<compile_context>
chip_gen: v6e
topology: v6e:2x2x1
jax: 0.10.0
libtpu: 0.0.40
codegen_flags: <defaults>
</compile_context>

<pallas_src>
import functools

import jax
import jax.numpy as jnp
from jax.experimental import pallas as pl
from jax.experimental.pallas import tpu as pltpu


def _round_up(n, m):
    return ((n + m - 1) // m) * m


def _lstm_reg_kernel(
    x_ref,        # (T*Bp, Ip)   flattened, padded input
    w_ih1_ref,    # (Ip, 4Hp)
    b1_ref,       # (1, 4Hp)     b_ih + b_hh of layer 1
    w_hh1_ref,    # (Hp, 4Hp)
    w_ih2_ref,    # (Hp, 4Hp)
    w_hh2_ref,    # (Hp, 4Hp)
    b2_ref,       # (1, 4Hp)
    w_reg_ref,    # (Hp, Op)
    b_reg_ref,    # (1, Op)
    out_ref,      # (T*Bp, Op)
    *, seq_len: int, batch_pad: int, hidden_pad: int,
):
    T, Bp, Hp = seq_len, batch_pad, hidden_pad

    # ---- Hoisted, non-recurrent layer-1 input projection (single MXU call). --
    x1 = (
        jnp.dot(x_ref[...], w_ih1_ref[...], preferred_element_type=jnp.float32)
        + b1_ref[...]
    )  # (T*Bp, 4Hp)

    # Load recurrent weights / bias once (hoisted out of the unrolled loop).
    w_hh1 = w_hh1_ref[...]
    w_ih2 = w_ih2_ref[...]
    w_hh2 = w_hh2_ref[...]
    b2 = b2_ref[...]

    def gate_split(g):
        # Hp == 128 => every slice is a full 128-lane tile (no masked lanes).
        i = jax.nn.sigmoid(g[:, 0 * Hp:1 * Hp])
        f = jax.nn.sigmoid(g[:, 1 * Hp:2 * Hp])
        c = jnp.tanh(g[:, 2 * Hp:3 * Hp])
        o = jax.nn.sigmoid(g[:, 3 * Hp:4 * Hp])
        return i, f, c, o

    zeros = jnp.zeros((Bp, Hp), jnp.float32)
    h1, c1, h2, c2 = zeros, zeros, zeros, zeros

    h2_all = []
    # Statically unrolled recurrence (seq_len is small); all slices static.
    for t in range(T):
        # Layer 1: input projection already computed, only the h @ W_hh matmul
        # remains in the serial path.
        g1 = x1[t * Bp:(t + 1) * Bp, :] + jnp.dot(
            h1, w_hh1, preferred_element_type=jnp.float32)
        i1, f1, gg1, o1 = gate_split(g1)
        c1 = f1 * c1 + i1 * gg1
        h1 = o1 * jnp.tanh(c1)

        # Layer 2 (stacked LSTM, no dropout at inference).
        g2 = (
            jnp.dot(h1, w_ih2, preferred_element_type=jnp.float32)
            + jnp.dot(h2, w_hh2, preferred_element_type=jnp.float32)
            + b2
        )
        i2, f2, gg2, o2 = gate_split(g2)
        c2 = f2 * c2 + i2 * gg2
        h2 = o2 * jnp.tanh(c2)
        h2_all.append(h2)

    # ---- Hoisted regression head: one batched matmul + one lane-dense store.
    h2_stack = jnp.concatenate(h2_all, axis=0)  # (T*Bp, Hp)
    y = (
        jnp.dot(h2_stack, w_reg_ref[...], preferred_element_type=jnp.float32)
        + b_reg_ref[...]
    )
    out_ref[...] = y


def lstm_reg_forward(x, params, *, hidden_size, output_size):
    """x: (seq_len, batch, input_size) f32 -> (seq_len, batch, output_size)."""
    seq_len, batch, input_size = x.shape
    H, O = hidden_size, output_size
    w_ih1, w_hh1, b1, w_ih2, w_hh2, b2, w_reg, b_reg = params

    # Hardware-friendly padded sizes (sublane=8, lane=128 for f32).
    Bp = max(8, _round_up(batch, 8))
    Hp = max(128, _round_up(H, 128))
    Ip = max(128, _round_up(input_size, 128))
    Op = max(128, _round_up(O, 128))

    def pad_to(a, shape):
        return jnp.pad(a, [(0, s - d) for d, s in zip(a.shape, shape)])

    def pad_gates(w, rows_pad):
        # (rows, 4*H) -> (rows_pad, 4*Hp); each PyTorch gate block (i,f,g,o)
        # is zero-padded from H to Hp so gate k lives at [k*Hp:(k+1)*Hp].
        rows = w.shape[0]
        w = w.reshape(rows, 4, H)
        w = jnp.pad(w, ((0, rows_pad - rows), (0, 0), (0, Hp - H)))
        return w.reshape(rows_pad, 4 * Hp)

    w_ih1_p = pad_gates(w_ih1, Ip)
    b1_p = pad_gates(b1, 1)
    w_hh1_p = pad_gates(w_hh1, Hp)
    w_ih2_p = pad_gates(w_ih2, Hp)
    w_hh2_p = pad_gates(w_hh2, Hp)
    b2_p = pad_gates(b2, 1)
    w_reg_p = pad_to(w_reg, (Hp, Op))
    b_reg_p = pad_to(b_reg, (1, Op))

    x_p = jnp.pad(x, ((0, 0), (0, Bp - batch), (0, Ip - input_size)))
    x_flat = x_p.reshape(seq_len * Bp, Ip)

    kernel = functools.partial(
        _lstm_reg_kernel, seq_len=seq_len, batch_pad=Bp, hidden_pad=Hp)

    vmem = lambda: pl.BlockSpec(memory_space=pltpu.MemorySpace.VMEM)
    y_flat = pl.pallas_call(
        kernel,
        out_shape=jax.ShapeDtypeStruct((seq_len * Bp, Op), jnp.float32),
        in_specs=[vmem() for _ in range(9)],
        out_specs=vmem(),
    )(x_flat, w_ih1_p, b1_p, w_hh1_p, w_ih2_p, w_hh2_p, b2_p, w_reg_p, b_reg_p)

    y = y_flat.reshape(seq_len, Bp, Op)
    return y[:, :batch, :O]


def lstm_reg_reference(x, params, *, hidden_size, output_size):
    """Pure-JAX reference with identical semantics (for correctness check)."""
    T, B, _ = x.shape
    H = hidden_size
    w_ih1, w_hh1, b1, w_ih2, w_hh2, b2, w_reg, b_reg = params

    def cell(x_t, h, c, w_ih, w_hh, b):
        g = x_t @ w_ih + h @ w_hh + b
        i = jax.nn.sigmoid(g[:, 0 * H:1 * H])
        f = jax.nn.sigmoid(g[:, 1 * H:2 * H])
        gg = jnp.tanh(g[:, 2 * H:3 * H])
        o = jax.nn.sigmoid(g[:, 3 * H:4 * H])
        c = f * c + i * gg
        h = o * jnp.tanh(c)
        return h, c

    h1 = c1 = h2 = c2 = jnp.zeros((B, H), jnp.float32)
    ys = []
    for t in range(T):
        h1, c1 = cell(x[t], h1, c1, w_ih1, w_hh1, b1)
        h2, c2 = cell(h1, h2, c2, w_ih2, w_hh2, b2)
        ys.append(h2 @ w_reg + b_reg)
    return jnp.stack(ys, axis=0)


def init_params(key, input_size, hidden_size, output_size):
    """Deterministic init mimicking PyTorch's U(-1/sqrt(H), 1/sqrt(H))."""
    H = hidden_size
    k = 1.0 / jnp.sqrt(jnp.float32(H))
    keys = jax.random.split(key, 10)
    u = lambda kk, shape: jax.random.uniform(kk, shape, jnp.float32, -k, k)

    # Layer 1 (input_size -> H), stored transposed for x @ W; gate order i,f,g,o.
    w_ih1 = u(keys[0], (input_size, 4 * H))
    w_hh1 = u(keys[1], (H, 4 * H))
    b1 = u(keys[2], (1, 4 * H)) + u(keys[3], (1, 4 * H))  # b_ih + b_hh
    # Layer 2 (H -> H).
    w_ih2 = u(keys[4], (H, 4 * H))
    w_hh2 = u(keys[5], (H, 4 * H))
    b2 = u(keys[6], (1, 4 * H)) + u(keys[7], (1, 4 * H))
    # Regression head (H -> output_size).
    w_reg = jax.random.uniform(keys[8], (H, output_size), jnp.float32, -k, k)
    b_reg = jax.random.uniform(keys[9], (1, output_size), jnp.float32, -k, k)
    return (w_ih1, w_hh1, b1, w_ih2, w_hh2, b2, w_reg, b_reg)


if __name__ == "__main__":
    input_size = 4
    hidden_size = 32
    output_size = 1
    seq_len = 8
    batch = 2

    key = jax.random.PRNGKey(0)
    k_x, k_p = jax.random.split(key)
    x = jax.random.normal(k_x, (seq_len, batch, input_size), jnp.float32)
    params = init_params(k_p, input_size, hidden_size, output_size)

    out = lstm_reg_forward(x, params, hidden_size=hidden_size,
                           output_size=output_size)
    out = jax.block_until_ready(out)

    ref = lstm_reg_reference(x, params, hidden_size=hidden_size,
                             output_size=output_size)
    ref = jax.block_until_ready(ref)

    assert out.shape == (seq_len, batch, output_size)
    assert jnp.all(jnp.isfinite(out))
    assert jnp.allclose(out, ref, atol=1e-3, rtol=1e-3), (
        float(jnp.max(jnp.abs(out - ref))))
    print("KERNEL_OK")
</pallas_src>

<mosaic_0001>
module attributes {stable_mosaic.version = 11 : i64} {
  func.func @_lstm_reg_kernel(%arg0: memref<64x128xf32, #tpu.memory_space<vmem>>, %arg1: memref<128x512xf32, #tpu.memory_space<vmem>>, %arg2: memref<1x512xf32, #tpu.memory_space<vmem>>, %arg3: memref<128x512xf32, #tpu.memory_space<vmem>>, %arg4: memref<128x512xf32, #tpu.memory_space<vmem>>, %arg5: memref<128x512xf32, #tpu.memory_space<vmem>>, %arg6: memref<1x512xf32, #tpu.memory_space<vmem>>, %arg7: memref<128x128xf32, #tpu.memory_space<vmem>>, %arg8: memref<1x128xf32, #tpu.memory_space<vmem>>, %arg9: memref<64x128xf32, #tpu.memory_space<vmem>>) attributes {dimension_semantics = [], scalar_prefetch = 0 : i64, scratch_operands = 0 : i64, tpu.core_type = #tpu.core_type<tc>} {
    %c0 = arith.constant 0 : index
    %c0_0 = arith.constant 0 : index
    %0 = vector.load %arg0[%c0, %c0_0] : memref<64x128xf32, #tpu.memory_space<vmem>>, vector<64x128xf32>
    %c0_1 = arith.constant 0 : index
    %c0_2 = arith.constant 0 : index
    %1 = vector.load %arg1[%c0_1, %c0_2] : memref<128x512xf32, #tpu.memory_space<vmem>>, vector<128x512xf32>
    %cst = arith.constant dense<0.000000e+00> : vector<64x512xf32>
    %2 = tpu.matmul %0, %1, %cst {dimension_numbers = #tpu.dot_dimension_numbers<[1], [0], [0], [1], [0, 0, 1, 1], [], []>} : vector<64x128xf32>, vector<128x512xf32>, vector<64x512xf32> -> vector<64x512xf32>
    %c0_3 = arith.constant 0 : index
    %c0_4 = arith.constant 0 : index
    %3 = vector.load %arg2[%c0_3, %c0_4] : memref<1x512xf32, #tpu.memory_space<vmem>>, vector<1x512xf32>
    %4 = vector.broadcast %3 : vector<1x512xf32> to vector<64x512xf32>
    %5 = arith.addf %2, %4 : vector<64x512xf32>
    %c0_5 = arith.constant 0 : index
    %c0_6 = arith.constant 0 : index
    %6 = vector.load %arg3[%c0_5, %c0_6] : memref<128x512xf32, #tpu.memory_space<vmem>>, vector<128x512xf32>
    %c0_7 = arith.constant 0 : index
    %c0_8 = arith.constant 0 : index
    %7 = vector.load %arg4[%c0_7, %c0_8] : memref<128x512xf32, #tpu.memory_space<vmem>>, vector<128x512xf32>
    %c0_9 = arith.constant 0 : index
    %c0_10 = arith.constant 0 : index
    %8 = vector.load %arg5[%c0_9, %c0_10] : memref<128x512xf32, #tpu.memory_space<vmem>>, vector<128x512xf32>
    %c0_11 = arith.constant 0 : index
    %c0_12 = arith.constant 0 : index
    %9 = vector.load %arg6[%c0_11, %c0_12] : memref<1x512xf32, #tpu.memory_space<vmem>>, vector<1x512xf32>
    %cst_13 = arith.constant 0.000000e+00 : f32
    %10 = vector.broadcast %cst_13 : f32 to vector<8x128xf32>
    %11 = vector.extract_strided_slice %5 {offsets = [0, 0], sizes = [8, 512], strides = [1, 1]} : vector<64x512xf32> to vector<8x512xf32>
    %cst_14 = arith.constant dense<0.000000e+00> : vector<8x512xf32>
    %12 = tpu.matmul %10, %6, %cst_14 {dimension_numbers = #tpu.dot_dimension_numbers<[1], [0], [0], [1], [0, 0, 1, 1], [], []>} : vector<8x128xf32>, vector<128x512xf32>, vector<8x512xf32> -> vector<8x512xf32>
    %13 = arith.addf %11, %12 : vector<8x512xf32>
    %14 = vector.extract_strided_slice %13 {offsets = [0, 0], sizes = [8, 128], strides = [1, 1]} : vector<8x512xf32> to vector<8x128xf32>
    %15 = arith.negf %14 : vector<8x128xf32>
    %16 = math.exp %15 : vector<8x128xf32>
    %cst_15 = arith.constant 1.000000e+00 : f32
    %17 = vector.broadcast %cst_15 : f32 to vector<8x128xf32>
    %18 = arith.addf %17, %16 : vector<8x128xf32>
    %19 = arith.divf %17, %18 : vector<8x128xf32>
    %20 = vector.extract_strided_slice %13 {offsets = [0, 128], sizes = [8, 128], strides = [1, 1]} : vector<8x512xf32> to vector<8x128xf32>
    %21 = arith.negf %20 : vector<8x128xf32>
    %22 = math.exp %21 : vector<8x128xf32>
    %cst_16 = arith.constant 1.000000e+00 : f32
    %23 = vector.broadcast %cst_16 : f32 to vector<8x128xf32>
    %24 = arith.addf %23, %22 : vector<8x128xf32>
    %25 = arith.divf %23, %24 : vector<8x128xf32>
    %26 = vector.extract_strided_slice %13 {offsets = [0, 256], sizes = [8, 128], strides = [1, 1]} : vector<8x512xf32> to vector<8x128xf32>
    %27 = math.tanh %26 : vector<8x128xf32>
    %28 = vector.extract_strided_slice %13 {offsets = [0, 384], sizes = [8, 128], strides = [1, 1]} : vector<8x512xf32> to vector<8x128xf32>
    %29 = arith.negf %28 : vector<8x128xf32>
    %30 = math.exp %29 : vector<8x128xf32>
    %cst_17 = arith.constant 1.000000e+00 : f32
    %31 = vector.broadcast %cst_17 : f32 to vector<8x128xf32>
    %32 = arith.addf %31, %30 : vector<8x128xf32>
    %33 = arith.divf %31, %32 : vector<8x128xf32>
    %34 = arith.mulf %25, %10 : vector<8x128xf32>
    %35 = arith.mulf %19, %27 : vector<8x128xf32>
    %36 = arith.addf %34, %35 : vector<8x128xf32>
    %37 = math.tanh %36 : vector<8x128xf32>
    %38 = arith.mulf %33, %37 : vector<8x128xf32>
    %cst_18 = arith.constant dense<0.000000e+00> : vector<8x512xf32>
    %39 = tpu.matmul %38, %7, %cst_18 {dimension_numbers = #tpu.dot_dimension_numbers<[1], [0], [0], [1], [0, 0, 1, 1], [], []>} : vector<8x128xf32>, vector<128x512xf32>, vector<8x512xf32> -> vector<8x512xf32>
    %cst_19 = arith.constant dense<0.000000e+00> : vector<8x512xf32>
    %40 = tpu.matmul %10, %8, %cst_19 {dimension_numbers = #tpu.dot_dimension_numbers<[1], [0], [0], [1], [0, 0, 1, 1], [], []>} : vector<8x128xf32>, vector<128x512xf32>, vector<8x512xf32> -> vector<8x512xf32>
    %41 = arith.addf %39, %40 : vector<8x512xf32>
    %42 = vector.broadcast %9 : vector<1x512xf32> to vector<8x512xf32>
    %43 = arith.addf %41, %42 : vector<8x512xf32>
    %44 = vector.extract_strided_slice %43 {offsets = [0, 0], sizes = [8, 128], strides = [1, 1]} : vector<8x512xf32> to vector<8x128xf32>
    %45 = arith.negf %44 : vector<8x128xf32>
    %46 = math.exp %45 : vector<8x128xf32>
    %cst_20 = arith.constant 1.000000e+00 : f32
    %47 = vector.broadcast %cst_20 : f32 to vector<8x128xf32>
    %48 = arith.addf %47, %46 : vector<8x128xf32>
    %49 = arith.divf %47, %48 : vector<8x128xf32>
    %50 = vector.extract_strided_slice %43 {offsets = [0, 128], sizes = [8, 128], strides = [1, 1]} : vector<8x512xf32> to vector<8x128xf32>
    %51 = arith.negf %50 : vector<8x128xf32>
    %52 = math.exp %51 : vector<8x128xf32>
    %cst_21 = arith.constant 1.000000e+00 : f32
    %53 = vector.broadcast %cst_21 : f32 to vector<8x128xf32>
    %54 = arith.addf %53, %52 : vector<8x128xf32>
    %55 = arith.divf %53, %54 : vector<8x128xf32>
    %56 = vector.extract_strided_slice %43 {offsets = [0, 256], sizes = [8, 128], strides = [1, 1]} : vector<8x512xf32> to vector<8x128xf32>
    %57 = math.tanh %56 : vector<8x128xf32>
    %58 = vector.extract_strided_slice %43 {offsets = [0, 384], sizes = [8, 128], strides = [1, 1]} : vector<8x512xf32> to vector<8x128xf32>
    %59 = arith.negf %58 : vector<8x128xf32>
    %60 = math.exp %59 : vector<8x128xf32>
    %cst_22 = arith.constant 1.000000e+00 : f32
    %61 = vector.broadcast %cst_22 : f32 to vector<8x128xf32>
    %62 = arith.addf %61, %60 : vector<8x128xf32>
    %63 = arith.divf %61, %62 : vector<8x128xf32>
    %64 = arith.mulf %55, %10 : vector<8x128xf32>
    %65 = arith.mulf %49, %57 : vector<8x128xf32>
    %66 = arith.addf %64, %65 : vector<8x128xf32>
    %67 = math.tanh %66 : vector<8x128xf32>
    %68 = arith.mulf %63, %67 : vector<8x128xf32>
    %69 = vector.extract_strided_slice %5 {offsets = [8, 0], sizes = [8, 512], strides = [1, 1]} : vector<64x512xf32> to vector<8x512xf32>
    %cst_23 = arith.constant dense<0.000000e+00> : vector<8x512xf32>
    %70 = tpu.matmul %38, %6, %cst_23 {dimension_numbers = #tpu.dot_dimension_numbers<[1], [0], [0], [1], [0, 0, 1, 1], [], []>} : vector<8x128xf32>, vector<128x512xf32>, vector<8x512xf32> -> vector<8x512xf32>
    %71 = arith.addf %69, %70 : vector<8x512xf32>
    %72 = vector.extract_strided_slice %71 {offsets = [0, 0], sizes = [8, 128], strides = [1, 1]} : vector<8x512xf32> to vector<8x128xf32>
    %73 = arith.negf %72 : vector<8x128xf32>
    %74 = math.exp %73 : vector<8x128xf32>
    %cst_24 = arith.constant 1.000000e+00 : f32
    %75 = vector.broadcast %cst_24 : f32 to vector<8x128xf32>
    %76 = arith.addf %75, %74 : vector<8x128xf32>
    %77 = arith.divf %75, %76 : vector<8x128xf32>
    %78 = vector.extract_strided_slice %71 {offsets = [0, 128], sizes = [8, 128], strides = [1, 1]} : vector<8x512xf32> to vector<8x128xf32>
    %79 = arith.negf %78 : vector<8x128xf32>
    %80 = math.exp %79 : vector<8x128xf32>
    %cst_25 = arith.constant 1.000000e+00 : f32
    %81 = vector.broadcast %cst_25 : f32 to vector<8x128xf32>
    %82 = arith.addf %81, %80 : vector<8x128xf32>
    %83 = arith.divf %81, %82 : vector<8x128xf32>
    %84 = vector.extract_strided_slice %71 {offsets = [0, 256], sizes = [8, 128], strides = [1, 1]} : vector<8x512xf32> to vector<8x128xf32>
    %85 = math.tanh %84 : vector<8x128xf32>
    %86 = vector.extract_strided_slice %71 {offsets = [0, 384], sizes = [8, 128], strides = [1, 1]} : vector<8x512xf32> to vector<8x128xf32>
    %87 = arith.negf %86 : vector<8x128xf32>
    %88 = math.exp %87 : vector<8x128xf32>
    %cst_26 = arith.constant 1.000000e+00 : f32
    %89 = vector.broadcast %cst_26 : f32 to vector<8x128xf32>
    %90 = arith.addf %89, %88 : vector<8x128xf32>
    %91 = arith.divf %89, %90 : vector<8x128xf32>
    %92 = arith.mulf %83, %36 : vector<8x128xf32>
    %93 = arith.mulf %77, %85 : vector<8x128xf32>
    %94 = arith.addf %92, %93 : vector<8x128xf32>
    %95 = math.tanh %94 : vector<8x128xf32>
    %96 = arith.mulf %91, %95 : vector<8x128xf32>
    %cst_27 = arith.constant dense<0.000000e+00> : vector<8x512xf32>
    %97 = tpu.matmul %96, %7, %cst_27 {dimension_numbers = #tpu.dot_dimension_numbers<[1], [0], [0], [1], [0, 0, 1, 1], [], []>} : vector<8x128xf32>, vector<128x512xf32>, vector<8x512xf32> -> vector<8x512xf32>
    %cst_28 = arith.constant dense<0.000000e+00> : vector<8x512xf32>
    %98 = tpu.matmul %68, %8, %cst_28 {dimension_numbers = #tpu.dot_dimension_numbers<[1], [0], [0], [1], [0, 0, 1, 1], [], []>} : vector<8x128xf32>, vector<128x512xf32>, vector<8x512xf32> -> vector<8x512xf32>
    %99 = arith.addf %97, %98 : vector<8x512xf32>
    %100 = vector.broadcast %9 : vector<1x512xf32> to vector<8x512xf32>
    %101 = arith.addf %99, %100 : vector<8x512xf32>
    %102 = vector.extract_strided_slice %101 {offsets = [0, 0], sizes = [8, 128], strides = [1, 1]} : vector<8x512xf32> to vector<8x128xf32>
    %103 = arith.negf %102 : vector<8x128xf32>
    %104 = math.exp %103 : vector<8x128xf32>
    %cst_29 = arith.constant 1.000000e+00 : f32
    %105 = vector.broadcast %cst_29 : f32 to vector<8x128xf32>
    %106 = arith.addf %105, %104 : vector<8x128xf32>
    %107 = arith.divf %105, %106 : vector<8x128xf32>
    %108 = vector.extract_strided_slice %101 {offsets = [0, 128], sizes = [8, 128], strides = [1, 1]} : vector<8x512xf32> to vector<8x128xf32>
    %109 = arith.negf %108 : vector<8x128xf32>
    %110 = math.exp %109 : vector<8x128xf32>
    %cst_30 = arith.constant 1.000000e+00 : f32
    %111 = vector.broadcast %cst_30 : f32 to vector<8x128xf32>
    %112 = arith.addf %111, %110 : vector<8x128xf32>
    %113 = arith.divf %111, %112 : vector<8x128xf32>
    %114 = vector.extract_strided_slice %101 {offsets = [0, 256], sizes = [8, 128], strides = [1, 1]} : vector<8x512xf32> to vector<8x128xf32>
    %115 = math.tanh %114 : vector<8x128xf32>
    %116 = vector.extract_strided_slice %101 {offsets = [0, 384], sizes = [8, 128], strides = [1, 1]} : vector<8x512xf32> to vector<8x128xf32>
    %117 = arith.negf %116 : vector<8x128xf32>
    %118 = math.exp %117 : vector<8x128xf32>
    %cst_31 = arith.constant 1.000000e+00 : f32
    %119 = vector.broadcast %cst_31 : f32 to vector<8x128xf32>
    %120 = arith.addf %119, %118 : vector<8x128xf32>
    %121 = arith.divf %119, %120 : vector<8x128xf32>
    %122 = arith.mulf %113, %66 : vector<8x128xf32>
    %123 = arith.mulf %107, %115 : vector<8x128xf32>
    %124 = arith.addf %122, %123 : vector<8x128xf32>
    %125 = math.tanh %124 : vector<8x128xf32>
    %126 = arith.mulf %121, %125 : vector<8x128xf32>
    %127 = vector.extract_strided_slice %5 {offsets = [16, 0], sizes = [8, 512], strides = [1, 1]} : vector<64x512xf32> to vector<8x512xf32>
    %cst_32 = arith.constant dense<0.000000e+00> : vector<8x512xf32>
    %128 = tpu.matmul %96, %6, %cst_32 {dimension_numbers = #tpu.dot_dimension_numbers<[1], [0], [0], [1], [0, 0, 1, 1], [], []>} : vector<8x128xf32>, vector<128x512xf32>, vector<8x512xf32> -> vector<8x512xf32>
    %129 = arith.addf %127, %128 : vector<8x512xf32>
    %130 = vector.extract_strided_slice %129 {offsets = [0, 0], sizes = [8, 128], strides = [1, 1]} : vector<8x512xf32> to vector<8x128xf32>
    %131 = arith.negf %130 : vector<8x128xf32>
    %132 = math.exp %131 : vector<8x128xf32>
    %cst_33 = arith.constant 1.000000e+00 : f32
    %133 = vector.broadcast %cst_33 : f32 to vector<8x128xf32>
    %134 = arith.addf %133, %132 : vector<8x128xf32>
    %135 = arith.divf %133, %134 : vector<8x128xf32>
    %136 = vector.extract_strided_slice %129 {offsets = [0, 128], sizes = [8, 128], strides = [1, 1]} : vector<8x512xf32> to vector<8x128xf32>
    %137 = arith.negf %136 : vector<8x128xf32>
    %138 = math.exp %137 : vector<8x128xf32>
    %cst_34 = arith.constant 1.000000e+00 : f32
    %139 = vector.broadcast %cst_34 : f32 to vector<8x128xf32>
    %140 = arith.addf %139, %138 : vector<8x128xf32>
    %141 = arith.divf %139, %140 : vector<8x128xf32>
    %142 = vector.extract_strided_slice %129 {offsets = [0, 256], sizes = [8, 128], strides = [1, 1]} : vector<8x512xf32> to vector<8x128xf32>
    %143 = math.tanh %142 : vector<8x128xf32>
    %144 = vector.extract_strided_slice %129 {offsets = [0, 384], sizes = [8, 128], strides = [1, 1]} : vector<8x512xf32> to vector<8x128xf32>
    %145 = arith.negf %144 : vector<8x128xf32>
    %146 = math.exp %145 : vector<8x128xf32>
    %cst_35 = arith.constant 1.000000e+00 : f32
    %147 = vector.broadcast %cst_35 : f32 to vector<8x128xf32>
    %148 = arith.addf %147, %146 : vector<8x128xf32>
    %149 = arith.divf %147, %148 : vector<8x128xf32>
    %150 = arith.mulf %141, %94 : vector<8x128xf32>
    %151 = arith.mulf %135, %143 : vector<8x128xf32>
    %152 = arith.addf %150, %151 : vector<8x128xf32>
    %153 = math.tanh %152 : vector<8x128xf32>
    %154 = arith.mulf %149, %153 : vector<8x128xf32>
    %cst_36 = arith.constant dense<0.000000e+00> : vector<8x512xf32>
    %155 = tpu.matmul %154, %7, %cst_36 {dimension_numbers = #tpu.dot_dimension_numbers<[1], [0], [0], [1], [0, 0, 1, 1], [], []>} : vector<8x128xf32>, vector<128x512xf32>, vector<8x512xf32> -> vector<8x512xf32>
    %cst_37 = arith.constant dense<0.000000e+00> : vector<8x512xf32>
    %156 = tpu.matmul %126, %8, %cst_37 {dimension_numbers = #tpu.dot_dimension_numbers<[1], [0], [0], [1], [0, 0, 1, 1], [], []>} : vector<8x128xf32>, vector<128x512xf32>, vector<8x512xf32> -> vector<8x512xf32>
    %157 = arith.addf %155, %156 : vector<8x512xf32>
    %158 = vector.broadcast %9 : vector<1x512xf32> to vector<8x512xf32>
    %159 = arith.addf %157, %158 : vector<8x512xf32>
    %160 = vector.extract_strided_slice %159 {offsets = [0, 0], sizes = [8, 128], strides = [1, 1]} : vector<8x512xf32> to vector<8x128xf32>
    %161 = arith.negf %160 : vector<8x128xf32>
    %162 = math.exp %161 : vector<8x128xf32>
    %cst_38 = arith.constant 1.000000e+00 : f32
    %163 = vector.broadcast %cst_38 : f32 to vector<8x128xf32>
    %164 = arith.addf %163, %162 : vector<8x128xf32>
    %165 = arith.divf %163, %164 : vector<8x128xf32>
    %166 = vector.extract_strided_slice %159 {offsets = [0, 128], sizes = [8, 128], strides = [1, 1]} : vector<8x512xf32> to vector<8x128xf32>
    %167 = arith.negf %166 : vector<8x128xf32>
    %168 = math.exp %167 : vector<8x128xf32>
    %cst_39 = arith.constant 1.000000e+00 : f32
    %169 = vector.broadcast %cst_39 : f32 to vector<8x128xf32>
    %170 = arith.addf %169, %168 : vector<8x128xf32>
    %171 = arith.divf %169, %170 : vector<8x128xf32>
    %172 = vector.extract_strided_slice %159 {offsets = [0, 256], sizes = [8, 128], strides = [1, 1]} : vector<8x512xf32> to vector<8x128xf32>
    %173 = math.tanh %172 : vector<8x128xf32>
    %174 = vector.extract_strided_slice %159 {offsets = [0, 384], sizes = [8, 128], strides = [1, 1]} : vector<8x512xf32> to vector<8x128xf32>
    %175 = arith.negf %174 : vector<8x128xf32>
    %176 = math.exp %175 : vector<8x128xf32>
    %cst_40 = arith.constant 1.000000e+00 : f32
    %177 = vector.broadcast %cst_40 : f32 to vector<8x128xf32>
    %178 = arith.addf %177, %176 : vector<8x128xf32>
    %179 = arith.divf %177, %178 : vector<8x128xf32>
    %180 = arith.mulf %171, %124 : vector<8x128xf32>
    %181 = arith.mulf %165, %173 : vector<8x128xf32>
    %182 = arith.addf %180, %181 : vector<8x128xf32>
    %183 = math.tanh %182 : vector<8x128xf32>
    %184 = arith.mulf %179, %183 : vector<8x128xf32>
    %185 = vector.extract_strided_slice %5 {offsets = [24, 0], sizes = [8, 512], strides = [1, 1]} : vector<64x512xf32> to vector<8x512xf32>
    %cst_41 = arith.constant dense<0.000000e+00> : vector<8x512xf32>
    %186 = tpu.matmul %154, %6, %cst_41 {dimension_numbers = #tpu.dot_dimension_numbers<[1], [0], [0], [1], [0, 0, 1, 1], [], []>} : vector<8x128xf32>, vector<128x512xf32>, vector<8x512xf32> -> vector<8x512xf32>
    %187 = arith.addf %185, %186 : vector<8x512xf32>
    %188 = vector.extract_strided_slice %187 {offsets = [0, 0], sizes = [8, 128], strides = [1, 1]} : vector<8x512xf32> to vector<8x128xf32>
    %189 = arith.negf %188 : vector<8x128xf32>
    %190 = math.exp %189 : vector<8x128xf32>
    %cst_42 = arith.constant 1.000000e+00 : f32
    %191 = vector.broadcast %cst_42 : f32 to vector<8x128xf32>
    %192 = arith.addf %191, %190 : vector<8x128xf32>
    %193 = arith.divf %191, %192 : vector<8x128xf32>
    %194 = vector.extract_strided_slice %187 {offsets = [0, 128], sizes = [8, 128], strides = [1, 1]} : vector<8x512xf32> to vector<8x128xf32>
    %195 = arith.negf %194 : vector<8x128xf32>
    %196 = math.exp %195 : vector<8x128xf32>
    %cst_43 = arith.constant 1.000000e+00 : f32
    %197 = vector.broadcast %cst_43 : f32 to vector<8x128xf32>
    %198 = arith.addf %197, %196 : vector<8x128xf32>
    %199 = arith.divf %197, %198 : vector<8x128xf32>
    %200 = vector.extract_strided_slice %187 {offsets = [0, 256], sizes = [8, 128], strides = [1, 1]} : vector<8x512xf32> to vector<8x128xf32>
    %201 = math.tanh %200 : vector<8x128xf32>
    %202 = vector.extract_strided_slice %187 {offsets = [0, 384], sizes = [8, 128], strides = [1, 1]} : vector<8x512xf32> to vector<8x128xf32>
    %203 = arith.negf %202 : vector<8x128xf32>
    %204 = math.exp %203 : vector<8x128xf32>
    %cst_44 = arith.constant 1.000000e+00 : f32
    %205 = vector.broadcast %cst_44 : f32 to vector<8x128xf32>
    %206 = arith.addf %205, %204 : vector<8x128xf32>
    %207 = arith.divf %205, %206 : vector<8x128xf32>
    %208 = arith.mulf %199, %152 : vector<8x128xf32>
    %209 = arith.mulf %193, %201 : vector<8x128xf32>
    %210 = arith.addf %208, %209 : vector<8x128xf32>
    %211 = math.tanh %210 : vector<8x128xf32>
    %212 = arith.mulf %207, %211 : vector<8x128xf32>
    %cst_45 = arith.constant dense<0.000000e+00> : vector<8x512xf32>
    %213 = tpu.matmul %212, %7, %cst_45 {dimension_numbers = #tpu.dot_dimension_numbers<[1], [0], [0], [1], [0, 0, 1, 1], [], []>} : vector<8x128xf32>, vector<128x512xf32>, vector<8x512xf32> -> vector<8x512xf32>
    %cst_46 = arith.constant dense<0.000000e+00> : vector<8x512xf32>
    %214 = tpu.matmul %184, %8, %cst_46 {dimension_numbers = #tpu.dot_dimension_numbers<[1], [0], [0], [1], [0, 0, 1, 1], [], []>} : vector<8x128xf32>, vector<128x512xf32>, vector<8x512xf32> -> vector<8x512xf32>
    %215 = arith.addf %213, %214 : vector<8x512xf32>
    %216 = vector.broadcast %9 : vector<1x512xf32> to vector<8x512xf32>
    %217 = arith.addf %215, %216 : vector<8x512xf32>
    %218 = vector.extract_strided_slice %217 {offsets = [0, 0], sizes = [8, 128], strides = [1, 1]} : vector<8x512xf32> to vector<8x128xf32>
    %219 = arith.negf %218 : vector<8x128xf32>
    %220 = math.exp %219 : vector<8x128xf32>
    %cst_47 = arith.constant 1.000000e+00 : f32
    %221 = vector.broadcast %cst_47 : f32 to vector<8x128xf32>
    %222 = arith.addf %221, %220 : vector<8x128xf32>
    %223 = arith.divf %221, %222 : vector<8x128xf32>
    %224 = vector.extract_strided_slice %217 {offsets = [0, 128], sizes = [8, 128], strides = [1, 1]} : vector<8x512xf32> to vector<8x128xf32>
    %225 = arith.negf %224 : vector<8x128xf32>
    %226 = math.exp %225 : vector<8x128xf32>
    %cst_48 = arith.constant 1.000000e+00 : f32
    %227 = vector.broadcast %cst_48 : f32 to vector<8x128xf32>
    %228 = arith.addf %227, %226 : vector<8x128xf32>
    %229 = arith.divf %227, %228 : vector<8x128xf32>
    %230 = vector.extract_strided_slice %217 {offsets = [0, 256], sizes = [8, 128], strides = [1, 1]} : vector<8x512xf32> to vector<8x128xf32>
    %231 = math.tanh %230 : vector<8x128xf32>
    %232 = vector.extract_strided_slice %217 {offsets = [0, 384], sizes = [8, 128], strides = [1, 1]} : vector<8x512xf32> to vector<8x128xf32>
    %233 = arith.negf %232 : vector<8x128xf32>
    %234 = math.exp %233 : vector<8x128xf32>
    %cst_49 = arith.constant 1.000000e+00 : f32
    %235 = vector.broadcast %cst_49 : f32 to vector<8x128xf32>
    %236 = arith.addf %235, %234 : vector<8x128xf32>
    %237 = arith.divf %235, %236 : vector<8x128xf32>
    %238 = arith.mulf %229, %182 : vector<8x128xf32>
    %239 = arith.mulf %223, %231 : vector<8x128xf32>
    %240 = arith.addf %238, %239 : vector<8x128xf32>
    %241 = math.tanh %240 : vector<8x128xf32>
    %242 = arith.mulf %237, %241 : vector<8x128xf32>
    %243 = vector.extract_strided_slice %5 {offsets = [32, 0], sizes = [8, 512], strides = [1, 1]} : vector<64x512xf32> to vector<8x512xf32>
    %cst_50 = arith.constant dense<0.000000e+00> : vector<8x512xf32>
    %244 = tpu.matmul %212, %6, %cst_50 {dimension_numbers = #tpu.dot_dimension_numbers<[1], [0], [0], [1], [0, 0, 1, 1], [], []>} : vector<8x128xf32>, vector<128x512xf32>, vector<8x512xf32> -> vector<8x512xf32>
    %245 = arith.addf %243, %244 : vector<8x512xf32>
    %246 = vector.extract_strided_slice %245 {offsets = [0, 0], sizes = [8, 128], strides = [1, 1]} : vector<8x512xf32> to vector<8x128xf32>
    %247 = arith.negf %246 : vector<8x128xf32>
    %248 = math.exp %247 : vector<8x128xf32>
    %cst_51 = arith.constant 1.000000e+00 : f32
    %249 = vector.broadcast %cst_51 : f32 to vector<8x128xf32>
    %250 = arith.addf %249, %248 : vector<8x128xf32>
    %251 = arith.divf %249, %250 : vector<8x128xf32>
    %252 = vector.extract_strided_slice %245 {offsets = [0, 128], sizes = [8, 128], strides = [1, 1]} : vector<8x512xf32> to vector<8x128xf32>
    %253 = arith.negf %252 : vector<8x128xf32>
    %254 = math.exp %253 : vector<8x128xf32>
    %cst_52 = arith.constant 1.000000e+00 : f32
    %255 = vector.broadcast %cst_52 : f32 to vector<8x128xf32>
    %256 = arith.addf %255, %254 : vector<8x128xf32>
    %257 = arith.divf %255, %256 : vector<8x128xf32>
    %258 = vector.extract_strided_slice %245 {offsets = [0, 256], sizes = [8, 128], strides = [1, 1]} : vector<8x512xf32> to vector<8x128xf32>
    %259 = math.tanh %258 : vector<8x128xf32>
    %260 = vector.extract_strided_slice %245 {offsets = [0, 384], sizes = [8, 128], strides = [1, 1]} : vector<8x512xf32> to vector<8x128xf32>
    %261 = arith.negf %260 : vector<8x128xf32>
    %262 = math.exp %261 : vector<8x128xf32>
    %cst_53 = arith.constant 1.000000e+00 : f32
    %263 = vector.broadcast %cst_53 : f32 to vector<8x128xf32>
    %264 = arith.addf %263, %262 : vector<8x128xf32>
    %265 = arith.divf %263, %264 : vector<8x128xf32>
    %266 = arith.mulf %257, %210 : vector<8x128xf32>
    %267 = arith.mulf %251, %259 : vector<8x128xf32>
    %268 = arith.addf %266, %267 : vector<8x128xf32>
    %269 = math.tanh %268 : vector<8x128xf32>
    %270 = arith.mulf %265, %269 : vector<8x128xf32>
    %cst_54 = arith.constant dense<0.000000e+00> : vector<8x512xf32>
    %271 = tpu.matmul %270, %7, %cst_54 {dimension_numbers = #tpu.dot_dimension_numbers<[1], [0], [0], [1], [0, 0, 1, 1], [], []>} : vector<8x128xf32>, vector<128x512xf32>, vector<8x512xf32> -> vector<8x512xf32>
    %cst_55 = arith.constant dense<0.000000e+00> : vector<8x512xf32>
    %272 = tpu.matmul %242, %8, %cst_55 {dimension_numbers = #tpu.dot_dimension_numbers<[1], [0], [0], [1], [0, 0, 1, 1], [], []>} : vector<8x128xf32>, vector<128x512xf32>, vector<8x512xf32> -> vector<8x512xf32>
    %273 = arith.addf %271, %272 : vector<8x512xf32>
    %274 = vector.broadcast %9 : vector<1x512xf32> to vector<8x512xf32>
    %275 = arith.addf %273, %274 : vector<8x512xf32>
    %276 = vector.extract_strided_slice %275 {offsets = [0, 0], sizes = [8, 128], strides = [1, 1]} : vector<8x512xf32> to vector<8x128xf32>
    %277 = arith.negf %276 : vector<8x128xf32>
    %278 = math.exp %277 : vector<8x128xf32>
    %cst_56 = arith.constant 1.000000e+00 : f32
    %279 = vector.broadcast %cst_56 : f32 to vector<8x128xf32>
    %280 = arith.addf %279, %278 : vector<8x128xf32>
    %281 = arith.divf %279, %280 : vector<8x128xf32>
    %282 = vector.extract_strided_slice %275 {offsets = [0, 128], sizes = [8, 128], strides = [1, 1]} : vector<8x512xf32> to vector<8x128xf32>
    %283 = arith.negf %282 : vector<8x128xf32>
    %284 = math.exp %283 : vector<8x128xf32>
    %cst_57 = arith.constant 1.000000e+00 : f32
    %285 = vector.broadcast %cst_57 : f32 to vector<8x128xf32>
    %286 = arith.addf %285, %284 : vector<8x128xf32>
    %287 = arith.divf %285, %286 : vector<8x128xf32>
    %288 = vector.extract_strided_slice %275 {offsets = [0, 256], sizes = [8, 128], strides = [1, 1]} : vector<8x512xf32> to vector<8x128xf32>
    %289 = math.tanh %288 : vector<8x128xf32>
    %290 = vector.extract_strided_slice %275 {offsets = [0, 384], sizes = [8, 128], strides = [1, 1]} : vector<8x512xf32> to vector<8x128xf32>
    %291 = arith.negf %290 : vector<8x128xf32>
    %292 = math.exp %291 : vector<8x128xf32>
    %cst_58 = arith.constant 1.000000e+00 : f32
    %293 = vector.broadcast %cst_58 : f32 to vector<8x128xf32>
    %294 = arith.addf %293, %292 : vector<8x128xf32>
    %295 = arith.divf %293, %294 : vector<8x128xf32>
    %296 = arith.mulf %287, %240 : vector<8x128xf32>
    %297 = arith.mulf %281, %289 : vector<8x128xf32>
    %298 = arith.addf %296, %297 : vector<8x128xf32>
    %299 = math.tanh %298 : vector<8x128xf32>
    %300 = arith.mulf %295, %299 : vector<8x128xf32>
    %301 = vector.extract_strided_slice %5 {offsets = [40, 0], sizes = [8, 512], strides = [1, 1]} : vector<64x512xf32> to vector<8x512xf32>
    %cst_59 = arith.constant dense<0.000000e+00> : vector<8x512xf32>
    %302 = tpu.matmul %270, %6, %cst_59 {dimension_numbers = #tpu.dot_dimension_numbers<[1], [0], [0], [1], [0, 0, 1, 1], [], []>} : vector<8x128xf32>, vector<128x512xf32>, vector<8x512xf32> -> vector<8x512xf32>
    %303 = arith.addf %301, %302 : vector<8x512xf32>
    %304 = vector.extract_strided_slice %303 {offsets = [0, 0], sizes = [8, 128], strides = [1, 1]} : vector<8x512xf32> to vector<8x128xf32>
    %305 = arith.negf %304 : vector<8x128xf32>
    %306 = math.exp %305 : vector<8x128xf32>
    %cst_60 = arith.constant 1.000000e+00 : f32
    %307 = vector.broadcast %cst_60 : f32 to vector<8x128xf32>
    %308 = arith.addf %307, %306 : vector<8x128xf32>
    %309 = arith.divf %307, %308 : vector<8x128xf32>
    %310 = vector.extract_strided_slice %303 {offsets = [0, 128], sizes = [8, 128], strides = [1, 1]} : vector<8x512xf32> to vector<8x128xf32>
    %311 = arith.negf %310 : vector<8x128xf32>
    %312 = math.exp %311 : vector<8x128xf32>
    %cst_61 = arith.constant 1.000000e+00 : f32
    %313 = vector.broadcast %cst_61 : f32 to vector<8x128xf32>
    %314 = arith.addf %313, %312 : vector<8x128xf32>
    %315 = arith.divf %313, %314 : vector<8x128xf32>
    %316 = vector.extract_strided_slice %303 {offsets = [0, 256], sizes = [8, 128], strides = [1, 1]} : vector<8x512xf32> to vector<8x128xf32>
    %317 = math.tanh %316 : vector<8x128xf32>
    %318 = vector.extract_strided_slice %303 {offsets = [0, 384], sizes = [8, 128], strides = [1, 1]} : vector<8x512xf32> to vector<8x128xf32>
    %319 = arith.negf %318 : vector<8x128xf32>
    %320 = math.exp %319 : vector<8x128xf32>
    %cst_62 = arith.constant 1.000000e+00 : f32
    %321 = vector.broadcast %cst_62 : f32 to vector<8x128xf32>
    %322 = arith.addf %321, %320 : vector<8x128xf32>
    %323 = arith.divf %321, %322 : vector<8x128xf32>
    %324 = arith.mulf %315, %268 : vector<8x128xf32>
    %325 = arith.mulf %309, %317 : vector<8x128xf32>
    %326 = arith.addf %324, %325 : vector<8x128xf32>
    %327 = math.tanh %326 : vector<8x128xf32>
    %328 = arith.mulf %323, %327 : vector<8x128xf32>
    %cst_63 = arith.constant dense<0.000000e+00> : vector<8x512xf32>
    %329 = tpu.matmul %328, %7, %cst_63 {dimension_numbers = #tpu.dot_dimension_numbers<[1], [0], [0], [1], [0, 0, 1, 1], [], []>} : vector<8x128xf32>, vector<128x512xf32>, vector<8x512xf32> -> vector<8x512xf32>
    %cst_64 = arith.constant dense<0.000000e+00> : vector<8x512xf32>
    %330 = tpu.matmul %300, %8, %cst_64 {dimension_numbers = #tpu.dot_dimension_numbers<[1], [0], [0], [1], [0, 0, 1, 1], [], []>} : vector<8x128xf32>, vector<128x512xf32>, vector<8x512xf32> -> vector<8x512xf32>
    %331 = arith.addf %329, %330 : vector<8x512xf32>
    %332 = vector.broadcast %9 : vector<1x512xf32> to vector<8x512xf32>
    %333 = arith.addf %331, %332 : vector<8x512xf32>
    %334 = vector.extract_strided_slice %333 {offsets = [0, 0], sizes = [8, 128], strides = [1, 1]} : vector<8x512xf32> to vector<8x128xf32>
    %335 = arith.negf %334 : vector<8x128xf32>
    %336 = math.exp %335 : vector<8x128xf32>
    %cst_65 = arith.constant 1.000000e+00 : f32
    %337 = vector.broadcast %cst_65 : f32 to vector<8x128xf32>
    %338 = arith.addf %337, %336 : vector<8x128xf32>
    %339 = arith.divf %337, %338 : vector<8x128xf32>
    %340 = vector.extract_strided_slice %333 {offsets = [0, 128], sizes = [8, 128], strides = [1, 1]} : vector<8x512xf32> to vector<8x128xf32>
    %341 = arith.negf %340 : vector<8x128xf32>
    %342 = math.exp %341 : vector<8x128xf32>
    %cst_66 = arith.constant 1.000000e+00 : f32
    %343 = vector.broadcast %cst_66 : f32 to vector<8x128xf32>
    %344 = arith.addf %343, %342 : vector<8x128xf32>
    %345 = arith.divf %343, %344 : vector<8x128xf32>
    %346 = vector.extract_strided_slice %333 {offsets = [0, 256], sizes = [8, 128], strides = [1, 1]} : vector<8x512xf32> to vector<8x128xf32>
    %347 = math.tanh %346 : vector<8x128xf32>
    %348 = vector.extract_strided_slice %333 {offsets = [0, 384], sizes = [8, 128], strides = [1, 1]} : vector<8x512xf32> to vector<8x128xf32>
    %349 = arith.negf %348 : vector<8x128xf32>
    %350 = math.exp %349 : vector<8x128xf32>
    %cst_67 = arith.constant 1.000000e+00 : f32
    %351 = vector.broadcast %cst_67 : f32 to vector<8x128xf32>
    %352 = arith.addf %351, %350 : vector<8x128xf32>
    %353 = arith.divf %351, %352 : vector<8x128xf32>
    %354 = arith.mulf %345, %298 : vector<8x128xf32>
    %355 = arith.mulf %339, %347 : vector<8x128xf32>
    %356 = arith.addf %354, %355 : vector<8x128xf32>
    %357 = math.tanh %356 : vector<8x128xf32>
    %358 = arith.mulf %353, %357 : vector<8x128xf32>
    %359 = vector.extract_strided_slice %5 {offsets = [48, 0], sizes = [8, 512], strides = [1, 1]} : vector<64x512xf32> to vector<8x512xf32>
    %cst_68 = arith.constant dense<0.000000e+00> : vector<8x512xf32>
    %360 = tpu.matmul %328, %6, %cst_68 {dimension_numbers = #tpu.dot_dimension_numbers<[1], [0], [0], [1], [0, 0, 1, 1], [], []>} : vector<8x128xf32>, vector<128x512xf32>, vector<8x512xf32> -> vector<8x512xf32>
    %361 = arith.addf %359, %360 : vector<8x512xf32>
    %362 = vector.extract_strided_slice %361 {offsets = [0, 0], sizes = [8, 128], strides = [1, 1]} : vector<8x512xf32> to vector<8x128xf32>
    %363 = arith.negf %362 : vector<8x128xf32>
    %364 = math.exp %363 : vector<8x128xf32>
    %cst_69 = arith.constant 1.000000e+00 : f32
    %365 = vector.broadcast %cst_69 : f32 to vector<8x128xf32>
    %366 = arith.addf %365, %364 : vector<8x128xf32>
    %367 = arith.divf %365, %366 : vector<8x128xf32>
    %368 = vector.extract_strided_slice %361 {offsets = [0, 128], sizes = [8, 128], strides = [1, 1]} : vector<8x512xf32> to vector<8x128xf32>
    %369 = arith.negf %368 : vector<8x128xf32>
    %370 = math.exp %369 : vector<8x128xf32>
    %cst_70 = arith.constant 1.000000e+00 : f32
    %371 = vector.broadcast %cst_70 : f32 to vector<8x128xf32>
    %372 = arith.addf %371, %370 : vector<8x128xf32>
    %373 = arith.divf %371, %372 : vector<8x128xf32>
    %374 = vector.extract_strided_slice %361 {offsets = [0, 256], sizes = [8, 128], strides = [1, 1]} : vector<8x512xf32> to vector<8x128xf32>
    %375 = math.tanh %374 : vector<8x128xf32>
    %376 = vector.extract_strided_slice %361 {offsets = [0, 384], sizes = [8, 128], strides = [1, 1]} : vector<8x512xf32> to vector<8x128xf32>
    %377 = arith.negf %376 : vector<8x128xf32>
    %378 = math.exp %377 : vector<8x128xf32>
    %cst_71 = arith.constant 1.000000e+00 : f32
    %379 = vector.broadcast %cst_71 : f32 to vector<8x128xf32>
    %380 = arith.addf %379, %378 : vector<8x128xf32>
    %381 = arith.divf %379, %380 : vector<8x128xf32>
    %382 = arith.mulf %373, %326 : vector<8x128xf32>
    %383 = arith.mulf %367, %375 : vector<8x128xf32>
    %384 = arith.addf %382, %383 : vector<8x128xf32>
    %385 = math.tanh %384 : vector<8x128xf32>
    %386 = arith.mulf %381, %385 : vector<8x128xf32>
    %cst_72 = arith.constant dense<0.000000e+00> : vector<8x512xf32>
    %387 = tpu.matmul %386, %7, %cst_72 {dimension_numbers = #tpu.dot_dimension_numbers<[1], [0], [0], [1], [0, 0, 1, 1], [], []>} : vector<8x128xf32>, vector<128x512xf32>, vector<8x512xf32> -> vector<8x512xf32>
    %cst_73 = arith.constant dense<0.000000e+00> : vector<8x512xf32>
    %388 = tpu.matmul %358, %8, %cst_73 {dimension_numbers = #tpu.dot_dimension_numbers<[1], [0], [0], [1], [0, 0, 1, 1], [], []>} : vector<8x128xf32>, vector<128x512xf32>, vector<8x512xf32> -> vector<8x512xf32>
    %389 = arith.addf %387, %388 : vector<8x512xf32>
    %390 = vector.broadcast %9 : vector<1x512xf32> to vector<8x512xf32>
    %391 = arith.addf %389, %390 : vector<8x512xf32>
    %392 = vector.extract_strided_slice %391 {offsets = [0, 0], sizes = [8, 128], strides = [1, 1]} : vector<8x512xf32> to vector<8x128xf32>
    %393 = arith.negf %392 : vector<8x128xf32>
    %394 = math.exp %393 : vector<8x128xf32>
    %cst_74 = arith.constant 1.000000e+00 : f32
    %395 = vector.broadcast %cst_74 : f32 to vector<8x128xf32>
    %396 = arith.addf %395, %394 : vector<8x128xf32>
    %397 = arith.divf %395, %396 : vector<8x128xf32>
    %398 = vector.extract_strided_slice %391 {offsets = [0, 128], sizes = [8, 128], strides = [1, 1]} : vector<8x512xf32> to vector<8x128xf32>
    %399 = arith.negf %398 : vector<8x128xf32>
    %400 = math.exp %399 : vector<8x128xf32>
    %cst_75 = arith.constant 1.000000e+00 : f32
    %401 = vector.broadcast %cst_75 : f32 to vector<8x128xf32>
    %402 = arith.addf %401, %400 : vector<8x128xf32>
    %403 = arith.divf %401, %402 : vector<8x128xf32>
    %404 = vector.extract_strided_slice %391 {offsets = [0, 256], sizes = [8, 128], strides = [1, 1]} : vector<8x512xf32> to vector<8x128xf32>
    %405 = math.tanh %404 : vector<8x128xf32>
    %406 = vector.extract_strided_slice %391 {offsets = [0, 384], sizes = [8, 128], strides = [1, 1]} : vector<8x512xf32> to vector<8x128xf32>
    %407 = arith.negf %406 : vector<8x128xf32>
    %408 = math.exp %407 : vector<8x128xf32>
    %cst_76 = arith.constant 1.000000e+00 : f32
    %409 = vector.broadcast %cst_76 : f32 to vector<8x128xf32>
    %410 = arith.addf %409, %408 : vector<8x128xf32>
    %411 = arith.divf %409, %410 : vector<8x128xf32>
    %412 = arith.mulf %403, %356 : vector<8x128xf32>
    %413 = arith.mulf %397, %405 : vector<8x128xf32>
    %414 = arith.addf %412, %413 : vector<8x128xf32>
    %415 = math.tanh %414 : vector<8x128xf32>
    %416 = arith.mulf %411, %415 : vector<8x128xf32>
    %417 = vector.extract_strided_slice %5 {offsets = [56, 0], sizes = [8, 512], strides = [1, 1]} : vector<64x512xf32> to vector<8x512xf32>
    %cst_77 = arith.constant dense<0.000000e+00> : vector<8x512xf32>
    %418 = tpu.matmul %386, %6, %cst_77 {dimension_numbers = #tpu.dot_dimension_numbers<[1], [0], [0], [1], [0, 0, 1, 1], [], []>} : vector<8x128xf32>, vector<128x512xf32>, vector<8x512xf32> -> vector<8x512xf32>
    %419 = arith.addf %417, %418 : vector<8x512xf32>
    %420 = vector.extract_strided_slice %419 {offsets = [0, 0], sizes = [8, 128], strides = [1, 1]} : vector<8x512xf32> to vector<8x128xf32>
    %421 = arith.negf %420 : vector<8x128xf32>
    %422 = math.exp %421 : vector<8x128xf32>
    %cst_78 = arith.constant 1.000000e+00 : f32
    %423 = vector.broadcast %cst_78 : f32 to vector<8x128xf32>
    %424 = arith.addf %423, %422 : vector<8x128xf32>
    %425 = arith.divf %423, %424 : vector<8x128xf32>
    %426 = vector.extract_strided_slice %419 {offsets = [0, 128], sizes = [8, 128], strides = [1, 1]} : vector<8x512xf32> to vector<8x128xf32>
    %427 = arith.negf %426 : vector<8x128xf32>
    %428 = math.exp %427 : vector<8x128xf32>
    %cst_79 = arith.constant 1.000000e+00 : f32
    %429 = vector.broadcast %cst_79 : f32 to vector<8x128xf32>
    %430 = arith.addf %429, %428 : vector<8x128xf32>
    %431 = arith.divf %429, %430 : vector<8x128xf32>
    %432 = vector.extract_strided_slice %419 {offsets = [0, 256], sizes = [8, 128], strides = [1, 1]} : vector<8x512xf32> to vector<8x128xf32>
    %433 = math.tanh %432 : vector<8x128xf32>
    %434 = vector.extract_strided_slice %419 {offsets = [0, 384], sizes = [8, 128], strides = [1, 1]} : vector<8x512xf32> to vector<8x128xf32>
    %435 = arith.negf %434 : vector<8x128xf32>
    %436 = math.exp %435 : vector<8x128xf32>
    %cst_80 = arith.constant 1.000000e+00 : f32
    %437 = vector.broadcast %cst_80 : f32 to vector<8x128xf32>
    %438 = arith.addf %437, %436 : vector<8x128xf32>
    %439 = arith.divf %437, %438 : vector<8x128xf32>
    %440 = arith.mulf %431, %384 : vector<8x128xf32>
    %441 = arith.mulf %425, %433 : vector<8x128xf32>
    %442 = arith.addf %440, %441 : vector<8x128xf32>
    %443 = math.tanh %442 : vector<8x128xf32>
    %444 = arith.mulf %439, %443 : vector<8x128xf32>
    %cst_81 = arith.constant dense<0.000000e+00> : vector<8x512xf32>
    %445 = tpu.matmul %444, %7, %cst_81 {dimension_numbers = #tpu.dot_dimension_numbers<[1], [0], [0], [1], [0, 0, 1, 1], [], []>} : vector<8x128xf32>, vector<128x512xf32>, vector<8x512xf32> -> vector<8x512xf32>
    %cst_82 = arith.constant dense<0.000000e+00> : vector<8x512xf32>
    %446 = tpu.matmul %416, %8, %cst_82 {dimension_numbers = #tpu.dot_dimension_numbers<[1], [0], [0], [1], [0, 0, 1, 1], [], []>} : vector<8x128xf32>, vector<128x512xf32>, vector<8x512xf32> -> vector<8x512xf32>
    %447 = arith.addf %445, %446 : vector<8x512xf32>
    %448 = vector.broadcast %9 : vector<1x512xf32> to vector<8x512xf32>
    %449 = arith.addf %447, %448 : vector<8x512xf32>
    %450 = vector.extract_strided_slice %449 {offsets = [0, 0], sizes = [8, 128], strides = [1, 1]} : vector<8x512xf32> to vector<8x128xf32>
    %451 = arith.negf %450 : vector<8x128xf32>
    %452 = math.exp %451 : vector<8x128xf32>
    %cst_83 = arith.constant 1.000000e+00 : f32
    %453 = vector.broadcast %cst_83 : f32 to vector<8x128xf32>
    %454 = arith.addf %453, %452 : vector<8x128xf32>
    %455 = arith.divf %453, %454 : vector<8x128xf32>
    %456 = vector.extract_strided_slice %449 {offsets = [0, 128], sizes = [8, 128], strides = [1, 1]} : vector<8x512xf32> to vector<8x128xf32>
    %457 = arith.negf %456 : vector<8x128xf32>
    %458 = math.exp %457 : vector<8x128xf32>
    %cst_84 = arith.constant 1.000000e+00 : f32
    %459 = vector.broadcast %cst_84 : f32 to vector<8x128xf32>
    %460 = arith.addf %459, %458 : vector<8x128xf32>
    %461 = arith.divf %459, %460 : vector<8x128xf32>
    %462 = vector.extract_strided_slice %449 {offsets = [0, 256], sizes = [8, 128], strides = [1, 1]} : vector<8x512xf32> to vector<8x128xf32>
    %463 = math.tanh %462 : vector<8x128xf32>
    %464 = vector.extract_strided_slice %449 {offsets = [0, 384], sizes = [8, 128], strides = [1, 1]} : vector<8x512xf32> to vector<8x128xf32>
    %465 = arith.negf %464 : vector<8x128xf32>
    %466 = math.exp %465 : vector<8x128xf32>
    %cst_85 = arith.constant 1.000000e+00 : f32
    %467 = vector.broadcast %cst_85 : f32 to vector<8x128xf32>
    %468 = arith.addf %467, %466 : vector<8x128xf32>
    %469 = arith.divf %467, %468 : vector<8x128xf32>
    %470 = arith.mulf %461, %414 : vector<8x128xf32>
    %471 = arith.mulf %455, %463 : vector<8x128xf32>
    %472 = arith.addf %470, %471 : vector<8x128xf32>
    %473 = math.tanh %472 : vector<8x128xf32>
    %474 = arith.mulf %469, %473 : vector<8x128xf32>
    %475 = tpu.concatenate %68, %126, %184, %242, %300, %358, %416, %474 in 0 : vector<8x128xf32>, vector<8x128xf32>, vector<8x128xf32>, vector<8x128xf32>, vector<8x128xf32>, vector<8x128xf32>, vector<8x128xf32>, vector<8x128xf32> -> vector<64x128xf32>
    %c0_86 = arith.constant 0 : index
    %c0_87 = arith.constant 0 : index
    %476 = vector.load %arg7[%c0_86, %c0_87] : memref<128x128xf32, #tpu.memory_space<vmem>>, vector<128x128xf32>
    %cst_88 = arith.constant dense<0.000000e+00> : vector<64x128xf32>
    %477 = tpu.matmul %475, %476, %cst_88 {dimension_numbers = #tpu.dot_dimension_numbers<[1], [0], [0], [1], [0, 0, 1, 1], [], []>} : vector<64x128xf32>, vector<128x128xf32>, vector<64x128xf32> -> vector<64x128xf32>
    %c0_89 = arith.constant 0 : index
    %c0_90 = arith.constant 0 : index
    %478 = vector.load %arg8[%c0_89, %c0_90] : memref<1x128xf32, #tpu.memory_space<vmem>>, vector<1x128xf32>
    %479 = vector.broadcast %478 : vector<1x128xf32> to vector<64x128xf32>
    %480 = arith.addf %477, %479 : vector<64x128xf32>
    %c0_91 = arith.constant 0 : index
    %c0_92 = arith.constant 0 : index
    %481 = vector.load %arg9[%c0_91, %c0_92] : memref<64x128xf32, #tpu.memory_space<vmem>>, vector<64x128xf32>
    tpu.vector_store %arg9[%c0_91, %c0_92], %480 {strides = array<i32>} : memref<64x128xf32, #tpu.memory_space<vmem>>, vector<64x128xf32>,
    return
  }
}

</mosaic_0001>

<bundles_post_ra>
// kernel: tpu_custom_call.1
= control target key start
LH: loop header
LB: loop body
LE: loop exit
PB: predicated region body
PF: predicated region fallthrough
CT: control target
= control target key end

     0   :  { %14 = vsyncpa [#allocation3], 0  ;;  %s9273_s0 = inlined_call_operand.hbm [shape: f32[64,128], index: 0, kind: input, shape index: {}]   ;;  %s9274_s1 = inlined_call_operand.hbm [shape: f32[128,512], index: 1, kind: input, shape index: {}]   ;;  %s9275_s2 = inlined_call_operand.hbm [shape: f32[1,512], index: 2, kind: input, shape index: {}]   ;;  %s9276_s3 = inlined_call_operand.hbm [shape: f32[128,512], index: 3, kind: input, shape index: {}]   ;;  %s9277_s4 = inlined_call_operand.hbm [shape: f32[128,512], index: 4, kind: input, shape index: {}]   ;;  %s9278_s5 = inlined_call_operand.hbm [shape: f32[128,512], index: 5, kind: input, shape index: {}]   ;;  %s9279_s6 = inlined_call_operand.vmem [shape: f32[1,512], index: 6, kind: input, shape index: {}]   ;;  %s9280_s7 = inlined_call_operand.hbm [shape: f32[128,128], index: 7, kind: input, shape index: {}]   ;;  %s9281_s8 = inlined_call_operand.vmem [shape: f32[1,128], index: 8, kind: input, shape index: {}]   ;;  %s9282_s9 = inlined_call_operand.hbm [shape: f32[64,128], index: 9, kind: output, shape index: {}]  }
   0x1   :  { %15 = vsyncpa [#allocation6], 0 }
   0x2   :  { %16 = vsyncpa [#allocation9], 0 }
   0x3   :  { %17 = vsyncpa [#allocation12], 0 }
   0x4   :  { %18 = vsyncpa [#allocation4], 0  ;;  %s5836_s30 = smov [#allocation5]  }
   0x5   :  { %s36_s10 = sshll.u32 %s5836_s30, 4  ;;  %s37_s10 = int_to_ptr.vmem [resolvable:$true] %s36_s10 }
   0x6   :  { %s5674_s11 = scalar_lea.vmem %s37_s10, 8192  ;;  %p5679_p1 = scmp.lt.s32.totalorder %s37_s10, %s37_s10 }
   0x7   :  { %p5675_p0 = scmp.ne.s32.totalorder %s37_s10, %s5674_s11  ;;  %p5680_p2 = scmp.lt.s32.totalorder %s5674_s11, %s5674_s11 }
   0x9   :  { %p5681_p3 = por %p5680_p2, %p5679_p1 }
   0xb   :  { %p5682_p4 = pnand %p5681_p3, %p5675_p0 }
   0xd   :  { %5685 = shalt.err (!%p5682_p4)
}
   0xe   :  { %s5837_s12 = smov 512   ;;  %s5838_s13 = smov 32  }
   0xf   :  { %42 = dma.hbm_to_vmem [thread:$0]  %s9274_s1, 8192, %s37_s10, [#allocation6], %s5837_s12, %s5837_s12, %s5838_s13  }
  0x10   :  { %s5839_s16 = smov [#allocation8]   ;;  %s5840_s18 = smov [#allocation11]  }
  0x11   :  { %s58_s17 = sshll.u32 %s5839_s16, 4  ;;  %s82_s19 = sshll.u32 %s5840_s18, 4  ;;  %s59_s17 = int_to_ptr.vmem [resolvable:$true] %s58_s17  ;;  %s83_s19 = int_to_ptr.vmem [resolvable:$true] %s82_s19 }
  0x12   :  { %s5694_s20 = scalar_lea.vmem %s59_s17, 8192  ;;  %p5699_p6 = scmp.lt.s32.totalorder %s59_s17, %s59_s17 }
  0x13   :  { %p5695_p5 = scmp.ne.s32.totalorder %s59_s17, %s5694_s20  ;;  %p5700_p7 = scmp.lt.s32.totalorder %s5694_s20, %s5694_s20 }
  0x15   :  { %p5701_p8 = por %p5700_p7, %p5699_p6 }
  0x17   :  { %p5702_p9 = pnand %p5701_p8, %p5695_p5 }
  0x19   :  { %5705 = shalt.err (!%p5702_p9)
}
  0x1a   :  { %64 = dma.hbm_to_vmem [thread:$0]  %s9276_s3, 8192, %s59_s17, [#allocation9], %s5837_s12, %s5837_s12, %s5838_s13  }
  0x1b   :  { %s5714_s1 = scalar_lea.vmem %s83_s19, 8192  ;;  %p5719_p11 = scmp.lt.s32.totalorder %s83_s19, %s83_s19 }
  0x1c   :  { %p5715_p10 = scmp.ne.s32.totalorder %s83_s19, %s5714_s1  ;;  %p5720_p12 = scmp.lt.s32.totalorder %s5714_s1, %s5714_s1 }
  0x1e   :  { %p5721_p13 = por %p5720_p12, %p5719_p11 }
  0x20   :  { %p5722_p0 = pnand %p5721_p13, %p5715_p10 }
  0x22   :  { %5725 = shalt.err (!%p5722_p0)
}
  0x23   :  { %88 = dma.hbm_to_vmem [thread:$0]  %s9278_s5, 8192, %s83_s19, [#allocation12], %s5837_s12, %s5837_s12, %s5838_s13  }
  0x24   :  { %s5841_s25 = smov [#allocation2]  }
  0x25   :  { %s24_s26 = sshll.u32 %s5841_s25, 4  ;;  %s25_s26 = int_to_ptr.vmem [resolvable:$true] %s24_s26 }
  0x26   :  { %s5734_s27 = scalar_lea.vmem %s25_s26, 1024  ;;  %p5739_p2 = scmp.lt.s32.totalorder %s25_s26, %s25_s26 }
  0x27   :  { %p5735_p1 = scmp.ne.s32.totalorder %s25_s26, %s5734_s27  ;;  %p5740_p3 = scmp.lt.s32.totalorder %s5734_s27, %s5734_s27 }
  0x29   :  { %p5741_p4 = por %p5740_p3, %p5739_p2 }
  0x2b   :  { %p5742_p5 = pnand %p5741_p4, %p5735_p1 }
  0x2d   :  { %5745 = shalt.err (!%p5742_p5)
}
  0x2e   :  { %s5842_s3 = smov 128   ;;  %s5843_s28 = smov 8  }
  0x2f   :  { %30 = dma.hbm_to_vmem [thread:$0]  %s9273_s0, 1024, %s25_s26, [#allocation3], %s5842_s3, %s5842_s3, %s5843_s28  }
  0x30   :  { %s5844_s5 = smov [#allocation7]   ;;  %s5845_s11 = smov [#allocation10]  }
  0x31   :  { %s49_s10 = sshll.u32 %s5844_s5, 4  ;;  %s70_s14 = sshll.u32 %s5845_s11, 4  ;;  %s50_s10 = int_to_ptr.vmem [resolvable:$true] %s49_s10  ;;  %s71_s14 = int_to_ptr.vmem [resolvable:$true] %s70_s14 }
  0x32   :  { %s5754_s15 = scalar_lea.vmem %s50_s10, 64  ;;  %p5759_p7 = scmp.lt.s32.totalorder %s50_s10, %s50_s10 }
  0x33   :  { %p5755_p6 = scmp.ne.s32.totalorder %s50_s10, %s5754_s15  ;;  %p5760_p8 = scmp.lt.s32.totalorder %s5754_s15, %s5754_s15 }
  0x35   :  { %p5761_p9 = por %p5760_p8, %p5759_p7 }
  0x37   :  { %p5762_p10 = pnand %p5761_p9, %p5755_p6 }
  0x39   :  { %5765 = shalt.err (!%p5762_p10)
}
  0x3a   :  { %52 = dma.hbm_to_vmem [thread:$0]  %s9275_s2, 64, %s50_s10, [#allocation6]  }
  0x3b   :  { %s5774_s18 = scalar_lea.vmem %s71_s14, 8192  ;;  %p5779_p12 = scmp.lt.s32.totalorder %s71_s14, %s71_s14 }
  0x3c   :  { %p5775_p11 = scmp.ne.s32.totalorder %s71_s14, %s5774_s18  ;;  %p5780_p13 = scmp.lt.s32.totalorder %s5774_s18, %s5774_s18 }
  0x3e   :  { %p5781_p0 = por %p5780_p13, %p5779_p12 }
  0x40   :  { %p5782_p1 = pnand %p5781_p0, %p5775_p11 }
  0x42   :  { %5785 = shalt.err (!%p5782_p1)
}
  0x43   :  { %76 = dma.hbm_to_vmem [thread:$0]  %s9277_s4, 8192, %s71_s14, [#allocation9], %s5837_s12, %s5837_s12, %s5838_s13  }
  0x44   :  { %s5846_s20 = smov [#allocation13]  }
  0x45   :  { %s96_s21 = sshll.u32 %s5846_s20, 4  ;;  %s97_s21 = int_to_ptr.vmem [resolvable:$true] %s96_s21 }
  0x46   :  { %s5794_s22 = scalar_lea.vmem %s97_s21, 2048  ;;  %p5799_p3 = scmp.lt.s32.totalorder %s97_s21, %s97_s21 }
  0x47   :  { %p5795_p2 = scmp.ne.s32.totalorder %s97_s21, %s5794_s22  ;;  %p5800_p4 = scmp.lt.s32.totalorder %s5794_s22, %s5794_s22 }
  0x49   :  { %p5801_p5 = por %p5800_p4, %p5799_p3 }
  0x4b   :  { %p5802_p6 = pnand %p5801_p5, %p5795_p2 }
  0x4d   :  { %5805 = shalt.err (!%p5802_p6)
}
  0x4e   :  { %102 = dma.hbm_to_vmem [thread:$0]  %s9280_s7, 2048, %s97_s21, [#allocation12], %s5842_s3, %s5842_s3, %s5843_s28  }
  0x4f   :  { %5826 = dma.done.wait [#allocation3], 1024  }
  0x50   :  { %5827 = vsyncadd [#allocation3], 4294966272 }
  0x51   :  { %5828 = dma.done.wait [#allocation6], 8256  }
  0x52   :  { %5829 = vsyncadd [#allocation6], 4294959040 }
  0x53   :  { %5830 = dma.done.wait [#allocation9], 16384  }
  0x54   :  { %5831 = vsyncadd [#allocation9], 4294950912 }
  0x55   :  { %5832 = dma.done.wait [#allocation12], 10240  }
  0x56   :  { %5833 = vsyncadd [#allocation12], 4294957056  ;;  %v9283_v0 = vmov 0.0   ;;  %v195_v1 = vld [vmem:[#allocation5 + $0x1e8] sm:$0xff]  ;;  %v194_v2 = vld [vmem:[#allocation5 + $0x1e0] sm:$0xff] }
  0x57   :  { %284 = vmatprep.mubr.f32.mxu1 %v9283_v0  ;;  %703 = vmatprep.mubr.f32.mxu0 %v9283_v0  ;;  %v191_v3 = vld [vmem:[#allocation5 + $0x1c8] sm:$0xff]  ;;  %v190_v5 = vld [vmem:[#allocation5 + $0x1c0] sm:$0xff] }
  0x58   :  { %220 = vmatprep.subr.mxu1 %v195_v1  ;;  %v507_v4 = vld [vmem:[#allocation8 + $0x1e8] sm:$0xff]  ;;  %v506_v6 = vld [vmem:[#allocation8 + $0x1e0] sm:$0xff] }
  0x59   :  { %221 = vmatpush1.msra.mxu1 %v194_v2  ;;  %639 = vmatprep.subr.mxu0 %v507_v4  ;;  %v187_v7 = vld [vmem:[#allocation5 + $0x1a8] sm:$0xff]  ;;  %v186_v9 = vld [vmem:[#allocation5 + $0x1a0] sm:$0xff]  ;;  %v197_v2 = vld [vmem:[#allocation5 + $0x1f8] sm:$0xff] }
  0x5a   :  { %v503_v8 = vld [vmem:[#allocation8 + $0x1c8] sm:$0xff]  ;;  %222 = vmatprep.subr.mxu1 %v191_v3  ;;  %640 = vmatpush1.msra.mxu0 %v506_v6  ;;  %v502_v10 = vld [vmem:[#allocation8 + $0x1c0] sm:$0xff] }
  0x5b   :  { %v499_v11 = vld [vmem:[#allocation8 + $0x1a8] sm:$0xff]  ;;  %223 = vmatpush1.msra.mxu1 %v190_v5  ;;  %641 = vmatprep.subr.mxu0 %v503_v8  ;;  %v498_v13 = vld [vmem:[#allocation8 + $0x1a0] sm:$0xff]  ;;  %v193_v5 = vld [vmem:[#allocation5 + $0x1d8] sm:$0xff] }
  0x5c   :  { %v183_v12 = vld [vmem:[#allocation5 + $0x188] sm:$0xff]  ;;  %224 = vmatprep.subr.mxu1 %v187_v7  ;;  %642 = vmatpush1.msra.mxu0 %v502_v10  ;;  %v182_v14 = vld [vmem:[#allocation5 + $0x180] sm:$0xff]  ;;  %v196_v3 = vld [vmem:[#allocation5 + $0x1f0] sm:$0xff] }
  0x5d   :  { %v495_v15 = vld [vmem:[#allocation8 + $0x188] sm:$0xff]  ;;  %225 = vmatpush1.msra.mxu1 %v186_v9  ;;  %643 = vmatprep.subr.mxu0 %v499_v11  ;;  %v494_v17 = vld [vmem:[#allocation8 + $0x180] sm:$0xff]  ;;  %v189_v8 = vld [vmem:[#allocation5 + $0x1b8] sm:$0xff] }
  0x5e   :  { %v179_v16 = vld [vmem:[#allocation5 + $0x168] sm:$0xff]  ;;  %226 = vmatprep.subr.mxu1 %v183_v12  ;;  %644 = vmatpush1.msra.mxu0 %v498_v13  ;;  %v178_v18 = vld [vmem:[#allocation5 + $0x160] sm:$0xff]  ;;  %v192_v6 = vld [vmem:[#allocation5 + $0x1d0] sm:$0xff] }
  0x5f   :  { %v491_v19 = vld [vmem:[#allocation8 + $0x168] sm:$0xff]  ;;  %227 = vmatpush1.msra.mxu1 %v182_v14  ;;  %645 = vmatprep.subr.mxu0 %v495_v15  ;;  %v490_v21 = vld [vmem:[#allocation8 + $0x160] sm:$0xff]  ;;  %v185_v10 = vld [vmem:[#allocation5 + $0x198] sm:$0xff] }
  0x60   :  { %v175_v20 = vld [vmem:[#allocation5 + $0x148] sm:$0xff]  ;;  %228 = vmatprep.subr.mxu1 %v179_v16  ;;  %646 = vmatpush1.msra.mxu0 %v494_v17  ;;  %v174_v22 = vld [vmem:[#allocation5 + $0x140] sm:$0xff]  ;;  %v188_v9 = vld [vmem:[#allocation5 + $0x1b0] sm:$0xff] }
  0x61   :  { %v487_v23 = vld [vmem:[#allocation8 + $0x148] sm:$0xff]  ;;  %229 = vmatpush1.msra.mxu1 %v178_v18  ;;  %647 = vmatprep.subr.mxu0 %v491_v19  ;;  %v486_v25 = vld [vmem:[#allocation8 + $0x140] sm:$0xff]  ;;  %v181_v13 = vld [vmem:[#allocation5 + $0x178] sm:$0xff] }
  0x62   :  { %v171_v24 = vld [vmem:[#allocation5 + $0x128] sm:$0xff]  ;;  %230 = vmatprep.subr.mxu1 %v175_v20  ;;  %648 = vmatpush1.msra.mxu0 %v490_v21  ;;  %v170_v26 = vld [vmem:[#allocation5 + $0x120] sm:$0xff]  ;;  %v184_v11 = vld [vmem:[#allocation5 + $0x190] sm:$0xff] }
  0x63   :  { %v483_v27 = vld [vmem:[#allocation8 + $0x128] sm:$0xff]  ;;  %231 = vmatpush1.msra.mxu1 %v174_v22  ;;  %649 = vmatprep.subr.mxu0 %v487_v23  ;;  %v482_v29 = vld [vmem:[#allocation8 + $0x120] sm:$0xff]  ;;  %v177_v15 = vld [vmem:[#allocation5 + $0x158] sm:$0xff] }
  0x64   :  { %v167_v28 = vld [vmem:[#allocation5 + $0x108] sm:$0xff]  ;;  %232 = vmatprep.subr.mxu1 %v171_v24  ;;  %650 = vmatpush1.msra.mxu0 %v486_v25  ;;  %v166_v30 = vld [vmem:[#allocation5 + $0x100] sm:$0xff]  ;;  %v5949_v12 = vld [vmem:[#allocation2 + $0x10] sm:$0xff] }
  0x65   :  { %v479_v31 = vld [vmem:[#allocation8 + $0x108] sm:$0xff]  ;;  %233 = vmatpush1.msra.mxu1 %v170_v26  ;;  %651 = vmatprep.subr.mxu0 %v483_v27  ;;  %v478_v33 = vld [vmem:[#allocation8 + $0x100] sm:$0xff]  ;;  %v5954_v17 = vld [vmem:[#allocation2 + $0x18] sm:$0xff] }
  0x66   :  { %v163_v32 = vld [vmem:[#allocation5 + $0xe8] sm:$0xff]  ;;  %234 = vmatprep.subr.mxu1 %v167_v28  ;;  %652 = vmatpush1.msra.mxu0 %v482_v29  ;;  %v162_v34 = vld [vmem:[#allocation5 + $0xe0] sm:$0xff]  ;;  %v180_v14 = vld [vmem:[#allocation5 + $0x170] sm:$0xff] }
  0x67   :  { %v475_v35 = vld [vmem:[#allocation8 + $0xe8] sm:$0xff]  ;;  %235 = vmatpush1.msra.mxu1 %v166_v30  ;;  %653 = vmatprep.subr.mxu0 %v479_v31  ;;  %v474_v37 = vld [vmem:[#allocation8 + $0xe0] sm:$0xff]  ;;  %v173_v18 = vld [vmem:[#allocation5 + $0x138] sm:$0xff] }
  0x68   :  { %v159_v36 = vld [vmem:[#allocation5 + $0xc8] sm:$0xff]  ;;  %236 = vmatprep.subr.mxu1 %v163_v32  ;;  %654 = vmatpush1.msra.mxu0 %v478_v33  ;;  %v158_v38 = vld [vmem:[#allocation5 + $0xc0] sm:$0xff]  ;;  %v176_v16 = vld [vmem:[#allocation5 + $0x150] sm:$0xff] }
  0x69   :  { %v471_v39 = vld [vmem:[#allocation8 + $0xc8] sm:$0xff]  ;;  %237 = vmatpush1.msra.mxu1 %v162_v34  ;;  %655 = vmatprep.subr.mxu0 %v475_v35  ;;  %v470_v41 = vld [vmem:[#allocation8 + $0xc0] sm:$0xff]  ;;  %v169_v20 = vld [vmem:[#allocation5 + $0x118] sm:$0xff] }
  0x6a   :  { %v155_v40 = vld [vmem:[#allocation5 + $0xa8] sm:$0xff]  ;;  %238 = vmatprep.subr.mxu1 %v159_v36  ;;  %656 = vmatpush1.msra.mxu0 %v474_v37  ;;  %v154_v42 = vld [vmem:[#allocation5 + $0xa0] sm:$0xff]  ;;  %v172_v19 = vld [vmem:[#allocation5 + $0x130] sm:$0xff] }
  0x6b   :  { %v467_v43 = vld [vmem:[#allocation8 + $0xa8] sm:$0xff]  ;;  %239 = vmatpush1.msra.mxu1 %v158_v38  ;;  %657 = vmatprep.subr.mxu0 %v471_v39  ;;  %v466_v45 = vld [vmem:[#allocation8 + $0xa0] sm:$0xff]  ;;  %v165_v23 = vld [vmem:[#allocation5 + $0xf8] sm:$0xff] }
  0x6c   :  { %v151_v44 = vld [vmem:[#allocation5 + $0x88] sm:$0xff]  ;;  %240 = vmatprep.subr.mxu1 %v155_v40  ;;  %658 = vmatpush1.msra.mxu0 %v470_v41  ;;  %v150_v46 = vld [vmem:[#allocation5 + $0x80] sm:$0xff]  ;;  %v168_v21 = vld [vmem:[#allocation5 + $0x110] sm:$0xff] }
  0x6d   :  { %v463_v47 = vld [vmem:[#allocation8 + $0x88] sm:$0xff]  ;;  %241 = vmatpush1.msra.mxu1 %v154_v42  ;;  %659 = vmatprep.subr.mxu0 %v467_v43  ;;  %v462_v49 = vld [vmem:[#allocation8 + $0x80] sm:$0xff]  ;;  %v161_v25 = vld [vmem:[#allocation5 + $0xd8] sm:$0xff] }
  0x6e   :  { %v147_v48 = vld [vmem:[#allocation5 + $0x68] sm:$0xff]  ;;  %242 = vmatprep.subr.mxu1 %v151_v44  ;;  %660 = vmatpush1.msra.mxu0 %v466_v45  ;;  %v146_v50 = vld [vmem:[#allocation5 + $0x60] sm:$0xff]  ;;  %v164_v24 = vld [vmem:[#allocation5 + $0xf0] sm:$0xff] }
  0x6f   :  { %v459_v51 = vld [vmem:[#allocation8 + $0x68] sm:$0xff]  ;;  %243 = vmatpush1.msra.mxu1 %v150_v46  ;;  %661 = vmatprep.subr.mxu0 %v463_v47  ;;  %v458_v53 = vld [vmem:[#allocation8 + $0x60] sm:$0xff]  ;;  %v157_v28 = vld [vmem:[#allocation5 + $0xb8] sm:$0xff] }
  0x70   :  { %v143_v52 = vld [vmem:[#allocation5 + $0x48] sm:$0xff]  ;;  %244 = vmatprep.subr.mxu1 %v147_v48  ;;  %662 = vmatpush1.msra.mxu0 %v462_v49  ;;  %v142_v54 = vld [vmem:[#allocation5 + $0x40] sm:$0xff]  ;;  %v160_v26 = vld [vmem:[#allocation5 + $0xd0] sm:$0xff] }
  0x71   :  { %v455_v55 = vld [vmem:[#allocation8 + $0x48] sm:$0xff]  ;;  %245 = vmatpush1.msra.mxu1 %v146_v50  ;;  %663 = vmatprep.subr.mxu0 %v459_v51  ;;  %v454_v57 = vld [vmem:[#allocation8 + $0x40] sm:$0xff]  ;;  %v153_v30 = vld [vmem:[#allocation5 + $0x98] sm:$0xff] }
  0x72   :  { %v139_v56 = vld [vmem:[#allocation5 + $0x28] sm:$0xff]  ;;  %246 = vmatprep.subr.mxu1 %v143_v52  ;;  %664 = vmatpush1.msra.mxu0 %v458_v53  ;;  %v138_v58 = vld [vmem:[#allocation5 + $0x20] sm:$0xff]  ;;  %v156_v29 = vld [vmem:[#allocation5 + $0xb0] sm:$0xff] }
  0x73   :  { %v451_v59 = vld [vmem:[#allocation8 + $0x28] sm:$0xff]  ;;  %247 = vmatpush1.msra.mxu1 %v142_v54  ;;  %665 = vmatprep.subr.mxu0 %v455_v55  ;;  %v450_v61 = vld [vmem:[#allocation8 + $0x20] sm:$0xff]  ;;  %v149_v33 = vld [vmem:[#allocation5 + $0x78] sm:$0xff] }
  0x74   :  { %v135_v60 = vld [vmem:[#allocation5 + $0x8] sm:$0xff]  ;;  %248 = vmatprep.subr.mxu1 %v139_v56  ;;  %666 = vmatpush1.msra.mxu0 %v454_v57  ;;  %v134_v62 = vld [vmem:[#allocation5] sm:$0xff]  ;;  %v152_v31 = vld [vmem:[#allocation5 + $0x90] sm:$0xff] }
  0x75   :  { %v447_v63 = vld [vmem:[#allocation8 + $0x8] sm:$0xff]  ;;  %249 = vmatpush1.msra.mxu1 %v138_v58  ;;  %667 = vmatprep.subr.mxu0 %v451_v59  ;;  %v5940_v1 = vld [vmem:[#allocation2] sm:$0xff]  ;;  %v145_v35 = vld [vmem:[#allocation5 + $0x58] sm:$0xff] }
  0x76   :  { %250 = vmatprep.subr.mxu1 %v135_v60  ;;  %668 = vmatpush1.msra.mxu0 %v450_v61  ;;  %v446_v4 = vld [vmem:[#allocation8] sm:$0xff]  ;;  %v5966_v32 = vld [vmem:[#allocation2 + $0x30] sm:$0xff]  ;;  %v5970_v37 = vld [vmem:[#allocation2 + $0x38] sm:$0xff] }
  0x77   :  { %251 = vmatpush1.msra.mxu1 %v134_v62  ;;  %669 = vmatprep.subr.mxu0 %v447_v63  ;;  %v5943_v7 = vld [vmem:[#allocation2 + $0x8] sm:$0xff]  ;;  %v5958_v22 = vld [vmem:[#allocation2 + $0x20] sm:$0xff]  ;;  %v148_v34 = vld [vmem:[#allocation5 + $0x70] sm:$0xff] }
  0x78   :  { %285 = vmatmul.mubr.f32.vlgmr.msra.gmra.mxu1 %v5940_v1  ;;  %333 = vmatprep.subr.mxu1 %v197_v2  ;;  %v5962_v27 = vld [vmem:[#allocation2 + $0x28] sm:$0xff]  ;;  %v144_v36 = vld [vmem:[#allocation5 + $0x50] sm:$0xff]  ;;  %v141_v38 = vld [vmem:[#allocation5 + $0x38] sm:$0xff] }
  0x79   :  { %334 = vmatpush1.msra.mxu1 %v196_v3  ;;  %670 = vmatpush1.msra.mxu0 %v446_v4  ;;  %v140_v39 = vld [vmem:[#allocation5 + $0x30] sm:$0xff]  ;;  %v137_v40 = vld [vmem:[#allocation5 + $0x18] sm:$0xff] }
  0x7a   :  { %335 = vmatprep.subr.mxu1 %v193_v5  ;;  %704 = vmatmul.mubr.f32.vlgmr.msra.gmra.mxu0 %v9283_v0  ;;  %v136_v41 = vld [vmem:[#allocation5 + $0x10] sm:$0xff]  ;;  %v5974_v42 = vld [vmem:[#allocation8 + $0x1f8] sm:$0xff] }
  0x7b   :  { %290 = vmatprep.mubr.f32.mxu1 %v9283_v0  ;;  %336 = vmatpush1.msra.mxu1 %v192_v6  ;;  %v5976_v43 = vld [vmem:[#allocation8 + $0x1f0] sm:$0xff]  ;;  %v5978_v44 = vld [vmem:[#allocation8 + $0x1d8] sm:$0xff] }
  0x7c   :  { %291 = vmatmul.mubr.f32.gmra.mxu1 %v5943_v7  ;;  %337 = vmatprep.subr.mxu1 %v189_v8  ;;  %v5982_v45 = vld [vmem:[#allocation8 + $0x1d0] sm:$0xff]  ;;  %v5986_v46 = vld [vmem:[#allocation8 + $0x1b8] sm:$0xff] }
  0x7d   :  { %338 = vmatpush1.msra.mxu1 %v188_v9  ;;  %296 = vmatprep.mubr.f32.mxu1 %v9283_v0  ;;  %v5989_v47 = vld [vmem:[#allocation8 + $0x1b0] sm:$0xff]  ;;  %v5992_v48 = vld [vmem:[#allocation8 + $0x198] sm:$0xff] }
  0x7e   :  { %339 = vmatprep.subr.mxu1 %v185_v10  ;;  %873 = vmatprep.mubr.f32.mxu0 %v9283_v0  ;;  %v5996_v49 = vld [vmem:[#allocation8 + $0x190] sm:$0xff]  ;;  %v6000_v50 = vld [vmem:[#allocation8 + $0x178] sm:$0xff] }
  0x7f   :  { %340 = vmatpush1.msra.mxu1 %v184_v11  ;;  %v6003_v51 = vld [vmem:[#allocation8 + $0x170] sm:$0xff]  ;;  %v6006_v52 = vld [vmem:[#allocation8 + $0x158] sm:$0xff]  ;;  %v6088_v11 = vld [vmem:[#allocation11 + $0x1e8] sm:$0xff] }
  0x80   :  { %297 = vmatmul.mubr.f32.gmra.mxu1 %v5949_v12  ;;  %341 = vmatprep.subr.mxu1 %v181_v13  ;;  %v6010_v53 = vld [vmem:[#allocation8 + $0x150] sm:$0xff]  ;;  %v6014_v54 = vld [vmem:[#allocation8 + $0x138] sm:$0xff]  ;;  %v6094_v13 = vld [vmem:[#allocation11 + $0x1e0] sm:$0xff] }
  0x81   :  { %342 = vmatpush1.msra.mxu1 %v180_v14  ;;  %302 = vmatprep.mubr.f32.mxu1 %v9283_v0  ;;  %v6017_v55 = vld [vmem:[#allocation8 + $0x130] sm:$0xff]  ;;  %v6020_v56 = vld [vmem:[#allocation8 + $0x118] sm:$0xff] }
  0x82   :  { %343 = vmatprep.subr.mxu1 %v177_v15  ;;  %v6024_v57 = vld [vmem:[#allocation8 + $0x110] sm:$0xff]  ;;  %v6028_v58 = vld [vmem:[#allocation8 + $0xf8] sm:$0xff]  ;;  %809 = vmatprep.subr.mxu0 %v6088_v11  ;;  %v6100_v15 = vld [vmem:[#allocation11 + $0x1c8] sm:$0xff] }
  0x83   :  { %344 = vmatpush1.msra.mxu1 %v176_v16  ;;  %v6031_v59 = vld [vmem:[#allocation8 + $0xf0] sm:$0xff]  ;;  %v6034_v60 = vld [vmem:[#allocation8 + $0xd8] sm:$0xff]  ;;  %810 = vmatpush1.msra.mxu0 %v6094_v13 }
  0x84   :  { %303 = vmatmul.mubr.f32.gmra.mxu1 %v5954_v17  ;;  %345 = vmatprep.subr.mxu1 %v173_v18  ;;  %v6038_v61 = vld [vmem:[#allocation8 + $0xd0] sm:$0xff]  ;;  %v6042_v62 = vld [vmem:[#allocation8 + $0xb8] sm:$0xff] }
  0x85   :  { %346 = vmatpush1.msra.mxu1 %v172_v19  ;;  %308 = vmatprep.mubr.f32.mxu1 %v9283_v0  ;;  %v6045_v63 = vld [vmem:[#allocation8 + $0xb0] sm:$0xff]  ;;  %v6056_v3 = vld [vmem:[#allocation8 + $0x78] sm:$0xff]  ;;  %v6112_v19 = vld [vmem:[#allocation11 + $0x1a8] sm:$0xff] }
  0x86   :  { %347 = vmatprep.subr.mxu1 %v169_v20  ;;  %v6052_v2 = vld [vmem:[#allocation8 + $0x90] sm:$0xff]  ;;  %v6062_v5 = vld [vmem:[#allocation8 + $0x58] sm:$0xff]  ;;  %811 = vmatprep.subr.mxu0 %v6100_v15  ;;  %9762 = vst [vmem:[#allocation20_spill] sm:$0xff] %v6112_v19 }
  0x87   :  { %348 = vmatpush1.msra.mxu1 %v168_v21  ;;  %v6059_v4 = vld [vmem:[#allocation8 + $0x70] sm:$0xff]  ;;  %v6076_v9 = vld [vmem:[#allocation8 + $0x18] sm:$0xff]  ;;  %v6118_v21 = vld [vmem:[#allocation11 + $0x1a0] sm:$0xff] }
  0x88   :  { %309 = vmatmul.mubr.f32.gmra.mxu1 %v5958_v22  ;;  %349 = vmatprep.subr.mxu1 %v165_v23  ;;  %v6066_v6 = vld [vmem:[#allocation8 + $0x50] sm:$0xff]  ;;  %v6102_v16 = vld [vmem:[#allocation11 + $0x1d8] sm:$0xff]  ;;  %9764 = vst [vmem:[#allocation22_spill] sm:$0xff] %v6118_v21  ;;  %v6124_v23 = vld [vmem:[#allocation11 + $0x188] sm:$0xff] }
  0x89   :  { %350 = vmatpush1.msra.mxu1 %v164_v24  ;;  %314 = vmatprep.mubr.f32.mxu1 %v9283_v0  ;;  %v6073_v8 = vld [vmem:[#allocation8 + $0x30] sm:$0xff]  ;;  %v6114_v20 = vld [vmem:[#allocation11 + $0x1b8] sm:$0xff]  ;;  %9766 = vst [vmem:[#allocation24_spill] sm:$0xff] %v6124_v23 }
  0x8a   :  { %351 = vmatprep.subr.mxu1 %v161_v25  ;;  %v6080_v10 = vld [vmem:[#allocation8 + $0x10] sm:$0xff]  ;;  %9763 = vst [vmem:[#allocation21_spill] sm:$0xff] %v6114_v20  ;;  %v6126_v24 = vld [vmem:[#allocation11 + $0x198] sm:$0xff]  ;;  %v6130_v25 = vld [vmem:[#allocation11 + $0x180] sm:$0xff] }
  0x8b   :  { %352 = vmatpush1.msra.mxu1 %v160_v26  ;;  %v6096_v14 = vld [vmem:[#allocation11 + $0x1f0] sm:$0xff]  ;;  %9767 = vst [vmem:[#allocation25_spill] sm:$0xff] %v6126_v24  ;;  %9768 = vst [vmem:[#allocation26_spill] sm:$0xff] %v6130_v25 }
  0x8c   :  { %315 = vmatmul.mubr.f32.gmra.mxu1 %v5962_v27  ;;  %353 = vmatprep.subr.mxu1 %v157_v28  ;;  %v6108_v18 = vld [vmem:[#allocation11 + $0x1d0] sm:$0xff]  ;;  %v6138_v28 = vld [vmem:[#allocation11 + $0x178] sm:$0xff] }
  0x8d   :  { %354 = vmatpush1.msra.mxu1 %v156_v29  ;;  %320 = vmatprep.mubr.f32.mxu1 %v9283_v0  ;;  %v6132_v26 = vld [vmem:[#allocation11 + $0x190] sm:$0xff]  ;;  %9771 = vst [vmem:[#allocation29_spill] sm:$0xff] %v6138_v28  ;;  %v6142_v29 = vld [vmem:[#allocation11 + $0x160] sm:$0xff] }
  0x8e   :  { %355 = vmatprep.subr.mxu1 %v153_v30  ;;  %9769 = vst [vmem:[#allocation27_spill] sm:$0xff] %v6132_v26  ;;  %9772 = vst [vmem:[#allocation30_spill] sm:$0xff] %v6142_v29  ;;  %v6144_v30 = vld [vmem:[#allocation11 + $0x170] sm:$0xff] }
  0x8f   :  { %356 = vmatpush1.msra.mxu1 %v152_v31  ;;  %9773 = vst [vmem:[#allocation31_spill] sm:$0xff] %v6144_v30  ;;  %v6148_v31 = vld [vmem:[#allocation11 + $0x148] sm:$0xff] }
  0x90   :  { %321 = vmatmul.mubr.f32.gmra.mxu1 %v5966_v32  ;;  %357 = vmatprep.subr.mxu1 %v149_v33  ;;  %9774 = vst [vmem:[#allocation32_spill] sm:$0xff] %v6148_v31  ;;  %v6154_v33 = vld [vmem:[#allocation11 + $0x140] sm:$0xff] }
  0x91   :  { %358 = vmatpush1.msra.mxu1 %v148_v34  ;;  %326 = vmatprep.mubr.f32.mxu1 %v9283_v0  ;;  %9776 = vst [vmem:[#allocation34_spill] sm:$0xff] %v6154_v33  ;;  %v6156_v34 = vld [vmem:[#allocation11 + $0x150] sm:$0xff] }
  0x92   :  { %359 = vmatprep.subr.mxu1 %v145_v35  ;;  %9777 = vst [vmem:[#allocation35_spill] sm:$0xff] %v6156_v34  ;;  %v6160_v35 = vld [vmem:[#allocation11 + $0x128] sm:$0xff] }
  0x93   :  { %360 = vmatpush1.msra.mxu1 %v144_v36  ;;  %9778 = vst [vmem:[#allocation36_spill] sm:$0xff] %v6160_v35  ;;  %v6162_v36 = vld [vmem:[#allocation11 + $0x138] sm:$0xff] }
  0x94   :  { %327 = vmatmul.mubr.f32.gmra.mxu1 %v5970_v37  ;;  %361 = vmatprep.subr.mxu1 %v141_v38  ;;  %9779 = vst [vmem:[#allocation37_spill] sm:$0xff] %v6162_v36  ;;  %v6168_v38 = vld [vmem:[#allocation11 + $0x130] sm:$0xff] }
  0x95   :  { %362 = vmatpush1.msra.mxu1 %v140_v39  ;;  %397 = vmatprep.mubr.f32.mxu1 %v9283_v0  ;;  %9781 = vst [vmem:[#allocation39_spill] sm:$0xff] %v6168_v38  ;;  %v6172_v39 = vld [vmem:[#allocation11 + $0x108] sm:$0xff] }
  0x96   :  { %363 = vmatprep.subr.mxu1 %v137_v40  ;;  %9782 = vst [vmem:[#allocation40_spill] sm:$0xff] %v6172_v39  ;;  %v6174_v40 = vld [vmem:[#allocation11 + $0x118] sm:$0xff] }
  0x97   :  { %364 = vmatpush1.msra.mxu1 %v136_v41  ;;  %9783 = vst [vmem:[#allocation41_spill] sm:$0xff] %v6174_v40  ;;  %v6178_v41 = vld [vmem:[#allocation11 + $0x100] sm:$0xff] }
  0x98   :  { %398 = vmatmul.mubr.f32.vlgmr.msra.gmra.mxu1 %v5940_v1  ;;  %710 = vmatprep.subr.mxu1 %v5974_v42  ;;  %v6048_v1 = vld [vmem:[#allocation8 + $0x98] sm:$0xff]  ;;  %9784 = vst [vmem:[#allocation42_spill] sm:$0xff] %v6178_v41 }
  0x99   :  { %711 = vmatpush1.msra.mxu1 %v5976_v43  ;;  %403 = vmatprep.mubr.f32.mxu1 %v9283_v0 }
  0x9a   :  { %712 = vmatprep.subr.mxu1 %v5978_v44 }
  0x9b   :  { %713 = vmatpush1.msra.mxu1 %v5982_v45 }
  0x9c   :  { %404 = vmatmul.mubr.f32.gmra.mxu1 %v5943_v7  ;;  %714 = vmatprep.subr.mxu1 %v5986_v46  ;;  %v6070_v7 = vld [vmem:[#allocation8 + $0x38] sm:$0xff] }
  0x9d   :  { %715 = vmatpush1.msra.mxu1 %v5989_v47  ;;  %409 = vmatprep.mubr.f32.mxu1 %v9283_v0 }
  0x9e   :  { %716 = vmatprep.subr.mxu1 %v5992_v48 }
  0x9f   :  { %717 = vmatpush1.msra.mxu1 %v5996_v49 }
  0xa0   :  { %410 = vmatmul.mubr.f32.gmra.mxu1 %v5949_v12  ;;  %718 = vmatprep.subr.mxu1 %v6000_v50  ;;  %v6090_v12 = vld [vmem:[#allocation11 + $0x1f8] sm:$0xff] }
  0xa1   :  { %719 = vmatpush1.msra.mxu1 %v6003_v51  ;;  %415 = vmatprep.mubr.f32.mxu1 %v9283_v0 }
  0xa2   :  { %720 = vmatprep.subr.mxu1 %v6006_v52 }
  0xa3   :  { %721 = vmatpush1.msra.mxu1 %v6010_v53 }
  0xa4   :  { %416 = vmatmul.mubr.f32.gmra.mxu1 %v5954_v17  ;;  %722 = vmatprep.subr.mxu1 %v6014_v54  ;;  %v6106_v17 = vld [vmem:[#allocation11 + $0x1c0] sm:$0xff] }
  0xa5   :  { %723 = vmatpush1.msra.mxu1 %v6017_v55  ;;  %421 = vmatprep.mubr.f32.mxu1 %v9283_v0 }
  0xa6   :  { %724 = vmatprep.subr.mxu1 %v6020_v56  ;;  %812 = vmatpush1.msra.mxu0 %v6106_v17 }
  0xa7   :  { %725 = vmatpush1.msra.mxu1 %v6024_v57  ;;  %813 = vmatprep.subr.mxu0 %v6112_v19 }
  0xa8   :  { %422 = vmatmul.mubr.f32.gmra.mxu1 %v5958_v22  ;;  %726 = vmatprep.subr.mxu1 %v6028_v58  ;;  %v6120_v22 = vld [vmem:[#allocation11 + $0x1b0] sm:$0xff] }
  0xa9   :  { %727 = vmatpush1.msra.mxu1 %v6031_v59  ;;  %427 = vmatprep.mubr.f32.mxu1 %v9283_v0  ;;  %9765 = vst [vmem:[#allocation23_spill] sm:$0xff] %v6120_v22 }
  0xaa   :  { %728 = vmatprep.subr.mxu1 %v6034_v60  ;;  %814 = vmatpush1.msra.mxu0 %v6118_v21 }
  0xab   :  { %729 = vmatpush1.msra.mxu1 %v6038_v61  ;;  %815 = vmatprep.subr.mxu0 %v6124_v23 }
  0xac   :  { %428 = vmatmul.mubr.f32.gmra.mxu1 %v5962_v27  ;;  %730 = vmatprep.subr.mxu1 %v6042_v62  ;;  %v6136_v27 = vld [vmem:[#allocation11 + $0x168] sm:$0xff] }
  0xad   :  { %731 = vmatpush1.msra.mxu1 %v6045_v63  ;;  %433 = vmatprep.mubr.f32.mxu1 %v9283_v0  ;;  %9770 = vst [vmem:[#allocation28_spill] sm:$0xff] %v6136_v27 }
  0xae   :  { %732 = vmatprep.subr.mxu1 %v6048_v1  ;;  %816 = vmatpush1.msra.mxu0 %v6130_v25 }
  0xaf   :  { %733 = vmatpush1.msra.mxu1 %v6052_v2  ;;  %817 = vmatprep.subr.mxu0 %v6136_v27 }
  0xb0   :  { %434 = vmatmul.mubr.f32.gmra.mxu1 %v5966_v32  ;;  %734 = vmatprep.subr.mxu1 %v6056_v3  ;;  %v6150_v32 = vld [vmem:[#allocation11 + $0x158] sm:$0xff] }
  0xb1   :  { %735 = vmatpush1.msra.mxu1 %v6059_v4  ;;  %439 = vmatprep.mubr.f32.mxu1 %v9283_v0  ;;  %9775 = vst [vmem:[#allocation33_spill] sm:$0xff] %v6150_v32 }
  0xb2   :  { %736 = vmatprep.subr.mxu1 %v6062_v5  ;;  %818 = vmatpush1.msra.mxu0 %v6142_v29 }
  0xb3   :  { %737 = vmatpush1.msra.mxu1 %v6066_v6  ;;  %819 = vmatprep.subr.mxu0 %v6148_v31  ;;  %v6416_v31 = vld [vmem:[#allocation10 + $0x80] sm:$0xff] }
  0xb4   :  { %440 = vmatmul.mubr.f32.gmra.mxu1 %v5970_v37  ;;  %738 = vmatprep.subr.mxu1 %v6070_v7  ;;  %v6166_v37 = vld [vmem:[#allocation11 + $0x120] sm:$0xff]  ;;  %9865 = vst [vmem:[#allocation122_spill] sm:$0xff] %v6416_v31 }
  0xb5   :  { %739 = vmatpush1.msra.mxu1 %v6073_v8  ;;  %774 = vmatprep.mubr.f32.mxu1 %v9283_v0  ;;  %9780 = vst [vmem:[#allocation38_spill] sm:$0xff] %v6166_v37 }
  0xb6   :  { %740 = vmatprep.subr.mxu1 %v6076_v9  ;;  %820 = vmatpush1.msra.mxu0 %v6154_v33  ;;  %v6310_v33 = vld [vmem:[#allocation10 + $0x1a0] sm:$0xff] }
  0xb7   :  { %741 = vmatpush1.msra.mxu1 %v6080_v10  ;;  %821 = vmatprep.subr.mxu0 %v6160_v35  ;;  %v6292_v35 = vld [vmem:[#allocation10 + $0x1c8] sm:$0xff]  ;;  %9829 = vst [vmem:[#allocation86_spill] sm:$0xff] %v6310_v33 }
  0xb8   :  { %775 = vmatmul.mubr.f32.vlgmr.msra.gmra.mxu1 %v9283_v0  ;;  %880 = vmatprep.subr.mxu1 %v6090_v12  ;;  %9823 = vst [vmem:[#allocation80_spill] sm:$0xff] %v6292_v35 }
  0xb9   :  { %944 = vmatprep.mubr.f32.mxu1 %v9283_v0  ;;  %881 = vmatpush1.msra.mxu1 %v6096_v14  ;;  %v6180_v0 = vld [vmem:[#allocation11 + $0x110] sm:$0xff] }
  0xba   :  { %882 = vmatprep.subr.mxu1 %v6102_v16  ;;  %822 = vmatpush1.msra.mxu0 %v6166_v37  ;;  %9785 = vst [vmem:[#allocation43_spill] sm:$0xff] %v6180_v0  ;;  %v6186_v37 = vld [vmem:[#allocation11 + $0xf8] sm:$0xff] }
  0xbb   :  { %883 = vmatpush1.msra.mxu1 %v6108_v18  ;;  %823 = vmatprep.subr.mxu0 %v6172_v39  ;;  %9787 = vst [vmem:[#allocation45_spill] sm:$0xff] %v6186_v37  ;;  %v6192_v39 = vld [vmem:[#allocation11 + $0xf0] sm:$0xff] }
  0xbc   :  { %884 = vmatprep.subr.mxu1 %v6114_v20  ;;  %824 = vmatpush1.msra.mxu0 %v6178_v41  ;;  %9789 = vst [vmem:[#allocation47_spill] sm:$0xff] %v6192_v39  ;;  %v6198_v41 = vld [vmem:[#allocation11 + $0xd8] sm:$0xff] }
  0xbd   :  { %885 = vmatpush1.msra.mxu1 %v6120_v22  ;;  %9791 = vst [vmem:[#allocation49_spill] sm:$0xff] %v6198_v41 }
  0xbe   :  { %886 = vmatprep.subr.mxu1 %v6126_v24 }
  0xbf   :  { %887 = vmatpush1.msra.mxu1 %v6132_v26 }
  0xc0   :  { %888 = vmatprep.subr.mxu1 %v6138_v28 }
  0xc1   :  { %889 = vmatpush1.msra.mxu1 %v6144_v30 }
  0xc2   :  { %890 = vmatprep.subr.mxu1 %v6150_v32  ;;  %v6400_v32 = vld [vmem:[#allocation10 + $0xb8] sm:$0xff] }
  0xc3   :  { %891 = vmatpush1.msra.mxu1 %v6156_v34  ;;  %v6306_v34 = vld [vmem:[#allocation10 + $0x1b8] sm:$0xff]  ;;  %9860 = vst [vmem:[#allocation117_spill] sm:$0xff] %v6400_v32 }
  0xc4   :  { %892 = vmatprep.subr.mxu1 %v6162_v36  ;;  %v6184_v36 = vld [vmem:[#allocation11 + $0xe8] sm:$0xff]  ;;  %9828 = vst [vmem:[#allocation85_spill] sm:$0xff] %v6306_v34 }
  0xc5   :  { %893 = vmatpush1.msra.mxu1 %v6168_v38  ;;  %9786 = vst [vmem:[#allocation44_spill] sm:$0xff] %v6184_v36  ;;  %825 = vmatprep.subr.mxu0 %v6184_v36  ;;  %v6190_v38 = vld [vmem:[#allocation11 + $0xe0] sm:$0xff]  ;;  %v6204_v36 = vld [vmem:[#allocation11 + $0xd0] sm:$0xff] }
  0xc6   :  { %894 = vmatprep.subr.mxu1 %v6174_v40  ;;  %9788 = vst [vmem:[#allocation46_spill] sm:$0xff] %v6190_v38  ;;  %826 = vmatpush1.msra.mxu0 %v6190_v38  ;;  %v6196_v40 = vld [vmem:[#allocation11 + $0xc8] sm:$0xff]  ;;  %9793 = vst [vmem:[#allocation51_spill] sm:$0xff] %v6204_v36  ;;  %v6210_v38 = vld [vmem:[#allocation11 + $0xb8] sm:$0xff] }
  0xc7   :  { %895 = vmatpush1.msra.mxu1 %v6180_v0  ;;  %9790 = vst [vmem:[#allocation48_spill] sm:$0xff] %v6196_v40  ;;  %827 = vmatprep.subr.mxu0 %v6196_v40  ;;  %v6202_v0 = vld [vmem:[#allocation11 + $0xc0] sm:$0xff]  ;;  %9795 = vst [vmem:[#allocation53_spill] sm:$0xff] %v6210_v38  ;;  %v6216_v40 = vld [vmem:[#allocation11 + $0xb0] sm:$0xff] }
  0xc8   :  { %896 = vmatprep.subr.mxu1 %v6186_v37  ;;  %9792 = vst [vmem:[#allocation50_spill] sm:$0xff] %v6202_v0  ;;  %828 = vmatpush1.msra.mxu0 %v6202_v0  ;;  %v6208_v37 = vld [vmem:[#allocation11 + $0xa8] sm:$0xff]  ;;  %9797 = vst [vmem:[#allocation55_spill] sm:$0xff] %v6216_v40  ;;  %v6222_v0 = vld [vmem:[#allocation11 + $0x98] sm:$0xff] }
  0xc9   :  { %897 = vmatpush1.msra.mxu1 %v6192_v39  ;;  %9794 = vst [vmem:[#allocation52_spill] sm:$0xff] %v6208_v37  ;;  %829 = vmatprep.subr.mxu0 %v6208_v37  ;;  %v6214_v39 = vld [vmem:[#allocation11 + $0xa0] sm:$0xff]  ;;  %9799 = vst [vmem:[#allocation57_spill] sm:$0xff] %v6222_v0  ;;  %v6228_v37 = vld [vmem:[#allocation11 + $0x90] sm:$0xff] }
  0xca   :  { %898 = vmatprep.subr.mxu1 %v6198_v41  ;;  %9796 = vst [vmem:[#allocation54_spill] sm:$0xff] %v6214_v39  ;;  %830 = vmatpush1.msra.mxu0 %v6214_v39  ;;  %v6220_v41 = vld [vmem:[#allocation11 + $0x88] sm:$0xff]  ;;  %9801 = vst [vmem:[#allocation59_spill] sm:$0xff] %v6228_v37  ;;  %v6234_v39 = vld [vmem:[#allocation11 + $0x78] sm:$0xff] }
  0xcb   :  { %899 = vmatpush1.msra.mxu1 %v6204_v36  ;;  %9798 = vst [vmem:[#allocation56_spill] sm:$0xff] %v6220_v41  ;;  %831 = vmatprep.subr.mxu0 %v6220_v41  ;;  %v6226_v36 = vld [vmem:[#allocation11 + $0x80] sm:$0xff]  ;;  %9803 = vst [vmem:[#allocation61_spill] sm:$0xff] %v6234_v39  ;;  %v6240_v41 = vld [vmem:[#allocation11 + $0x70] sm:$0xff] }
  0xcc   :  { %900 = vmatprep.subr.mxu1 %v6210_v38  ;;  %9800 = vst [vmem:[#allocation58_spill] sm:$0xff] %v6226_v36  ;;  %832 = vmatpush1.msra.mxu0 %v6226_v36  ;;  %v6232_v38 = vld [vmem:[#allocation11 + $0x68] sm:$0xff]  ;;  %9805 = vst [vmem:[#allocation63_spill] sm:$0xff] %v6240_v41  ;;  %v6246_v36 = vld [vmem:[#allocation11 + $0x58] sm:$0xff] }
  0xcd   :  { %901 = vmatpush1.msra.mxu1 %v6216_v40  ;;  %9802 = vst [vmem:[#allocation60_spill] sm:$0xff] %v6232_v38  ;;  %833 = vmatprep.subr.mxu0 %v6232_v38  ;;  %v6238_v40 = vld [vmem:[#allocation11 + $0x60] sm:$0xff]  ;;  %9807 = vst [vmem:[#allocation65_spill] sm:$0xff] %v6246_v36  ;;  %v6252_v38 = vld [vmem:[#allocation11 + $0x50] sm:$0xff] }
  0xce   :  { %902 = vmatprep.subr.mxu1 %v6222_v0  ;;  %9804 = vst [vmem:[#allocation62_spill] sm:$0xff] %v6238_v40  ;;  %834 = vmatpush1.msra.mxu0 %v6238_v40  ;;  %v6244_v0 = vld [vmem:[#allocation11 + $0x48] sm:$0xff]  ;;  %9809 = vst [vmem:[#allocation67_spill] sm:$0xff] %v6252_v38  ;;  %v6258_v40 = vld [vmem:[#allocation11 + $0x38] sm:$0xff] }
  0xcf   :  { %903 = vmatpush1.msra.mxu1 %v6228_v37  ;;  %9806 = vst [vmem:[#allocation64_spill] sm:$0xff] %v6244_v0  ;;  %835 = vmatprep.subr.mxu0 %v6244_v0  ;;  %v6250_v37 = vld [vmem:[#allocation11 + $0x40] sm:$0xff]  ;;  %9811 = vst [vmem:[#allocation69_spill] sm:$0xff] %v6258_v40  ;;  %v6264_v0 = vld [vmem:[#allocation11 + $0x30] sm:$0xff] }
  0xd0   :  { %904 = vmatprep.subr.mxu1 %v6234_v39  ;;  %9808 = vst [vmem:[#allocation66_spill] sm:$0xff] %v6250_v37  ;;  %836 = vmatpush1.msra.mxu0 %v6250_v37  ;;  %v6256_v39 = vld [vmem:[#allocation11 + $0x28] sm:$0xff]  ;;  %9813 = vst [vmem:[#allocation71_spill] sm:$0xff] %v6264_v0  ;;  %v6270_v37 = vld [vmem:[#allocation11 + $0x18] sm:$0xff] }
  0xd1   :  { %905 = vmatpush1.msra.mxu1 %v6240_v41  ;;  %9810 = vst [vmem:[#allocation68_spill] sm:$0xff] %v6256_v39  ;;  %837 = vmatprep.subr.mxu0 %v6256_v39  ;;  %v6262_v41 = vld [vmem:[#allocation11 + $0x20] sm:$0xff]  ;;  %9815 = vst [vmem:[#allocation73_spill] sm:$0xff] %v6270_v37  ;;  %v6276_v39 = vld [vmem:[#allocation11 + $0x10] sm:$0xff] }
  0xd2   :  { %906 = vmatprep.subr.mxu1 %v6246_v36  ;;  %9812 = vst [vmem:[#allocation70_spill] sm:$0xff] %v6262_v41  ;;  %838 = vmatpush1.msra.mxu0 %v6262_v41  ;;  %v6268_v36 = vld [vmem:[#allocation11 + $0x8] sm:$0xff]  ;;  %9817 = vst [vmem:[#allocation75_spill] sm:$0xff] %v6276_v39  ;;  %v6282_v41 = vld [vmem:[#allocation10 + $0x1f8] sm:$0xff] }
  0xd3   :  { %907 = vmatpush1.msra.mxu1 %v6252_v38  ;;  %9814 = vst [vmem:[#allocation72_spill] sm:$0xff] %v6268_v36  ;;  %839 = vmatprep.subr.mxu0 %v6268_v36  ;;  %v6274_v38 = vld [vmem:[#allocation11] sm:$0xff]  ;;  %9819 = vst [vmem:[#allocation77_spill] sm:$0xff] %v6282_v41  ;;  %v6288_v36 = vld [vmem:[#allocation10 + $0x1f0] sm:$0xff] }
  0xd4   :  { %908 = vmatprep.subr.mxu1 %v6258_v40  ;;  %9816 = vst [vmem:[#allocation74_spill] sm:$0xff] %v6274_v38  ;;  %840 = vmatpush1.msra.mxu0 %v6274_v38  ;;  %v6280_v40 = vld [vmem:[#allocation10 + $0x1e8] sm:$0xff]  ;;  %9821 = vst [vmem:[#allocation79_spill] sm:$0xff] %v6288_v36  ;;  %v6294_v38 = vld [vmem:[#allocation10 + $0x1d8] sm:$0xff] }
  0xd5   :  { %909 = vmatpush1.msra.mxu1 %v6264_v0  ;;  %9818 = vst [vmem:[#allocation76_spill] sm:$0xff] %v6280_v40  ;;  %951 = vmatprep.subr.mxu0 %v6280_v40  ;;  %v6286_v0 = vld [vmem:[#allocation10 + $0x1e0] sm:$0xff]  ;;  %9824 = vst [vmem:[#allocation81_spill] sm:$0xff] %v6294_v38  ;;  %v6300_v40 = vld [vmem:[#allocation10 + $0x1d0] sm:$0xff] }
  0xd6   :  { %910 = vmatprep.subr.mxu1 %v6270_v37  ;;  %9820 = vst [vmem:[#allocation78_spill] sm:$0xff] %v6286_v0  ;;  %v9822_v37 = vmov 0.0   ;;  %9826 = vst [vmem:[#allocation83_spill] sm:$0xff] %v6300_v40 }
  0xd7   :  { %911 = vmatpush1.msra.mxu1 %v6276_v39  ;;  %874 = vmatmul.mubr.f32.vlgmr.msra.gmra.mxu0 %v9822_v37  ;;  %v6298_v39 = vld [vmem:[#allocation10 + $0x1c0] sm:$0xff] }
  0xd8   :  { %1022 = vmatprep.subr.mxu1 %v6282_v41  ;;  %945 = vmatmul.mubr.f32.vlgmr.msra.gmra.mxu1 %v9822_v37  ;;  %9825 = vst [vmem:[#allocation82_spill] sm:$0xff] %v6298_v39  ;;  %v6304_v41 = vld [vmem:[#allocation10 + $0x1a8] sm:$0xff] }
  0xd9   :  { %952 = vmatpush1.msra.mxu0 %v6286_v0  ;;  %1023 = vmatpush1.msra.mxu1 %v6288_v36  ;;  %9827 = vst [vmem:[#allocation84_spill] sm:$0xff] %v6304_v41  ;;  %v6312_v0 = vld [vmem:[#allocation10 + $0x1b0] sm:$0xff]  ;;  %v6316_v36 = vld [vmem:[#allocation10 + $0x188] sm:$0xff] }
  0xda   :  { %953 = vmatprep.subr.mxu0 %v6292_v35  ;;  %1024 = vmatprep.subr.mxu1 %v6294_v38  ;;  %9830 = vst [vmem:[#allocation87_spill] sm:$0xff] %v6312_v0  ;;  %9831 = vst [vmem:[#allocation88_spill] sm:$0xff] %v6316_v36  ;;  %v6318_v35 = vld [vmem:[#allocation10 + $0x198] sm:$0xff]  ;;  %v6322_v38 = vld [vmem:[#allocation10 + $0x180] sm:$0xff] }
  0xdb   :  { %954 = vmatpush1.msra.mxu0 %v6298_v39  ;;  %1025 = vmatpush1.msra.mxu1 %v6300_v40  ;;  %9832 = vst [vmem:[#allocation89_spill] sm:$0xff] %v6318_v35  ;;  %9833 = vst [vmem:[#allocation90_spill] sm:$0xff] %v6322_v38  ;;  %v6324_v39 = vld [vmem:[#allocation10 + $0x190] sm:$0xff]  ;;  %v6328_v40 = vld [vmem:[#allocation10 + $0x168] sm:$0xff] }
  0xdc   :  { %955 = vmatprep.subr.mxu0 %v6304_v41  ;;  %1026 = vmatprep.subr.mxu1 %v6306_v34  ;;  %9834 = vst [vmem:[#allocation91_spill] sm:$0xff] %v6324_v39  ;;  %9835 = vst [vmem:[#allocation92_spill] sm:$0xff] %v6328_v40  ;;  %v6330_v41 = vld [vmem:[#allocation10 + $0x178] sm:$0xff]  ;;  %v6334_v34 = vld [vmem:[#allocation10 + $0x160] sm:$0xff] }
  0xdd   :  { %956 = vmatpush1.msra.mxu0 %v6310_v33  ;;  %1027 = vmatpush1.msra.mxu1 %v6312_v0  ;;  %9836 = vst [vmem:[#allocation93_spill] sm:$0xff] %v6330_v41  ;;  %9837 = vst [vmem:[#allocation94_spill] sm:$0xff] %v6334_v34  ;;  %v6336_v33 = vld [vmem:[#allocation10 + $0x170] sm:$0xff]  ;;  %v6340_v0 = vld [vmem:[#allocation10 + $0x148] sm:$0xff] }
  0xde   :  { %957 = vmatprep.subr.mxu0 %v6316_v36  ;;  %1028 = vmatprep.subr.mxu1 %v6318_v35  ;;  %9838 = vst [vmem:[#allocation95_spill] sm:$0xff] %v6336_v33  ;;  %9839 = vst [vmem:[#allocation96_spill] sm:$0xff] %v6340_v0  ;;  %v6342_v36 = vld [vmem:[#allocation10 + $0x158] sm:$0xff]  ;;  %v6346_v35 = vld [vmem:[#allocation10 + $0x140] sm:$0xff] }
  0xdf   :  { %958 = vmatpush1.msra.mxu0 %v6322_v38  ;;  %1029 = vmatpush1.msra.mxu1 %v6324_v39  ;;  %9840 = vst [vmem:[#allocation97_spill] sm:$0xff] %v6342_v36  ;;  %9841 = vst [vmem:[#allocation98_spill] sm:$0xff] %v6346_v35  ;;  %v6348_v38 = vld [vmem:[#allocation10 + $0x150] sm:$0xff]  ;;  %v6352_v39 = vld [vmem:[#allocation10 + $0x128] sm:$0xff] }
  0xe0   :  { %959 = vmatprep.subr.mxu0 %v6328_v40  ;;  %1030 = vmatprep.subr.mxu1 %v6330_v41  ;;  %9842 = vst [vmem:[#allocation99_spill] sm:$0xff] %v6348_v38  ;;  %9843 = vst [vmem:[#allocation100_spill] sm:$0xff] %v6352_v39  ;;  %v6354_v40 = vld [vmem:[#allocation10 + $0x138] sm:$0xff]  ;;  %v6358_v41 = vld [vmem:[#allocation10 + $0x120] sm:$0xff] }
  0xe1   :  { %960 = vmatpush1.msra.mxu0 %v6334_v34  ;;  %1031 = vmatpush1.msra.mxu1 %v6336_v33  ;;  %9844 = vst [vmem:[#allocation101_spill] sm:$0xff] %v6354_v40  ;;  %9845 = vst [vmem:[#allocation102_spill] sm:$0xff] %v6358_v41  ;;  %v6360_v34 = vld [vmem:[#allocation10 + $0x130] sm:$0xff]  ;;  %v6364_v33 = vld [vmem:[#allocation10 + $0x108] sm:$0xff] }
  0xe2   :  { %961 = vmatprep.subr.mxu0 %v6340_v0  ;;  %1032 = vmatprep.subr.mxu1 %v6342_v36  ;;  %9846 = vst [vmem:[#allocation103_spill] sm:$0xff] %v6360_v34  ;;  %9847 = vst [vmem:[#allocation104_spill] sm:$0xff] %v6364_v33  ;;  %v6366_v0 = vld [vmem:[#allocation10 + $0x118] sm:$0xff]  ;;  %v6370_v36 = vld [vmem:[#allocation10 + $0x100] sm:$0xff] }
  0xe3   :  { %962 = vmatpush1.msra.mxu0 %v6346_v35  ;;  %1033 = vmatpush1.msra.mxu1 %v6348_v38  ;;  %9848 = vst [vmem:[#allocation105_spill] sm:$0xff] %v6366_v0  ;;  %9849 = vst [vmem:[#allocation106_spill] sm:$0xff] %v6370_v36  ;;  %v6372_v35 = vld [vmem:[#allocation10 + $0x110] sm:$0xff]  ;;  %v6376_v38 = vld [vmem:[#allocation10 + $0xe8] sm:$0xff] }
  0xe4   :  { %963 = vmatprep.subr.mxu0 %v6352_v39  ;;  %1034 = vmatprep.subr.mxu1 %v6354_v40  ;;  %9850 = vst [vmem:[#allocation107_spill] sm:$0xff] %v6372_v35  ;;  %9851 = vst [vmem:[#allocation108_spill] sm:$0xff] %v6376_v38  ;;  %v6378_v39 = vld [vmem:[#allocation10 + $0xf8] sm:$0xff]  ;;  %v6382_v40 = vld [vmem:[#allocation10 + $0xe0] sm:$0xff] }
  0xe5   :  { %964 = vmatpush1.msra.mxu0 %v6358_v41  ;;  %1035 = vmatpush1.msra.mxu1 %v6360_v34  ;;  %9852 = vst [vmem:[#allocation109_spill] sm:$0xff] %v6378_v39  ;;  %9853 = vst [vmem:[#allocation110_spill] sm:$0xff] %v6382_v40  ;;  %v6384_v41 = vld [vmem:[#allocation10 + $0xf0] sm:$0xff]  ;;  %v6388_v34 = vld [vmem:[#allocation10 + $0xc8] sm:$0xff] }
  0xe6   :  { %965 = vmatprep.subr.mxu0 %v6364_v33  ;;  %1036 = vmatprep.subr.mxu1 %v6366_v0  ;;  %9854 = vst [vmem:[#allocation111_spill] sm:$0xff] %v6384_v41  ;;  %9855 = vst [vmem:[#allocation112_spill] sm:$0xff] %v6388_v34  ;;  %v6390_v33 = vld [vmem:[#allocation10 + $0xd8] sm:$0xff]  ;;  %v6392_v0 = vld [vmem:[#allocation10 + $0xc0] sm:$0xff] }
  0xe7   :  { %966 = vmatpush1.msra.mxu0 %v6370_v36  ;;  %1037 = vmatpush1.msra.mxu1 %v6372_v35  ;;  %9856 = vst [vmem:[#allocation113_spill] sm:$0xff] %v6390_v33  ;;  %9857 = vst [vmem:[#allocation114_spill] sm:$0xff] %v6392_v0  ;;  %v6396_v36 = vld [vmem:[#allocation10 + $0xd0] sm:$0xff]  ;;  %v6398_v35 = vld [vmem:[#allocation10 + $0xa8] sm:$0xff] }
  0xe8   :  { %967 = vmatprep.subr.mxu0 %v6376_v38  ;;  %1038 = vmatprep.subr.mxu1 %v6378_v39  ;;  %9858 = vst [vmem:[#allocation115_spill] sm:$0xff] %v6396_v36  ;;  %9859 = vst [vmem:[#allocation116_spill] sm:$0xff] %v6398_v35  ;;  %v6404_v39 = vld [vmem:[#allocation10 + $0xa0] sm:$0xff]  ;;  %v6406_v38 = vld [vmem:[#allocation10 + $0xb0] sm:$0xff] }
  0xe9   :  { %968 = vmatpush1.msra.mxu0 %v6382_v40  ;;  %1039 = vmatpush1.msra.mxu1 %v6384_v41  ;;  %9861 = vst [vmem:[#allocation118_spill] sm:$0xff] %v6404_v39  ;;  %9862 = vst [vmem:[#allocation119_spill] sm:$0xff] %v6406_v38  ;;  %v6410_v40 = vld [vmem:[#allocation10 + $0x88] sm:$0xff]  ;;  %v6412_v41 = vld [vmem:[#allocation10 + $0x98] sm:$0xff] }
  0xea   :  { %969 = vmatprep.subr.mxu0 %v6388_v34  ;;  %1040 = vmatprep.subr.mxu1 %v6390_v33  ;;  %9863 = vst [vmem:[#allocation120_spill] sm:$0xff] %v6410_v40  ;;  %9864 = vst [vmem:[#allocation121_spill] sm:$0xff] %v6412_v41  ;;  %v6418_v34 = vld [vmem:[#allocation10 + $0x90] sm:$0xff]  ;;  %v6422_v33 = vld [vmem:[#allocation10 + $0x68] sm:$0xff] }
  0xeb   :  { %970 = vmatpush1.msra.mxu0 %v6392_v0  ;;  %1041 = vmatpush1.msra.mxu1 %v6396_v36  ;;  %9866 = vst [vmem:[#allocation123_spill] sm:$0xff] %v6418_v34  ;;  %9867 = vst [vmem:[#allocation124_spill] sm:$0xff] %v6422_v33  ;;  %v6424_v0 = vld [vmem:[#allocation10 + $0x78] sm:$0xff]  ;;  %v6428_v36 = vld [vmem:[#allocation10 + $0x60] sm:$0xff] }
  0xec   :  { %971 = vmatprep.subr.mxu0 %v6398_v35  ;;  %1042 = vmatprep.subr.mxu1 %v6400_v32  ;;  %9868 = vst [vmem:[#allocation125_spill] sm:$0xff] %v6424_v0  ;;  %9869 = vst [vmem:[#allocation126_spill] sm:$0xff] %v6428_v36  ;;  %v6430_v35 = vld [vmem:[#allocation10 + $0x70] sm:$0xff]  ;;  %v6434_v32 = vld [vmem:[#allocation10 + $0x48] sm:$0xff] }
  0xed   :  { %972 = vmatpush1.msra.mxu0 %v6404_v39  ;;  %1043 = vmatpush1.msra.mxu1 %v6406_v38  ;;  %9870 = vst [vmem:[#allocation127_spill] sm:$0xff] %v6430_v35  ;;  %9871 = vst [vmem:[#allocation128_spill] sm:$0xff] %v6434_v32  ;;  %v6436_v39 = vld [vmem:[#allocation10 + $0x58] sm:$0xff]  ;;  %v6440_v38 = vld [vmem:[#allocation10 + $0x40] sm:$0xff] }
  0xee   :  { %973 = vmatprep.subr.mxu0 %v6410_v40  ;;  %1044 = vmatprep.subr.mxu1 %v6412_v41  ;;  %9872 = vst [vmem:[#allocation129_spill] sm:$0xff] %v6436_v39  ;;  %9873 = vst [vmem:[#allocation130_spill] sm:$0xff] %v6440_v38  ;;  %v6442_v40 = vld [vmem:[#allocation10 + $0x50] sm:$0xff]  ;;  %v6446_v41 = vld [vmem:[#allocation10 + $0x28] sm:$0xff] }
  0xef   :  { %974 = vmatpush1.msra.mxu0 %v6416_v31  ;;  %1045 = vmatpush1.msra.mxu1 %v6418_v34  ;;  %9874 = vst [vmem:[#allocation131_spill] sm:$0xff] %v6442_v40  ;;  %9875 = vst [vmem:[#allocation132_spill] sm:$0xff] %v6446_v41  ;;  %v6448_v31 = vld [vmem:[#allocation10 + $0x38] sm:$0xff]  ;;  %v6452_v34 = vld [vmem:[#allocation10 + $0x20] sm:$0xff] }
  0xf0   :  { %975 = vmatprep.subr.mxu0 %v6422_v33  ;;  %1046 = vmatprep.subr.mxu1 %v6424_v0  ;;  %9876 = vst [vmem:[#allocation133_spill] sm:$0xff] %v6448_v31  ;;  %9877 = vst [vmem:[#allocation134_spill] sm:$0xff] %v6452_v34  ;;  %v6454_v33 = vld [vmem:[#allocation10 + $0x30] sm:$0xff]  ;;  %v6458_v0 = vld [vmem:[#allocation10 + $0x8] sm:$0xff] }
  0xf1   :  { %976 = vmatpush1.msra.mxu0 %v6428_v36  ;;  %1047 = vmatpush1.msra.mxu1 %v6430_v35  ;;  %9878 = vst [vmem:[#allocation135_spill] sm:$0xff] %v6454_v33  ;;  %9879 = vst [vmem:[#allocation136_spill] sm:$0xff] %v6458_v0  ;;  %v6460_v36 = vld [vmem:[#allocation10 + $0x18] sm:$0xff]  ;;  %v6464_v35 = vld [vmem:[#allocation10] sm:$0xff] }
  0xf2   :  { %977 = vmatprep.subr.mxu0 %v6434_v32  ;;  %1048 = vmatprep.subr.mxu1 %v6436_v39  ;;  %9880 = vst [vmem:[#allocation137_spill] sm:$0xff] %v6460_v36  ;;  %9881 = vst [vmem:[#allocation138_spill] sm:$0xff] %v6464_v35  ;;  %v6466_v32 = vld [vmem:[#allocation10 + $0x10] sm:$0xff] }
  0xf3   :  { %978 = vmatpush1.msra.mxu0 %v6440_v38  ;;  %1049 = vmatpush1.msra.mxu1 %v6442_v40  ;;  %9882 = vst [vmem:[#allocation139_spill] sm:$0xff] %v6466_v32 }
  0xf4   :  { %979 = vmatprep.subr.mxu0 %v6446_v41  ;;  %1050 = vmatprep.subr.mxu1 %v6448_v31  ;;  %v6476_v31 = vld [vmem:[#allocation8 + $0x1e8] sm:$0xff] }
  0xf5   :  { %980 = vmatpush1.msra.mxu0 %v6452_v34  ;;  %1051 = vmatpush1.msra.mxu1 %v6454_v33  ;;  %9883 = vst [vmem:[#allocation140_spill] sm:$0xff] %v6476_v31  ;;  %v200_v34 = vlaneseq }
  0xf6   :  { %981 = vmatprep.subr.mxu0 %v6458_v0  ;;  %1052 = vmatprep.subr.mxu1 %v6460_v36  ;;  %v198_v36 = vld [vmem:[#allocation7] sm:$0xf] }
  0xf7   :  { %982 = vmatpush1.msra.mxu0 %v6464_v35  ;;  %1053 = vmatpush1.msra.mxu1 %v6466_v32  ;;  %v6480_v33 = vshrl.u32 %v200_v34, 7 }
  0xf8   :  { %1015 = vmatprep.mubr.f32.mxu0 %v9822_v37  ;;  %1086 = vmatprep.mubr.f32.mxu1 %v9822_v37 }
  0xf9   :  { %1142 = vmatprep.subr.mxu0 %v6476_v31  ;;  %1213 = vmatprep.subr.mxu1 %v5974_v42  ;;  %v9401_v0 = vsub.s32 0, %v6480_v33  ;;  %v9404_v35 = vsub.s32 1, %v6480_v33 }
  0xfb   :  { %v203_v40 = vrot.slane %v198_v36, %v9401_v0  ;;  %v207_v39 = vrot.slane %v198_v36, %v9404_v35 }
 0x138   :  { %v286_v41 = vpop.f32.mrf.mxu1 }
 0x13a   :  { %v288_v32 = vpop.f32.mrf.mxu1 }
 0x13c   :  { %v292_v38 = vpop.f32.mrf.mxu1 }
 0x13d   :  { %v6488_v31 = vadd.f32 %v292_v38, %v203_v40 }
 0x13e   :  { %v294_v42 = vpop.f32.mrf.mxu1 }
 0x13f   :  { %9884 = vst [vmem:[#allocation141_spill] sm:$0xff] %v6488_v31  ;;  %v6490_v30 = vadd.f32 %v294_v42, %v207_v39 }
 0x140   :  { %v298_v34 = vpop.f32.mrf.mxu1 }
 0x141   :  { %9885 = vst [vmem:[#allocation142_spill] sm:$0xff] %v6490_v30  ;;  %v6492_v29 = vadd.f32 %v298_v34, %v203_v40 }
 0x142   :  { %v300_v28 = vpop.f32.mrf.mxu1 }
 0x143   :  { %9886 = vst [vmem:[#allocation143_spill] sm:$0xff] %v6492_v29  ;;  %v6494_v27 = vadd.f32 %v300_v28, %v207_v39 }
 0x144   :  { %v304_v26 = vpop.f32.mrf.mxu1 }
 0x145   :  { %9887 = vst [vmem:[#allocation144_spill] sm:$0xff] %v6494_v27  ;;  %v6496_v25 = vadd.f32 %v304_v26, %v203_v40 }
 0x146   :  { %v306_v24 = vpop.f32.mrf.mxu1 }
 0x147   :  { %9888 = vst [vmem:[#allocation145_spill] sm:$0xff] %v6496_v25  ;;  %v6498_v0 = vadd.f32 %v306_v24, %v207_v39 }
 0x148   :  { %v310_v23 = vpop.f32.mrf.mxu1 }
 0x149   :  { %9889 = vst [vmem:[#allocation146_spill] sm:$0xff] %v6498_v0  ;;  %v6500_v22 = vadd.f32 %v310_v23, %v203_v40  ;;  %v705_v23 = vpop.f32.mrf.mxu0 }
 0x14a   :  { %v312_v38 = vpop.f32.mrf.mxu1 }
 0x14b   :  { %9890 = vst [vmem:[#allocation147_spill] sm:$0xff] %v6500_v22  ;;  %v6502_v35 = vadd.f32 %v312_v38, %v207_v39  ;;  %v9408_v38 = vsub.s32 2, %v6480_v33 }
 0x14c   :  { %v316_v42 = vpop.f32.mrf.mxu1 }
 0x14d   :  { %9891 = vst [vmem:[#allocation148_spill] sm:$0xff] %v6502_v35  ;;  %v6504_v30 = vadd.f32 %v316_v42, %v203_v40  ;;  %v707_v35 = vpop.f32.mrf.mxu0 }
 0x14e   :  { %v318_v34 = vpop.f32.mrf.mxu1 }
 0x14f   :  { %9892 = vst [vmem:[#allocation149_spill] sm:$0xff] %v6504_v30  ;;  %v6506_v29 = vadd.f32 %v318_v34, %v207_v39  ;;  %v289_v30 = vadd.f32 %v288_v32, %v207_v39  ;;  %v9409_v34 = vsub.s32 3, %v6480_v33 }
 0x150   :  { %v322_v28 = vpop.f32.mrf.mxu1 }
 0x151   :  { %9893 = vst [vmem:[#allocation150_spill] sm:$0xff] %v6506_v29  ;;  %v6508_v27 = vadd.f32 %v322_v28, %v203_v40  ;;  %v287_v29 = vadd.f32 %v286_v41, %v203_v40 }
 0x152   :  { %v324_v26 = vpop.f32.mrf.mxu1 }
 0x153   :  { %9894 = vst [vmem:[#allocation151_spill] sm:$0xff] %v6508_v27  ;;  %v6510_v25 = vadd.f32 %v324_v26, %v207_v39  ;;  %v211_v26 = vrot.slane %v198_v36, %v9408_v38  ;;  %v782_v27 = vadd.f32 %v707_v35, %v289_v30 }
 0x154   :  { %v328_v24 = vpop.f32.mrf.mxu1 }
 0x155   :  { %9895 = vst [vmem:[#allocation152_spill] sm:$0xff] %v6510_v25  ;;  %v6512_v0 = vadd.f32 %v328_v24, %v203_v40  ;;  %v215_v24 = vrot.slane %v198_v36, %v9409_v34 }
 0x156   :  { %v330_v22 = vpop.f32.mrf.mxu1 }
 0x157   :  { %9896 = vst [vmem:[#allocation153_spill] sm:$0xff] %v6512_v0  ;;  %v6514_v31 = vadd.f32 %v330_v22, %v207_v39  ;;  %v781_v22 = vadd.f32 %v705_v23, %v287_v29  ;;  %v4673_v39 = vmul.f32 -1.442695, %v782_v27 }
 0x158   :  { %v399_v42 = vpop.f32.mrf.mxu1 }
 0x159   :  { %9897 = vst [vmem:[#allocation154_spill] sm:$0xff] %v6514_v31  ;;  %v4672_v40 = vmul.f32 -1.442695, %v781_v22  ;;  %4802 = vpow2.f32 %v4673_v39 }
 0x15a   :  { %v401_v28 = vpop.f32.mrf.mxu1 }
 0x15b   :  { %4804 = vpow2.f32 %v4672_v40 }
 0x15c   :  { %v405_v25 = vpop.f32.mrf.mxu1 }
 0x15d   :  { %v6522_v0 = vadd.f32 %v405_v25, %v211_v26 }
 0x15e   :  { %v407_v31 = vpop.f32.mrf.mxu1 }
 0x15f   :  { %v6524_v21 = vadd.f32 %v407_v31, %v215_v24 }
 0x160   :  { %v411_v32 = vpop.f32.mrf.mxu1 }
 0x161   :  { %v6526_v20 = vadd.f32 %v411_v32, %v211_v26 }
 0x162   :  { %v413_v41 = vpop.f32.mrf.mxu1 }
 0x163   :  { %9898 = vst [vmem:[#allocation155_spill] sm:$0xff] %v6526_v20  ;;  %v6528_v19 = vadd.f32 %v413_v41, %v215_v24  ;;  %v400_v20 = vadd.f32 %v399_v42, %v211_v26 }
 0x164   :  { %v417_v38 = vpop.f32.mrf.mxu1 }
 0x165   :  { %9899 = vst [vmem:[#allocation156_spill] sm:$0xff] %v6528_v19  ;;  %v6530_v30 = vadd.f32 %v417_v38, %v211_v26 }
 0x166   :  { %v419_v35 = vpop.f32.mrf.mxu1  ;;  %v4803_v38 = vpop.eup %4802 }
 0x167   :  { %9900 = vst [vmem:[#allocation157_spill] sm:$0xff] %v6530_v30  ;;  %v6532_v25 = vadd.f32 %v419_v35, %v215_v24 }
 0x168   :  { %v423_v29 = vpop.f32.mrf.mxu1  ;;  %v4805_v30 = vpop.eup %4804 }
 0x169   :  { %9901 = vst [vmem:[#allocation158_spill] sm:$0xff] %v6532_v25  ;;  %v6534_v36 = vadd.f32 %v423_v29, %v211_v26  ;;  %v794_v29 = vadd.f32 1.0, %v4803_v38 }
 0x16a   :  { %v425_v31 = vpop.f32.mrf.mxu1 }
 0x16b   :  { %9902 = vst [vmem:[#allocation159_spill] sm:$0xff] %v6534_v36  ;;  %v6536_v23 = vadd.f32 %v425_v31, %v215_v24  ;;  %v788_v31 = vadd.f32 1.0, %v4805_v30  ;;  %4806 = vrcp.f32 %v794_v29  ;;  %v9925_v29 = vld [vmem:[#allocation35_spill] sm:$0xff] }
 0x16c   :  { %v429_v27 = vpop.f32.mrf.mxu1 }
 0x16d   :  { %9903 = vst [vmem:[#allocation160_spill] sm:$0xff] %v6536_v23  ;;  %v6538_v32 = vadd.f32 %v429_v27, %v211_v26  ;;  %4808 = vrcp.f32 %v788_v31  ;;  %v9926_v31 = vld [vmem:[#allocation36_spill] sm:$0xff] }
 0x16e   :  { %v431_v22 = vpop.f32.mrf.mxu1 }
 0x16f   :  { %9904 = vst [vmem:[#allocation161_spill] sm:$0xff] %v6538_v32  ;;  %v6540_v41 = vadd.f32 %v431_v22, %v215_v24  ;;  %v402_v22 = vadd.f32 %v401_v28, %v215_v24 }
 0x170   :  { %v435_v34 = vpop.f32.mrf.mxu1 }
 0x171   :  { %9905 = vst [vmem:[#allocation162_spill] sm:$0xff] %v6540_v41  ;;  %v6542_v39 = vadd.f32 %v435_v34, %v211_v26 }
 0x172   :  { %v437_v40 = vpop.f32.mrf.mxu1 }
 0x173   :  { %9906 = vst [vmem:[#allocation163_spill] sm:$0xff] %v6542_v39  ;;  %v6544_v35 = vadd.f32 %v437_v40, %v215_v24 }
 0x174   :  { %v441_v25 = vpop.f32.mrf.mxu1 }
 0x175   :  { %9907 = vst [vmem:[#allocation164_spill] sm:$0xff] %v6544_v35  ;;  %v6546_v36 = vadd.f32 %v441_v25, %v211_v26 }
 0x176   :  { %v443_v23 = vpop.f32.mrf.mxu1 }
 0x177   :  { %9908 = vst [vmem:[#allocation165_spill] sm:$0xff] %v6546_v36  ;;  %v6548_v27 = vadd.f32 %v443_v23, %v215_v24  ;;  %v6565_v23 = vld [vmem:[#allocation8 + $0x1c0] sm:$0xff] }
 0x178   :  { %v776_v32 = vpop.f32.mrf.mxu1  ;;  %v4807_v40 = vpop.eup %4806 }
 0x179   :  { %9909 = vst [vmem:[#allocation166_spill] sm:$0xff] %v6548_v27  ;;  %v783_v41 = vadd.f32 %v776_v32, %v400_v20  ;;  %v804_v25 = vmul.f32 0.0, %v4807_v40  ;;  %v6569_v32 = vld [vmem:[#allocation8 + $0x1a8] sm:$0xff]  ;;  %v9929_v40 = vld [vmem:[#allocation39_spill] sm:$0xff] }
 0x17a   :  { %v778_v34 = vpop.f32.mrf.mxu1  ;;  %v4809_v35 = vpop.eup %4808  ;;  %v7063_v27 = vld [vmem:[#allocation11 + $0x128] sm:$0xff] }
 0x17b   :  { %4810 = vtanh.f32 %v783_v41  ;;  %v784_v39 = vadd.f32 %v778_v34, %v402_v22  ;;  %v6573_v41 = vld [vmem:[#allocation8 + $0x1a0] sm:$0xff]  ;;  %v9927_v22 = vld [vmem:[#allocation37_spill] sm:$0xff]  ;;  %v9928_v34 = vld [vmem:[#allocation38_spill] sm:$0xff] }
 0x17d   :  { %v4674_v19 = vmul.f32 -1.442695, %v784_v39  ;;  %v9923_v39 = vld [vmem:[#allocation33_spill] sm:$0xff] }
 0x17f   :  { %4812 = vpow2.f32 %v4674_v19  ;;  %v6557_v19 = vld [vmem:[#allocation8 + $0x1e0] sm:$0xff] }
 0x188   :  { %v4811_v38 = vpop.eup %4810 }
 0x189   :  { %v805_v36 = vmul.f32 %v4811_v38, %v4809_v35  ;;  %v9924_v35 = vld [vmem:[#allocation34_spill] sm:$0xff]  ;;  %v9930_v38 = vld [vmem:[#allocation40_spill] sm:$0xff] }
 0x18a   :  { %10057 = vst [vmem:[#allocation40_spill] sm:$0xff] %v7063_v27 }
 0x18b   :  { %v6550_v30 = vadd.f32 %v805_v36, %v804_v25  ;;  %v6561_v36 = vld [vmem:[#allocation8 + $0x1c8] sm:$0xff] }
 0x18c   :  { %v4813_v42 = vpop.eup %4812  ;;  %v9931_v25 = vld [vmem:[#allocation41_spill] sm:$0xff] }
 0x18d   :  { %v801_v26 = vadd.f32 1.0, %v4813_v42  ;;  %4814 = vtanh.f32 %v6550_v30  ;;  %v9932_v42 = vld [vmem:[#allocation42_spill] sm:$0xff] }
 0x18f   :  { %4816 = vrcp.f32 %v801_v26  ;;  %v9933_v26 = vld [vmem:[#allocation43_spill] sm:$0xff] }
 0x19a   :  { %v4815_v28 = vpop.eup %4814 }
 0x19c   :  { %v4817_v20 = vpop.eup %4816 }
 0x19d   :  { %v6553_v24 = vmul.f32 %v4817_v20, %v4815_v28  ;;  %v9934_v28 = vld [vmem:[#allocation44_spill] sm:$0xff]  ;;  %v9935_v20 = vld [vmem:[#allocation45_spill] sm:$0xff] }
 0x19f   :  { %1016 = vmatmul.mubr.f32.vlgmr.msra.gmra.mxu0 %v6553_v24  ;;  %1087 = vmatmul.mubr.f32.vlgmr.msra.gmra.mxu1 %v6553_v24 }
 0x1a0   :  { %1143 = vmatpush1.msra.mxu0 %v6557_v19  ;;  %1214 = vmatpush1.msra.mxu1 %v5976_v43  ;;  %v6577_v43 = vld [vmem:[#allocation8 + $0x188] sm:$0xff] }
 0x1a1   :  { %1144 = vmatprep.subr.mxu0 %v6561_v36  ;;  %1215 = vmatprep.subr.mxu1 %v5978_v44  ;;  %v6581_v44 = vld [vmem:[#allocation8 + $0x180] sm:$0xff] }
 0x1a2   :  { %1145 = vmatpush1.msra.mxu0 %v6565_v23  ;;  %1216 = vmatpush1.msra.mxu1 %v5982_v45  ;;  %v6585_v45 = vld [vmem:[#allocation8 + $0x168] sm:$0xff] }
 0x1a3   :  { %1146 = vmatprep.subr.mxu0 %v6569_v32  ;;  %1217 = vmatprep.subr.mxu1 %v5986_v46  ;;  %v6589_v46 = vld [vmem:[#allocation8 + $0x160] sm:$0xff] }
 0x1a4   :  { %1147 = vmatpush1.msra.mxu0 %v6573_v41  ;;  %1218 = vmatpush1.msra.mxu1 %v5989_v47  ;;  %v6593_v47 = vld [vmem:[#allocation8 + $0x148] sm:$0xff] }
 0x1a5   :  { %1148 = vmatprep.subr.mxu0 %v6577_v43  ;;  %1219 = vmatprep.subr.mxu1 %v5992_v48  ;;  %v6597_v48 = vld [vmem:[#allocation8 + $0x140] sm:$0xff] }
 0x1a6   :  { %1149 = vmatpush1.msra.mxu0 %v6581_v44  ;;  %1220 = vmatpush1.msra.mxu1 %v5996_v49  ;;  %v6601_v49 = vld [vmem:[#allocation8 + $0x128] sm:$0xff] }
 0x1a7   :  { %1150 = vmatprep.subr.mxu0 %v6585_v45  ;;  %1221 = vmatprep.subr.mxu1 %v6000_v50  ;;  %v6605_v50 = vld [vmem:[#allocation8 + $0x120] sm:$0xff] }
 0x1a8   :  { %1151 = vmatpush1.msra.mxu0 %v6589_v46  ;;  %1222 = vmatpush1.msra.mxu1 %v6003_v51  ;;  %v6609_v51 = vld [vmem:[#allocation8 + $0x108] sm:$0xff] }
 0x1a9   :  { %1152 = vmatprep.subr.mxu0 %v6593_v47  ;;  %1223 = vmatprep.subr.mxu1 %v6006_v52  ;;  %v6613_v52 = vld [vmem:[#allocation8 + $0x100] sm:$0xff] }
 0x1aa   :  { %1153 = vmatpush1.msra.mxu0 %v6597_v48  ;;  %1224 = vmatpush1.msra.mxu1 %v6010_v53  ;;  %v6617_v53 = vld [vmem:[#allocation8 + $0xe8] sm:$0xff] }
 0x1ab   :  { %1154 = vmatprep.subr.mxu0 %v6601_v49  ;;  %1225 = vmatprep.subr.mxu1 %v6014_v54  ;;  %v6621_v54 = vld [vmem:[#allocation8 + $0xe0] sm:$0xff] }
 0x1ac   :  { %1155 = vmatpush1.msra.mxu0 %v6605_v50  ;;  %1226 = vmatpush1.msra.mxu1 %v6017_v55  ;;  %v6625_v55 = vld [vmem:[#allocation8 + $0xc8] sm:$0xff] }
 0x1ad   :  { %1156 = vmatprep.subr.mxu0 %v6609_v51  ;;  %1227 = vmatprep.subr.mxu1 %v6020_v56  ;;  %v6629_v56 = vld [vmem:[#allocation8 + $0xc0] sm:$0xff] }
 0x1ae   :  { %1157 = vmatpush1.msra.mxu0 %v6613_v52  ;;  %1228 = vmatpush1.msra.mxu1 %v6024_v57  ;;  %v6633_v57 = vld [vmem:[#allocation8 + $0xa8] sm:$0xff] }
 0x1af   :  { %1158 = vmatprep.subr.mxu0 %v6617_v53  ;;  %1229 = vmatprep.subr.mxu1 %v6028_v58  ;;  %v6637_v58 = vld [vmem:[#allocation8 + $0xa0] sm:$0xff] }
 0x1b0   :  { %1159 = vmatpush1.msra.mxu0 %v6621_v54  ;;  %1230 = vmatpush1.msra.mxu1 %v6031_v59  ;;  %v6641_v59 = vld [vmem:[#allocation8 + $0x88] sm:$0xff] }
 0x1b1   :  { %1160 = vmatprep.subr.mxu0 %v6625_v55  ;;  %1231 = vmatprep.subr.mxu1 %v6034_v60  ;;  %v6645_v60 = vld [vmem:[#allocation8 + $0x80] sm:$0xff] }
 0x1b2   :  { %1161 = vmatpush1.msra.mxu0 %v6629_v56  ;;  %1232 = vmatpush1.msra.mxu1 %v6038_v61  ;;  %v6649_v61 = vld [vmem:[#allocation8 + $0x68] sm:$0xff] }
 0x1b3   :  { %1162 = vmatprep.subr.mxu0 %v6633_v57  ;;  %1233 = vmatprep.subr.mxu1 %v6042_v62  ;;  %v6653_v62 = vld [vmem:[#allocation8 + $0x60] sm:$0xff] }
 0x1b4   :  { %1163 = vmatpush1.msra.mxu0 %v6637_v58  ;;  %1234 = vmatpush1.msra.mxu1 %v6045_v63  ;;  %v6657_v63 = vld [vmem:[#allocation8 + $0x48] sm:$0xff] }
 0x1b5   :  { %1164 = vmatprep.subr.mxu0 %v6641_v59  ;;  %1235 = vmatprep.subr.mxu1 %v6048_v1  ;;  %v6661_v1 = vld [vmem:[#allocation8 + $0x40] sm:$0xff] }
 0x1b6   :  { %1165 = vmatpush1.msra.mxu0 %v6645_v60  ;;  %1236 = vmatpush1.msra.mxu1 %v6052_v2  ;;  %v6665_v2 = vld [vmem:[#allocation8 + $0x28] sm:$0xff] }
 0x1b7   :  { %1166 = vmatprep.subr.mxu0 %v6649_v61  ;;  %1237 = vmatprep.subr.mxu1 %v6056_v3  ;;  %v6669_v3 = vld [vmem:[#allocation8 + $0x20] sm:$0xff] }
 0x1b8   :  { %1167 = vmatpush1.msra.mxu0 %v6653_v62  ;;  %1238 = vmatpush1.msra.mxu1 %v6059_v4  ;;  %v6673_v4 = vld [vmem:[#allocation8 + $0x8] sm:$0xff] }
 0x1b9   :  { %1168 = vmatprep.subr.mxu0 %v6657_v63  ;;  %1239 = vmatprep.subr.mxu1 %v6062_v5  ;;  %v6677_v5 = vld [vmem:[#allocation8] sm:$0xff] }
 0x1ba   :  { %1169 = vmatpush1.msra.mxu0 %v6661_v1  ;;  %1240 = vmatpush1.msra.mxu1 %v6066_v6  ;;  %v9910_v6 = vld [vmem:[#allocation20_spill] sm:$0xff] }
 0x1bb   :  { %1170 = vmatprep.subr.mxu0 %v6665_v2  ;;  %1241 = vmatprep.subr.mxu1 %v6070_v7  ;;  %v9911_v7 = vld [vmem:[#allocation21_spill] sm:$0xff] }
 0x1bc   :  { %1171 = vmatpush1.msra.mxu0 %v6669_v3  ;;  %1242 = vmatpush1.msra.mxu1 %v6073_v8  ;;  %v9912_v8 = vld [vmem:[#allocation22_spill] sm:$0xff] }
 0x1bd   :  { %1172 = vmatprep.subr.mxu0 %v6673_v4  ;;  %1243 = vmatprep.subr.mxu1 %v6076_v9  ;;  %v9913_v9 = vld [vmem:[#allocation23_spill] sm:$0xff] }
 0x1be   :  { %1173 = vmatpush1.msra.mxu0 %v6677_v5  ;;  %1206 = vmatprep.mubr.f32.mxu0 %v9822_v37 }
 0x1bf   :  { %1244 = vmatpush1.msra.mxu1 %v6080_v10  ;;  %1277 = vmatprep.mubr.f32.mxu1 %v9822_v37  ;;  %v9914_v10 = vld [vmem:[#allocation24_spill] sm:$0xff] }
 0x1c0   :  { %1207 = vmatmul.mubr.f32.vlgmr.msra.gmra.mxu0 %v6553_v24  ;;  %1278 = vmatmul.mubr.f32.vlgmr.msra.gmra.mxu1 %v6553_v24  ;;  %v9936_v24 = vld [vmem:[#allocation46_spill] sm:$0xff] }
 0x1c1   :  { %1312 = vmatprep.subr.mxu0 %v6088_v11  ;;  %1383 = vmatprep.subr.mxu1 %v6090_v12  ;;  %v9915_v11 = vld [vmem:[#allocation25_spill] sm:$0xff]  ;;  %v9916_v12 = vld [vmem:[#allocation26_spill] sm:$0xff] }
 0x1c2   :  { %1313 = vmatpush1.msra.mxu0 %v6094_v13  ;;  %1384 = vmatpush1.msra.mxu1 %v6096_v14  ;;  %v9917_v13 = vld [vmem:[#allocation27_spill] sm:$0xff]  ;;  %v9918_v14 = vld [vmem:[#allocation28_spill] sm:$0xff] }
 0x1c3   :  { %1314 = vmatprep.subr.mxu0 %v6100_v15  ;;  %1385 = vmatprep.subr.mxu1 %v6102_v16  ;;  %v9919_v15 = vld [vmem:[#allocation29_spill] sm:$0xff]  ;;  %v9920_v16 = vld [vmem:[#allocation30_spill] sm:$0xff] }
 0x1c4   :  { %1315 = vmatpush1.msra.mxu0 %v6106_v17  ;;  %1386 = vmatpush1.msra.mxu1 %v6108_v18  ;;  %v9921_v17 = vld [vmem:[#allocation31_spill] sm:$0xff]  ;;  %v9922_v18 = vld [vmem:[#allocation32_spill] sm:$0xff] }
 0x1c5   :  { %1316 = vmatprep.subr.mxu0 %v9910_v6  ;;  %1387 = vmatprep.subr.mxu1 %v9911_v7  ;;  %v9937_v6 = vld [vmem:[#allocation47_spill] sm:$0xff]  ;;  %v9938_v7 = vld [vmem:[#allocation48_spill] sm:$0xff] }
 0x1c6   :  { %1317 = vmatpush1.msra.mxu0 %v9912_v8  ;;  %1388 = vmatpush1.msra.mxu1 %v9913_v9  ;;  %v9939_v8 = vld [vmem:[#allocation49_spill] sm:$0xff]  ;;  %v9940_v9 = vld [vmem:[#allocation50_spill] sm:$0xff] }
 0x1c7   :  { %1318 = vmatprep.subr.mxu0 %v9914_v10  ;;  %1389 = vmatprep.subr.mxu1 %v9915_v11  ;;  %v9941_v10 = vld [vmem:[#allocation51_spill] sm:$0xff]  ;;  %v9942_v11 = vld [vmem:[#allocation52_spill] sm:$0xff] }
 0x1c8   :  { %1319 = vmatpush1.msra.mxu0 %v9916_v12  ;;  %1390 = vmatpush1.msra.mxu1 %v9917_v13  ;;  %v9943_v12 = vld [vmem:[#allocation53_spill] sm:$0xff]  ;;  %v9944_v13 = vld [vmem:[#allocation54_spill] sm:$0xff] }
 0x1c9   :  { %1320 = vmatprep.subr.mxu0 %v9918_v14  ;;  %1391 = vmatprep.subr.mxu1 %v9919_v15  ;;  %v9945_v14 = vld [vmem:[#allocation55_spill] sm:$0xff]  ;;  %v9946_v15 = vld [vmem:[#allocation56_spill] sm:$0xff] }
 0x1ca   :  { %1321 = vmatpush1.msra.mxu0 %v9920_v16  ;;  %1392 = vmatpush1.msra.mxu1 %v9921_v17  ;;  %v9947_v16 = vld [vmem:[#allocation57_spill] sm:$0xff]  ;;  %v9948_v17 = vld [vmem:[#allocation58_spill] sm:$0xff] }
 0x1cb   :  { %1322 = vmatprep.subr.mxu0 %v9922_v18  ;;  %1393 = vmatprep.subr.mxu1 %v9923_v39  ;;  %v9949_v18 = vld [vmem:[#allocation59_spill] sm:$0xff]  ;;  %v9950_v39 = vld [vmem:[#allocation60_spill] sm:$0xff] }
 0x1cc   :  { %1323 = vmatpush1.msra.mxu0 %v9924_v35  ;;  %1394 = vmatpush1.msra.mxu1 %v9925_v29  ;;  %v9951_v35 = vld [vmem:[#allocation61_spill] sm:$0xff]  ;;  %v9952_v29 = vld [vmem:[#allocation62_spill] sm:$0xff] }
 0x1cd   :  { %1324 = vmatprep.subr.mxu0 %v9926_v31  ;;  %1395 = vmatprep.subr.mxu1 %v9927_v22  ;;  %v9953_v31 = vld [vmem:[#allocation63_spill] sm:$0xff]  ;;  %v9954_v22 = vld [vmem:[#allocation64_spill] sm:$0xff] }
 0x1ce   :  { %1325 = vmatpush1.msra.mxu0 %v9928_v34  ;;  %1396 = vmatpush1.msra.mxu1 %v9929_v40  ;;  %v9955_v34 = vld [vmem:[#allocation65_spill] sm:$0xff]  ;;  %v9956_v40 = vld [vmem:[#allocation66_spill] sm:$0xff] }
 0x1cf   :  { %1326 = vmatprep.subr.mxu0 %v9930_v38  ;;  %1397 = vmatprep.subr.mxu1 %v9931_v25  ;;  %v9957_v38 = vld [vmem:[#allocation67_spill] sm:$0xff]  ;;  %v9958_v25 = vld [vmem:[#allocation68_spill] sm:$0xff] }
 0x1d0   :  { %1327 = vmatpush1.msra.mxu0 %v9932_v42  ;;  %1398 = vmatpush1.msra.mxu1 %v9933_v26  ;;  %v9959_v42 = vld [vmem:[#allocation69_spill] sm:$0xff]  ;;  %v9960_v26 = vld [vmem:[#allocation70_spill] sm:$0xff] }
 0x1d1   :  { %1328 = vmatprep.subr.mxu0 %v9934_v28  ;;  %1399 = vmatprep.subr.mxu1 %v9935_v20  ;;  %v9961_v28 = vld [vmem:[#allocation71_spill] sm:$0xff]  ;;  %v9962_v20 = vld [vmem:[#allocation72_spill] sm:$0xff] }
 0x1d2   :  { %1329 = vmatpush1.msra.mxu0 %v9936_v24  ;;  %1400 = vmatpush1.msra.mxu1 %v9937_v6  ;;  %v9963_v24 = vld [vmem:[#allocation73_spill] sm:$0xff]  ;;  %v9964_v6 = vld [vmem:[#allocation74_spill] sm:$0xff] }
 0x1d3   :  { %1330 = vmatprep.subr.mxu0 %v9938_v7  ;;  %1401 = vmatprep.subr.mxu1 %v9939_v8  ;;  %v9965_v7 = vld [vmem:[#allocation75_spill] sm:$0xff]  ;;  %v9966_v8 = vld [vmem:[#allocation76_spill] sm:$0xff] }
 0x1d4   :  { %1331 = vmatpush1.msra.mxu0 %v9940_v9  ;;  %1402 = vmatpush1.msra.mxu1 %v9941_v10  ;;  %v9967_v9 = vld [vmem:[#allocation77_spill] sm:$0xff]  ;;  %v875_v10 = vpop.f32.mrf.mxu0 }
 0x1d5   :  { %1332 = vmatprep.subr.mxu0 %v9942_v11  ;;  %1403 = vmatprep.subr.mxu1 %v9943_v12  ;;  %v638_v11 = vld [vmem:[%s9279_s6] sm:$0xf]  ;;  %v946_v12 = vpop.f32.mrf.mxu1 }
 0x1d6   :  { %1333 = vmatpush1.msra.mxu0 %v9944_v13  ;;  %1404 = vmatpush1.msra.mxu1 %v9945_v14  ;;  %v877_v13 = vpop.f32.mrf.mxu0  ;;  %v9968_v14 = vsub.s32 0, %v6480_v33 }
 0x1d7   :  { %1334 = vmatprep.subr.mxu0 %v9946_v15  ;;  %1405 = vmatprep.subr.mxu1 %v9947_v16 }
 0x1d8   :  { %1335 = vmatpush1.msra.mxu0 %v9948_v17  ;;  %1406 = vmatpush1.msra.mxu1 %v9949_v18  ;;  %v6758_v15 = vrot.slane %v638_v11, %v9968_v14  ;;  %v948_v17 = vpop.f32.mrf.mxu1 }
 0x1d9   :  { %1336 = vmatprep.subr.mxu0 %v9950_v39  ;;  %1407 = vmatprep.subr.mxu1 %v9951_v35  ;;  %v9969_v39 = vsub.s32 1, %v6480_v33 }
 0x1da   :  { %1337 = vmatpush1.msra.mxu0 %v9952_v29  ;;  %1408 = vmatpush1.msra.mxu1 %v9953_v31 }
 0x1db   :  { %1338 = vmatprep.subr.mxu0 %v9954_v22  ;;  %1409 = vmatprep.subr.mxu1 %v9955_v34  ;;  %v6762_v35 = vrot.slane %v638_v11, %v9969_v39  ;;  %v9972_v39 = vld [vmem:[#allocation141_spill] sm:$0xff] }
 0x1dc   :  { %1339 = vmatpush1.msra.mxu0 %v9956_v40  ;;  %1410 = vmatpush1.msra.mxu1 %v9957_v38 }
 0x1dd   :  { %1340 = vmatprep.subr.mxu0 %v9958_v25  ;;  %1411 = vmatprep.subr.mxu1 %v9959_v42 }
 0x1de   :  { %1341 = vmatpush1.msra.mxu0 %v9960_v26  ;;  %1412 = vmatpush1.msra.mxu1 %v9961_v28  ;;  %v9970_v28 = vsub.s32 3, %v6480_v33 }
 0x1df   :  { %1342 = vmatprep.subr.mxu0 %v9962_v20  ;;  %1413 = vmatprep.subr.mxu1 %v9963_v24 }
 0x1e0   :  { %1343 = vmatpush1.msra.mxu0 %v9964_v6  ;;  %1414 = vmatpush1.msra.mxu1 %v9965_v7  ;;  %v6768_v20 = vrot.slane %v638_v11, %v9970_v28  ;;  %v9971_v7 = vsub.s32 2, %v6480_v33 }
 0x1e1   :  { %1376 = vmatprep.mubr.f32.mxu0 %v9822_v37  ;;  %1447 = vmatprep.mubr.f32.mxu1 %v9822_v37 }
 0x1e2   :  { %1454 = vmatprep.subr.mxu0 %v9966_v8  ;;  %1525 = vmatprep.subr.mxu1 %v9967_v9  ;;  %v6773_v8 = vrot.slane %v638_v11, %v9971_v7  ;;  %v9973_v11 = vld [vmem:[#allocation142_spill] sm:$0xff] }
 0x25f   :  { %v1017_v16 = vpop.f32.mrf.mxu0  ;;  %v1088_v22 = vpop.f32.mrf.mxu1 }
 0x260   :  { %v1018_v18 = vadd.f32 %v1017_v16, %v875_v10  ;;  %v1089_v6 = vadd.f32 %v1088_v22, %v946_v12 }
 0x261   :  { %v1019_v29 = vpop.f32.mrf.mxu0  ;;  %v1090_v42 = vpop.f32.mrf.mxu1 }
 0x262   :  { %v1114_v31 = vadd.f32 %v6758_v15, %v1018_v18  ;;  %v1020_v34 = vadd.f32 %v1019_v29, %v877_v13  ;;  %v1091_v26 = vadd.f32 %v1090_v42, %v948_v17  ;;  %v1116_v13 = vadd.f32 %v6773_v8, %v1089_v6 }
 0x264   :  { %v4675_v40 = vmul.f32 -1.442695, %v1114_v31  ;;  %v1115_v38 = vadd.f32 %v6762_v35, %v1020_v34  ;;  %v1117_v24 = vadd.f32 %v6768_v20, %v1091_v26 }
 0x266   :  { %4818 = vpow2.f32 %v4675_v40  ;;  %v4676_v25 = vmul.f32 -1.442695, %v1115_v38  ;;  %v4677_v9 = vmul.f32 -1.442695, %v1117_v24 }
 0x268   :  { %4820 = vpow2.f32 %v4676_v25 }
 0x269   :  { %4822 = vpow2.f32 %v4677_v9 }
 0x273   :  { %v4819_v10 = vpop.eup %4818 }
 0x274   :  { %v1121_v14 = vadd.f32 1.0, %v4819_v10 }
 0x275   :  { %v4821_v16 = vpop.eup %4820 }
 0x276   :  { %4824 = vrcp.f32 %v1121_v14  ;;  %v1127_v17 = vadd.f32 1.0, %v4821_v16  ;;  %v4823_v31 = vpop.eup %4822 }
 0x277   :  { %4826 = vtanh.f32 %v1116_v13  ;;  %v1134_v25 = vadd.f32 1.0, %v4823_v31 }
 0x278   :  { %4828 = vrcp.f32 %v1127_v17 }
 0x280   :  { %v1208_v18 = vpop.f32.mrf.mxu0  ;;  %v1279_v24 = vpop.f32.mrf.mxu1 }
 0x281   :  { %v1284_v29 = vadd.f32 %v1208_v18, %v9972_v39  ;;  %v1286_v10 = vadd.f32 %v1279_v24, %v6522_v0  ;;  %v9976_v0 = vld [vmem:[#allocation79_spill] sm:$0xff]  ;;  %v9987_v24 = vld [vmem:[#allocation90_spill] sm:$0xff] }
 0x282   :  { %v1210_v12 = vpop.f32.mrf.mxu0  ;;  %v1281_v7 = vpop.f32.mrf.mxu1 }
 0x283   :  { %v4825_v22 = vpop.eup %4824  ;;  %v4678_v33 = vmul.f32 -1.442695, %v1284_v29  ;;  %v1285_v34 = vadd.f32 %v1210_v12, %v9973_v11  ;;  %v1287_v9 = vadd.f32 %v1281_v7, %v6524_v21  ;;  %v9975_v21 = vld [vmem:[#allocation78_spill] sm:$0xff]  ;;  %v9977_v12 = vld [vmem:[#allocation80_spill] sm:$0xff]  ;;  %v9980_v11 = vld [vmem:[#allocation83_spill] sm:$0xff] }
 0x284   :  { %v4827_v40 = vpop.eup %4826  ;;  %v9988_v7 = vld [vmem:[#allocation91_spill] sm:$0xff] }
 0x285   :  { %v4829_v38 = vpop.eup %4828  ;;  %4830 = vpow2.f32 %v4678_v33  ;;  %v4679_v42 = vmul.f32 -1.442695, %v1285_v34  ;;  %v1138_v28 = vmul.f32 %v4827_v40, %v4825_v22  ;;  %v4680_v14 = vmul.f32 -1.442695, %v1287_v9  ;;  %v9978_v22 = vld [vmem:[#allocation81_spill] sm:$0xff]  ;;  %v9979_v33 = vld [vmem:[#allocation82_spill] sm:$0xff] }
 0x286   :  { %v1137_v26 = vmul.f32 0.0, %v4829_v38  ;;  %v9981_v34 = vld [vmem:[#allocation84_spill] sm:$0xff]  ;;  %v9982_v40 = vld [vmem:[#allocation85_spill] sm:$0xff]  ;;  %v9983_v38 = vld [vmem:[#allocation86_spill] sm:$0xff] }
 0x287   :  { %4832 = vpow2.f32 %v4679_v42  ;;  %v9985_v42 = vld [vmem:[#allocation88_spill] sm:$0xff] }
 0x288   :  { %v6778_v6 = vadd.f32 %v1138_v28, %v1137_v26  ;;  %4834 = vrcp.f32 %v1134_v25  ;;  %v9984_v25 = vld [vmem:[#allocation87_spill] sm:$0xff]  ;;  %v9986_v26 = vld [vmem:[#allocation89_spill] sm:$0xff] }
 0x28a   :  { %4836 = vtanh.f32 %v6778_v6 }
 0x28b   :  { %4838 = vtanh.f32 %v1286_v10  ;;  %v9989_v10 = vld [vmem:[#allocation92_spill] sm:$0xff] }
 0x292   :  { %v4831_v13 = vpop.eup %4830 }
 0x293   :  { %v1291_v16 = vadd.f32 1.0, %v4831_v13  ;;  %v9990_v13 = vld [vmem:[#allocation93_spill] sm:$0xff] }
 0x294   :  { %v4833_v17 = vpop.eup %4832 }
 0x295   :  { %4840 = vrcp.f32 %v1291_v16  ;;  %v1297_v18 = vadd.f32 1.0, %v4833_v17  ;;  %v4835_v39 = vpop.eup %4834  ;;  %v9991_v17 = vld [vmem:[#allocation94_spill] sm:$0xff] }
 0x296   :  { %4842 = vpow2.f32 %v4680_v14 }
 0x297   :  { %v4837_v29 = vpop.eup %4836  ;;  %4844 = vrcp.f32 %v1297_v18  ;;  %v9992_v18 = vld [vmem:[#allocation95_spill] sm:$0xff] }
 0x298   :  { %v6783_v31 = vmul.f32 %v4837_v29, %v4835_v39  ;;  %v4839_v28 = vpop.eup %4838  ;;  %v9993_v29 = vld [vmem:[#allocation96_spill] sm:$0xff] }
 0x29a   :  { %9974 = vst [vmem:[#allocation20_spill] sm:$0xff] %v6783_v31  ;;  %1377 = vmatmul.mubr.f32.vlgmr.msra.gmra.mxu0 %v6783_v31  ;;  %1448 = vmatmul.mubr.f32.vlgmr.msra.gmra.mxu1 %v6783_v31  ;;  %v7060_v31 = vld [vmem:[#allocation11 + $0x150] sm:$0xff] }
 0x29b   :  { %1455 = vmatpush1.msra.mxu0 %v9975_v21  ;;  %1526 = vmatpush1.msra.mxu1 %v9976_v0  ;;  %v9994_v21 = vld [vmem:[#allocation97_spill] sm:$0xff]  ;;  %10056 = vst [vmem:[#allocation39_spill] sm:$0xff] %v7060_v31 }
 0x29c   :  { %1456 = vmatprep.subr.mxu0 %v9977_v12  ;;  %1527 = vmatprep.subr.mxu1 %v9978_v22  ;;  %v9995_v12 = vld [vmem:[#allocation98_spill] sm:$0xff]  ;;  %v9996_v22 = vld [vmem:[#allocation99_spill] sm:$0xff] }
 0x29d   :  { %1457 = vmatpush1.msra.mxu0 %v9979_v33  ;;  %1528 = vmatpush1.msra.mxu1 %v9980_v11  ;;  %v9997_v33 = vld [vmem:[#allocation100_spill] sm:$0xff]  ;;  %v9998_v11 = vld [vmem:[#allocation101_spill] sm:$0xff] }
 0x29e   :  { %1458 = vmatprep.subr.mxu0 %v9981_v34  ;;  %1529 = vmatprep.subr.mxu1 %v9982_v40 }
 0x29f   :  { %1459 = vmatpush1.msra.mxu0 %v9983_v38  ;;  %1530 = vmatpush1.msra.mxu1 %v9984_v25  ;;  %v9999_v38 = vld [vmem:[#allocation102_spill] sm:$0xff]  ;;  %v10000_v25 = vld [vmem:[#allocation103_spill] sm:$0xff] }
 0x2a0   :  { %1460 = vmatprep.subr.mxu0 %v9985_v42  ;;  %1531 = vmatprep.subr.mxu1 %v9986_v26  ;;  %v10001_v42 = vld [vmem:[#allocation104_spill] sm:$0xff]  ;;  %v10002_v26 = vld [vmem:[#allocation105_spill] sm:$0xff] }
 0x2a1   :  { %1461 = vmatpush1.msra.mxu0 %v9987_v24  ;;  %1532 = vmatpush1.msra.mxu1 %v9988_v7  ;;  %v10005_v24 = vld [vmem:[#allocation108_spill] sm:$0xff]  ;;  %v10006_v7 = vld [vmem:[#allocation109_spill] sm:$0xff] }
 0x2a2   :  { %v4841_v9 = vpop.eup %4840  ;;  %1462 = vmatprep.subr.mxu0 %v9989_v10  ;;  %1533 = vmatprep.subr.mxu1 %v9990_v13  ;;  %v10008_v10 = vld [vmem:[#allocation111_spill] sm:$0xff]  ;;  %v10009_v13 = vld [vmem:[#allocation112_spill] sm:$0xff] }
 0x2a3   :  { %v4843_v14 = vpop.eup %4842  ;;  %v1308_v16 = vmul.f32 %v4841_v9, %v4839_v28  ;;  %1463 = vmatpush1.msra.mxu0 %v9991_v17  ;;  %1534 = vmatpush1.msra.mxu1 %v9992_v18  ;;  %v10004_v28 = vld [vmem:[#allocation107_spill] sm:$0xff]  ;;  %v10007_v9 = vld [vmem:[#allocation110_spill] sm:$0xff]  ;;  %v10013_v18 = vld [vmem:[#allocation116_spill] sm:$0xff] }
 0x2a4   :  { %v4845_v39 = vpop.eup %4844  ;;  %1464 = vmatprep.subr.mxu0 %v9993_v29  ;;  %1535 = vmatprep.subr.mxu1 %v9994_v21  ;;  %v1304_v40 = vadd.f32 1.0, %v4843_v14  ;;  %v10010_v14 = vld [vmem:[#allocation113_spill] sm:$0xff]  ;;  %v10012_v17 = vld [vmem:[#allocation115_spill] sm:$0xff]  ;;  %v10015_v29 = vld [vmem:[#allocation118_spill] sm:$0xff] }
 0x2a5   :  { %v1307_v0 = vmul.f32 %v4845_v39, %v6550_v30  ;;  %1465 = vmatpush1.msra.mxu0 %v9995_v12  ;;  %1536 = vmatpush1.msra.mxu1 %v9996_v22  ;;  %v10003_v30 = vld [vmem:[#allocation106_spill] sm:$0xff]  ;;  %v10014_v39 = vld [vmem:[#allocation117_spill] sm:$0xff]  ;;  %v10016_v21 = vld [vmem:[#allocation119_spill] sm:$0xff] }
 0x2a6   :  { %1466 = vmatprep.subr.mxu0 %v9997_v33  ;;  %1537 = vmatprep.subr.mxu1 %v9998_v11  ;;  %v10018_v12 = vld [vmem:[#allocation121_spill] sm:$0xff]  ;;  %v10019_v22 = vld [vmem:[#allocation122_spill] sm:$0xff]  ;;  %v10020_v33 = vld [vmem:[#allocation123_spill] sm:$0xff] }
 0x2a7   :  { %v6812_v34 = vadd.f32 %v1308_v16, %v1307_v0  ;;  %1467 = vmatpush1.msra.mxu0 %v9999_v38  ;;  %1538 = vmatpush1.msra.mxu1 %v10000_v25  ;;  %v10011_v16 = vld [vmem:[#allocation114_spill] sm:$0xff]  ;;  %v10017_v0 = vld [vmem:[#allocation120_spill] sm:$0xff]  ;;  %v10024_v25 = vld [vmem:[#allocation127_spill] sm:$0xff] }
 0x2a8   :  { %1468 = vmatprep.subr.mxu0 %v10001_v42  ;;  %1539 = vmatprep.subr.mxu1 %v10002_v26  ;;  %v10021_v11 = vld [vmem:[#allocation124_spill] sm:$0xff]  ;;  %v10023_v38 = vld [vmem:[#allocation126_spill] sm:$0xff]  ;;  %v10026_v26 = vld [vmem:[#allocation129_spill] sm:$0xff] }
 0x2a9   :  { %1469 = vmatpush1.msra.mxu0 %v10003_v30  ;;  %1540 = vmatpush1.msra.mxu1 %v10004_v28  ;;  %4846 = vtanh.f32 %v6812_v34  ;;  %v10025_v42 = vld [vmem:[#allocation128_spill] sm:$0xff]  ;;  %v10027_v30 = vld [vmem:[#allocation130_spill] sm:$0xff]  ;;  %v10028_v28 = vld [vmem:[#allocation131_spill] sm:$0xff] }
 0x2aa   :  { %1470 = vmatprep.subr.mxu0 %v10005_v24  ;;  %1541 = vmatprep.subr.mxu1 %v10006_v7  ;;  %4848 = vrcp.f32 %v1304_v40  ;;  %v10022_v40 = vld [vmem:[#allocation125_spill] sm:$0xff]  ;;  %v10029_v7 = vld [vmem:[#allocation132_spill] sm:$0xff] }
 0x2ab   :  { %1471 = vmatpush1.msra.mxu0 %v10007_v9  ;;  %1542 = vmatpush1.msra.mxu1 %v10008_v10  ;;  %v10030_v9 = vld [vmem:[#allocation133_spill] sm:$0xff]  ;;  %v10031_v10 = vld [vmem:[#allocation134_spill] sm:$0xff] }
 0x2ac   :  { %1472 = vmatprep.subr.mxu0 %v10009_v13  ;;  %1543 = vmatprep.subr.mxu1 %v10010_v14  ;;  %v10032_v13 = vld [vmem:[#allocation135_spill] sm:$0xff] }
 0x2ad   :  { %1473 = vmatpush1.msra.mxu0 %v10011_v16  ;;  %1544 = vmatpush1.msra.mxu1 %v10012_v17  ;;  %v10033_v16 = vld [vmem:[#allocation136_spill] sm:$0xff]  ;;  %v10034_v17 = vld [vmem:[#allocation137_spill] sm:$0xff] }
 0x2ae   :  { %1474 = vmatprep.subr.mxu0 %v10013_v18  ;;  %1545 = vmatprep.subr.mxu1 %v10014_v39  ;;  %v10035_v18 = vld [vmem:[#allocation138_spill] sm:$0xff] }
 0x2af   :  { %1475 = vmatpush1.msra.mxu0 %v10015_v29  ;;  %1546 = vmatpush1.msra.mxu1 %v10016_v21  ;;  %v10036_v29 = vld [vmem:[#allocation139_spill] sm:$0xff]  ;;  %v10037_v21 = vld [vmem:[#allocation140_spill] sm:$0xff] }
 0x2b0   :  { %1476 = vmatprep.subr.mxu0 %v10017_v0  ;;  %1547 = vmatprep.subr.mxu1 %v10018_v12  ;;  %v6860_v0 = vld [vmem:[#allocation8 + $0x1f8] sm:$0xff]  ;;  %v6864_v12 = vld [vmem:[#allocation8 + $0x1f0] sm:$0xff] }
 0x2b1   :  { %1477 = vmatpush1.msra.mxu0 %v10019_v22  ;;  %1548 = vmatpush1.msra.mxu1 %v10020_v33  ;;  %v6868_v22 = vld [vmem:[#allocation8 + $0x1d8] sm:$0xff]  ;;  %v6872_v33 = vld [vmem:[#allocation8 + $0x1d0] sm:$0xff] }
 0x2b2   :  { %1478 = vmatprep.subr.mxu0 %v10021_v11  ;;  %1549 = vmatprep.subr.mxu1 %v10022_v40  ;;  %v6876_v11 = vld [vmem:[#allocation8 + $0x1b8] sm:$0xff]  ;;  %v7003_v40 = vld [vmem:[#allocation11 + $0x1c8] sm:$0xff] }
 0x2b3   :  { %1479 = vmatpush1.msra.mxu0 %v10023_v38  ;;  %1550 = vmatpush1.msra.mxu1 %v10024_v25  ;;  %v7006_v38 = vld [vmem:[#allocation11 + $0x1d8] sm:$0xff]  ;;  %v7009_v25 = vld [vmem:[#allocation11 + $0x1c0] sm:$0xff] }
 0x2b4   :  { %1480 = vmatprep.subr.mxu0 %v10025_v42  ;;  %1551 = vmatprep.subr.mxu1 %v10026_v26  ;;  %10038 = vst [vmem:[#allocation21_spill] sm:$0xff] %v7006_v38  ;;  %10039 = vst [vmem:[#allocation22_spill] sm:$0xff] %v7009_v25  ;;  %v7012_v42 = vld [vmem:[#allocation11 + $0x1d0] sm:$0xff]  ;;  %v7015_v26 = vld [vmem:[#allocation11 + $0x1a8] sm:$0xff] }
 0x2b5   :  { %1481 = vmatpush1.msra.mxu0 %v10027_v30  ;;  %1552 = vmatpush1.msra.mxu1 %v10028_v28  ;;  %10040 = vst [vmem:[#allocation23_spill] sm:$0xff] %v7012_v42  ;;  %10041 = vst [vmem:[#allocation24_spill] sm:$0xff] %v7015_v26  ;;  %v7018_v30 = vld [vmem:[#allocation11 + $0x1b8] sm:$0xff]  ;;  %v7021_v28 = vld [vmem:[#allocation11 + $0x1a0] sm:$0xff] }
 0x2b6   :  { %v4847_v24 = vpop.eup %4846  ;;  %1482 = vmatprep.subr.mxu0 %v10029_v7  ;;  %1553 = vmatprep.subr.mxu1 %v10030_v9  ;;  %10042 = vst [vmem:[#allocation25_spill] sm:$0xff] %v7018_v30  ;;  %10043 = vst [vmem:[#allocation26_spill] sm:$0xff] %v7021_v28  ;;  %v7027_v7 = vld [vmem:[#allocation11 + $0x188] sm:$0xff]  ;;  %v7030_v9 = vld [vmem:[#allocation11 + $0x198] sm:$0xff] }
 0x2b7   :  { %1483 = vmatpush1.msra.mxu0 %v10031_v10  ;;  %1554 = vmatpush1.msra.mxu1 %v10032_v13  ;;  %v4849_v14 = vpop.eup %4848  ;;  %10045 = vst [vmem:[#allocation28_spill] sm:$0xff] %v7027_v7  ;;  %10046 = vst [vmem:[#allocation29_spill] sm:$0xff] %v7030_v9  ;;  %v7033_v10 = vld [vmem:[#allocation11 + $0x180] sm:$0xff]  ;;  %v7036_v13 = vld [vmem:[#allocation11 + $0x190] sm:$0xff] }
 0x2b8   :  { %1484 = vmatprep.subr.mxu0 %v10033_v16  ;;  %1555 = vmatprep.subr.mxu1 %v10034_v17  ;;  %v6853_v39 = vmul.f32 %v4849_v14, %v4847_v24  ;;  %v7024_v24 = vld [vmem:[#allocation11 + $0x1b0] sm:$0xff]  ;;  %10047 = vst [vmem:[#allocation30_spill] sm:$0xff] %v7033_v10  ;;  %10048 = vst [vmem:[#allocation31_spill] sm:$0xff] %v7036_v13  ;;  %v7039_v14 = vld [vmem:[#allocation11 + $0x168] sm:$0xff] }
 0x2b9   :  { %1485 = vmatpush1.msra.mxu0 %v10035_v18  ;;  %1518 = vmatprep.mubr.f32.mxu0 %v9822_v37  ;;  %10044 = vst [vmem:[#allocation27_spill] sm:$0xff] %v7024_v24  ;;  %10049 = vst [vmem:[#allocation32_spill] sm:$0xff] %v7039_v14  ;;  %v7042_v16 = vld [vmem:[#allocation11 + $0x178] sm:$0xff]  ;;  %v7045_v17 = vld [vmem:[#allocation11 + $0x160] sm:$0xff] }
 0x2ba   :  { %1556 = vmatpush1.msra.mxu1 %v10036_v29  ;;  %1589 = vmatprep.mubr.f32.mxu1 %v9822_v37  ;;  %10050 = vst [vmem:[#allocation33_spill] sm:$0xff] %v7042_v16  ;;  %10051 = vst [vmem:[#allocation34_spill] sm:$0xff] %v7045_v17  ;;  %v7048_v18 = vld [vmem:[#allocation11 + $0x170] sm:$0xff]  ;;  %v7054_v29 = vld [vmem:[#allocation11 + $0x158] sm:$0xff] }
 0x2bb   :  { %1519 = vmatmul.mubr.f32.vlgmr.msra.gmra.mxu0 %v6853_v39  ;;  %1590 = vmatmul.mubr.f32.vlgmr.msra.gmra.mxu1 %v6853_v39  ;;  %10052 = vst [vmem:[#allocation35_spill] sm:$0xff] %v7048_v18  ;;  %10054 = vst [vmem:[#allocation37_spill] sm:$0xff] %v7054_v29 }
 0x2bc   :  { %1624 = vmatprep.subr.mxu0 %v10037_v21  ;;  %1695 = vmatprep.subr.mxu1 %v6860_v0  ;;  %v7057_v21 = vld [vmem:[#allocation11 + $0x140] sm:$0xff] }
 0x2bd   :  { %1625 = vmatpush1.msra.mxu0 %v6557_v19  ;;  %1696 = vmatpush1.msra.mxu1 %v6864_v12  ;;  %v6880_v19 = vld [vmem:[#allocation8 + $0x1b0] sm:$0xff]  ;;  %10055 = vst [vmem:[#allocation38_spill] sm:$0xff] %v7057_v21 }
 0x2be   :  { %1626 = vmatprep.subr.mxu0 %v6561_v36  ;;  %1697 = vmatprep.subr.mxu1 %v6868_v22  ;;  %v6884_v36 = vld [vmem:[#allocation8 + $0x198] sm:$0xff] }
 0x2bf   :  { %1627 = vmatpush1.msra.mxu0 %v6565_v23  ;;  %1698 = vmatpush1.msra.mxu1 %v6872_v33  ;;  %v6888_v23 = vld [vmem:[#allocation8 + $0x190] sm:$0xff] }
 0x2c0   :  { %1628 = vmatprep.subr.mxu0 %v6569_v32  ;;  %1699 = vmatprep.subr.mxu1 %v6876_v11  ;;  %v6892_v32 = vld [vmem:[#allocation8 + $0x178] sm:$0xff] }
 0x2c1   :  { %1629 = vmatpush1.msra.mxu0 %v6573_v41  ;;  %1700 = vmatpush1.msra.mxu1 %v6880_v19  ;;  %v6896_v41 = vld [vmem:[#allocation8 + $0x170] sm:$0xff] }
 0x2c2   :  { %1630 = vmatprep.subr.mxu0 %v6577_v43  ;;  %1701 = vmatprep.subr.mxu1 %v6884_v36  ;;  %v6900_v43 = vld [vmem:[#allocation8 + $0x158] sm:$0xff] }
 0x2c3   :  { %1631 = vmatpush1.msra.mxu0 %v6581_v44  ;;  %1702 = vmatpush1.msra.mxu1 %v6888_v23  ;;  %v6904_v44 = vld [vmem:[#allocation8 + $0x150] sm:$0xff] }
 0x2c4   :  { %1632 = vmatprep.subr.mxu0 %v6585_v45  ;;  %1703 = vmatprep.subr.mxu1 %v6892_v32  ;;  %v6908_v45 = vld [vmem:[#allocation8 + $0x138] sm:$0xff] }
 0x2c5   :  { %1633 = vmatpush1.msra.mxu0 %v6589_v46  ;;  %1704 = vmatpush1.msra.mxu1 %v6896_v41  ;;  %v6912_v46 = vld [vmem:[#allocation8 + $0x130] sm:$0xff] }
 0x2c6   :  { %1634 = vmatprep.subr.mxu0 %v6593_v47  ;;  %1705 = vmatprep.subr.mxu1 %v6900_v43  ;;  %v6916_v47 = vld [vmem:[#allocation8 + $0x118] sm:$0xff] }
 0x2c7   :  { %1635 = vmatpush1.msra.mxu0 %v6597_v48  ;;  %1706 = vmatpush1.msra.mxu1 %v6904_v44  ;;  %v6920_v48 = vld [vmem:[#allocation8 + $0x110] sm:$0xff] }
 0x2c8   :  { %1636 = vmatprep.subr.mxu0 %v6601_v49  ;;  %1707 = vmatprep.subr.mxu1 %v6908_v45  ;;  %v6924_v49 = vld [vmem:[#allocation8 + $0xf8] sm:$0xff] }
 0x2c9   :  { %1637 = vmatpush1.msra.mxu0 %v6605_v50  ;;  %1708 = vmatpush1.msra.mxu1 %v6912_v46  ;;  %v6928_v50 = vld [vmem:[#allocation8 + $0xf0] sm:$0xff] }
 0x2ca   :  { %1638 = vmatprep.subr.mxu0 %v6609_v51  ;;  %1709 = vmatprep.subr.mxu1 %v6916_v47  ;;  %v6932_v51 = vld [vmem:[#allocation8 + $0xd8] sm:$0xff] }
 0x2cb   :  { %1639 = vmatpush1.msra.mxu0 %v6613_v52  ;;  %1710 = vmatpush1.msra.mxu1 %v6920_v48  ;;  %v6936_v52 = vld [vmem:[#allocation8 + $0xd0] sm:$0xff] }
 0x2cc   :  { %1640 = vmatprep.subr.mxu0 %v6617_v53  ;;  %1711 = vmatprep.subr.mxu1 %v6924_v49  ;;  %v6940_v53 = vld [vmem:[#allocation8 + $0xb8] sm:$0xff] }
 0x2cd   :  { %1641 = vmatpush1.msra.mxu0 %v6621_v54  ;;  %1712 = vmatpush1.msra.mxu1 %v6928_v50  ;;  %v6944_v54 = vld [vmem:[#allocation8 + $0xb0] sm:$0xff] }
 0x2ce   :  { %1642 = vmatprep.subr.mxu0 %v6625_v55  ;;  %1713 = vmatprep.subr.mxu1 %v6932_v51  ;;  %v6948_v55 = vld [vmem:[#allocation8 + $0x98] sm:$0xff] }
 0x2cf   :  { %1643 = vmatpush1.msra.mxu0 %v6629_v56  ;;  %1714 = vmatpush1.msra.mxu1 %v6936_v52  ;;  %v6952_v56 = vld [vmem:[#allocation8 + $0x90] sm:$0xff] }
 0x2d0   :  { %1644 = vmatprep.subr.mxu0 %v6633_v57  ;;  %1715 = vmatprep.subr.mxu1 %v6940_v53  ;;  %v6956_v57 = vld [vmem:[#allocation8 + $0x78] sm:$0xff] }
 0x2d1   :  { %1645 = vmatpush1.msra.mxu0 %v6637_v58  ;;  %1716 = vmatpush1.msra.mxu1 %v6944_v54  ;;  %v6960_v58 = vld [vmem:[#allocation8 + $0x70] sm:$0xff] }
 0x2d2   :  { %1646 = vmatprep.subr.mxu0 %v6641_v59  ;;  %1717 = vmatprep.subr.mxu1 %v6948_v55  ;;  %v6964_v59 = vld [vmem:[#allocation8 + $0x58] sm:$0xff] }
 0x2d3   :  { %1647 = vmatpush1.msra.mxu0 %v6645_v60  ;;  %1718 = vmatpush1.msra.mxu1 %v6952_v56  ;;  %v6968_v60 = vld [vmem:[#allocation8 + $0x50] sm:$0xff] }
 0x2d4   :  { %1648 = vmatprep.subr.mxu0 %v6649_v61  ;;  %1719 = vmatprep.subr.mxu1 %v6956_v57  ;;  %v6972_v61 = vld [vmem:[#allocation8 + $0x38] sm:$0xff] }
 0x2d5   :  { %1649 = vmatpush1.msra.mxu0 %v6653_v62  ;;  %1720 = vmatpush1.msra.mxu1 %v6960_v58  ;;  %v6976_v62 = vld [vmem:[#allocation8 + $0x30] sm:$0xff] }
 0x2d6   :  { %1650 = vmatprep.subr.mxu0 %v6657_v63  ;;  %1721 = vmatprep.subr.mxu1 %v6964_v59  ;;  %v6980_v63 = vld [vmem:[#allocation8 + $0x18] sm:$0xff] }
 0x2d7   :  { %1651 = vmatpush1.msra.mxu0 %v6661_v1  ;;  %1722 = vmatpush1.msra.mxu1 %v6968_v60  ;;  %v6985_v1 = vld [vmem:[#allocation8 + $0x10] sm:$0xff] }
 0x2d8   :  { %1652 = vmatprep.subr.mxu0 %v6665_v2  ;;  %1723 = vmatprep.subr.mxu1 %v6972_v61  ;;  %v6991_v2 = vld [vmem:[#allocation11 + $0x1e8] sm:$0xff] }
 0x2d9   :  { %1653 = vmatpush1.msra.mxu0 %v6669_v3  ;;  %1724 = vmatpush1.msra.mxu1 %v6976_v62  ;;  %v6994_v3 = vld [vmem:[#allocation11 + $0x1f8] sm:$0xff] }
 0x2da   :  { %1654 = vmatprep.subr.mxu0 %v6673_v4  ;;  %1725 = vmatprep.subr.mxu1 %v6980_v63  ;;  %v6997_v4 = vld [vmem:[#allocation11 + $0x1e0] sm:$0xff] }
 0x2db   :  { %1655 = vmatpush1.msra.mxu0 %v6677_v5  ;;  %1688 = vmatprep.mubr.f32.mxu0 %v9822_v37  ;;  %v7000_v5 = vld [vmem:[#allocation11 + $0x1f0] sm:$0xff] }
 0x2dc   :  { %1726 = vmatpush1.msra.mxu1 %v6985_v1  ;;  %1759 = vmatprep.mubr.f32.mxu1 %v9822_v37 }
 0x2dd   :  { %1689 = vmatmul.mubr.f32.vlgmr.msra.gmra.mxu0 %v6853_v39  ;;  %1760 = vmatmul.mubr.f32.vlgmr.msra.gmra.mxu1 %v6853_v39  ;;  %v7051_v39 = vld [vmem:[#allocation11 + $0x148] sm:$0xff] }
 0x2de   :  { %1794 = vmatprep.subr.mxu0 %v6991_v2  ;;  %1865 = vmatprep.subr.mxu1 %v6994_v3  ;;  %10053 = vst [vmem:[#allocation36_spill] sm:$0xff] %v7051_v39 }
 0x2df   :  { %1795 = vmatpush1.msra.mxu0 %v6997_v4  ;;  %1866 = vmatpush1.msra.mxu1 %v7000_v5 }
 0x2e0   :  { %1796 = vmatprep.subr.mxu0 %v7003_v40  ;;  %1867 = vmatprep.subr.mxu1 %v7006_v38 }
 0x2e1   :  { %1797 = vmatpush1.msra.mxu0 %v7009_v25  ;;  %1868 = vmatpush1.msra.mxu1 %v7012_v42 }
 0x2e2   :  { %1798 = vmatprep.subr.mxu0 %v7015_v26  ;;  %1869 = vmatprep.subr.mxu1 %v7018_v30 }
 0x2e3   :  { %1799 = vmatpush1.msra.mxu0 %v7021_v28  ;;  %1870 = vmatpush1.msra.mxu1 %v7024_v24 }
 0x2e4   :  { %1800 = vmatprep.subr.mxu0 %v7027_v7  ;;  %1871 = vmatprep.subr.mxu1 %v7030_v9 }
 0x2e5   :  { %1801 = vmatpush1.msra.mxu0 %v7033_v10  ;;  %1872 = vmatpush1.msra.mxu1 %v7036_v13 }
 0x2e6   :  { %1802 = vmatprep.subr.mxu0 %v7039_v14  ;;  %1873 = vmatprep.subr.mxu1 %v7042_v16 }
 0x2e7   :  { %1803 = vmatpush1.msra.mxu0 %v7045_v17  ;;  %1874 = vmatpush1.msra.mxu1 %v7048_v18  ;;  %v7066_v18 = vld [vmem:[#allocation11 + $0x138] sm:$0xff] }
 0x2e8   :  { %1804 = vmatprep.subr.mxu0 %v7051_v39  ;;  %1875 = vmatprep.subr.mxu1 %v7054_v29  ;;  %10058 = vst [vmem:[#allocation41_spill] sm:$0xff] %v7066_v18  ;;  %v7069_v39 = vld [vmem:[#allocation11 + $0x120] sm:$0xff]  ;;  %v7072_v29 = vld [vmem:[#allocation11 + $0x130] sm:$0xff] }
 0x2e9   :  { %1805 = vmatpush1.msra.mxu0 %v7057_v21  ;;  %1876 = vmatpush1.msra.mxu1 %v7060_v31  ;;  %10059 = vst [vmem:[#allocation42_spill] sm:$0xff] %v7069_v39  ;;  %10060 = vst [vmem:[#allocation43_spill] sm:$0xff] %v7072_v29  ;;  %v7075_v21 = vld [vmem:[#allocation11 + $0x108] sm:$0xff]  ;;  %v7078_v31 = vld [vmem:[#allocation11 + $0x118] sm:$0xff] }
 0x2ea   :  { %1806 = vmatprep.subr.mxu0 %v7063_v27  ;;  %1877 = vmatprep.subr.mxu1 %v7066_v18  ;;  %10061 = vst [vmem:[#allocation44_spill] sm:$0xff] %v7075_v21  ;;  %10062 = vst [vmem:[#allocation45_spill] sm:$0xff] %v7078_v31  ;;  %v7081_v27 = vld [vmem:[#allocation11 + $0x100] sm:$0xff]  ;;  %v7084_v18 = vld [vmem:[#allocation11 + $0x110] sm:$0xff] }
 0x2eb   :  { %1807 = vmatpush1.msra.mxu0 %v7069_v39  ;;  %1878 = vmatpush1.msra.mxu1 %v7072_v29  ;;  %10063 = vst [vmem:[#allocation46_spill] sm:$0xff] %v7081_v27  ;;  %10064 = vst [vmem:[#allocation47_spill] sm:$0xff] %v7084_v18  ;;  %v7087_v39 = vld [vmem:[#allocation11 + $0xe8] sm:$0xff]  ;;  %v7090_v29 = vld [vmem:[#allocation11 + $0xf8] sm:$0xff] }
 0x2ec   :  { %1808 = vmatprep.subr.mxu0 %v7075_v21  ;;  %1879 = vmatprep.subr.mxu1 %v7078_v31  ;;  %10065 = vst [vmem:[#allocation48_spill] sm:$0xff] %v7087_v39  ;;  %10066 = vst [vmem:[#allocation49_spill] sm:$0xff] %v7090_v29  ;;  %v7093_v21 = vld [vmem:[#allocation11 + $0xe0] sm:$0xff]  ;;  %v7096_v31 = vld [vmem:[#allocation11 + $0xf0] sm:$0xff] }
 0x2ed   :  { %1809 = vmatpush1.msra.mxu0 %v7081_v27  ;;  %1880 = vmatpush1.msra.mxu1 %v7084_v18  ;;  %10067 = vst [vmem:[#allocation50_spill] sm:$0xff] %v7093_v21  ;;  %10068 = vst [vmem:[#allocation51_spill] sm:$0xff] %v7096_v31  ;;  %v7099_v27 = vld [vmem:[#allocation11 + $0xc8] sm:$0xff]  ;;  %v7102_v18 = vld [vmem:[#allocation11 + $0xd8] sm:$0xff] }
 0x2ee   :  { %1810 = vmatprep.subr.mxu0 %v7087_v39  ;;  %1881 = vmatprep.subr.mxu1 %v7090_v29  ;;  %10069 = vst [vmem:[#allocation52_spill] sm:$0xff] %v7099_v27  ;;  %10070 = vst [vmem:[#allocation53_spill] sm:$0xff] %v7102_v18  ;;  %v7105_v39 = vld [vmem:[#allocation11 + $0xc0] sm:$0xff]  ;;  %v7108_v29 = vld [vmem:[#allocation11 + $0xd0] sm:$0xff] }
 0x2ef   :  { %1811 = vmatpush1.msra.mxu0 %v7093_v21  ;;  %1882 = vmatpush1.msra.mxu1 %v7096_v31  ;;  %10071 = vst [vmem:[#allocation54_spill] sm:$0xff] %v7105_v39  ;;  %10072 = vst [vmem:[#allocation55_spill] sm:$0xff] %v7108_v29  ;;  %v7111_v21 = vld [vmem:[#allocation11 + $0xa8] sm:$0xff]  ;;  %v7114_v31 = vld [vmem:[#allocation11 + $0xb8] sm:$0xff] }
 0x2f0   :  { %1812 = vmatprep.subr.mxu0 %v7099_v27  ;;  %1883 = vmatprep.subr.mxu1 %v7102_v18  ;;  %10073 = vst [vmem:[#allocation56_spill] sm:$0xff] %v7111_v21  ;;  %10074 = vst [vmem:[#allocation57_spill] sm:$0xff] %v7114_v31  ;;  %v7117_v27 = vld [vmem:[#allocation11 + $0xa0] sm:$0xff]  ;;  %v7120_v18 = vld [vmem:[#allocation11 + $0xb0] sm:$0xff] }
 0x2f1   :  { %1813 = vmatpush1.msra.mxu0 %v7105_v39  ;;  %1884 = vmatpush1.msra.mxu1 %v7108_v29  ;;  %10075 = vst [vmem:[#allocation58_spill] sm:$0xff] %v7117_v27  ;;  %10076 = vst [vmem:[#allocation59_spill] sm:$0xff] %v7120_v18  ;;  %v7123_v39 = vld [vmem:[#allocation11 + $0x88] sm:$0xff]  ;;  %v7126_v29 = vld [vmem:[#allocation11 + $0x98] sm:$0xff] }
 0x2f2   :  { %1814 = vmatprep.subr.mxu0 %v7111_v21  ;;  %1885 = vmatprep.subr.mxu1 %v7114_v31  ;;  %10077 = vst [vmem:[#allocation60_spill] sm:$0xff] %v7123_v39  ;;  %10078 = vst [vmem:[#allocation61_spill] sm:$0xff] %v7126_v29  ;;  %v7129_v21 = vld [vmem:[#allocation11 + $0x80] sm:$0xff]  ;;  %v7132_v31 = vld [vmem:[#allocation11 + $0x90] sm:$0xff] }
 0x2f3   :  { %1815 = vmatpush1.msra.mxu0 %v7117_v27  ;;  %1886 = vmatpush1.msra.mxu1 %v7120_v18  ;;  %10079 = vst [vmem:[#allocation62_spill] sm:$0xff] %v7129_v21  ;;  %10080 = vst [vmem:[#allocation63_spill] sm:$0xff] %v7132_v31  ;;  %v7135_v27 = vld [vmem:[#allocation11 + $0x68] sm:$0xff]  ;;  %v7138_v18 = vld [vmem:[#allocation11 + $0x78] sm:$0xff] }
 0x2f4   :  { %1816 = vmatprep.subr.mxu0 %v7123_v39  ;;  %1887 = vmatprep.subr.mxu1 %v7126_v29  ;;  %10081 = vst [vmem:[#allocation64_spill] sm:$0xff] %v7135_v27  ;;  %10082 = vst [vmem:[#allocation65_spill] sm:$0xff] %v7138_v18  ;;  %v7141_v39 = vld [vmem:[#allocation11 + $0x60] sm:$0xff]  ;;  %v7144_v29 = vld [vmem:[#allocation11 + $0x70] sm:$0xff] }
 0x2f5   :  { %1817 = vmatpush1.msra.mxu0 %v7129_v21  ;;  %1888 = vmatpush1.msra.mxu1 %v7132_v31  ;;  %10083 = vst [vmem:[#allocation66_spill] sm:$0xff] %v7141_v39  ;;  %10084 = vst [vmem:[#allocation67_spill] sm:$0xff] %v7144_v29  ;;  %v7147_v21 = vld [vmem:[#allocation11 + $0x48] sm:$0xff]  ;;  %v7150_v31 = vld [vmem:[#allocation11 + $0x58] sm:$0xff] }
 0x2f6   :  { %1818 = vmatprep.subr.mxu0 %v7135_v27  ;;  %1889 = vmatprep.subr.mxu1 %v7138_v18  ;;  %10085 = vst [vmem:[#allocation68_spill] sm:$0xff] %v7147_v21  ;;  %10086 = vst [vmem:[#allocation69_spill] sm:$0xff] %v7150_v31  ;;  %v7153_v27 = vld [vmem:[#allocation11 + $0x40] sm:$0xff]  ;;  %v7156_v18 = vld [vmem:[#allocation11 + $0x50] sm:$0xff] }
 0x2f7   :  { %1819 = vmatpush1.msra.mxu0 %v7141_v39  ;;  %1890 = vmatpush1.msra.mxu1 %v7144_v29  ;;  %10087 = vst [vmem:[#allocation70_spill] sm:$0xff] %v7153_v27  ;;  %10088 = vst [vmem:[#allocation71_spill] sm:$0xff] %v7156_v18  ;;  %v7159_v39 = vld [vmem:[#allocation11 + $0x28] sm:$0xff]  ;;  %v7162_v29 = vld [vmem:[#allocation11 + $0x38] sm:$0xff] }
 0x2f8   :  { %1820 = vmatprep.subr.mxu0 %v7147_v21  ;;  %1891 = vmatprep.subr.mxu1 %v7150_v31  ;;  %10089 = vst [vmem:[#allocation72_spill] sm:$0xff] %v7159_v39  ;;  %10090 = vst [vmem:[#allocation73_spill] sm:$0xff] %v7162_v29  ;;  %v7165_v21 = vld [vmem:[#allocation11 + $0x20] sm:$0xff]  ;;  %v7168_v31 = vld [vmem:[#allocation11 + $0x30] sm:$0xff] }
 0x2f9   :  { %1821 = vmatpush1.msra.mxu0 %v7153_v27  ;;  %1892 = vmatpush1.msra.mxu1 %v7156_v18  ;;  %10091 = vst [vmem:[#allocation74_spill] sm:$0xff] %v7165_v21  ;;  %10092 = vst [vmem:[#allocation75_spill] sm:$0xff] %v7168_v31  ;;  %v7171_v27 = vld [vmem:[#allocation11 + $0x8] sm:$0xff]  ;;  %v7174_v18 = vld [vmem:[#allocation11 + $0x18] sm:$0xff] }
 0x2fa   :  { %1822 = vmatprep.subr.mxu0 %v7159_v39  ;;  %1893 = vmatprep.subr.mxu1 %v7162_v29  ;;  %10093 = vst [vmem:[#allocation76_spill] sm:$0xff] %v7171_v27  ;;  %10094 = vst [vmem:[#allocation77_spill] sm:$0xff] %v7174_v18  ;;  %v7177_v39 = vld [vmem:[#allocation11] sm:$0xff]  ;;  %v7180_v29 = vld [vmem:[#allocation11 + $0x10] sm:$0xff] }
 0x2fb   :  { %1823 = vmatpush1.msra.mxu0 %v7165_v21  ;;  %1894 = vmatpush1.msra.mxu1 %v7168_v31  ;;  %10095 = vst [vmem:[#allocation141_spill] sm:$0xff] %v7177_v39  ;;  %10096 = vst [vmem:[#allocation142_spill] sm:$0xff] %v7180_v29  ;;  %v7185_v31 = vld [vmem:[#allocation10 + $0x1e8] sm:$0xff] }
 0x2fc   :  { %1824 = vmatprep.subr.mxu0 %v7171_v27  ;;  %1895 = vmatprep.subr.mxu1 %v7174_v18  ;;  %10097 = vst [vmem:[#allocation78_spill] sm:$0xff] %v7185_v31  ;;  %v7188_v27 = vld [vmem:[#allocation10 + $0x1f8] sm:$0xff] }
 0x2fd   :  { %1825 = vmatpush1.msra.mxu0 %v7177_v39  ;;  %1896 = vmatpush1.msra.mxu1 %v7180_v29  ;;  %10098 = vst [vmem:[#allocation79_spill] sm:$0xff] %v7188_v27 }
 0x2fe   :  { %1858 = vmatprep.mubr.f32.mxu0 %v9822_v37  ;;  %1929 = vmatprep.mubr.f32.mxu1 %v9822_v37 }
 0x2ff   :  { %1936 = vmatprep.subr.mxu0 %v7185_v31  ;;  %2007 = vmatprep.subr.mxu1 %v7188_v27 }
 0x35a   :  { %v1378_v18 = vpop.f32.mrf.mxu0  ;;  %v1449_v21 = vpop.f32.mrf.mxu1 }
 0x35c   :  { %v1380_v17 = vpop.f32.mrf.mxu0  ;;  %v1451_v16 = vpop.f32.mrf.mxu1 }
 0x37b   :  { %v1520_v39 = vpop.f32.mrf.mxu0  ;;  %v1591_v10 = vpop.f32.mrf.mxu1 }
 0x37c   :  { %v1521_v14 = vadd.f32 %v1520_v39, %v1378_v18  ;;  %v1592_v26 = vadd.f32 %v1591_v10, %v1449_v21  ;;  %v10100_v10 = vld [vmem:[#allocation144_spill] sm:$0xff] }
 0x37d   :  { %v1522_v13 = vpop.f32.mrf.mxu0  ;;  %v1593_v28 = vpop.f32.mrf.mxu1 }
 0x37e   :  { %v1596_v29 = vadd.f32 %v1521_v14, %v6758_v15  ;;  %v1523_v9 = vadd.f32 %v1522_v13, %v1380_v17  ;;  %v1594_v30 = vadd.f32 %v1593_v28, %v1451_v16  ;;  %v1598_v18 = vadd.f32 %v1592_v26, %v6773_v8 }
 0x380   :  { %v4681_v7 = vmul.f32 -1.442695, %v1596_v29  ;;  %v1597_v24 = vadd.f32 %v1523_v9, %v6762_v35  ;;  %v1599_v27 = vadd.f32 %v1594_v30, %v6768_v20 }
 0x382   :  { %4850 = vpow2.f32 %v4681_v7  ;;  %v4682_v31 = vmul.f32 -1.442695, %v1597_v24  ;;  %v4683_v42 = vmul.f32 -1.442695, %v1599_v27  ;;  %v10099_v24 = vld [vmem:[#allocation143_spill] sm:$0xff] }
 0x384   :  { %4852 = vpow2.f32 %v4682_v31 }
 0x385   :  { %4854 = vpow2.f32 %v4683_v42 }
 0x38f   :  { %v4851_v25 = vpop.eup %4850 }
 0x390   :  { %v1603_v39 = vadd.f32 1.0, %v4851_v25 }
 0x391   :  { %v4853_v38 = vpop.eup %4852 }
 0x392   :  { %4856 = vrcp.f32 %v1603_v39  ;;  %v1609_v13 = vadd.f32 1.0, %v4853_v38  ;;  %v4855_v7 = vpop.eup %4854  ;;  %v10101_v39 = vld [vmem:[#allocation156_spill] sm:$0xff] }
 0x393   :  { %4858 = vtanh.f32 %v1598_v18  ;;  %v1616_v29 = vadd.f32 1.0, %v4855_v7 }
 0x394   :  { %4860 = vrcp.f32 %v1609_v13 }
 0x39d   :  { %v1690_v9 = vpop.f32.mrf.mxu0  ;;  %v1761_v42 = vpop.f32.mrf.mxu1 }
 0x39e   :  { %v1766_v14 = vadd.f32 %v1690_v9, %v10099_v24  ;;  %v10102_v9 = vld [vmem:[#allocation155_spill] sm:$0xff] }
 0x39f   :  { %v4857_v31 = vpop.eup %4856  ;;  %v1692_v28 = vpop.f32.mrf.mxu0  ;;  %v1768_v24 = vadd.f32 %v1761_v42, %v10102_v9  ;;  %v7222_v42 = vld [vmem:[#allocation10 + $0x1d0] sm:$0xff]  ;;  %v7237_v9 = vld [vmem:[#allocation10 + $0x188] sm:$0xff] }
 0x3a0   :  { %v4859_v16 = vpop.eup %4858  ;;  %v4684_v30 = vmul.f32 -1.442695, %v1766_v14  ;;  %v1767_v27 = vadd.f32 %v1692_v28, %v10100_v10  ;;  %v1763_v18 = vpop.f32.mrf.mxu1  ;;  %10105 = vst [vmem:[#allocation82_spill] sm:$0xff] %v7237_v9 }
 0x3a1   :  { %v4861_v17 = vpop.eup %4860  ;;  %v1620_v26 = vmul.f32 %v4859_v16, %v4857_v31  ;;  %v1769_v13 = vadd.f32 %v1763_v18, %v10101_v39  ;;  %v7228_v18 = vld [vmem:[#allocation10 + $0x1b8] sm:$0xff]  ;;  %v7231_v39 = vld [vmem:[#allocation10 + $0x1a0] sm:$0xff] }
 0x3a2   :  { %v1619_v25 = vmul.f32 %v4861_v17, %v6778_v6  ;;  %4862 = vpow2.f32 %v4684_v30  ;;  %v4685_v38 = vmul.f32 -1.442695, %v1767_v27  ;;  %v7207_v27 = vld [vmem:[#allocation10 + $0x1e0] sm:$0xff]  ;;  %v7210_v17 = vld [vmem:[#allocation10 + $0x1f0] sm:$0xff] }
 0x3a3   :  { %v4686_v14 = vmul.f32 -1.442695, %v1769_v13  ;;  %v7234_v13 = vld [vmem:[#allocation10 + $0x1b0] sm:$0xff] }
 0x3a4   :  { %4864 = vpow2.f32 %v4685_v38  ;;  %v7198_v21 = vadd.f32 %v1620_v26, %v1619_v25  ;;  %v7216_v26 = vld [vmem:[#allocation10 + $0x1d8] sm:$0xff]  ;;  %v7219_v25 = vld [vmem:[#allocation10 + $0x1c0] sm:$0xff]  ;;  %v7225_v38 = vld [vmem:[#allocation10 + $0x1a8] sm:$0xff]  ;;  %10104 = vst [vmem:[#allocation81_spill] sm:$0xff] %v7234_v13 }
 0x3a5   :  { %4866 = vrcp.f32 %v1616_v29  ;;  %v7213_v29 = vld [vmem:[#allocation10 + $0x1c8] sm:$0xff] }
 0x3a6   :  { %4868 = vtanh.f32 %v7198_v21 }
 0x3a7   :  { %4870 = vtanh.f32 %v1768_v24  ;;  %v7240_v24 = vld [vmem:[#allocation10 + $0x198] sm:$0xff] }
 0x3a8   :  { %4872 = vpow2.f32 %v4686_v14  ;;  %10106 = vst [vmem:[#allocation83_spill] sm:$0xff] %v7240_v24 }
 0x3af   :  { %v4863_v28 = vpop.eup %4862 }
 0x3b0   :  { %v1773_v7 = vadd.f32 1.0, %v4863_v28  ;;  %v7243_v28 = vld [vmem:[#allocation10 + $0x180] sm:$0xff] }
 0x3b1   :  { %v4865_v31 = vpop.eup %4864  ;;  %10107 = vst [vmem:[#allocation84_spill] sm:$0xff] %v7243_v28 }
 0x3b2   :  { %v4867_v6 = vpop.eup %4866  ;;  %4874 = vrcp.f32 %v1773_v7  ;;  %v1779_v16 = vadd.f32 1.0, %v4865_v31  ;;  %v7246_v7 = vld [vmem:[#allocation10 + $0x190] sm:$0xff] }
 0x3b3   :  { %v4869_v30 = vpop.eup %4868  ;;  %10108 = vst [vmem:[#allocation85_spill] sm:$0xff] %v7246_v7 }
 0x3b4   :  { %4876 = vrcp.f32 %v1779_v16  ;;  %v7203_v10 = vmul.f32 %v4869_v30, %v4867_v6  ;;  %v4871_v14 = vpop.eup %4870  ;;  %v7249_v6 = vld [vmem:[#allocation10 + $0x168] sm:$0xff]  ;;  %v7252_v16 = vld [vmem:[#allocation10 + $0x178] sm:$0xff] }
 0x3b5   :  { %v4873_v31 = vpop.eup %4872  ;;  %10109 = vst [vmem:[#allocation86_spill] sm:$0xff] %v7249_v6  ;;  %10110 = vst [vmem:[#allocation87_spill] sm:$0xff] %v7252_v16 }
 0x3b6   :  { %10103 = vst [vmem:[#allocation80_spill] sm:$0xff] %v7203_v10  ;;  %1859 = vmatmul.mubr.f32.vlgmr.msra.gmra.mxu0 %v7203_v10  ;;  %1930 = vmatmul.mubr.f32.vlgmr.msra.gmra.mxu1 %v7203_v10  ;;  %v7255_v10 = vld [vmem:[#allocation10 + $0x160] sm:$0xff] }
 0x3b7   :  { %1937 = vmatpush1.msra.mxu0 %v7207_v27  ;;  %2008 = vmatpush1.msra.mxu1 %v7210_v17  ;;  %10111 = vst [vmem:[#allocation88_spill] sm:$0xff] %v7255_v10 }
 0x3b8   :  { %1938 = vmatprep.subr.mxu0 %v7213_v29  ;;  %2009 = vmatprep.subr.mxu1 %v7216_v26 }
 0x3b9   :  { %1939 = vmatpush1.msra.mxu0 %v7219_v25  ;;  %2010 = vmatpush1.msra.mxu1 %v7222_v42 }
 0x3ba   :  { %1940 = vmatprep.subr.mxu0 %v7225_v38  ;;  %2011 = vmatprep.subr.mxu1 %v7228_v18 }
 0x3bb   :  { %1941 = vmatpush1.msra.mxu0 %v7231_v39  ;;  %2012 = vmatpush1.msra.mxu1 %v7234_v13  ;;  %v7267_v13 = vld [vmem:[#allocation10 + $0x140] sm:$0xff] }
 0x3bc   :  { %1942 = vmatprep.subr.mxu0 %v7237_v9  ;;  %2013 = vmatprep.subr.mxu1 %v7240_v24  ;;  %v7258_v24 = vld [vmem:[#allocation10 + $0x170] sm:$0xff]  ;;  %v7264_v9 = vld [vmem:[#allocation10 + $0x158] sm:$0xff]  ;;  %10114 = vst [vmem:[#allocation91_spill] sm:$0xff] %v7267_v13 }
 0x3bd   :  { %1943 = vmatpush1.msra.mxu0 %v7243_v28  ;;  %2014 = vmatpush1.msra.mxu1 %v7246_v7  ;;  %v7261_v7 = vld [vmem:[#allocation10 + $0x148] sm:$0xff]  ;;  %10113 = vst [vmem:[#allocation90_spill] sm:$0xff] %v7264_v9 }
 0x3be   :  { %1944 = vmatprep.subr.mxu0 %v7249_v6  ;;  %2015 = vmatprep.subr.mxu1 %v7252_v16  ;;  %10112 = vst [vmem:[#allocation89_spill] sm:$0xff] %v7261_v7  ;;  %v1786_v16 = vadd.f32 1.0, %v4873_v31  ;;  %v7283_v31 = vld [vmem:[#allocation10 + $0x130] sm:$0xff] }
 0x3bf   :  { %v4875_v30 = vpop.eup %4874  ;;  %1945 = vmatpush1.msra.mxu0 %v7255_v10  ;;  %2016 = vmatpush1.msra.mxu1 %v7258_v24  ;;  %v7270_v10 = vld [vmem:[#allocation10 + $0x150] sm:$0xff]  ;;  %10117 = vst [vmem:[#allocation94_spill] sm:$0xff] %v7283_v31 }
 0x3c0   :  { %v1790_v28 = vmul.f32 %v4875_v30, %v4871_v14  ;;  %1946 = vmatprep.subr.mxu0 %v7261_v7  ;;  %2017 = vmatprep.subr.mxu1 %v7264_v9  ;;  %10115 = vst [vmem:[#allocation92_spill] sm:$0xff] %v7270_v10  ;;  %v7274_v30 = vld [vmem:[#allocation10 + $0x128] sm:$0xff]  ;;  %v7277_v7 = vld [vmem:[#allocation10 + $0x138] sm:$0xff]  ;;  %v7280_v9 = vld [vmem:[#allocation10 + $0x120] sm:$0xff]  ;;  %4878 = vrcp.f32 %v1786_v16 }
 0x3c1   :  { %v4877_v6 = vpop.eup %4876  ;;  %1947 = vmatpush1.msra.mxu0 %v7267_v13  ;;  %2018 = vmatpush1.msra.mxu1 %v7270_v10  ;;  %10116 = vst [vmem:[#allocation93_spill] sm:$0xff] %v7280_v9  ;;  %v7288_v10 = vld [vmem:[#allocation10 + $0x108] sm:$0xff]  ;;  %v7310_v16 = vld [vmem:[#allocation10 + $0xf0] sm:$0xff] }
 0x3c2   :  { %v1789_v14 = vmul.f32 %v4877_v6, %v6812_v34  ;;  %1948 = vmatprep.subr.mxu0 %v7274_v30  ;;  %2019 = vmatprep.subr.mxu1 %v7277_v7  ;;  %10118 = vst [vmem:[#allocation95_spill] sm:$0xff] %v7288_v10  ;;  %v7291_v34 = vld [vmem:[#allocation10 + $0x118] sm:$0xff]  ;;  %v7294_v6 = vld [vmem:[#allocation10 + $0x100] sm:$0xff]  ;;  %10125 = vst [vmem:[#allocation102_spill] sm:$0xff] %v7310_v16 }
 0x3c3   :  { %1949 = vmatpush1.msra.mxu0 %v7280_v9  ;;  %2020 = vmatpush1.msra.mxu1 %v7283_v31  ;;  %10119 = vst [vmem:[#allocation96_spill] sm:$0xff] %v7291_v34  ;;  %10120 = vst [vmem:[#allocation97_spill] sm:$0xff] %v7294_v6  ;;  %v7297_v9 = vld [vmem:[#allocation10 + $0x110] sm:$0xff]  ;;  %v7300_v31 = vld [vmem:[#allocation10 + $0xe8] sm:$0xff] }
 0x3c4   :  { %v7286_v13 = vadd.f32 %v1790_v28, %v1789_v14  ;;  %1950 = vmatprep.subr.mxu0 %v7288_v10  ;;  %2021 = vmatprep.subr.mxu1 %v7291_v34  ;;  %10121 = vst [vmem:[#allocation98_spill] sm:$0xff] %v7297_v9  ;;  %10122 = vst [vmem:[#allocation99_spill] sm:$0xff] %v7300_v31  ;;  %v7303_v28 = vld [vmem:[#allocation10 + $0xf8] sm:$0xff]  ;;  %v7307_v14 = vld [vmem:[#allocation10 + $0xe0] sm:$0xff] }
 0x3c5   :  { %1951 = vmatpush1.msra.mxu0 %v7294_v6  ;;  %2022 = vmatpush1.msra.mxu1 %v7297_v9  ;;  %10123 = vst [vmem:[#allocation100_spill] sm:$0xff] %v7303_v28  ;;  %10124 = vst [vmem:[#allocation101_spill] sm:$0xff] %v7307_v14  ;;  %v7313_v6 = vld [vmem:[#allocation10 + $0xc8] sm:$0xff]  ;;  %v7316_v9 = vld [vmem:[#allocation10 + $0xd8] sm:$0xff] }
 0x3c6   :  { %1952 = vmatprep.subr.mxu0 %v7300_v31  ;;  %2023 = vmatprep.subr.mxu1 %v7303_v28  ;;  %4880 = vtanh.f32 %v7286_v13  ;;  %10126 = vst [vmem:[#allocation103_spill] sm:$0xff] %v7313_v6  ;;  %10127 = vst [vmem:[#allocation104_spill] sm:$0xff] %v7316_v9  ;;  %v7319_v31 = vld [vmem:[#allocation10 + $0xc0] sm:$0xff]  ;;  %v7322_v28 = vld [vmem:[#allocation10 + $0xd0] sm:$0xff] }
 0x3c7   :  { %1953 = vmatpush1.msra.mxu0 %v7307_v14  ;;  %2024 = vmatpush1.msra.mxu1 %v7310_v16  ;;  %10128 = vst [vmem:[#allocation105_spill] sm:$0xff] %v7319_v31  ;;  %10129 = vst [vmem:[#allocation106_spill] sm:$0xff] %v7322_v28  ;;  %v7325_v14 = vld [vmem:[#allocation10 + $0xa8] sm:$0xff]  ;;  %v7328_v16 = vld [vmem:[#allocation10 + $0xb8] sm:$0xff] }
 0x3c8   :  { %1954 = vmatprep.subr.mxu0 %v7313_v6  ;;  %2025 = vmatprep.subr.mxu1 %v7316_v9  ;;  %10130 = vst [vmem:[#allocation107_spill] sm:$0xff] %v7325_v14  ;;  %10131 = vst [vmem:[#allocation108_spill] sm:$0xff] %v7328_v16  ;;  %v7331_v6 = vld [vmem:[#allocation10 + $0xa0] sm:$0xff]  ;;  %v7334_v9 = vld [vmem:[#allocation10 + $0xb0] sm:$0xff] }
 0x3c9   :  { %1955 = vmatpush1.msra.mxu0 %v7319_v31  ;;  %2026 = vmatpush1.msra.mxu1 %v7322_v28  ;;  %10132 = vst [vmem:[#allocation109_spill] sm:$0xff] %v7331_v6  ;;  %10133 = vst [vmem:[#allocation110_spill] sm:$0xff] %v7334_v9  ;;  %v7337_v31 = vld [vmem:[#allocation10 + $0x88] sm:$0xff]  ;;  %v7340_v28 = vld [vmem:[#allocation10 + $0x98] sm:$0xff] }
 0x3ca   :  { %1956 = vmatprep.subr.mxu0 %v7325_v14  ;;  %2027 = vmatprep.subr.mxu1 %v7328_v16  ;;  %10134 = vst [vmem:[#allocation111_spill] sm:$0xff] %v7337_v31  ;;  %10135 = vst [vmem:[#allocation112_spill] sm:$0xff] %v7340_v28  ;;  %v7343_v14 = vld [vmem:[#allocation10 + $0x80] sm:$0xff]  ;;  %v7346_v16 = vld [vmem:[#allocation10 + $0x90] sm:$0xff] }
 0x3cb   :  { %1957 = vmatpush1.msra.mxu0 %v7331_v6  ;;  %2028 = vmatpush1.msra.mxu1 %v7334_v9  ;;  %10136 = vst [vmem:[#allocation113_spill] sm:$0xff] %v7343_v14  ;;  %10137 = vst [vmem:[#allocation114_spill] sm:$0xff] %v7346_v16  ;;  %v7349_v6 = vld [vmem:[#allocation10 + $0x68] sm:$0xff]  ;;  %v7352_v9 = vld [vmem:[#allocation10 + $0x78] sm:$0xff] }
 0x3cc   :  { %1958 = vmatprep.subr.mxu0 %v7337_v31  ;;  %2029 = vmatprep.subr.mxu1 %v7340_v28  ;;  %10138 = vst [vmem:[#allocation115_spill] sm:$0xff] %v7349_v6  ;;  %10139 = vst [vmem:[#allocation116_spill] sm:$0xff] %v7352_v9  ;;  %v7355_v31 = vld [vmem:[#allocation10 + $0x60] sm:$0xff]  ;;  %v7358_v28 = vld [vmem:[#allocation10 + $0x70] sm:$0xff] }
 0x3cd   :  { %1959 = vmatpush1.msra.mxu0 %v7343_v14  ;;  %2030 = vmatpush1.msra.mxu1 %v7346_v16  ;;  %10140 = vst [vmem:[#allocation117_spill] sm:$0xff] %v7355_v31  ;;  %10141 = vst [vmem:[#allocation118_spill] sm:$0xff] %v7358_v28  ;;  %v7361_v14 = vld [vmem:[#allocation10 + $0x48] sm:$0xff]  ;;  %v7364_v16 = vld [vmem:[#allocation10 + $0x58] sm:$0xff] }
 0x3ce   :  { %1960 = vmatprep.subr.mxu0 %v7349_v6  ;;  %2031 = vmatprep.subr.mxu1 %v7352_v9  ;;  %10142 = vst [vmem:[#allocation119_spill] sm:$0xff] %v7361_v14  ;;  %10143 = vst [vmem:[#allocation120_spill] sm:$0xff] %v7364_v16  ;;  %v7367_v6 = vld [vmem:[#allocation10 + $0x40] sm:$0xff]  ;;  %v7370_v9 = vld [vmem:[#allocation10 + $0x50] sm:$0xff] }
 0x3cf   :  { %1961 = vmatpush1.msra.mxu0 %v7355_v31  ;;  %2032 = vmatpush1.msra.mxu1 %v7358_v28  ;;  %10144 = vst [vmem:[#allocation121_spill] sm:$0xff] %v7367_v6  ;;  %10145 = vst [vmem:[#allocation122_spill] sm:$0xff] %v7370_v9  ;;  %v4879_v31 = vpop.eup %4878  ;;  %v7373_v34 = vld [vmem:[#allocation10 + $0x28] sm:$0xff]  ;;  %v7376_v28 = vld [vmem:[#allocation10 + $0x38] sm:$0xff] }
 0x3d0   :  { %1962 = vmatprep.subr.mxu0 %v7361_v14  ;;  %2033 = vmatprep.subr.mxu1 %v7364_v16  ;;  %10146 = vst [vmem:[#allocation123_spill] sm:$0xff] %v7373_v34  ;;  %10147 = vst [vmem:[#allocation124_spill] sm:$0xff] %v7376_v28  ;;  %v7379_v10 = vld [vmem:[#allocation10 + $0x20] sm:$0xff]  ;;  %v7382_v16 = vld [vmem:[#allocation10 + $0x30] sm:$0xff] }
 0x3d1   :  { %1963 = vmatpush1.msra.mxu0 %v7367_v6  ;;  %2034 = vmatpush1.msra.mxu1 %v7370_v9  ;;  %10148 = vst [vmem:[#allocation125_spill] sm:$0xff] %v7379_v10  ;;  %v7385_v6 = vld [vmem:[#allocation10 + $0x8] sm:$0xff]  ;;  %v7388_v9 = vld [vmem:[#allocation10 + $0x18] sm:$0xff] }
 0x3d2   :  { %1964 = vmatprep.subr.mxu0 %v7373_v34  ;;  %2035 = vmatprep.subr.mxu1 %v7376_v28  ;;  %10149 = vst [vmem:[#allocation126_spill] sm:$0xff] %v7385_v6  ;;  %v7393_v28 = vld [vmem:[#allocation10] sm:$0xff] }
 0x3d3   :  { %v4881_v14 = vpop.eup %4880  ;;  %1965 = vmatpush1.msra.mxu0 %v7379_v10  ;;  %2036 = vmatpush1.msra.mxu1 %v7382_v16  ;;  %v7397_v10 = vld [vmem:[#allocation10 + $0x10] sm:$0xff] }
 0x3d4   :  { %1966 = vmatprep.subr.mxu0 %v7385_v6  ;;  %2037 = vmatprep.subr.mxu1 %v7388_v9  ;;  %v7391_v34 = vmul.f32 %v4881_v14, %v4879_v31  ;;  %10150 = vst [vmem:[#allocation127_spill] sm:$0xff] %v7397_v10  ;;  %v7403_v6 = vld [vmem:[#allocation8 + $0x1e8] sm:$0xff]  ;;  %v7407_v31 = vld [vmem:[#allocation8 + $0x1e0] sm:$0xff] }
 0x3d5   :  { %1967 = vmatpush1.msra.mxu0 %v7393_v28  ;;  %2000 = vmatprep.mubr.f32.mxu0 %v9822_v37  ;;  %10151 = vst [vmem:[#allocation128_spill] sm:$0xff] %v7403_v6  ;;  %v7411_v14 = vld [vmem:[#allocation8 + $0x1c8] sm:$0xff] }
 0x3d6   :  { %2038 = vmatpush1.msra.mxu1 %v7397_v10  ;;  %2071 = vmatprep.mubr.f32.mxu1 %v9822_v37  ;;  %v7415_v10 = vld [vmem:[#allocation8 + $0x1c0] sm:$0xff] }
 0x3d7   :  { %2001 = vmatmul.mubr.f32.vlgmr.msra.gmra.mxu0 %v7391_v34  ;;  %2072 = vmatmul.mubr.f32.vlgmr.msra.gmra.mxu1 %v7391_v34 }
 0x3d8   :  { %2106 = vmatprep.subr.mxu0 %v7403_v6  ;;  %2177 = vmatprep.subr.mxu1 %v6860_v0  ;;  %v7419_v6 = vld [vmem:[#allocation8 + $0x1a8] sm:$0xff]  ;;  %v7423_v0 = vld [vmem:[#allocation8 + $0x1a0] sm:$0xff] }
 0x3d9   :  { %2107 = vmatpush1.msra.mxu0 %v7407_v31  ;;  %2178 = vmatpush1.msra.mxu1 %v6864_v12  ;;  %v7427_v12 = vld [vmem:[#allocation8 + $0x188] sm:$0xff] }
 0x3da   :  { %2108 = vmatprep.subr.mxu0 %v7411_v14  ;;  %2179 = vmatprep.subr.mxu1 %v6868_v22  ;;  %v7431_v22 = vld [vmem:[#allocation8 + $0x180] sm:$0xff] }
 0x3db   :  { %2109 = vmatpush1.msra.mxu0 %v7415_v10  ;;  %2180 = vmatpush1.msra.mxu1 %v6872_v33  ;;  %v7435_v33 = vld [vmem:[#allocation8 + $0x168] sm:$0xff] }
 0x3dc   :  { %2110 = vmatprep.subr.mxu0 %v7419_v6  ;;  %2181 = vmatprep.subr.mxu1 %v6876_v11  ;;  %v7439_v11 = vld [vmem:[#allocation8 + $0x160] sm:$0xff] }
 0x3dd   :  { %2111 = vmatpush1.msra.mxu0 %v7423_v0  ;;  %2182 = vmatpush1.msra.mxu1 %v6880_v19  ;;  %v7443_v19 = vld [vmem:[#allocation8 + $0x148] sm:$0xff] }
 0x3de   :  { %2112 = vmatprep.subr.mxu0 %v7427_v12  ;;  %2183 = vmatprep.subr.mxu1 %v6884_v36  ;;  %v7447_v36 = vld [vmem:[#allocation8 + $0x140] sm:$0xff] }
 0x3df   :  { %2113 = vmatpush1.msra.mxu0 %v7431_v22  ;;  %2184 = vmatpush1.msra.mxu1 %v6888_v23  ;;  %v7451_v23 = vld [vmem:[#allocation8 + $0x128] sm:$0xff] }
 0x3e0   :  { %2114 = vmatprep.subr.mxu0 %v7435_v33  ;;  %2185 = vmatprep.subr.mxu1 %v6892_v32  ;;  %v7455_v32 = vld [vmem:[#allocation8 + $0x120] sm:$0xff] }
 0x3e1   :  { %2115 = vmatpush1.msra.mxu0 %v7439_v11  ;;  %2186 = vmatpush1.msra.mxu1 %v6896_v41  ;;  %v7459_v41 = vld [vmem:[#allocation8 + $0x108] sm:$0xff] }
 0x3e2   :  { %2116 = vmatprep.subr.mxu0 %v7443_v19  ;;  %2187 = vmatprep.subr.mxu1 %v6900_v43  ;;  %v7463_v43 = vld [vmem:[#allocation8 + $0x100] sm:$0xff] }
 0x3e3   :  { %2117 = vmatpush1.msra.mxu0 %v7447_v36  ;;  %2188 = vmatpush1.msra.mxu1 %v6904_v44  ;;  %v7467_v44 = vld [vmem:[#allocation8 + $0xe8] sm:$0xff] }
 0x3e4   :  { %2118 = vmatprep.subr.mxu0 %v7451_v23  ;;  %2189 = vmatprep.subr.mxu1 %v6908_v45  ;;  %v7471_v45 = vld [vmem:[#allocation8 + $0xe0] sm:$0xff] }
 0x3e5   :  { %2119 = vmatpush1.msra.mxu0 %v7455_v32  ;;  %2190 = vmatpush1.msra.mxu1 %v6912_v46  ;;  %v7475_v46 = vld [vmem:[#allocation8 + $0xc8] sm:$0xff] }
 0x3e6   :  { %2120 = vmatprep.subr.mxu0 %v7459_v41  ;;  %2191 = vmatprep.subr.mxu1 %v6916_v47  ;;  %v7479_v47 = vld [vmem:[#allocation8 + $0xc0] sm:$0xff] }
 0x3e7   :  { %2121 = vmatpush1.msra.mxu0 %v7463_v43  ;;  %2192 = vmatpush1.msra.mxu1 %v6920_v48  ;;  %v7483_v48 = vld [vmem:[#allocation8 + $0xa8] sm:$0xff] }
 0x3e8   :  { %2122 = vmatprep.subr.mxu0 %v7467_v44  ;;  %2193 = vmatprep.subr.mxu1 %v6924_v49  ;;  %v7487_v49 = vld [vmem:[#allocation8 + $0xa0] sm:$0xff] }
 0x3e9   :  { %2123 = vmatpush1.msra.mxu0 %v7471_v45  ;;  %2194 = vmatpush1.msra.mxu1 %v6928_v50  ;;  %v7491_v50 = vld [vmem:[#allocation8 + $0x88] sm:$0xff] }
 0x3ea   :  { %2124 = vmatprep.subr.mxu0 %v7475_v46  ;;  %2195 = vmatprep.subr.mxu1 %v6932_v51  ;;  %v7495_v51 = vld [vmem:[#allocation8 + $0x80] sm:$0xff] }
 0x3eb   :  { %2125 = vmatpush1.msra.mxu0 %v7479_v47  ;;  %2196 = vmatpush1.msra.mxu1 %v6936_v52  ;;  %10152 = vst [vmem:[#allocation129_spill] sm:$0xff] %v7495_v51  ;;  %v7499_v52 = vld [vmem:[#allocation8 + $0x68] sm:$0xff] }
 0x3ec   :  { %2126 = vmatprep.subr.mxu0 %v7483_v48  ;;  %2197 = vmatprep.subr.mxu1 %v6940_v53  ;;  %10153 = vst [vmem:[#allocation130_spill] sm:$0xff] %v7499_v52  ;;  %v7503_v53 = vld [vmem:[#allocation8 + $0x60] sm:$0xff] }
 0x3ed   :  { %2127 = vmatpush1.msra.mxu0 %v7487_v49  ;;  %2198 = vmatpush1.msra.mxu1 %v6944_v54  ;;  %10154 = vst [vmem:[#allocation131_spill] sm:$0xff] %v7503_v53  ;;  %v7507_v54 = vld [vmem:[#allocation8 + $0x48] sm:$0xff] }
 0x3ee   :  { %2128 = vmatprep.subr.mxu0 %v7491_v50  ;;  %2199 = vmatprep.subr.mxu1 %v6948_v55  ;;  %10155 = vst [vmem:[#allocation132_spill] sm:$0xff] %v7507_v54  ;;  %v7511_v55 = vld [vmem:[#allocation8 + $0x40] sm:$0xff] }
 0x3ef   :  { %2129 = vmatpush1.msra.mxu0 %v7495_v51  ;;  %2200 = vmatpush1.msra.mxu1 %v6952_v56  ;;  %10156 = vst [vmem:[#allocation133_spill] sm:$0xff] %v7511_v55  ;;  %v7515_v56 = vld [vmem:[#allocation8 + $0x28] sm:$0xff] }
 0x3f0   :  { %2130 = vmatprep.subr.mxu0 %v7499_v52  ;;  %2201 = vmatprep.subr.mxu1 %v6956_v57  ;;  %10157 = vst [vmem:[#allocation134_spill] sm:$0xff] %v7515_v56  ;;  %v7519_v57 = vld [vmem:[#allocation8 + $0x20] sm:$0xff] }
 0x3f1   :  { %2131 = vmatpush1.msra.mxu0 %v7503_v53  ;;  %2202 = vmatpush1.msra.mxu1 %v6960_v58  ;;  %10158 = vst [vmem:[#allocation135_spill] sm:$0xff] %v7519_v57  ;;  %v7523_v58 = vld [vmem:[#allocation8 + $0x8] sm:$0xff] }
 0x3f2   :  { %2132 = vmatprep.subr.mxu0 %v7507_v54  ;;  %2203 = vmatprep.subr.mxu1 %v6964_v59  ;;  %10159 = vst [vmem:[#allocation136_spill] sm:$0xff] %v7523_v58  ;;  %v7527_v59 = vld [vmem:[#allocation8] sm:$0xff] }
 0x3f3   :  { %2133 = vmatpush1.msra.mxu0 %v7511_v55  ;;  %2204 = vmatpush1.msra.mxu1 %v6968_v60  ;;  %10160 = vst [vmem:[#allocation137_spill] sm:$0xff] %v7527_v59  ;;  %v10161_v60 = vld [vmem:[#allocation21_spill] sm:$0xff] }
 0x3f4   :  { %2134 = vmatprep.subr.mxu0 %v7515_v56  ;;  %2205 = vmatprep.subr.mxu1 %v6972_v61  ;;  %v10162_v61 = vld [vmem:[#allocation22_spill] sm:$0xff] }
 0x3f5   :  { %2135 = vmatpush1.msra.mxu0 %v7519_v57  ;;  %2206 = vmatpush1.msra.mxu1 %v6976_v62  ;;  %v10163_v62 = vld [vmem:[#allocation23_spill] sm:$0xff] }
 0x3f6   :  { %2136 = vmatprep.subr.mxu0 %v7523_v58  ;;  %2207 = vmatprep.subr.mxu1 %v6980_v63  ;;  %v10164_v63 = vld [vmem:[#allocation24_spill] sm:$0xff] }
 0x3f7   :  { %2137 = vmatpush1.msra.mxu0 %v7527_v59  ;;  %2170 = vmatprep.mubr.f32.mxu0 %v9822_v37 }
 0x3f8   :  { %2208 = vmatpush1.msra.mxu1 %v6985_v1  ;;  %2241 = vmatprep.mubr.f32.mxu1 %v9822_v37  ;;  %v10165_v1 = vld [vmem:[#allocation25_spill] sm:$0xff] }
 0x3f9   :  { %2171 = vmatmul.mubr.f32.vlgmr.msra.gmra.mxu0 %v7391_v34  ;;  %2242 = vmatmul.mubr.f32.vlgmr.msra.gmra.mxu1 %v7391_v34  ;;  %v10166_v34 = vld [vmem:[#allocation26_spill] sm:$0xff] }
 0x3fa   :  { %2276 = vmatprep.subr.mxu0 %v6991_v2  ;;  %2347 = vmatprep.subr.mxu1 %v6994_v3  ;;  %v10167_v2 = vld [vmem:[#allocation27_spill] sm:$0xff]  ;;  %v10168_v3 = vld [vmem:[#allocation28_spill] sm:$0xff] }
 0x3fb   :  { %2277 = vmatpush1.msra.mxu0 %v6997_v4  ;;  %2348 = vmatpush1.msra.mxu1 %v7000_v5  ;;  %v10169_v4 = vld [vmem:[#allocation29_spill] sm:$0xff]  ;;  %v10170_v5 = vld [vmem:[#allocation30_spill] sm:$0xff] }
 0x3fc   :  { %2278 = vmatprep.subr.mxu0 %v7003_v40  ;;  %2349 = vmatprep.subr.mxu1 %v10161_v60  ;;  %v10171_v40 = vld [vmem:[#allocation31_spill] sm:$0xff]  ;;  %v10172_v60 = vld [vmem:[#allocation32_spill] sm:$0xff] }
 0x3fd   :  { %2279 = vmatpush1.msra.mxu0 %v10162_v61  ;;  %2350 = vmatpush1.msra.mxu1 %v10163_v62  ;;  %v10173_v61 = vld [vmem:[#allocation33_spill] sm:$0xff]  ;;  %v10174_v62 = vld [vmem:[#allocation34_spill] sm:$0xff] }
 0x3fe   :  { %2280 = vmatprep.subr.mxu0 %v10164_v63  ;;  %2351 = vmatprep.subr.mxu1 %v10165_v1  ;;  %v10175_v63 = vld [vmem:[#allocation35_spill] sm:$0xff]  ;;  %v10176_v1 = vld [vmem:[#allocation36_spill] sm:$0xff] }
 0x3ff   :  { %2281 = vmatpush1.msra.mxu0 %v10166_v34  ;;  %2352 = vmatpush1.msra.mxu1 %v10167_v2  ;;  %v10177_v34 = vld [vmem:[#allocation37_spill] sm:$0xff]  ;;  %v10178_v2 = vld [vmem:[#allocation38_spill] sm:$0xff] }
 0x400   :  { %2282 = vmatprep.subr.mxu0 %v10168_v3  ;;  %2353 = vmatprep.subr.mxu1 %v10169_v4  ;;  %v10179_v3 = vld [vmem:[#allocation39_spill] sm:$0xff]  ;;  %v10180_v4 = vld [vmem:[#allocation40_spill] sm:$0xff] }
 0x401   :  { %2283 = vmatpush1.msra.mxu0 %v10170_v5  ;;  %2354 = vmatpush1.msra.mxu1 %v10171_v40  ;;  %v10181_v5 = vld [vmem:[#allocation41_spill] sm:$0xff]  ;;  %v10182_v40 = vld [vmem:[#allocation42_spill] sm:$0xff] }
 0x402   :  { %2284 = vmatprep.subr.mxu0 %v10172_v60  ;;  %2355 = vmatprep.subr.mxu1 %v10173_v61  ;;  %v10183_v60 = vld [vmem:[#allocation43_spill] sm:$0xff]  ;;  %v10184_v61 = vld [vmem:[#allocation44_spill] sm:$0xff] }
 0x403   :  { %2285 = vmatpush1.msra.mxu0 %v10174_v62  ;;  %2356 = vmatpush1.msra.mxu1 %v10175_v63  ;;  %v10185_v62 = vld [vmem:[#allocation45_spill] sm:$0xff]  ;;  %v10186_v63 = vld [vmem:[#allocation46_spill] sm:$0xff] }
 0x404   :  { %2286 = vmatprep.subr.mxu0 %v10176_v1  ;;  %2357 = vmatprep.subr.mxu1 %v10177_v34  ;;  %v10187_v1 = vld [vmem:[#allocation47_spill] sm:$0xff]  ;;  %v10188_v34 = vld [vmem:[#allocation48_spill] sm:$0xff] }
 0x405   :  { %2287 = vmatpush1.msra.mxu0 %v10178_v2  ;;  %2358 = vmatpush1.msra.mxu1 %v10179_v3  ;;  %v10189_v2 = vld [vmem:[#allocation49_spill] sm:$0xff]  ;;  %v10190_v3 = vld [vmem:[#allocation50_spill] sm:$0xff] }
 0x406   :  { %2288 = vmatprep.subr.mxu0 %v10180_v4  ;;  %2359 = vmatprep.subr.mxu1 %v10181_v5  ;;  %v10191_v4 = vld [vmem:[#allocation51_spill] sm:$0xff]  ;;  %v10192_v5 = vld [vmem:[#allocation52_spill] sm:$0xff] }
 0x407   :  { %2289 = vmatpush1.msra.mxu0 %v10182_v40  ;;  %2360 = vmatpush1.msra.mxu1 %v10183_v60  ;;  %v10193_v40 = vld [vmem:[#allocation53_spill] sm:$0xff]  ;;  %v10194_v60 = vld [vmem:[#allocation54_spill] sm:$0xff] }
 0x408   :  { %2290 = vmatprep.subr.mxu0 %v10184_v61  ;;  %2361 = vmatprep.subr.mxu1 %v10185_v62  ;;  %v10195_v61 = vld [vmem:[#allocation55_spill] sm:$0xff]  ;;  %v10196_v62 = vld [vmem:[#allocation56_spill] sm:$0xff] }
 0x409   :  { %2291 = vmatpush1.msra.mxu0 %v10186_v63  ;;  %2362 = vmatpush1.msra.mxu1 %v10187_v1  ;;  %v10197_v63 = vld [vmem:[#allocation57_spill] sm:$0xff]  ;;  %v10198_v1 = vld [vmem:[#allocation58_spill] sm:$0xff] }
 0x40a   :  { %2292 = vmatprep.subr.mxu0 %v10188_v34  ;;  %2363 = vmatprep.subr.mxu1 %v10189_v2  ;;  %v10199_v34 = vld [vmem:[#allocation59_spill] sm:$0xff]  ;;  %v10200_v2 = vld [vmem:[#allocation60_spill] sm:$0xff] }
 0x40b   :  { %2293 = vmatpush1.msra.mxu0 %v10190_v3  ;;  %2364 = vmatpush1.msra.mxu1 %v10191_v4  ;;  %v10201_v3 = vld [vmem:[#allocation61_spill] sm:$0xff]  ;;  %v10202_v4 = vld [vmem:[#allocation62_spill] sm:$0xff] }
 0x40c   :  { %2294 = vmatprep.subr.mxu0 %v10192_v5  ;;  %2365 = vmatprep.subr.mxu1 %v10193_v40  ;;  %v10203_v5 = vld [vmem:[#allocation63_spill] sm:$0xff]  ;;  %v10204_v40 = vld [vmem:[#allocation64_spill] sm:$0xff] }
 0x40d   :  { %2295 = vmatpush1.msra.mxu0 %v10194_v60  ;;  %2366 = vmatpush1.msra.mxu1 %v10195_v61  ;;  %v10205_v60 = vld [vmem:[#allocation65_spill] sm:$0xff]  ;;  %v10206_v61 = vld [vmem:[#allocation66_spill] sm:$0xff] }
 0x40e   :  { %2296 = vmatprep.subr.mxu0 %v10196_v62  ;;  %2367 = vmatprep.subr.mxu1 %v10197_v63  ;;  %v10207_v62 = vld [vmem:[#allocation67_spill] sm:$0xff]  ;;  %v10208_v63 = vld [vmem:[#allocation68_spill] sm:$0xff] }
 0x40f   :  { %2297 = vmatpush1.msra.mxu0 %v10198_v1  ;;  %2368 = vmatpush1.msra.mxu1 %v10199_v34  ;;  %v10209_v1 = vld [vmem:[#allocation69_spill] sm:$0xff]  ;;  %v10210_v34 = vld [vmem:[#allocation70_spill] sm:$0xff] }
 0x410   :  { %2298 = vmatprep.subr.mxu0 %v10200_v2  ;;  %2369 = vmatprep.subr.mxu1 %v10201_v3  ;;  %v10211_v2 = vld [vmem:[#allocation71_spill] sm:$0xff]  ;;  %v10212_v3 = vld [vmem:[#allocation72_spill] sm:$0xff] }
 0x411   :  { %2299 = vmatpush1.msra.mxu0 %v10202_v4  ;;  %2370 = vmatpush1.msra.mxu1 %v10203_v5  ;;  %v10213_v4 = vld [vmem:[#allocation73_spill] sm:$0xff]  ;;  %v10214_v5 = vld [vmem:[#allocation74_spill] sm:$0xff] }
 0x412   :  { %2300 = vmatprep.subr.mxu0 %v10204_v40  ;;  %2371 = vmatprep.subr.mxu1 %v10205_v60  ;;  %v10215_v40 = vld [vmem:[#allocation75_spill] sm:$0xff]  ;;  %v10216_v60 = vld [vmem:[#allocation76_spill] sm:$0xff] }
 0x413   :  { %2301 = vmatpush1.msra.mxu0 %v10206_v61  ;;  %2372 = vmatpush1.msra.mxu1 %v10207_v62  ;;  %v10217_v61 = vld [vmem:[#allocation77_spill] sm:$0xff] }
 0x414   :  { %2302 = vmatprep.subr.mxu0 %v10208_v63  ;;  %2373 = vmatprep.subr.mxu1 %v10209_v1  ;;  %v10218_v62 = vld [vmem:[#allocation141_spill] sm:$0xff]  ;;  %v10219_v63 = vld [vmem:[#allocation142_spill] sm:$0xff] }
 0x415   :  { %2303 = vmatpush1.msra.mxu0 %v10210_v34  ;;  %2374 = vmatpush1.msra.mxu1 %v10211_v2  ;;  %v10220_v1 = vld [vmem:[#allocation78_spill] sm:$0xff]  ;;  %v10221_v34 = vld [vmem:[#allocation79_spill] sm:$0xff] }
 0x416   :  { %2304 = vmatprep.subr.mxu0 %v10212_v3  ;;  %2375 = vmatprep.subr.mxu1 %v10213_v4 }
 0x417   :  { %2305 = vmatpush1.msra.mxu0 %v10214_v5  ;;  %2376 = vmatpush1.msra.mxu1 %v10215_v40 }
 0x418   :  { %2306 = vmatprep.subr.mxu0 %v10216_v60  ;;  %2377 = vmatprep.subr.mxu1 %v10217_v61 }
 0x419   :  { %2307 = vmatpush1.msra.mxu0 %v10218_v62  ;;  %2378 = vmatpush1.msra.mxu1 %v10219_v63 }
 0x41a   :  { %2340 = vmatprep.mubr.f32.mxu0 %v9822_v37  ;;  %2411 = vmatprep.mubr.f32.mxu1 %v9822_v37 }
 0x41b   :  { %2418 = vmatprep.subr.mxu0 %v10220_v1  ;;  %2489 = vmatprep.subr.mxu1 %v10221_v34 }
 0x476   :  { %v1860_v2 = vpop.f32.mrf.mxu0  ;;  %v1931_v3 = vpop.f32.mrf.mxu1 }
 0x478   :  { %v1862_v4 = vpop.f32.mrf.mxu0  ;;  %v1933_v40 = vpop.f32.mrf.mxu1 }
 0x497   :  { %v2002_v5 = vpop.f32.mrf.mxu0  ;;  %v2073_v62 = vpop.f32.mrf.mxu1 }
 0x498   :  { %v2003_v60 = vadd.f32 %v2002_v5, %v1860_v2  ;;  %v2074_v54 = vadd.f32 %v2073_v62, %v1931_v3  ;;  %v10223_v3 = vld [vmem:[#allocation146_spill] sm:$0xff] }
 0x499   :  { %v2004_v59 = vpop.f32.mrf.mxu0  ;;  %v2075_v55 = vpop.f32.mrf.mxu1 }
 0x49a   :  { %v2078_v61 = vadd.f32 %v2003_v60, %v6758_v15  ;;  %v2005_v58 = vadd.f32 %v2004_v59, %v1862_v4  ;;  %v2076_v1 = vadd.f32 %v2075_v55, %v1933_v40  ;;  %v2080_v2 = vadd.f32 %v2074_v54, %v6773_v8 }
 0x49c   :  { %v4687_v63 = vmul.f32 -1.442695, %v2078_v61  ;;  %v2079_v57 = vadd.f32 %v2005_v58, %v6762_v35  ;;  %v2081_v34 = vadd.f32 %v2076_v1, %v6768_v20 }
 0x49e   :  { %4882 = vpow2.f32 %v4687_v63  ;;  %v4688_v56 = vmul.f32 -1.442695, %v2079_v57  ;;  %v4689_v53 = vmul.f32 -1.442695, %v2081_v34  ;;  %v10222_v57 = vld [vmem:[#allocation145_spill] sm:$0xff] }
 0x4a0   :  { %4884 = vpow2.f32 %v4688_v56 }
 0x4a1   :  { %4886 = vpow2.f32 %v4689_v53 }
 0x4ab   :  { %v4883_v52 = vpop.eup %4882 }
 0x4ac   :  { %v2085_v5 = vadd.f32 1.0, %v4883_v52 }
 0x4ad   :  { %v4885_v51 = vpop.eup %4884 }
 0x4ae   :  { %4888 = vrcp.f32 %v2085_v5  ;;  %v2091_v59 = vadd.f32 1.0, %v4885_v51  ;;  %v4887_v4 = vpop.eup %4886  ;;  %v10224_v5 = vld [vmem:[#allocation158_spill] sm:$0xff] }
 0x4af   :  { %4890 = vtanh.f32 %v2080_v2  ;;  %v2098_v1 = vadd.f32 1.0, %v4887_v4 }
 0x4b0   :  { %4892 = vrcp.f32 %v2091_v59 }
 0x4b9   :  { %v2172_v58 = vpop.f32.mrf.mxu0  ;;  %v2243_v53 = vpop.f32.mrf.mxu1 }
 0x4ba   :  { %v2248_v60 = vadd.f32 %v2172_v58, %v10222_v57  ;;  %v10225_v58 = vld [vmem:[#allocation157_spill] sm:$0xff] }
 0x4bb   :  { %v4889_v56 = vpop.eup %4888  ;;  %v2174_v55 = vpop.f32.mrf.mxu0  ;;  %v2250_v57 = vadd.f32 %v2243_v53, %v10225_v58  ;;  %v10239_v58 = vld [vmem:[#allocation93_spill] sm:$0xff] }
 0x4bc   :  { %v4891_v40 = vpop.eup %4890  ;;  %v4690_v61 = vmul.f32 -1.442695, %v2248_v60  ;;  %v2249_v62 = vadd.f32 %v2174_v55, %v10223_v3  ;;  %v2245_v2 = vpop.f32.mrf.mxu1 }
 0x4bd   :  { %v4893_v63 = vpop.eup %4892  ;;  %v2102_v54 = vmul.f32 %v4891_v40, %v4889_v56  ;;  %v2251_v59 = vadd.f32 %v2245_v2, %v10224_v5  ;;  %v10237_v2 = vld [vmem:[#allocation91_spill] sm:$0xff]  ;;  %v10238_v5 = vld [vmem:[#allocation92_spill] sm:$0xff] }
 0x4be   :  { %v2101_v52 = vmul.f32 %v4893_v63, %v7198_v21  ;;  %4894 = vpow2.f32 %v4690_v61  ;;  %v4691_v51 = vmul.f32 -1.442695, %v2249_v62  ;;  %v10227_v62 = vld [vmem:[#allocation81_spill] sm:$0xff]  ;;  %v10228_v63 = vld [vmem:[#allocation82_spill] sm:$0xff] }
 0x4bf   :  { %v4692_v60 = vmul.f32 -1.442695, %v2251_v59 }
 0x4c0   :  { %4896 = vpow2.f32 %v4691_v51  ;;  %v7610_v34 = vadd.f32 %v2102_v54, %v2101_v52  ;;  %v10235_v54 = vld [vmem:[#allocation89_spill] sm:$0xff]  ;;  %v10236_v52 = vld [vmem:[#allocation90_spill] sm:$0xff] }
 0x4c1   :  { %4898 = vrcp.f32 %v2098_v1  ;;  %v10232_v1 = vld [vmem:[#allocation86_spill] sm:$0xff] }
 0x4c2   :  { %4900 = vtanh.f32 %v7610_v34 }
 0x4c3   :  { %4902 = vtanh.f32 %v2250_v57 }
 0x4c4   :  { %4904 = vpow2.f32 %v4692_v60  ;;  %v10241_v60 = vld [vmem:[#allocation95_spill] sm:$0xff] }
 0x4cb   :  { %v4895_v55 = vpop.eup %4894 }
 0x4cc   :  { %v2255_v4 = vadd.f32 1.0, %v4895_v55  ;;  %v10242_v55 = vld [vmem:[#allocation96_spill] sm:$0xff] }
 0x4cd   :  { %v4897_v56 = vpop.eup %4896 }
 0x4ce   :  { %v4899_v21 = vpop.eup %4898  ;;  %4906 = vrcp.f32 %v2255_v4  ;;  %v2261_v40 = vadd.f32 1.0, %v4897_v56  ;;  %v10243_v4 = vld [vmem:[#allocation97_spill] sm:$0xff]  ;;  %v10244_v56 = vld [vmem:[#allocation98_spill] sm:$0xff] }
 0x4cf   :  { %v4901_v61 = vpop.eup %4900 }
 0x4d0   :  { %4908 = vrcp.f32 %v2261_v40  ;;  %v7615_v3 = vmul.f32 %v4901_v61, %v4899_v21  ;;  %v10248_v21 = vld [vmem:[#allocation102_spill] sm:$0xff]  ;;  %v10249_v40 = vld [vmem:[#allocation103_spill] sm:$0xff]  ;;  %v10250_v61 = vld [vmem:[#allocation104_spill] sm:$0xff] }
 0x4d2   :  { %10226 = vst [vmem:[#allocation138_spill] sm:$0xff] %v7615_v3  ;;  %2341 = vmatmul.mubr.f32.vlgmr.msra.gmra.mxu0 %v7615_v3  ;;  %2412 = vmatmul.mubr.f32.vlgmr.msra.gmra.mxu1 %v7615_v3  ;;  %v7895_v3 = vld [vmem:[#allocation11 + $0x128] sm:$0xff] }
 0x4d3   :  { %2419 = vmatpush1.msra.mxu0 %v7207_v27  ;;  %2490 = vmatpush1.msra.mxu1 %v7210_v17  ;;  %v10229_v27 = vld [vmem:[#allocation83_spill] sm:$0xff]  ;;  %v4903_v17 = vpop.eup %4902  ;;  %10303 = vst [vmem:[#allocation34_spill] sm:$0xff] %v7895_v3 }
 0x4d4   :  { %2420 = vmatprep.subr.mxu0 %v7213_v29  ;;  %2491 = vmatprep.subr.mxu1 %v7216_v26  ;;  %v10230_v29 = vld [vmem:[#allocation84_spill] sm:$0xff]  ;;  %v10231_v26 = vld [vmem:[#allocation85_spill] sm:$0xff] }
 0x4d5   :  { %2421 = vmatpush1.msra.mxu0 %v7219_v25  ;;  %2492 = vmatpush1.msra.mxu1 %v7222_v42  ;;  %v4905_v25 = vpop.eup %4904  ;;  %v10233_v42 = vld [vmem:[#allocation87_spill] sm:$0xff] }
 0x4d6   :  { %2422 = vmatprep.subr.mxu0 %v7225_v38  ;;  %2493 = vmatprep.subr.mxu1 %v7228_v18  ;;  %v10234_v18 = vld [vmem:[#allocation88_spill] sm:$0xff]  ;;  %v2268_v51 = vadd.f32 1.0, %v4905_v25  ;;  %v10257_v25 = vld [vmem:[#allocation111_spill] sm:$0xff] }
 0x4d7   :  { %2423 = vmatpush1.msra.mxu0 %v7231_v39  ;;  %2494 = vmatpush1.msra.mxu1 %v10227_v62  ;;  %v10251_v62 = vld [vmem:[#allocation105_spill] sm:$0xff] }
 0x4d8   :  { %2424 = vmatprep.subr.mxu0 %v10228_v63  ;;  %2495 = vmatprep.subr.mxu1 %v10229_v27  ;;  %4910 = vrcp.f32 %v2268_v51  ;;  %v10252_v63 = vld [vmem:[#allocation106_spill] sm:$0xff]  ;;  %v10253_v27 = vld [vmem:[#allocation107_spill] sm:$0xff]  ;;  %v10266_v51 = vld [vmem:[#allocation120_spill] sm:$0xff] }
 0x4d9   :  { %2425 = vmatpush1.msra.mxu0 %v10230_v29  ;;  %2496 = vmatpush1.msra.mxu1 %v10231_v26  ;;  %v10255_v29 = vld [vmem:[#allocation109_spill] sm:$0xff]  ;;  %v10256_v26 = vld [vmem:[#allocation110_spill] sm:$0xff] }
 0x4da   :  { %2426 = vmatprep.subr.mxu0 %v10232_v1  ;;  %2497 = vmatprep.subr.mxu1 %v10233_v42  ;;  %v10258_v1 = vld [vmem:[#allocation112_spill] sm:$0xff]  ;;  %v10259_v42 = vld [vmem:[#allocation113_spill] sm:$0xff] }
 0x4db   :  { %v4907_v38 = vpop.eup %4906  ;;  %2427 = vmatpush1.msra.mxu0 %v10234_v18  ;;  %2498 = vmatpush1.msra.mxu1 %v7258_v24  ;;  %v10240_v24 = vld [vmem:[#allocation94_spill] sm:$0xff]  ;;  %v10261_v18 = vld [vmem:[#allocation115_spill] sm:$0xff] }
 0x4dc   :  { %v2272_v39 = vmul.f32 %v4907_v38, %v4903_v17  ;;  %2428 = vmatprep.subr.mxu0 %v10235_v54  ;;  %2499 = vmatprep.subr.mxu1 %v10236_v52  ;;  %v10254_v17 = vld [vmem:[#allocation108_spill] sm:$0xff]  ;;  %v10260_v38 = vld [vmem:[#allocation114_spill] sm:$0xff]  ;;  %v10263_v54 = vld [vmem:[#allocation117_spill] sm:$0xff] }
 0x4dd   :  { %v4909_v53 = vpop.eup %4908  ;;  %2429 = vmatpush1.msra.mxu0 %v10237_v2  ;;  %2500 = vmatpush1.msra.mxu1 %v10238_v5  ;;  %v10264_v52 = vld [vmem:[#allocation118_spill] sm:$0xff]  ;;  %v10267_v2 = vld [vmem:[#allocation121_spill] sm:$0xff] }
 0x4de   :  { %v2271_v59 = vmul.f32 %v4909_v53, %v7286_v13  ;;  %2430 = vmatprep.subr.mxu0 %v7274_v30  ;;  %2501 = vmatprep.subr.mxu1 %v7277_v7  ;;  %v10245_v13 = vld [vmem:[#allocation99_spill] sm:$0xff]  ;;  %v10246_v30 = vld [vmem:[#allocation100_spill] sm:$0xff]  ;;  %v10247_v7 = vld [vmem:[#allocation101_spill] sm:$0xff] }
 0x4df   :  { %2431 = vmatpush1.msra.mxu0 %v10239_v58  ;;  %2502 = vmatpush1.msra.mxu1 %v10240_v24  ;;  %v10265_v53 = vld [vmem:[#allocation119_spill] sm:$0xff]  ;;  %v10268_v5 = vld [vmem:[#allocation122_spill] sm:$0xff]  ;;  %v10270_v24 = vld [vmem:[#allocation124_spill] sm:$0xff] }
 0x4e0   :  { %v7646_v57 = vadd.f32 %v2272_v39, %v2271_v59  ;;  %2432 = vmatprep.subr.mxu0 %v10241_v60  ;;  %2503 = vmatprep.subr.mxu1 %v10242_v55  ;;  %v10262_v39 = vld [vmem:[#allocation116_spill] sm:$0xff]  ;;  %v10269_v58 = vld [vmem:[#allocation123_spill] sm:$0xff]  ;;  %v10271_v55 = vld [vmem:[#allocation125_spill] sm:$0xff] }
 0x4e1   :  { %2433 = vmatpush1.msra.mxu0 %v10243_v4  ;;  %2504 = vmatpush1.msra.mxu1 %v10244_v56  ;;  %v10272_v4 = vld [vmem:[#allocation126_spill] sm:$0xff] }
 0x4e2   :  { %2434 = vmatprep.subr.mxu0 %v10245_v13  ;;  %2505 = vmatprep.subr.mxu1 %v10246_v30  ;;  %4912 = vtanh.f32 %v7646_v57  ;;  %v10273_v13 = vld [vmem:[#allocation127_spill] sm:$0xff]  ;;  %v10274_v30 = vld [vmem:[#allocation128_spill] sm:$0xff] }
 0x4e3   :  { %2435 = vmatpush1.msra.mxu0 %v10247_v7  ;;  %2506 = vmatpush1.msra.mxu1 %v10248_v21  ;;  %v7704_v7 = vld [vmem:[#allocation8 + $0x1d0] sm:$0xff]  ;;  %v7708_v21 = vld [vmem:[#allocation8 + $0x1b8] sm:$0xff] }
 0x4e4   :  { %2436 = vmatprep.subr.mxu0 %v10249_v40  ;;  %2507 = vmatprep.subr.mxu1 %v10250_v61  ;;  %v7784_v40 = vld [vmem:[#allocation8 + $0x90] sm:$0xff]  ;;  %v7788_v61 = vld [vmem:[#allocation8 + $0x78] sm:$0xff] }
 0x4e5   :  { %2437 = vmatpush1.msra.mxu0 %v10251_v62  ;;  %2508 = vmatpush1.msra.mxu1 %v10252_v63  ;;  %v4911_v59 = vpop.eup %4910  ;;  %v7792_v62 = vld [vmem:[#allocation8 + $0x70] sm:$0xff]  ;;  %v7796_v63 = vld [vmem:[#allocation8 + $0x58] sm:$0xff] }
 0x4e6   :  { %2438 = vmatprep.subr.mxu0 %v10253_v27  ;;  %2509 = vmatprep.subr.mxu1 %v10254_v17  ;;  %v10279_v27 = vld [vmem:[#allocation133_spill] sm:$0xff]  ;;  %v7800_v17 = vld [vmem:[#allocation8 + $0x50] sm:$0xff] }
 0x4e7   :  { %2439 = vmatpush1.msra.mxu0 %v10255_v29  ;;  %2510 = vmatpush1.msra.mxu1 %v10256_v26  ;;  %v10280_v29 = vld [vmem:[#allocation134_spill] sm:$0xff]  ;;  %v7804_v26 = vld [vmem:[#allocation8 + $0x38] sm:$0xff] }
 0x4e8   :  { %2440 = vmatprep.subr.mxu0 %v10257_v25  ;;  %2511 = vmatprep.subr.mxu1 %v10258_v1  ;;  %v10281_v25 = vld [vmem:[#allocation135_spill] sm:$0xff]  ;;  %v7808_v1 = vld [vmem:[#allocation8 + $0x30] sm:$0xff] }
 0x4e9   :  { %2441 = vmatpush1.msra.mxu0 %v10259_v42  ;;  %2512 = vmatpush1.msra.mxu1 %v10260_v38  ;;  %v10282_v42 = vld [vmem:[#allocation136_spill] sm:$0xff]  ;;  %v7812_v38 = vld [vmem:[#allocation8 + $0x18] sm:$0xff] }
 0x4ea   :  { %2442 = vmatprep.subr.mxu0 %v10261_v18  ;;  %2513 = vmatprep.subr.mxu1 %v10262_v39  ;;  %v10283_v18 = vld [vmem:[#allocation137_spill] sm:$0xff]  ;;  %v7817_v39 = vld [vmem:[#allocation8 + $0x10] sm:$0xff] }
 0x4eb   :  { %2443 = vmatpush1.msra.mxu0 %v10263_v54  ;;  %2514 = vmatpush1.msra.mxu1 %v10264_v52  ;;  %v7823_v54 = vld [vmem:[#allocation11 + $0x1e8] sm:$0xff]  ;;  %v7826_v52 = vld [vmem:[#allocation11 + $0x1f8] sm:$0xff] }
 0x4ec   :  { %2444 = vmatprep.subr.mxu0 %v10265_v53  ;;  %2515 = vmatprep.subr.mxu1 %v10266_v51  ;;  %v7829_v53 = vld [vmem:[#allocation11 + $0x1e0] sm:$0xff]  ;;  %v7832_v51 = vld [vmem:[#allocation11 + $0x1f0] sm:$0xff] }
 0x4ed   :  { %2445 = vmatpush1.msra.mxu0 %v10267_v2  ;;  %2516 = vmatpush1.msra.mxu1 %v10268_v5  ;;  %v7835_v2 = vld [vmem:[#allocation11 + $0x1c8] sm:$0xff]  ;;  %v7838_v5 = vld [vmem:[#allocation11 + $0x1d8] sm:$0xff] }
 0x4ee   :  { %2446 = vmatprep.subr.mxu0 %v10269_v58  ;;  %2517 = vmatprep.subr.mxu1 %v10270_v24  ;;  %10284 = vst [vmem:[#allocation139_spill] sm:$0xff] %v7838_v5  ;;  %v7844_v58 = vld [vmem:[#allocation11 + $0x1d0] sm:$0xff]  ;;  %v7847_v24 = vld [vmem:[#allocation11 + $0x1a8] sm:$0xff] }
 0x4ef   :  { %v4913_v60 = vpop.eup %4912  ;;  %2447 = vmatpush1.msra.mxu0 %v10271_v55  ;;  %2518 = vmatpush1.msra.mxu1 %v7382_v16  ;;  %v7692_v16 = vld [vmem:[#allocation8 + $0x1f8] sm:$0xff]  ;;  %10286 = vst [vmem:[#allocation143_spill] sm:$0xff] %v7844_v58  ;;  %10287 = vst [vmem:[#allocation144_spill] sm:$0xff] %v7847_v24  ;;  %v7853_v55 = vld [vmem:[#allocation11 + $0x1a0] sm:$0xff] }
 0x4f0   :  { %2448 = vmatprep.subr.mxu0 %v10272_v4  ;;  %2519 = vmatprep.subr.mxu1 %v7388_v9  ;;  %v7683_v56 = vmul.f32 %v4913_v60, %v4911_v59  ;;  %v7696_v9 = vld [vmem:[#allocation8 + $0x1f0] sm:$0xff]  ;;  %v7841_v59 = vld [vmem:[#allocation11 + $0x1c0] sm:$0xff]  ;;  %v7850_v60 = vld [vmem:[#allocation11 + $0x1b8] sm:$0xff]  ;;  %10289 = vst [vmem:[#allocation155_spill] sm:$0xff] %v7853_v55 }
 0x4f1   :  { %2449 = vmatpush1.msra.mxu0 %v7393_v28  ;;  %2482 = vmatprep.mubr.f32.mxu0 %v9822_v37  ;;  %v7700_v28 = vld [vmem:[#allocation8 + $0x1d8] sm:$0xff]  ;;  %10285 = vst [vmem:[#allocation140_spill] sm:$0xff] %v7841_v59  ;;  %10288 = vst [vmem:[#allocation156_spill] sm:$0xff] %v7850_v60  ;;  %v7856_v4 = vld [vmem:[#allocation11 + $0x1b0] sm:$0xff] }
 0x4f2   :  { %2520 = vmatpush1.msra.mxu1 %v10273_v13  ;;  %2553 = vmatprep.mubr.f32.mxu1 %v9822_v37  ;;  %10290 = vst [vmem:[#allocation21_spill] sm:$0xff] %v7856_v4  ;;  %v7862_v13 = vld [vmem:[#allocation11 + $0x198] sm:$0xff] }
 0x4f3   :  { %2483 = vmatmul.mubr.f32.vlgmr.msra.gmra.mxu0 %v7683_v56  ;;  %2554 = vmatmul.mubr.f32.vlgmr.msra.gmra.mxu1 %v7683_v56  ;;  %10292 = vst [vmem:[#allocation23_spill] sm:$0xff] %v7862_v13 }
 0x4f4   :  { %2588 = vmatprep.subr.mxu0 %v10274_v30  ;;  %2659 = vmatprep.subr.mxu1 %v7692_v16  ;;  %v7865_v30 = vld [vmem:[#allocation11 + $0x180] sm:$0xff] }
 0x4f5   :  { %2589 = vmatpush1.msra.mxu0 %v7407_v31  ;;  %2660 = vmatpush1.msra.mxu1 %v7696_v9  ;;  %v7712_v31 = vld [vmem:[#allocation8 + $0x1b0] sm:$0xff]  ;;  %10293 = vst [vmem:[#allocation24_spill] sm:$0xff] %v7865_v30 }
 0x4f6   :  { %2590 = vmatprep.subr.mxu0 %v7411_v14  ;;  %2661 = vmatprep.subr.mxu1 %v7700_v28  ;;  %v7716_v14 = vld [vmem:[#allocation8 + $0x198] sm:$0xff] }
 0x4f7   :  { %2591 = vmatpush1.msra.mxu0 %v7415_v10  ;;  %2662 = vmatpush1.msra.mxu1 %v7704_v7  ;;  %v7720_v10 = vld [vmem:[#allocation8 + $0x190] sm:$0xff] }
 0x4f8   :  { %2592 = vmatprep.subr.mxu0 %v7419_v6  ;;  %2663 = vmatprep.subr.mxu1 %v7708_v21  ;;  %v7724_v6 = vld [vmem:[#allocation8 + $0x178] sm:$0xff] }
 0x4f9   :  { %2593 = vmatpush1.msra.mxu0 %v7423_v0  ;;  %2664 = vmatpush1.msra.mxu1 %v7712_v31  ;;  %v7728_v0 = vld [vmem:[#allocation8 + $0x170] sm:$0xff] }
 0x4fa   :  { %2594 = vmatprep.subr.mxu0 %v7427_v12  ;;  %2665 = vmatprep.subr.mxu1 %v7716_v14  ;;  %v7732_v12 = vld [vmem:[#allocation8 + $0x158] sm:$0xff] }
 0x4fb   :  { %2595 = vmatpush1.msra.mxu0 %v7431_v22  ;;  %2666 = vmatpush1.msra.mxu1 %v7720_v10  ;;  %v7736_v22 = vld [vmem:[#allocation8 + $0x150] sm:$0xff] }
 0x4fc   :  { %2596 = vmatprep.subr.mxu0 %v7435_v33  ;;  %2667 = vmatprep.subr.mxu1 %v7724_v6  ;;  %v7740_v33 = vld [vmem:[#allocation8 + $0x138] sm:$0xff] }
 0x4fd   :  { %2597 = vmatpush1.msra.mxu0 %v7439_v11  ;;  %2668 = vmatpush1.msra.mxu1 %v7728_v0  ;;  %v7744_v11 = vld [vmem:[#allocation8 + $0x130] sm:$0xff] }
 0x4fe   :  { %2598 = vmatprep.subr.mxu0 %v7443_v19  ;;  %2669 = vmatprep.subr.mxu1 %v7732_v12  ;;  %v7748_v19 = vld [vmem:[#allocation8 + $0x118] sm:$0xff] }
 0x4ff   :  { %2599 = vmatpush1.msra.mxu0 %v7447_v36  ;;  %2670 = vmatpush1.msra.mxu1 %v7736_v22  ;;  %v7752_v36 = vld [vmem:[#allocation8 + $0x110] sm:$0xff] }
 0x500   :  { %2600 = vmatprep.subr.mxu0 %v7451_v23  ;;  %2671 = vmatprep.subr.mxu1 %v7740_v33  ;;  %v7756_v23 = vld [vmem:[#allocation8 + $0xf8] sm:$0xff] }
 0x501   :  { %2601 = vmatpush1.msra.mxu0 %v7455_v32  ;;  %2672 = vmatpush1.msra.mxu1 %v7744_v11  ;;  %v7760_v32 = vld [vmem:[#allocation8 + $0xf0] sm:$0xff] }
 0x502   :  { %2602 = vmatprep.subr.mxu0 %v7459_v41  ;;  %2673 = vmatprep.subr.mxu1 %v7748_v19  ;;  %v7764_v41 = vld [vmem:[#allocation8 + $0xd8] sm:$0xff] }
 0x503   :  { %2603 = vmatpush1.msra.mxu0 %v7463_v43  ;;  %2674 = vmatpush1.msra.mxu1 %v7752_v36  ;;  %v7768_v43 = vld [vmem:[#allocation8 + $0xd0] sm:$0xff] }
 0x504   :  { %2604 = vmatprep.subr.mxu0 %v7467_v44  ;;  %2675 = vmatprep.subr.mxu1 %v7756_v23  ;;  %v7772_v44 = vld [vmem:[#allocation8 + $0xb8] sm:$0xff] }
 0x505   :  { %2605 = vmatpush1.msra.mxu0 %v7471_v45  ;;  %2676 = vmatpush1.msra.mxu1 %v7760_v32  ;;  %v7776_v45 = vld [vmem:[#allocation8 + $0xb0] sm:$0xff] }
 0x506   :  { %2606 = vmatprep.subr.mxu0 %v7475_v46  ;;  %2677 = vmatprep.subr.mxu1 %v7764_v41  ;;  %v7780_v46 = vld [vmem:[#allocation8 + $0x98] sm:$0xff] }
 0x507   :  { %2607 = vmatpush1.msra.mxu0 %v7479_v47  ;;  %2678 = vmatpush1.msra.mxu1 %v7768_v43  ;;  %v10275_v47 = vld [vmem:[#allocation129_spill] sm:$0xff] }
 0x508   :  { %2608 = vmatprep.subr.mxu0 %v7483_v48  ;;  %2679 = vmatprep.subr.mxu1 %v7772_v44  ;;  %v10276_v48 = vld [vmem:[#allocation130_spill] sm:$0xff] }
 0x509   :  { %2609 = vmatpush1.msra.mxu0 %v7487_v49  ;;  %2680 = vmatpush1.msra.mxu1 %v7776_v45  ;;  %v10277_v49 = vld [vmem:[#allocation131_spill] sm:$0xff] }
 0x50a   :  { %2610 = vmatprep.subr.mxu0 %v7491_v50  ;;  %2681 = vmatprep.subr.mxu1 %v7780_v46  ;;  %v10278_v50 = vld [vmem:[#allocation132_spill] sm:$0xff] }
 0x50b   :  { %2611 = vmatpush1.msra.mxu0 %v10275_v47  ;;  %2682 = vmatpush1.msra.mxu1 %v7784_v40  ;;  %v7868_v47 = vld [vmem:[#allocation11 + $0x190] sm:$0xff] }
 0x50c   :  { %2612 = vmatprep.subr.mxu0 %v10276_v48  ;;  %2683 = vmatprep.subr.mxu1 %v7788_v61  ;;  %10294 = vst [vmem:[#allocation25_spill] sm:$0xff] %v7868_v47  ;;  %v7871_v48 = vld [vmem:[#allocation11 + $0x168] sm:$0xff] }
 0x50d   :  { %2613 = vmatpush1.msra.mxu0 %v10277_v49  ;;  %2684 = vmatpush1.msra.mxu1 %v7792_v62  ;;  %10295 = vst [vmem:[#allocation26_spill] sm:$0xff] %v7871_v48  ;;  %v7874_v49 = vld [vmem:[#allocation11 + $0x178] sm:$0xff] }
 0x50e   :  { %2614 = vmatprep.subr.mxu0 %v10278_v50  ;;  %2685 = vmatprep.subr.mxu1 %v7796_v63  ;;  %10296 = vst [vmem:[#allocation27_spill] sm:$0xff] %v7874_v49  ;;  %v7877_v50 = vld [vmem:[#allocation11 + $0x160] sm:$0xff] }
 0x50f   :  { %2615 = vmatpush1.msra.mxu0 %v10279_v27  ;;  %2686 = vmatpush1.msra.mxu1 %v7800_v17  ;;  %10297 = vst [vmem:[#allocation28_spill] sm:$0xff] %v7877_v50  ;;  %v7880_v27 = vld [vmem:[#allocation11 + $0x170] sm:$0xff] }
 0x510   :  { %2616 = vmatprep.subr.mxu0 %v10280_v29  ;;  %2687 = vmatprep.subr.mxu1 %v7804_v26  ;;  %10298 = vst [vmem:[#allocation29_spill] sm:$0xff] %v7880_v27  ;;  %v7883_v29 = vld [vmem:[#allocation11 + $0x148] sm:$0xff] }
 0x511   :  { %2617 = vmatpush1.msra.mxu0 %v10281_v25  ;;  %2688 = vmatpush1.msra.mxu1 %v7808_v1  ;;  %10299 = vst [vmem:[#allocation30_spill] sm:$0xff] %v7883_v29  ;;  %v7886_v25 = vld [vmem:[#allocation11 + $0x158] sm:$0xff] }
 0x512   :  { %2618 = vmatprep.subr.mxu0 %v10282_v42  ;;  %2689 = vmatprep.subr.mxu1 %v7812_v38  ;;  %10300 = vst [vmem:[#allocation31_spill] sm:$0xff] %v7886_v25  ;;  %v7889_v42 = vld [vmem:[#allocation11 + $0x140] sm:$0xff] }
 0x513   :  { %2619 = vmatpush1.msra.mxu0 %v10283_v18  ;;  %2652 = vmatprep.mubr.f32.mxu0 %v9822_v37  ;;  %10301 = vst [vmem:[#allocation32_spill] sm:$0xff] %v7889_v42  ;;  %v7892_v18 = vld [vmem:[#allocation11 + $0x150] sm:$0xff] }
 0x514   :  { %2690 = vmatpush1.msra.mxu1 %v7817_v39  ;;  %2723 = vmatprep.mubr.f32.mxu1 %v9822_v37  ;;  %10302 = vst [vmem:[#allocation33_spill] sm:$0xff] %v7892_v18 }
 0x515   :  { %2653 = vmatmul.mubr.f32.vlgmr.msra.gmra.mxu0 %v7683_v56  ;;  %2724 = vmatmul.mubr.f32.vlgmr.msra.gmra.mxu1 %v7683_v56  ;;  %v7859_v56 = vld [vmem:[#allocation11 + $0x188] sm:$0xff] }
 0x516   :  { %2758 = vmatprep.subr.mxu0 %v7823_v54  ;;  %2829 = vmatprep.subr.mxu1 %v7826_v52  ;;  %10291 = vst [vmem:[#allocation22_spill] sm:$0xff] %v7859_v56 }
 0x517   :  { %2759 = vmatpush1.msra.mxu0 %v7829_v53  ;;  %2830 = vmatpush1.msra.mxu1 %v7832_v51 }
 0x518   :  { %2760 = vmatprep.subr.mxu0 %v7835_v2  ;;  %2831 = vmatprep.subr.mxu1 %v7838_v5 }
 0x519   :  { %2761 = vmatpush1.msra.mxu0 %v7841_v59  ;;  %2832 = vmatpush1.msra.mxu1 %v7844_v58 }
 0x51a   :  { %2762 = vmatprep.subr.mxu0 %v7847_v24  ;;  %2833 = vmatprep.subr.mxu1 %v7850_v60 }
 0x51b   :  { %2763 = vmatpush1.msra.mxu0 %v7853_v55  ;;  %2834 = vmatpush1.msra.mxu1 %v7856_v4 }
 0x51c   :  { %2764 = vmatprep.subr.mxu0 %v7859_v56  ;;  %2835 = vmatprep.subr.mxu1 %v7862_v13 }
 0x51d   :  { %2765 = vmatpush1.msra.mxu0 %v7865_v30  ;;  %2836 = vmatpush1.msra.mxu1 %v7868_v47 }
 0x51e   :  { %2766 = vmatprep.subr.mxu0 %v7871_v48  ;;  %2837 = vmatprep.subr.mxu1 %v7874_v49 }
 0x51f   :  { %2767 = vmatpush1.msra.mxu0 %v7877_v50  ;;  %2838 = vmatpush1.msra.mxu1 %v7880_v27  ;;  %v7898_v27 = vld [vmem:[#allocation11 + $0x138] sm:$0xff] }
 0x520   :  { %2768 = vmatprep.subr.mxu0 %v7883_v29  ;;  %2839 = vmatprep.subr.mxu1 %v7886_v25  ;;  %10304 = vst [vmem:[#allocation35_spill] sm:$0xff] %v7898_v27  ;;  %v7901_v29 = vld [vmem:[#allocation11 + $0x120] sm:$0xff]  ;;  %v7904_v25 = vld [vmem:[#allocation11 + $0x130] sm:$0xff] }
 0x521   :  { %2769 = vmatpush1.msra.mxu0 %v7889_v42  ;;  %2840 = vmatpush1.msra.mxu1 %v7892_v18  ;;  %10305 = vst [vmem:[#allocation36_spill] sm:$0xff] %v7901_v29  ;;  %10306 = vst [vmem:[#allocation37_spill] sm:$0xff] %v7904_v25  ;;  %v7907_v42 = vld [vmem:[#allocation11 + $0x108] sm:$0xff]  ;;  %v7910_v18 = vld [vmem:[#allocation11 + $0x118] sm:$0xff] }
 0x522   :  { %2770 = vmatprep.subr.mxu0 %v7895_v3  ;;  %2841 = vmatprep.subr.mxu1 %v7898_v27  ;;  %10307 = vst [vmem:[#allocation38_spill] sm:$0xff] %v7907_v42  ;;  %10308 = vst [vmem:[#allocation39_spill] sm:$0xff] %v7910_v18  ;;  %v7913_v3 = vld [vmem:[#allocation11 + $0x100] sm:$0xff]  ;;  %v7916_v27 = vld [vmem:[#allocation11 + $0x110] sm:$0xff] }
 0x523   :  { %2771 = vmatpush1.msra.mxu0 %v7901_v29  ;;  %2842 = vmatpush1.msra.mxu1 %v7904_v25  ;;  %10309 = vst [vmem:[#allocation40_spill] sm:$0xff] %v7913_v3  ;;  %10310 = vst [vmem:[#allocation41_spill] sm:$0xff] %v7916_v27  ;;  %v7919_v29 = vld [vmem:[#allocation11 + $0xe8] sm:$0xff]  ;;  %v7922_v25 = vld [vmem:[#allocation11 + $0xf8] sm:$0xff] }
 0x524   :  { %2772 = vmatprep.subr.mxu0 %v7907_v42  ;;  %2843 = vmatprep.subr.mxu1 %v7910_v18  ;;  %10311 = vst [vmem:[#allocation42_spill] sm:$0xff] %v7919_v29  ;;  %10312 = vst [vmem:[#allocation43_spill] sm:$0xff] %v7922_v25  ;;  %v7925_v42 = vld [vmem:[#allocation11 + $0xe0] sm:$0xff]  ;;  %v7928_v18 = vld [vmem:[#allocation11 + $0xf0] sm:$0xff] }
 0x525   :  { %2773 = vmatpush1.msra.mxu0 %v7913_v3  ;;  %2844 = vmatpush1.msra.mxu1 %v7916_v27  ;;  %10313 = vst [vmem:[#allocation44_spill] sm:$0xff] %v7925_v42  ;;  %10314 = vst [vmem:[#allocation45_spill] sm:$0xff] %v7928_v18  ;;  %v7931_v3 = vld [vmem:[#allocation11 + $0xc8] sm:$0xff]  ;;  %v7934_v27 = vld [vmem:[#allocation11 + $0xd8] sm:$0xff] }
 0x526   :  { %2774 = vmatprep.subr.mxu0 %v7919_v29  ;;  %2845 = vmatprep.subr.mxu1 %v7922_v25  ;;  %10315 = vst [vmem:[#allocation46_spill] sm:$0xff] %v7931_v3  ;;  %10316 = vst [vmem:[#allocation47_spill] sm:$0xff] %v7934_v27  ;;  %v7937_v29 = vld [vmem:[#allocation11 + $0xc0] sm:$0xff]  ;;  %v7940_v25 = vld [vmem:[#allocation11 + $0xd0] sm:$0xff] }
 0x527   :  { %2775 = vmatpush1.msra.mxu0 %v7925_v42  ;;  %2846 = vmatpush1.msra.mxu1 %v7928_v18  ;;  %10317 = vst [vmem:[#allocation48_spill] sm:$0xff] %v7937_v29  ;;  %10318 = vst [vmem:[#allocation49_spill] sm:$0xff] %v7940_v25  ;;  %v7943_v42 = vld [vmem:[#allocation11 + $0xa8] sm:$0xff]  ;;  %v7946_v18 = vld [vmem:[#allocation11 + $0xb8] sm:$0xff] }
 0x528   :  { %2776 = vmatprep.subr.mxu0 %v7931_v3  ;;  %2847 = vmatprep.subr.mxu1 %v7934_v27  ;;  %10319 = vst [vmem:[#allocation50_spill] sm:$0xff] %v7943_v42  ;;  %10320 = vst [vmem:[#allocation51_spill] sm:$0xff] %v7946_v18  ;;  %v7949_v3 = vld [vmem:[#allocation11 + $0xa0] sm:$0xff]  ;;  %v7952_v27 = vld [vmem:[#allocation11 + $0xb0] sm:$0xff] }
 0x529   :  { %2777 = vmatpush1.msra.mxu0 %v7937_v29  ;;  %2848 = vmatpush1.msra.mxu1 %v7940_v25  ;;  %10321 = vst [vmem:[#allocation52_spill] sm:$0xff] %v7949_v3  ;;  %10322 = vst [vmem:[#allocation53_spill] sm:$0xff] %v7952_v27  ;;  %v7955_v29 = vld [vmem:[#allocation11 + $0x88] sm:$0xff]  ;;  %v7958_v25 = vld [vmem:[#allocation11 + $0x98] sm:$0xff] }
 0x52a   :  { %2778 = vmatprep.subr.mxu0 %v7943_v42  ;;  %2849 = vmatprep.subr.mxu1 %v7946_v18  ;;  %10323 = vst [vmem:[#allocation54_spill] sm:$0xff] %v7955_v29  ;;  %10324 = vst [vmem:[#allocation55_spill] sm:$0xff] %v7958_v25  ;;  %v7961_v42 = vld [vmem:[#allocation11 + $0x80] sm:$0xff]  ;;  %v7964_v18 = vld [vmem:[#allocation11 + $0x90] sm:$0xff] }
 0x52b   :  { %2779 = vmatpush1.msra.mxu0 %v7949_v3  ;;  %2850 = vmatpush1.msra.mxu1 %v7952_v27  ;;  %10325 = vst [vmem:[#allocation56_spill] sm:$0xff] %v7961_v42  ;;  %10326 = vst [vmem:[#allocation57_spill] sm:$0xff] %v7964_v18  ;;  %v7967_v3 = vld [vmem:[#allocation11 + $0x68] sm:$0xff]  ;;  %v7970_v27 = vld [vmem:[#allocation11 + $0x78] sm:$0xff] }
 0x52c   :  { %2780 = vmatprep.subr.mxu0 %v7955_v29  ;;  %2851 = vmatprep.subr.mxu1 %v7958_v25  ;;  %10327 = vst [vmem:[#allocation58_spill] sm:$0xff] %v7967_v3  ;;  %10328 = vst [vmem:[#allocation59_spill] sm:$0xff] %v7970_v27  ;;  %v7973_v29 = vld [vmem:[#allocation11 + $0x60] sm:$0xff]  ;;  %v7976_v25 = vld [vmem:[#allocation11 + $0x70] sm:$0xff] }
 0x52d   :  { %2781 = vmatpush1.msra.mxu0 %v7961_v42  ;;  %2852 = vmatpush1.msra.mxu1 %v7964_v18  ;;  %10329 = vst [vmem:[#allocation60_spill] sm:$0xff] %v7973_v29  ;;  %10330 = vst [vmem:[#allocation61_spill] sm:$0xff] %v7976_v25  ;;  %v7979_v42 = vld [vmem:[#allocation11 + $0x48] sm:$0xff]  ;;  %v7982_v18 = vld [vmem:[#allocation11 + $0x58] sm:$0xff] }
 0x52e   :  { %2782 = vmatprep.subr.mxu0 %v7967_v3  ;;  %2853 = vmatprep.subr.mxu1 %v7970_v27  ;;  %10331 = vst [vmem:[#allocation62_spill] sm:$0xff] %v7979_v42  ;;  %10332 = vst [vmem:[#allocation63_spill] sm:$0xff] %v7982_v18  ;;  %v7985_v3 = vld [vmem:[#allocation11 + $0x40] sm:$0xff]  ;;  %v7988_v27 = vld [vmem:[#allocation11 + $0x50] sm:$0xff] }
 0x52f   :  { %2783 = vmatpush1.msra.mxu0 %v7973_v29  ;;  %2854 = vmatpush1.msra.mxu1 %v7976_v25  ;;  %10333 = vst [vmem:[#allocation64_spill] sm:$0xff] %v7985_v3  ;;  %10334 = vst [vmem:[#allocation65_spill] sm:$0xff] %v7988_v27  ;;  %v7991_v29 = vld [vmem:[#allocation11 + $0x28] sm:$0xff]  ;;  %v7994_v25 = vld [vmem:[#allocation11 + $0x38] sm:$0xff] }
 0x530   :  { %2784 = vmatprep.subr.mxu0 %v7979_v42  ;;  %2855 = vmatprep.subr.mxu1 %v7982_v18  ;;  %10335 = vst [vmem:[#allocation66_spill] sm:$0xff] %v7991_v29  ;;  %10336 = vst [vmem:[#allocation67_spill] sm:$0xff] %v7994_v25  ;;  %v7997_v42 = vld [vmem:[#allocation11 + $0x20] sm:$0xff]  ;;  %v8000_v18 = vld [vmem:[#allocation11 + $0x30] sm:$0xff] }
 0x531   :  { %2785 = vmatpush1.msra.mxu0 %v7985_v3  ;;  %2856 = vmatpush1.msra.mxu1 %v7988_v27  ;;  %10337 = vst [vmem:[#allocation68_spill] sm:$0xff] %v7997_v42  ;;  %10338 = vst [vmem:[#allocation69_spill] sm:$0xff] %v8000_v18  ;;  %v8003_v3 = vld [vmem:[#allocation11 + $0x8] sm:$0xff]  ;;  %v8006_v27 = vld [vmem:[#allocation11 + $0x18] sm:$0xff] }
 0x532   :  { %2786 = vmatprep.subr.mxu0 %v7991_v29  ;;  %2857 = vmatprep.subr.mxu1 %v7994_v25  ;;  %10339 = vst [vmem:[#allocation70_spill] sm:$0xff] %v8003_v3  ;;  %10340 = vst [vmem:[#allocation71_spill] sm:$0xff] %v8006_v27  ;;  %v8009_v29 = vld [vmem:[#allocation11] sm:$0xff]  ;;  %v8012_v25 = vld [vmem:[#allocation11 + $0x10] sm:$0xff] }
 0x533   :  { %2787 = vmatpush1.msra.mxu0 %v7997_v42  ;;  %2858 = vmatpush1.msra.mxu1 %v8000_v18  ;;  %10341 = vst [vmem:[#allocation72_spill] sm:$0xff] %v8009_v29  ;;  %10342 = vst [vmem:[#allocation73_spill] sm:$0xff] %v8012_v25  ;;  %v8017_v18 = vld [vmem:[#allocation10 + $0x1e8] sm:$0xff] }
 0x534   :  { %2788 = vmatprep.subr.mxu0 %v8003_v3  ;;  %2859 = vmatprep.subr.mxu1 %v8006_v27  ;;  %10343 = vst [vmem:[#allocation74_spill] sm:$0xff] %v8017_v18  ;;  %v8020_v3 = vld [vmem:[#allocation10 + $0x1f8] sm:$0xff] }
 0x535   :  { %2789 = vmatpush1.msra.mxu0 %v8009_v29  ;;  %2860 = vmatpush1.msra.mxu1 %v8012_v25  ;;  %10344 = vst [vmem:[#allocation75_spill] sm:$0xff] %v8020_v3 }
 0x536   :  { %2822 = vmatprep.mubr.f32.mxu0 %v9822_v37  ;;  %2893 = vmatprep.mubr.f32.mxu1 %v9822_v37 }
 0x537   :  { %2900 = vmatprep.subr.mxu0 %v8017_v18  ;;  %2971 = vmatprep.subr.mxu1 %v8020_v3 }
 0x592   :  { %v2342_v27 = vpop.f32.mrf.mxu0  ;;  %v2413_v42 = vpop.f32.mrf.mxu1 }
 0x594   :  { %v2344_v50 = vpop.f32.mrf.mxu0  ;;  %v2415_v49 = vpop.f32.mrf.mxu1 }
 0x5b3   :  { %v2484_v29 = vpop.f32.mrf.mxu0  ;;  %v2555_v30 = vpop.f32.mrf.mxu1 }
 0x5b4   :  { %v2485_v48 = vadd.f32 %v2484_v29, %v2342_v27  ;;  %v2556_v24 = vadd.f32 %v2555_v30, %v2413_v42  ;;  %v10346_v30 = vld [vmem:[#allocation148_spill] sm:$0xff] }
 0x5b5   :  { %v2486_v47 = vpop.f32.mrf.mxu0  ;;  %v2557_v55 = vpop.f32.mrf.mxu1 }
 0x5b6   :  { %v2560_v25 = vadd.f32 %v2485_v48, %v6758_v15  ;;  %v2487_v13 = vadd.f32 %v2486_v47, %v2344_v50  ;;  %v2558_v60 = vadd.f32 %v2557_v55, %v2415_v49  ;;  %v2562_v27 = vadd.f32 %v2556_v24, %v6773_v8 }
 0x5b8   :  { %v4693_v56 = vmul.f32 -1.442695, %v2560_v25  ;;  %v2561_v4 = vadd.f32 %v2487_v13, %v6762_v35  ;;  %v2563_v3 = vadd.f32 %v2558_v60, %v6768_v20 }
 0x5ba   :  { %4914 = vpow2.f32 %v4693_v56  ;;  %v4694_v18 = vmul.f32 -1.442695, %v2561_v4  ;;  %v4695_v58 = vmul.f32 -1.442695, %v2563_v3  ;;  %v10345_v4 = vld [vmem:[#allocation147_spill] sm:$0xff] }
 0x5bc   :  { %4916 = vpow2.f32 %v4694_v18 }
 0x5bd   :  { %4918 = vpow2.f32 %v4695_v58 }
 0x5c7   :  { %v4915_v59 = vpop.eup %4914 }
 0x5c8   :  { %v2567_v29 = vadd.f32 1.0, %v4915_v59 }
 0x5c9   :  { %v4917_v5 = vpop.eup %4916 }
 0x5ca   :  { %4920 = vrcp.f32 %v2567_v29  ;;  %v2573_v47 = vadd.f32 1.0, %v4917_v5  ;;  %v4919_v56 = vpop.eup %4918  ;;  %v10347_v29 = vld [vmem:[#allocation160_spill] sm:$0xff] }
 0x5cb   :  { %4922 = vtanh.f32 %v2562_v27  ;;  %v2580_v42 = vadd.f32 1.0, %v4919_v56 }
 0x5cc   :  { %4924 = vrcp.f32 %v2573_v47 }
 0x5d5   :  { %v2654_v13 = vpop.f32.mrf.mxu0  ;;  %v2725_v58 = vpop.f32.mrf.mxu1 }
 0x5d6   :  { %v2730_v48 = vadd.f32 %v2654_v13, %v10345_v4  ;;  %v10348_v13 = vld [vmem:[#allocation159_spill] sm:$0xff] }
 0x5d7   :  { %v4921_v50 = vpop.eup %4920  ;;  %v2656_v55 = vpop.f32.mrf.mxu0  ;;  %v2732_v4 = vadd.f32 %v2725_v58, %v10348_v13  ;;  %v8054_v58 = vld [vmem:[#allocation10 + $0x1d0] sm:$0xff]  ;;  %v8069_v13 = vld [vmem:[#allocation10 + $0x188] sm:$0xff] }
 0x5d8   :  { %v4923_v49 = vpop.eup %4922  ;;  %v4696_v60 = vmul.f32 -1.442695, %v2730_v48  ;;  %v2731_v3 = vadd.f32 %v2656_v55, %v10346_v30  ;;  %v2727_v27 = vpop.f32.mrf.mxu1  ;;  %10351 = vst [vmem:[#allocation141_spill] sm:$0xff] %v8069_v13 }
 0x5d9   :  { %v4925_v25 = vpop.eup %4924  ;;  %v2584_v24 = vmul.f32 %v4923_v49, %v4921_v50  ;;  %v2733_v47 = vadd.f32 %v2727_v27, %v10347_v29  ;;  %v8060_v27 = vld [vmem:[#allocation10 + $0x1b8] sm:$0xff]  ;;  %v8063_v29 = vld [vmem:[#allocation10 + $0x1a0] sm:$0xff] }
 0x5da   :  { %v2583_v59 = vmul.f32 %v4925_v25, %v7610_v34  ;;  %4926 = vpow2.f32 %v4696_v60  ;;  %v4697_v5 = vmul.f32 -1.442695, %v2731_v3  ;;  %v8039_v3 = vld [vmem:[#allocation10 + $0x1e0] sm:$0xff]  ;;  %v8042_v25 = vld [vmem:[#allocation10 + $0x1f0] sm:$0xff] }
 0x5db   :  { %v4698_v48 = vmul.f32 -1.442695, %v2733_v47  ;;  %v8066_v47 = vld [vmem:[#allocation10 + $0x1b0] sm:$0xff] }
 0x5dc   :  { %4928 = vpow2.f32 %v4697_v5  ;;  %v8030_v18 = vadd.f32 %v2584_v24, %v2583_v59  ;;  %v8048_v24 = vld [vmem:[#allocation10 + $0x1d8] sm:$0xff]  ;;  %v8051_v59 = vld [vmem:[#allocation10 + $0x1c0] sm:$0xff]  ;;  %v8057_v5 = vld [vmem:[#allocation10 + $0x1a8] sm:$0xff]  ;;  %10350 = vst [vmem:[#allocation77_spill] sm:$0xff] %v8066_v47 }
 0x5dd   :  { %4930 = vrcp.f32 %v2580_v42  ;;  %v8045_v42 = vld [vmem:[#allocation10 + $0x1c8] sm:$0xff] }
 0x5de   :  { %4932 = vtanh.f32 %v8030_v18 }
 0x5df   :  { %4934 = vtanh.f32 %v2732_v4  ;;  %v8072_v4 = vld [vmem:[#allocation10 + $0x198] sm:$0xff] }
 0x5e0   :  { %4936 = vpow2.f32 %v4698_v48  ;;  %10352 = vst [vmem:[#allocation142_spill] sm:$0xff] %v8072_v4 }
 0x5e7   :  { %v4927_v55 = vpop.eup %4926 }
 0x5e8   :  { %v2737_v56 = vadd.f32 1.0, %v4927_v55  ;;  %v8075_v55 = vld [vmem:[#allocation10 + $0x180] sm:$0xff] }
 0x5e9   :  { %v4929_v50 = vpop.eup %4928  ;;  %10353 = vst [vmem:[#allocation78_spill] sm:$0xff] %v8075_v55 }
 0x5ea   :  { %v4931_v34 = vpop.eup %4930  ;;  %4938 = vrcp.f32 %v2737_v56  ;;  %v2743_v49 = vadd.f32 1.0, %v4929_v50  ;;  %v8078_v56 = vld [vmem:[#allocation10 + $0x190] sm:$0xff] }
 0x5eb   :  { %v4933_v60 = vpop.eup %4932  ;;  %10354 = vst [vmem:[#allocation79_spill] sm:$0xff] %v8078_v56 }
 0x5ec   :  { %4940 = vrcp.f32 %v2743_v49  ;;  %v8035_v30 = vmul.f32 %v4933_v60, %v4931_v34  ;;  %v4935_v48 = vpop.eup %4934  ;;  %v8081_v34 = vld [vmem:[#allocation10 + $0x168] sm:$0xff]  ;;  %v8084_v49 = vld [vmem:[#allocation10 + $0x178] sm:$0xff] }
 0x5ed   :  { %v4937_v50 = vpop.eup %4936  ;;  %10355 = vst [vmem:[#allocation145_spill] sm:$0xff] %v8081_v34  ;;  %10356 = vst [vmem:[#allocation146_spill] sm:$0xff] %v8084_v49 }
 0x5ee   :  { %10349 = vst [vmem:[#allocation76_spill] sm:$0xff] %v8035_v30  ;;  %2823 = vmatmul.mubr.f32.vlgmr.msra.gmra.mxu0 %v8035_v30  ;;  %2894 = vmatmul.mubr.f32.vlgmr.msra.gmra.mxu1 %v8035_v30  ;;  %v8087_v30 = vld [vmem:[#allocation10 + $0x160] sm:$0xff] }
 0x5ef   :  { %2901 = vmatpush1.msra.mxu0 %v8039_v3  ;;  %2972 = vmatpush1.msra.mxu1 %v8042_v25  ;;  %10357 = vst [vmem:[#allocation158_spill] sm:$0xff] %v8087_v30 }
 0x5f0   :  { %2902 = vmatprep.subr.mxu0 %v8045_v42  ;;  %2973 = vmatprep.subr.mxu1 %v8048_v24 }
 0x5f1   :  { %2903 = vmatpush1.msra.mxu0 %v8051_v59  ;;  %2974 = vmatpush1.msra.mxu1 %v8054_v58 }
 0x5f2   :  { %2904 = vmatprep.subr.mxu0 %v8057_v5  ;;  %2975 = vmatprep.subr.mxu1 %v8060_v27 }
 0x5f3   :  { %2905 = vmatpush1.msra.mxu0 %v8063_v29  ;;  %2976 = vmatpush1.msra.mxu1 %v8066_v47  ;;  %v8099_v47 = vld [vmem:[#allocation10 + $0x140] sm:$0xff] }
 0x5f4   :  { %2906 = vmatprep.subr.mxu0 %v8069_v13  ;;  %2977 = vmatprep.subr.mxu1 %v8072_v4  ;;  %v8090_v4 = vld [vmem:[#allocation10 + $0x170] sm:$0xff]  ;;  %v8096_v13 = vld [vmem:[#allocation10 + $0x158] sm:$0xff]  ;;  %10360 = vst [vmem:[#allocation82_spill] sm:$0xff] %v8099_v47 }
 0x5f5   :  { %2907 = vmatpush1.msra.mxu0 %v8075_v55  ;;  %2978 = vmatpush1.msra.mxu1 %v8078_v56  ;;  %v8093_v56 = vld [vmem:[#allocation10 + $0x148] sm:$0xff]  ;;  %10359 = vst [vmem:[#allocation81_spill] sm:$0xff] %v8096_v13 }
 0x5f6   :  { %2908 = vmatprep.subr.mxu0 %v8081_v34  ;;  %2979 = vmatprep.subr.mxu1 %v8084_v49  ;;  %10358 = vst [vmem:[#allocation157_spill] sm:$0xff] %v8093_v56  ;;  %v2750_v49 = vadd.f32 1.0, %v4937_v50  ;;  %v8115_v50 = vld [vmem:[#allocation10 + $0x130] sm:$0xff] }
 0x5f7   :  { %v4939_v60 = vpop.eup %4938  ;;  %2909 = vmatpush1.msra.mxu0 %v8087_v30  ;;  %2980 = vmatpush1.msra.mxu1 %v8090_v4  ;;  %v8102_v30 = vld [vmem:[#allocation10 + $0x150] sm:$0xff]  ;;  %10363 = vst [vmem:[#allocation85_spill] sm:$0xff] %v8115_v50 }
 0x5f8   :  { %v2754_v55 = vmul.f32 %v4939_v60, %v4935_v48  ;;  %2910 = vmatprep.subr.mxu0 %v8093_v56  ;;  %2981 = vmatprep.subr.mxu1 %v8096_v13  ;;  %10361 = vst [vmem:[#allocation83_spill] sm:$0xff] %v8102_v30  ;;  %v8106_v60 = vld [vmem:[#allocation10 + $0x128] sm:$0xff]  ;;  %v8109_v56 = vld [vmem:[#allocation10 + $0x138] sm:$0xff]  ;;  %v8112_v13 = vld [vmem:[#allocation10 + $0x120] sm:$0xff]  ;;  %4942 = vrcp.f32 %v2750_v49 }
 0x5f9   :  { %v4941_v34 = vpop.eup %4940  ;;  %2911 = vmatpush1.msra.mxu0 %v8099_v47  ;;  %2982 = vmatpush1.msra.mxu1 %v8102_v30  ;;  %10362 = vst [vmem:[#allocation84_spill] sm:$0xff] %v8112_v13  ;;  %v8120_v30 = vld [vmem:[#allocation10 + $0x108] sm:$0xff]  ;;  %v8142_v49 = vld [vmem:[#allocation10 + $0xf0] sm:$0xff] }
 0x5fa   :  { %v2753_v48 = vmul.f32 %v4941_v34, %v7646_v57  ;;  %2912 = vmatprep.subr.mxu0 %v8106_v60  ;;  %2983 = vmatprep.subr.mxu1 %v8109_v56  ;;  %10364 = vst [vmem:[#allocation86_spill] sm:$0xff] %v8120_v30  ;;  %v8123_v57 = vld [vmem:[#allocation10 + $0x118] sm:$0xff]  ;;  %v8126_v34 = vld [vmem:[#allocation10 + $0x100] sm:$0xff]  ;;  %10371 = vst [vmem:[#allocation93_spill] sm:$0xff] %v8142_v49 }
 0x5fb   :  { %2913 = vmatpush1.msra.mxu0 %v8112_v13  ;;  %2984 = vmatpush1.msra.mxu1 %v8115_v50  ;;  %10365 = vst [vmem:[#allocation87_spill] sm:$0xff] %v8123_v57  ;;  %10366 = vst [vmem:[#allocation88_spill] sm:$0xff] %v8126_v34  ;;  %v8129_v13 = vld [vmem:[#allocation10 + $0x110] sm:$0xff]  ;;  %v8132_v50 = vld [vmem:[#allocation10 + $0xe8] sm:$0xff] }
 0x5fc   :  { %v8118_v47 = vadd.f32 %v2754_v55, %v2753_v48  ;;  %2914 = vmatprep.subr.mxu0 %v8120_v30  ;;  %2985 = vmatprep.subr.mxu1 %v8123_v57  ;;  %10367 = vst [vmem:[#allocation89_spill] sm:$0xff] %v8129_v13  ;;  %10368 = vst [vmem:[#allocation90_spill] sm:$0xff] %v8132_v50  ;;  %v8135_v55 = vld [vmem:[#allocation10 + $0xf8] sm:$0xff]  ;;  %v8139_v48 = vld [vmem:[#allocation10 + $0xe0] sm:$0xff] }
 0x5fd   :  { %2915 = vmatpush1.msra.mxu0 %v8126_v34  ;;  %2986 = vmatpush1.msra.mxu1 %v8129_v13  ;;  %10369 = vst [vmem:[#allocation91_spill] sm:$0xff] %v8135_v55  ;;  %10370 = vst [vmem:[#allocation92_spill] sm:$0xff] %v8139_v48  ;;  %v8145_v34 = vld [vmem:[#allocation10 + $0xc8] sm:$0xff]  ;;  %v8148_v13 = vld [vmem:[#allocation10 + $0xd8] sm:$0xff] }
 0x5fe   :  { %2916 = vmatprep.subr.mxu0 %v8132_v50  ;;  %2987 = vmatprep.subr.mxu1 %v8135_v55  ;;  %4944 = vtanh.f32 %v8118_v47  ;;  %10372 = vst [vmem:[#allocation94_spill] sm:$0xff] %v8145_v34  ;;  %10373 = vst [vmem:[#allocation95_spill] sm:$0xff] %v8148_v13  ;;  %v8151_v50 = vld [vmem:[#allocation10 + $0xc0] sm:$0xff]  ;;  %v8154_v55 = vld [vmem:[#allocation10 + $0xd0] sm:$0xff] }
 0x5ff   :  { %2917 = vmatpush1.msra.mxu0 %v8139_v48  ;;  %2988 = vmatpush1.msra.mxu1 %v8142_v49  ;;  %10374 = vst [vmem:[#allocation96_spill] sm:$0xff] %v8151_v50  ;;  %10375 = vst [vmem:[#allocation97_spill] sm:$0xff] %v8154_v55  ;;  %v8157_v48 = vld [vmem:[#allocation10 + $0xa8] sm:$0xff]  ;;  %v8160_v49 = vld [vmem:[#allocation10 + $0xb8] sm:$0xff] }
 0x600   :  { %2918 = vmatprep.subr.mxu0 %v8145_v34  ;;  %2989 = vmatprep.subr.mxu1 %v8148_v13  ;;  %10376 = vst [vmem:[#allocation98_spill] sm:$0xff] %v8157_v48  ;;  %10377 = vst [vmem:[#allocation99_spill] sm:$0xff] %v8160_v49  ;;  %v8163_v34 = vld [vmem:[#allocation10 + $0xa0] sm:$0xff]  ;;  %v8166_v13 = vld [vmem:[#allocation10 + $0xb0] sm:$0xff] }
 0x601   :  { %2919 = vmatpush1.msra.mxu0 %v8151_v50  ;;  %2990 = vmatpush1.msra.mxu1 %v8154_v55  ;;  %10378 = vst [vmem:[#allocation100_spill] sm:$0xff] %v8163_v34  ;;  %10379 = vst [vmem:[#allocation101_spill] sm:$0xff] %v8166_v13  ;;  %v8169_v50 = vld [vmem:[#allocation10 + $0x88] sm:$0xff]  ;;  %v8172_v55 = vld [vmem:[#allocation10 + $0x98] sm:$0xff] }
 0x602   :  { %2920 = vmatprep.subr.mxu0 %v8157_v48  ;;  %2991 = vmatprep.subr.mxu1 %v8160_v49  ;;  %10380 = vst [vmem:[#allocation102_spill] sm:$0xff] %v8169_v50  ;;  %10381 = vst [vmem:[#allocation103_spill] sm:$0xff] %v8172_v55  ;;  %v8175_v48 = vld [vmem:[#allocation10 + $0x80] sm:$0xff]  ;;  %v8178_v49 = vld [vmem:[#allocation10 + $0x90] sm:$0xff] }
 0x603   :  { %2921 = vmatpush1.msra.mxu0 %v8163_v34  ;;  %2992 = vmatpush1.msra.mxu1 %v8166_v13  ;;  %10382 = vst [vmem:[#allocation104_spill] sm:$0xff] %v8175_v48  ;;  %10383 = vst [vmem:[#allocation105_spill] sm:$0xff] %v8178_v49  ;;  %v8181_v34 = vld [vmem:[#allocation10 + $0x68] sm:$0xff]  ;;  %v8184_v13 = vld [vmem:[#allocation10 + $0x78] sm:$0xff] }
 0x604   :  { %2922 = vmatprep.subr.mxu0 %v8169_v50  ;;  %2993 = vmatprep.subr.mxu1 %v8172_v55  ;;  %10384 = vst [vmem:[#allocation106_spill] sm:$0xff] %v8181_v34  ;;  %10385 = vst [vmem:[#allocation107_spill] sm:$0xff] %v8184_v13  ;;  %v8187_v50 = vld [vmem:[#allocation10 + $0x60] sm:$0xff]  ;;  %v8190_v55 = vld [vmem:[#allocation10 + $0x70] sm:$0xff] }
 0x605   :  { %2923 = vmatpush1.msra.mxu0 %v8175_v48  ;;  %2994 = vmatpush1.msra.mxu1 %v8178_v49  ;;  %10386 = vst [vmem:[#allocation108_spill] sm:$0xff] %v8187_v50  ;;  %10387 = vst [vmem:[#allocation109_spill] sm:$0xff] %v8190_v55  ;;  %v8193_v48 = vld [vmem:[#allocation10 + $0x48] sm:$0xff]  ;;  %v8196_v49 = vld [vmem:[#allocation10 + $0x58] sm:$0xff] }
 0x606   :  { %2924 = vmatprep.subr.mxu0 %v8181_v34  ;;  %2995 = vmatprep.subr.mxu1 %v8184_v13  ;;  %10388 = vst [vmem:[#allocation110_spill] sm:$0xff] %v8193_v48  ;;  %10389 = vst [vmem:[#allocation111_spill] sm:$0xff] %v8196_v49  ;;  %v8199_v34 = vld [vmem:[#allocation10 + $0x40] sm:$0xff]  ;;  %v8202_v13 = vld [vmem:[#allocation10 + $0x50] sm:$0xff] }
 0x607   :  { %2925 = vmatpush1.msra.mxu0 %v8187_v50  ;;  %2996 = vmatpush1.msra.mxu1 %v8190_v55  ;;  %10390 = vst [vmem:[#allocation112_spill] sm:$0xff] %v8199_v34  ;;  %10391 = vst [vmem:[#allocation113_spill] sm:$0xff] %v8202_v13  ;;  %v4943_v50 = vpop.eup %4942  ;;  %v8205_v57 = vld [vmem:[#allocation10 + $0x28] sm:$0xff]  ;;  %v8208_v55 = vld [vmem:[#allocation10 + $0x38] sm:$0xff] }
 0x608   :  { %2926 = vmatprep.subr.mxu0 %v8193_v48  ;;  %2997 = vmatprep.subr.mxu1 %v8196_v49  ;;  %10392 = vst [vmem:[#allocation114_spill] sm:$0xff] %v8205_v57  ;;  %10393 = vst [vmem:[#allocation115_spill] sm:$0xff] %v8208_v55  ;;  %v8211_v30 = vld [vmem:[#allocation10 + $0x20] sm:$0xff]  ;;  %v8214_v49 = vld [vmem:[#allocation10 + $0x30] sm:$0xff] }
 0x609   :  { %2927 = vmatpush1.msra.mxu0 %v8199_v34  ;;  %2998 = vmatpush1.msra.mxu1 %v8202_v13  ;;  %10394 = vst [vmem:[#allocation116_spill] sm:$0xff] %v8211_v30  ;;  %v8217_v34 = vld [vmem:[#allocation10 + $0x8] sm:$0xff]  ;;  %v8220_v13 = vld [vmem:[#allocation10 + $0x18] sm:$0xff] }
 0x60a   :  { %2928 = vmatprep.subr.mxu0 %v8205_v57  ;;  %2999 = vmatprep.subr.mxu1 %v8208_v55  ;;  %10395 = vst [vmem:[#allocation117_spill] sm:$0xff] %v8217_v34  ;;  %v8225_v55 = vld [vmem:[#allocation10] sm:$0xff] }
 0x60b   :  { %v4945_v48 = vpop.eup %4944  ;;  %2929 = vmatpush1.msra.mxu0 %v8211_v30  ;;  %3000 = vmatpush1.msra.mxu1 %v8214_v49  ;;  %v8229_v30 = vld [vmem:[#allocation10 + $0x10] sm:$0xff] }
 0x60c   :  { %2930 = vmatprep.subr.mxu0 %v8217_v34  ;;  %3001 = vmatprep.subr.mxu1 %v8220_v13  ;;  %v8223_v57 = vmul.f32 %v4945_v48, %v4943_v50  ;;  %10396 = vst [vmem:[#allocation118_spill] sm:$0xff] %v8229_v30  ;;  %v8235_v34 = vld [vmem:[#allocation8 + $0x1e8] sm:$0xff]  ;;  %v8239_v50 = vld [vmem:[#allocation8 + $0x1e0] sm:$0xff] }
 0x60d   :  { %2931 = vmatpush1.msra.mxu0 %v8225_v55  ;;  %2964 = vmatprep.mubr.f32.mxu0 %v9822_v37  ;;  %10397 = vst [vmem:[#allocation119_spill] sm:$0xff] %v8235_v34  ;;  %v8243_v48 = vld [vmem:[#allocation8 + $0x1c8] sm:$0xff] }
 0x60e   :  { %3002 = vmatpush1.msra.mxu1 %v8229_v30  ;;  %3035 = vmatprep.mubr.f32.mxu1 %v9822_v37  ;;  %v8247_v30 = vld [vmem:[#allocation8 + $0x1c0] sm:$0xff] }
 0x60f   :  { %2965 = vmatmul.mubr.f32.vlgmr.msra.gmra.mxu0 %v8223_v57  ;;  %3036 = vmatmul.mubr.f32.vlgmr.msra.gmra.mxu1 %v8223_v57 }
 0x610   :  { %3070 = vmatprep.subr.mxu0 %v8235_v34  ;;  %3141 = vmatprep.subr.mxu1 %v7692_v16  ;;  %v8251_v34 = vld [vmem:[#allocation8 + $0x1a8] sm:$0xff]  ;;  %v8255_v16 = vld [vmem:[#allocation8 + $0x1a0] sm:$0xff] }
 0x611   :  { %3071 = vmatpush1.msra.mxu0 %v8239_v50  ;;  %3142 = vmatpush1.msra.mxu1 %v7696_v9  ;;  %v8259_v9 = vld [vmem:[#allocation8 + $0x188] sm:$0xff] }
 0x612   :  { %3072 = vmatprep.subr.mxu0 %v8243_v48  ;;  %3143 = vmatprep.subr.mxu1 %v7700_v28  ;;  %v8263_v28 = vld [vmem:[#allocation8 + $0x180] sm:$0xff] }
 0x613   :  { %3073 = vmatpush1.msra.mxu0 %v8247_v30  ;;  %3144 = vmatpush1.msra.mxu1 %v7704_v7  ;;  %v8267_v7 = vld [vmem:[#allocation8 + $0x168] sm:$0xff] }
 0x614   :  { %3074 = vmatprep.subr.mxu0 %v8251_v34  ;;  %3145 = vmatprep.subr.mxu1 %v7708_v21  ;;  %v8271_v21 = vld [vmem:[#allocation8 + $0x160] sm:$0xff] }
 0x615   :  { %3075 = vmatpush1.msra.mxu0 %v8255_v16  ;;  %3146 = vmatpush1.msra.mxu1 %v7712_v31  ;;  %v8275_v31 = vld [vmem:[#allocation8 + $0x148] sm:$0xff] }
 0x616   :  { %3076 = vmatprep.subr.mxu0 %v8259_v9  ;;  %3147 = vmatprep.subr.mxu1 %v7716_v14  ;;  %v8279_v14 = vld [vmem:[#allocation8 + $0x140] sm:$0xff] }
 0x617   :  { %3077 = vmatpush1.msra.mxu0 %v8263_v28  ;;  %3148 = vmatpush1.msra.mxu1 %v7720_v10  ;;  %v8283_v10 = vld [vmem:[#allocation8 + $0x128] sm:$0xff] }
 0x618   :  { %3078 = vmatprep.subr.mxu0 %v8267_v7  ;;  %3149 = vmatprep.subr.mxu1 %v7724_v6  ;;  %v8287_v6 = vld [vmem:[#allocation8 + $0x120] sm:$0xff] }
 0x619   :  { %3079 = vmatpush1.msra.mxu0 %v8271_v21  ;;  %3150 = vmatpush1.msra.mxu1 %v7728_v0  ;;  %v8291_v0 = vld [vmem:[#allocation8 + $0x108] sm:$0xff] }
 0x61a   :  { %3080 = vmatprep.subr.mxu0 %v8275_v31  ;;  %3151 = vmatprep.subr.mxu1 %v7732_v12  ;;  %v8295_v12 = vld [vmem:[#allocation8 + $0x100] sm:$0xff] }
 0x61b   :  { %3081 = vmatpush1.msra.mxu0 %v8279_v14  ;;  %3152 = vmatpush1.msra.mxu1 %v7736_v22  ;;  %v8299_v22 = vld [vmem:[#allocation8 + $0xe8] sm:$0xff] }
 0x61c   :  { %3082 = vmatprep.subr.mxu0 %v8283_v10  ;;  %3153 = vmatprep.subr.mxu1 %v7740_v33  ;;  %v8303_v33 = vld [vmem:[#allocation8 + $0xe0] sm:$0xff] }
 0x61d   :  { %3083 = vmatpush1.msra.mxu0 %v8287_v6  ;;  %3154 = vmatpush1.msra.mxu1 %v7744_v11  ;;  %v8307_v11 = vld [vmem:[#allocation8 + $0xc8] sm:$0xff] }
 0x61e   :  { %3084 = vmatprep.subr.mxu0 %v8291_v0  ;;  %3155 = vmatprep.subr.mxu1 %v7748_v19  ;;  %v8311_v19 = vld [vmem:[#allocation8 + $0xc0] sm:$0xff] }
 0x61f   :  { %3085 = vmatpush1.msra.mxu0 %v8295_v12  ;;  %3156 = vmatpush1.msra.mxu1 %v7752_v36  ;;  %v8315_v36 = vld [vmem:[#allocation8 + $0xa8] sm:$0xff] }
 0x620   :  { %3086 = vmatprep.subr.mxu0 %v8299_v22  ;;  %3157 = vmatprep.subr.mxu1 %v7756_v23  ;;  %v8319_v23 = vld [vmem:[#allocation8 + $0xa0] sm:$0xff] }
 0x621   :  { %3087 = vmatpush1.msra.mxu0 %v8303_v33  ;;  %3158 = vmatpush1.msra.mxu1 %v7760_v32  ;;  %v8323_v32 = vld [vmem:[#allocation8 + $0x88] sm:$0xff] }
 0x622   :  { %3088 = vmatprep.subr.mxu0 %v8307_v11  ;;  %3159 = vmatprep.subr.mxu1 %v7764_v41  ;;  %v8327_v41 = vld [vmem:[#allocation8 + $0x80] sm:$0xff] }
 0x623   :  { %3089 = vmatpush1.msra.mxu0 %v8311_v19  ;;  %3160 = vmatpush1.msra.mxu1 %v7768_v43  ;;  %10398 = vst [vmem:[#allocation120_spill] sm:$0xff] %v8327_v41  ;;  %v8331_v43 = vld [vmem:[#allocation8 + $0x68] sm:$0xff] }
 0x624   :  { %3090 = vmatprep.subr.mxu0 %v8315_v36  ;;  %3161 = vmatprep.subr.mxu1 %v7772_v44  ;;  %10399 = vst [vmem:[#allocation121_spill] sm:$0xff] %v8331_v43  ;;  %v8335_v44 = vld [vmem:[#allocation8 + $0x60] sm:$0xff] }
 0x625   :  { %3091 = vmatpush1.msra.mxu0 %v8319_v23  ;;  %3162 = vmatpush1.msra.mxu1 %v7776_v45  ;;  %10400 = vst [vmem:[#allocation122_spill] sm:$0xff] %v8335_v44  ;;  %v8339_v45 = vld [vmem:[#allocation8 + $0x48] sm:$0xff] }
 0x626   :  { %3092 = vmatprep.subr.mxu0 %v8323_v32  ;;  %3163 = vmatprep.subr.mxu1 %v7780_v46  ;;  %10401 = vst [vmem:[#allocation123_spill] sm:$0xff] %v8339_v45  ;;  %v8343_v46 = vld [vmem:[#allocation8 + $0x40] sm:$0xff] }
 0x627   :  { %3093 = vmatpush1.msra.mxu0 %v8327_v41  ;;  %3164 = vmatpush1.msra.mxu1 %v7784_v40  ;;  %10402 = vst [vmem:[#allocation124_spill] sm:$0xff] %v8343_v46  ;;  %v8347_v40 = vld [vmem:[#allocation8 + $0x28] sm:$0xff] }
 0x628   :  { %3094 = vmatprep.subr.mxu0 %v8331_v43  ;;  %3165 = vmatprep.subr.mxu1 %v7788_v61  ;;  %10403 = vst [vmem:[#allocation125_spill] sm:$0xff] %v8347_v40  ;;  %v8351_v61 = vld [vmem:[#allocation8 + $0x20] sm:$0xff] }
 0x629   :  { %3095 = vmatpush1.msra.mxu0 %v8335_v44  ;;  %3166 = vmatpush1.msra.mxu1 %v7792_v62  ;;  %10404 = vst [vmem:[#allocation126_spill] sm:$0xff] %v8351_v61  ;;  %v8355_v62 = vld [vmem:[#allocation8 + $0x8] sm:$0xff] }
 0x62a   :  { %3096 = vmatprep.subr.mxu0 %v8339_v45  ;;  %3167 = vmatprep.subr.mxu1 %v7796_v63  ;;  %10405 = vst [vmem:[#allocation127_spill] sm:$0xff] %v8355_v62  ;;  %v8359_v63 = vld [vmem:[#allocation8] sm:$0xff] }
 0x62b   :  { %3097 = vmatpush1.msra.mxu0 %v8343_v46  ;;  %3168 = vmatpush1.msra.mxu1 %v7800_v17  ;;  %10406 = vst [vmem:[#allocation128_spill] sm:$0xff] %v8359_v63  ;;  %v10407_v17 = vld [vmem:[#allocation139_spill] sm:$0xff] }
 0x62c   :  { %3098 = vmatprep.subr.mxu0 %v8347_v40  ;;  %3169 = vmatprep.subr.mxu1 %v7804_v26  ;;  %v10408_v26 = vld [vmem:[#allocation140_spill] sm:$0xff] }
 0x62d   :  { %3099 = vmatpush1.msra.mxu0 %v8351_v61  ;;  %3170 = vmatpush1.msra.mxu1 %v7808_v1  ;;  %v10409_v1 = vld [vmem:[#allocation143_spill] sm:$0xff] }
 0x62e   :  { %3100 = vmatprep.subr.mxu0 %v8355_v62  ;;  %3171 = vmatprep.subr.mxu1 %v7812_v38  ;;  %v10410_v38 = vld [vmem:[#allocation144_spill] sm:$0xff] }
 0x62f   :  { %3101 = vmatpush1.msra.mxu0 %v8359_v63  ;;  %3134 = vmatprep.mubr.f32.mxu0 %v9822_v37 }
 0x630   :  { %3172 = vmatpush1.msra.mxu1 %v7817_v39  ;;  %3205 = vmatprep.mubr.f32.mxu1 %v9822_v37  ;;  %v10411_v39 = vld [vmem:[#allocation156_spill] sm:$0xff] }
 0x631   :  { %3135 = vmatmul.mubr.f32.vlgmr.msra.gmra.mxu0 %v8223_v57  ;;  %3206 = vmatmul.mubr.f32.vlgmr.msra.gmra.mxu1 %v8223_v57  ;;  %v10412_v57 = vld [vmem:[#allocation155_spill] sm:$0xff] }
 0x632   :  { %3240 = vmatprep.subr.mxu0 %v7823_v54  ;;  %3311 = vmatprep.subr.mxu1 %v7826_v52  ;;  %v10413_v54 = vld [vmem:[#allocation21_spill] sm:$0xff]  ;;  %v10414_v52 = vld [vmem:[#allocation22_spill] sm:$0xff] }
 0x633   :  { %3241 = vmatpush1.msra.mxu0 %v7829_v53  ;;  %3312 = vmatpush1.msra.mxu1 %v7832_v51  ;;  %v10415_v53 = vld [vmem:[#allocation23_spill] sm:$0xff]  ;;  %v10416_v51 = vld [vmem:[#allocation24_spill] sm:$0xff] }
 0x634   :  { %3242 = vmatprep.subr.mxu0 %v7835_v2  ;;  %3313 = vmatprep.subr.mxu1 %v10407_v17  ;;  %v10417_v2 = vld [vmem:[#allocation25_spill] sm:$0xff]  ;;  %v10418_v17 = vld [vmem:[#allocation26_spill] sm:$0xff] }
 0x635   :  { %3243 = vmatpush1.msra.mxu0 %v10408_v26  ;;  %3314 = vmatpush1.msra.mxu1 %v10409_v1  ;;  %v10419_v26 = vld [vmem:[#allocation27_spill] sm:$0xff]  ;;  %v10420_v1 = vld [vmem:[#allocation28_spill] sm:$0xff] }
 0x636   :  { %3244 = vmatprep.subr.mxu0 %v10410_v38  ;;  %3315 = vmatprep.subr.mxu1 %v10411_v39  ;;  %v10421_v38 = vld [vmem:[#allocation29_spill] sm:$0xff]  ;;  %v10422_v39 = vld [vmem:[#allocation30_spill] sm:$0xff] }
 0x637   :  { %3245 = vmatpush1.msra.mxu0 %v10412_v57  ;;  %3316 = vmatpush1.msra.mxu1 %v10413_v54  ;;  %v10423_v57 = vld [vmem:[#allocation31_spill] sm:$0xff]  ;;  %v10424_v54 = vld [vmem:[#allocation32_spill] sm:$0xff] }
 0x638   :  { %3246 = vmatprep.subr.mxu0 %v10414_v52  ;;  %3317 = vmatprep.subr.mxu1 %v10415_v53  ;;  %v10425_v52 = vld [vmem:[#allocation33_spill] sm:$0xff]  ;;  %v10426_v53 = vld [vmem:[#allocation34_spill] sm:$0xff] }
 0x639   :  { %3247 = vmatpush1.msra.mxu0 %v10416_v51  ;;  %3318 = vmatpush1.msra.mxu1 %v10417_v2  ;;  %v10427_v51 = vld [vmem:[#allocation35_spill] sm:$0xff]  ;;  %v10428_v2 = vld [vmem:[#allocation36_spill] sm:$0xff] }
 0x63a   :  { %3248 = vmatprep.subr.mxu0 %v10418_v17  ;;  %3319 = vmatprep.subr.mxu1 %v10419_v26  ;;  %v10429_v17 = vld [vmem:[#allocation37_spill] sm:$0xff]  ;;  %v10430_v26 = vld [vmem:[#allocation38_spill] sm:$0xff] }
 0x63b   :  { %3249 = vmatpush1.msra.mxu0 %v10420_v1  ;;  %3320 = vmatpush1.msra.mxu1 %v10421_v38  ;;  %v10431_v1 = vld [vmem:[#allocation39_spill] sm:$0xff]  ;;  %v10432_v38 = vld [vmem:[#allocation40_spill] sm:$0xff] }
 0x63c   :  { %3250 = vmatprep.subr.mxu0 %v10422_v39  ;;  %3321 = vmatprep.subr.mxu1 %v10423_v57  ;;  %v10433_v39 = vld [vmem:[#allocation41_spill] sm:$0xff]  ;;  %v10434_v57 = vld [vmem:[#allocation42_spill] sm:$0xff] }
 0x63d   :  { %3251 = vmatpush1.msra.mxu0 %v10424_v54  ;;  %3322 = vmatpush1.msra.mxu1 %v10425_v52  ;;  %v10435_v54 = vld [vmem:[#allocation43_spill] sm:$0xff]  ;;  %v10436_v52 = vld [vmem:[#allocation44_spill] sm:$0xff] }
 0x63e   :  { %3252 = vmatprep.subr.mxu0 %v10426_v53  ;;  %3323 = vmatprep.subr.mxu1 %v10427_v51  ;;  %v10437_v53 = vld [vmem:[#allocation45_spill] sm:$0xff]  ;;  %v10438_v51 = vld [vmem:[#allocation46_spill] sm:$0xff] }
 0x63f   :  { %3253 = vmatpush1.msra.mxu0 %v10428_v2  ;;  %3324 = vmatpush1.msra.mxu1 %v10429_v17  ;;  %v10439_v2 = vld [vmem:[#allocation47_spill] sm:$0xff]  ;;  %v10440_v17 = vld [vmem:[#allocation48_spill] sm:$0xff] }
 0x640   :  { %3254 = vmatprep.subr.mxu0 %v10430_v26  ;;  %3325 = vmatprep.subr.mxu1 %v10431_v1  ;;  %v10441_v26 = vld [vmem:[#allocation49_spill] sm:$0xff]  ;;  %v10442_v1 = vld [vmem:[#allocation50_spill] sm:$0xff] }
 0x641   :  { %3255 = vmatpush1.msra.mxu0 %v10432_v38  ;;  %3326 = vmatpush1.msra.mxu1 %v10433_v39  ;;  %v10443_v38 = vld [vmem:[#allocation51_spill] sm:$0xff]  ;;  %v10444_v39 = vld [vmem:[#allocation52_spill] sm:$0xff] }
 0x642   :  { %3256 = vmatprep.subr.mxu0 %v10434_v57  ;;  %3327 = vmatprep.subr.mxu1 %v10435_v54  ;;  %v10445_v57 = vld [vmem:[#allocation53_spill] sm:$0xff]  ;;  %v10446_v54 = vld [vmem:[#allocation54_spill] sm:$0xff] }
 0x643   :  { %3257 = vmatpush1.msra.mxu0 %v10436_v52  ;;  %3328 = vmatpush1.msra.mxu1 %v10437_v53  ;;  %v10447_v52 = vld [vmem:[#allocation55_spill] sm:$0xff]  ;;  %v10448_v53 = vld [vmem:[#allocation56_spill] sm:$0xff] }
 0x644   :  { %3258 = vmatprep.subr.mxu0 %v10438_v51  ;;  %3329 = vmatprep.subr.mxu1 %v10439_v2  ;;  %v10449_v51 = vld [vmem:[#allocation57_spill] sm:$0xff]  ;;  %v10450_v2 = vld [vmem:[#allocation58_spill] sm:$0xff] }
 0x645   :  { %3259 = vmatpush1.msra.mxu0 %v10440_v17  ;;  %3330 = vmatpush1.msra.mxu1 %v10441_v26  ;;  %v10451_v17 = vld [vmem:[#allocation59_spill] sm:$0xff]  ;;  %v10452_v26 = vld [vmem:[#allocation60_spill] sm:$0xff] }
 0x646   :  { %3260 = vmatprep.subr.mxu0 %v10442_v1  ;;  %3331 = vmatprep.subr.mxu1 %v10443_v38  ;;  %v10453_v1 = vld [vmem:[#allocation61_spill] sm:$0xff]  ;;  %v10454_v38 = vld [vmem:[#allocation62_spill] sm:$0xff] }
 0x647   :  { %3261 = vmatpush1.msra.mxu0 %v10444_v39  ;;  %3332 = vmatpush1.msra.mxu1 %v10445_v57  ;;  %v10455_v39 = vld [vmem:[#allocation63_spill] sm:$0xff]  ;;  %v10456_v57 = vld [vmem:[#allocation64_spill] sm:$0xff] }
 0x648   :  { %3262 = vmatprep.subr.mxu0 %v10446_v54  ;;  %3333 = vmatprep.subr.mxu1 %v10447_v52  ;;  %v10457_v54 = vld [vmem:[#allocation65_spill] sm:$0xff]  ;;  %v10458_v52 = vld [vmem:[#allocation66_spill] sm:$0xff] }
 0x649   :  { %3263 = vmatpush1.msra.mxu0 %v10448_v53  ;;  %3334 = vmatpush1.msra.mxu1 %v10449_v51  ;;  %v10459_v53 = vld [vmem:[#allocation67_spill] sm:$0xff]  ;;  %v10460_v51 = vld [vmem:[#allocation68_spill] sm:$0xff] }
 0x64a   :  { %3264 = vmatprep.subr.mxu0 %v10450_v2  ;;  %3335 = vmatprep.subr.mxu1 %v10451_v17  ;;  %v10461_v2 = vld [vmem:[#allocation69_spill] sm:$0xff]  ;;  %v10462_v17 = vld [vmem:[#allocation70_spill] sm:$0xff] }
 0x64b   :  { %3265 = vmatpush1.msra.mxu0 %v10452_v26  ;;  %3336 = vmatpush1.msra.mxu1 %v10453_v1  ;;  %v10463_v26 = vld [vmem:[#allocation71_spill] sm:$0xff]  ;;  %v10464_v1 = vld [vmem:[#allocation72_spill] sm:$0xff] }
 0x64c   :  { %3266 = vmatprep.subr.mxu0 %v10454_v38  ;;  %3337 = vmatprep.subr.mxu1 %v10455_v39  ;;  %v10465_v38 = vld [vmem:[#allocation73_spill] sm:$0xff]  ;;  %v10466_v39 = vld [vmem:[#allocation74_spill] sm:$0xff] }
 0x64d   :  { %3267 = vmatpush1.msra.mxu0 %v10456_v57  ;;  %3338 = vmatpush1.msra.mxu1 %v10457_v54  ;;  %v10467_v57 = vld [vmem:[#allocation75_spill] sm:$0xff] }
 0x64e   :  { %3268 = vmatprep.subr.mxu0 %v10458_v52  ;;  %3339 = vmatprep.subr.mxu1 %v10459_v53 }
 0x64f   :  { %3269 = vmatpush1.msra.mxu0 %v10460_v51  ;;  %3340 = vmatpush1.msra.mxu1 %v10461_v2 }
 0x650   :  { %3270 = vmatprep.subr.mxu0 %v10462_v17  ;;  %3341 = vmatprep.subr.mxu1 %v10463_v26 }
 0x651   :  { %3271 = vmatpush1.msra.mxu0 %v10464_v1  ;;  %3342 = vmatpush1.msra.mxu1 %v10465_v38 }
 0x652   :  { %3304 = vmatprep.mubr.f32.mxu0 %v9822_v37  ;;  %3375 = vmatprep.mubr.f32.mxu1 %v9822_v37 }
 0x653   :  { %3382 = vmatprep.subr.mxu0 %v10466_v39  ;;  %3453 = vmatprep.subr.mxu1 %v10467_v57 }
 0x6ae   :  { %v2824_v54 = vpop.f32.mrf.mxu0  ;;  %v2895_v52 = vpop.f32.mrf.mxu1 }
 0x6b0   :  { %v2826_v53 = vpop.f32.mrf.mxu0  ;;  %v2897_v2 = vpop.f32.mrf.mxu1 }
 0x6cf   :  { %v2966_v51 = vpop.f32.mrf.mxu0  ;;  %v3037_v1 = vpop.f32.mrf.mxu1 }
 0x6d0   :  { %v2967_v17 = vadd.f32 %v2966_v51, %v2824_v54  ;;  %v3038_v45 = vadd.f32 %v3037_v1, %v2895_v52  ;;  %v10469_v52 = vld [vmem:[#allocation150_spill] sm:$0xff] }
 0x6d1   :  { %v2968_v63 = vpop.f32.mrf.mxu0  ;;  %v3039_v46 = vpop.f32.mrf.mxu1 }
 0x6d2   :  { %v3042_v26 = vadd.f32 %v2967_v17, %v6758_v15  ;;  %v2969_v62 = vadd.f32 %v2968_v63, %v2826_v53  ;;  %v3040_v39 = vadd.f32 %v3039_v46, %v2897_v2  ;;  %v3044_v54 = vadd.f32 %v3038_v45, %v6773_v8 }
 0x6d4   :  { %v4699_v38 = vmul.f32 -1.442695, %v3042_v26  ;;  %v3043_v61 = vadd.f32 %v2969_v62, %v6762_v35  ;;  %v3045_v57 = vadd.f32 %v3040_v39, %v6768_v20 }
 0x6d6   :  { %4946 = vpow2.f32 %v4699_v38  ;;  %v4700_v40 = vmul.f32 -1.442695, %v3043_v61  ;;  %v4701_v44 = vmul.f32 -1.442695, %v3045_v57  ;;  %v10468_v61 = vld [vmem:[#allocation149_spill] sm:$0xff] }
 0x6d8   :  { %4948 = vpow2.f32 %v4700_v40 }
 0x6d9   :  { %4950 = vpow2.f32 %v4701_v44 }
 0x6e3   :  { %v4947_v43 = vpop.eup %4946 }
 0x6e4   :  { %v3049_v51 = vadd.f32 1.0, %v4947_v43 }
 0x6e5   :  { %v4949_v41 = vpop.eup %4948 }
 0x6e6   :  { %4952 = vrcp.f32 %v3049_v51  ;;  %v3055_v63 = vadd.f32 1.0, %v4949_v41  ;;  %v4951_v53 = vpop.eup %4950  ;;  %v10470_v51 = vld [vmem:[#allocation162_spill] sm:$0xff] }
 0x6e7   :  { %4954 = vtanh.f32 %v3044_v54  ;;  %v3062_v39 = vadd.f32 1.0, %v4951_v53 }
 0x6e8   :  { %4956 = vrcp.f32 %v3055_v63 }
 0x6f1   :  { %v3136_v62 = vpop.f32.mrf.mxu0  ;;  %v3207_v44 = vpop.f32.mrf.mxu1 }
 0x6f2   :  { %v3212_v17 = vadd.f32 %v3136_v62, %v10468_v61  ;;  %v10471_v62 = vld [vmem:[#allocation161_spill] sm:$0xff] }
 0x6f3   :  { %v4953_v40 = vpop.eup %4952  ;;  %v3138_v46 = vpop.f32.mrf.mxu0  ;;  %v3214_v61 = vadd.f32 %v3207_v44, %v10471_v62  ;;  %v10485_v62 = vld [vmem:[#allocation84_spill] sm:$0xff] }
 0x6f4   :  { %v4955_v2 = vpop.eup %4954  ;;  %v4702_v26 = vmul.f32 -1.442695, %v3212_v17  ;;  %v3213_v1 = vadd.f32 %v3138_v46, %v10469_v52  ;;  %v3209_v54 = vpop.f32.mrf.mxu1 }
 0x6f5   :  { %v4957_v38 = vpop.eup %4956  ;;  %v3066_v45 = vmul.f32 %v4955_v2, %v4953_v40  ;;  %v3215_v63 = vadd.f32 %v3209_v54, %v10470_v51  ;;  %v10483_v54 = vld [vmem:[#allocation82_spill] sm:$0xff]  ;;  %v10484_v51 = vld [vmem:[#allocation83_spill] sm:$0xff] }
 0x6f6   :  { %v3065_v43 = vmul.f32 %v4957_v38, %v8030_v18  ;;  %4958 = vpow2.f32 %v4702_v26  ;;  %v4703_v41 = vmul.f32 -1.442695, %v3213_v1  ;;  %v10473_v1 = vld [vmem:[#allocation77_spill] sm:$0xff] }
 0x6f7   :  { %v4704_v17 = vmul.f32 -1.442695, %v3215_v63  ;;  %v10474_v38 = vld [vmem:[#allocation141_spill] sm:$0xff] }
 0x6f8   :  { %4960 = vpow2.f32 %v4703_v41  ;;  %v8442_v57 = vadd.f32 %v3066_v45, %v3065_v43  ;;  %v10481_v45 = vld [vmem:[#allocation157_spill] sm:$0xff] }
 0x6f9   :  { %4962 = vrcp.f32 %v3062_v39  ;;  %v10478_v39 = vld [vmem:[#allocation145_spill] sm:$0xff] }
 0x6fa   :  { %4964 = vtanh.f32 %v8442_v57  ;;  %v10482_v43 = vld [vmem:[#allocation81_spill] sm:$0xff] }
 0x6fb   :  { %4966 = vtanh.f32 %v3214_v61 }
 0x6fc   :  { %4968 = vpow2.f32 %v4704_v17  ;;  %v10487_v17 = vld [vmem:[#allocation86_spill] sm:$0xff] }
 0x703   :  { %v4959_v46 = vpop.eup %4958 }
 0x704   :  { %v3219_v53 = vadd.f32 1.0, %v4959_v46  ;;  %v10488_v46 = vld [vmem:[#allocation87_spill] sm:$0xff] }
 0x705   :  { %v4961_v40 = vpop.eup %4960 }
 0x706   :  { %v4963_v18 = vpop.eup %4962  ;;  %4970 = vrcp.f32 %v3219_v53  ;;  %v3225_v2 = vadd.f32 1.0, %v4961_v40  ;;  %v10489_v53 = vld [vmem:[#allocation88_spill] sm:$0xff]  ;;  %v10490_v40 = vld [vmem:[#allocation89_spill] sm:$0xff] }
 0x707   :  { %v4965_v26 = vpop.eup %4964 }
 0x708   :  { %4972 = vrcp.f32 %v3225_v2  ;;  %v8447_v52 = vmul.f32 %v4965_v26, %v4963_v18  ;;  %v10494_v18 = vld [vmem:[#allocation93_spill] sm:$0xff]  ;;  %v10495_v2 = vld [vmem:[#allocation94_spill] sm:$0xff]  ;;  %v10496_v26 = vld [vmem:[#allocation95_spill] sm:$0xff] }
 0x70a   :  { %10472 = vst [vmem:[#allocation129_spill] sm:$0xff] %v8447_v52  ;;  %3305 = vmatmul.mubr.f32.vlgmr.msra.gmra.mxu0 %v8447_v52  ;;  %3376 = vmatmul.mubr.f32.vlgmr.msra.gmra.mxu1 %v8447_v52  ;;  %v8727_v52 = vld [vmem:[#allocation11 + $0x128] sm:$0xff] }
 0x70b   :  { %3383 = vmatpush1.msra.mxu0 %v8039_v3  ;;  %3454 = vmatpush1.msra.mxu1 %v8042_v25  ;;  %v10475_v3 = vld [vmem:[#allocation142_spill] sm:$0xff]  ;;  %v4967_v25 = vpop.eup %4966  ;;  %10549 = vst [vmem:[#allocation22_spill] sm:$0xff] %v8727_v52 }
 0x70c   :  { %3384 = vmatprep.subr.mxu0 %v8045_v42  ;;  %3455 = vmatprep.subr.mxu1 %v8048_v24  ;;  %v10476_v42 = vld [vmem:[#allocation78_spill] sm:$0xff]  ;;  %v10477_v24 = vld [vmem:[#allocation79_spill] sm:$0xff] }
 0x70d   :  { %3385 = vmatpush1.msra.mxu0 %v8051_v59  ;;  %3456 = vmatpush1.msra.mxu1 %v8054_v58  ;;  %v4969_v59 = vpop.eup %4968  ;;  %v10479_v58 = vld [vmem:[#allocation146_spill] sm:$0xff] }
 0x70e   :  { %3386 = vmatprep.subr.mxu0 %v8057_v5  ;;  %3457 = vmatprep.subr.mxu1 %v8060_v27  ;;  %v10480_v27 = vld [vmem:[#allocation158_spill] sm:$0xff]  ;;  %v3232_v41 = vadd.f32 1.0, %v4969_v59 }
 0x70f   :  { %3387 = vmatpush1.msra.mxu0 %v8063_v29  ;;  %3458 = vmatpush1.msra.mxu1 %v10473_v1  ;;  %v10497_v1 = vld [vmem:[#allocation96_spill] sm:$0xff]  ;;  %v10503_v59 = vld [vmem:[#allocation102_spill] sm:$0xff] }
 0x710   :  { %3388 = vmatprep.subr.mxu0 %v10474_v38  ;;  %3459 = vmatprep.subr.mxu1 %v10475_v3  ;;  %4974 = vrcp.f32 %v3232_v41  ;;  %v10498_v38 = vld [vmem:[#allocation97_spill] sm:$0xff]  ;;  %v10499_v3 = vld [vmem:[#allocation98_spill] sm:$0xff]  ;;  %v10512_v41 = vld [vmem:[#allocation111_spill] sm:$0xff] }
 0x711   :  { %3389 = vmatpush1.msra.mxu0 %v10476_v42  ;;  %3460 = vmatpush1.msra.mxu1 %v10477_v24  ;;  %v10501_v42 = vld [vmem:[#allocation100_spill] sm:$0xff]  ;;  %v10502_v24 = vld [vmem:[#allocation101_spill] sm:$0xff] }
 0x712   :  { %3390 = vmatprep.subr.mxu0 %v10478_v39  ;;  %3461 = vmatprep.subr.mxu1 %v10479_v58  ;;  %v10504_v39 = vld [vmem:[#allocation103_spill] sm:$0xff]  ;;  %v10505_v58 = vld [vmem:[#allocation104_spill] sm:$0xff] }
 0x713   :  { %v4971_v5 = vpop.eup %4970  ;;  %3391 = vmatpush1.msra.mxu0 %v10480_v27  ;;  %3462 = vmatpush1.msra.mxu1 %v8090_v4  ;;  %v10486_v4 = vld [vmem:[#allocation85_spill] sm:$0xff]  ;;  %v10507_v27 = vld [vmem:[#allocation106_spill] sm:$0xff] }
 0x714   :  { %v3236_v29 = vmul.f32 %v4971_v5, %v4967_v25  ;;  %3392 = vmatprep.subr.mxu0 %v10481_v45  ;;  %3463 = vmatprep.subr.mxu1 %v10482_v43  ;;  %v10500_v25 = vld [vmem:[#allocation99_spill] sm:$0xff]  ;;  %v10506_v5 = vld [vmem:[#allocation105_spill] sm:$0xff]  ;;  %v10509_v45 = vld [vmem:[#allocation108_spill] sm:$0xff] }
 0x715   :  { %v4973_v44 = vpop.eup %4972  ;;  %3393 = vmatpush1.msra.mxu0 %v10483_v54  ;;  %3464 = vmatpush1.msra.mxu1 %v10484_v51  ;;  %v10510_v43 = vld [vmem:[#allocation109_spill] sm:$0xff]  ;;  %v10513_v54 = vld [vmem:[#allocation112_spill] sm:$0xff] }
 0x716   :  { %v3235_v63 = vmul.f32 %v4973_v44, %v8118_v47  ;;  %3394 = vmatprep.subr.mxu0 %v8106_v60  ;;  %3465 = vmatprep.subr.mxu1 %v8109_v56  ;;  %v10491_v47 = vld [vmem:[#allocation90_spill] sm:$0xff]  ;;  %v10492_v60 = vld [vmem:[#allocation91_spill] sm:$0xff]  ;;  %v10493_v56 = vld [vmem:[#allocation92_spill] sm:$0xff] }
 0x717   :  { %3395 = vmatpush1.msra.mxu0 %v10485_v62  ;;  %3466 = vmatpush1.msra.mxu1 %v10486_v4  ;;  %v10511_v44 = vld [vmem:[#allocation110_spill] sm:$0xff]  ;;  %v10514_v51 = vld [vmem:[#allocation113_spill] sm:$0xff]  ;;  %v10516_v4 = vld [vmem:[#allocation115_spill] sm:$0xff] }
 0x718   :  { %v8478_v61 = vadd.f32 %v3236_v29, %v3235_v63  ;;  %3396 = vmatprep.subr.mxu0 %v10487_v17  ;;  %3467 = vmatprep.subr.mxu1 %v10488_v46  ;;  %v10508_v29 = vld [vmem:[#allocation107_spill] sm:$0xff]  ;;  %v10515_v62 = vld [vmem:[#allocation114_spill] sm:$0xff]  ;;  %v10517_v46 = vld [vmem:[#allocation116_spill] sm:$0xff] }
 0x719   :  { %3397 = vmatpush1.msra.mxu0 %v10489_v53  ;;  %3468 = vmatpush1.msra.mxu1 %v10490_v40  ;;  %v10518_v53 = vld [vmem:[#allocation117_spill] sm:$0xff] }
 0x71a   :  { %3398 = vmatprep.subr.mxu0 %v10491_v47  ;;  %3469 = vmatprep.subr.mxu1 %v10492_v60  ;;  %4976 = vtanh.f32 %v8478_v61  ;;  %v10519_v47 = vld [vmem:[#allocation118_spill] sm:$0xff]  ;;  %v10520_v60 = vld [vmem:[#allocation119_spill] sm:$0xff] }
 0x71b   :  { %3399 = vmatpush1.msra.mxu0 %v10493_v56  ;;  %3470 = vmatpush1.msra.mxu1 %v10494_v18  ;;  %v8536_v56 = vld [vmem:[#allocation8 + $0x1d0] sm:$0xff]  ;;  %v8540_v18 = vld [vmem:[#allocation8 + $0x1b8] sm:$0xff] }
 0x71c   :  { %3400 = vmatprep.subr.mxu0 %v10495_v2  ;;  %3471 = vmatprep.subr.mxu1 %v10496_v26  ;;  %v8616_v2 = vld [vmem:[#allocation8 + $0x90] sm:$0xff]  ;;  %v8620_v26 = vld [vmem:[#allocation8 + $0x78] sm:$0xff] }
 0x71d   :  { %3401 = vmatpush1.msra.mxu0 %v10497_v1  ;;  %3472 = vmatpush1.msra.mxu1 %v10498_v38  ;;  %v4975_v63 = vpop.eup %4974  ;;  %v8624_v1 = vld [vmem:[#allocation8 + $0x70] sm:$0xff]  ;;  %v8628_v38 = vld [vmem:[#allocation8 + $0x58] sm:$0xff] }
 0x71e   :  { %3402 = vmatprep.subr.mxu0 %v10499_v3  ;;  %3473 = vmatprep.subr.mxu1 %v10500_v25  ;;  %v10525_v3 = vld [vmem:[#allocation124_spill] sm:$0xff]  ;;  %v8632_v25 = vld [vmem:[#allocation8 + $0x50] sm:$0xff] }
 0x71f   :  { %3403 = vmatpush1.msra.mxu0 %v10501_v42  ;;  %3474 = vmatpush1.msra.mxu1 %v10502_v24  ;;  %v10526_v42 = vld [vmem:[#allocation125_spill] sm:$0xff]  ;;  %v8636_v24 = vld [vmem:[#allocation8 + $0x38] sm:$0xff] }
 0x720   :  { %3404 = vmatprep.subr.mxu0 %v10503_v59  ;;  %3475 = vmatprep.subr.mxu1 %v10504_v39  ;;  %v10527_v59 = vld [vmem:[#allocation126_spill] sm:$0xff] }
 0x721   :  { %3405 = vmatpush1.msra.mxu0 %v10505_v58  ;;  %3476 = vmatpush1.msra.mxu1 %v10506_v5  ;;  %v8640_v39 = vld [vmem:[#allocation8 + $0x30] sm:$0xff]  ;;  %v10528_v58 = vld [vmem:[#allocation127_spill] sm:$0xff] }
 0x722   :  { %3406 = vmatprep.subr.mxu0 %v10507_v27  ;;  %3477 = vmatprep.subr.mxu1 %v10508_v29  ;;  %v8644_v5 = vld [vmem:[#allocation8 + $0x18] sm:$0xff]  ;;  %v10529_v27 = vld [vmem:[#allocation128_spill] sm:$0xff]  ;;  %v8649_v29 = vld [vmem:[#allocation8 + $0x10] sm:$0xff] }
 0x723   :  { %3407 = vmatpush1.msra.mxu0 %v10509_v45  ;;  %3478 = vmatpush1.msra.mxu1 %v10510_v43  ;;  %v8655_v45 = vld [vmem:[#allocation11 + $0x1e8] sm:$0xff]  ;;  %v8658_v43 = vld [vmem:[#allocation11 + $0x1f8] sm:$0xff] }
 0x724   :  { %3408 = vmatprep.subr.mxu0 %v10511_v44  ;;  %3479 = vmatprep.subr.mxu1 %v10512_v41  ;;  %v8661_v44 = vld [vmem:[#allocation11 + $0x1e0] sm:$0xff]  ;;  %v8664_v41 = vld [vmem:[#allocation11 + $0x1f0] sm:$0xff] }
 0x725   :  { %3409 = vmatpush1.msra.mxu0 %v10513_v54  ;;  %3480 = vmatpush1.msra.mxu1 %v10514_v51  ;;  %v8667_v54 = vld [vmem:[#allocation11 + $0x1c8] sm:$0xff]  ;;  %v8670_v51 = vld [vmem:[#allocation11 + $0x1d8] sm:$0xff] }
 0x726   :  { %3410 = vmatprep.subr.mxu0 %v10515_v62  ;;  %3481 = vmatprep.subr.mxu1 %v10516_v4  ;;  %10530 = vst [vmem:[#allocation130_spill] sm:$0xff] %v8670_v51  ;;  %v8676_v62 = vld [vmem:[#allocation11 + $0x1d0] sm:$0xff]  ;;  %v8679_v4 = vld [vmem:[#allocation11 + $0x1a8] sm:$0xff] }
 0x727   :  { %v4977_v17 = vpop.eup %4976  ;;  %3411 = vmatpush1.msra.mxu0 %v10517_v46  ;;  %3482 = vmatpush1.msra.mxu1 %v8214_v49  ;;  %v8524_v49 = vld [vmem:[#allocation8 + $0x1f8] sm:$0xff]  ;;  %10532 = vst [vmem:[#allocation132_spill] sm:$0xff] %v8676_v62  ;;  %10533 = vst [vmem:[#allocation133_spill] sm:$0xff] %v8679_v4  ;;  %v8685_v46 = vld [vmem:[#allocation11 + $0x1a0] sm:$0xff] }
 0x728   :  { %3412 = vmatprep.subr.mxu0 %v10518_v53  ;;  %3483 = vmatprep.subr.mxu1 %v8220_v13  ;;  %v8515_v40 = vmul.f32 %v4977_v17, %v4975_v63  ;;  %v8528_v13 = vld [vmem:[#allocation8 + $0x1f0] sm:$0xff]  ;;  %v8673_v63 = vld [vmem:[#allocation11 + $0x1c0] sm:$0xff]  ;;  %v8682_v17 = vld [vmem:[#allocation11 + $0x1b8] sm:$0xff]  ;;  %10535 = vst [vmem:[#allocation135_spill] sm:$0xff] %v8685_v46 }
 0x729   :  { %3413 = vmatpush1.msra.mxu0 %v8225_v55  ;;  %3446 = vmatprep.mubr.f32.mxu0 %v9822_v37  ;;  %v8532_v55 = vld [vmem:[#allocation8 + $0x1d8] sm:$0xff]  ;;  %10531 = vst [vmem:[#allocation131_spill] sm:$0xff] %v8673_v63  ;;  %10534 = vst [vmem:[#allocation134_spill] sm:$0xff] %v8682_v17  ;;  %v8688_v53 = vld [vmem:[#allocation11 + $0x1b0] sm:$0xff] }
 0x72a   :  { %3484 = vmatpush1.msra.mxu1 %v10519_v47  ;;  %3517 = vmatprep.mubr.f32.mxu1 %v9822_v37  ;;  %10536 = vst [vmem:[#allocation136_spill] sm:$0xff] %v8688_v53  ;;  %v8694_v47 = vld [vmem:[#allocation11 + $0x198] sm:$0xff] }
 0x72b   :  { %3447 = vmatmul.mubr.f32.vlgmr.msra.gmra.mxu0 %v8515_v40  ;;  %3518 = vmatmul.mubr.f32.vlgmr.msra.gmra.mxu1 %v8515_v40  ;;  %10538 = vst [vmem:[#allocation147_spill] sm:$0xff] %v8694_v47 }
 0x72c   :  { %3552 = vmatprep.subr.mxu0 %v10520_v60  ;;  %3623 = vmatprep.subr.mxu1 %v8524_v49  ;;  %v8697_v60 = vld [vmem:[#allocation11 + $0x180] sm:$0xff] }
 0x72d   :  { %3553 = vmatpush1.msra.mxu0 %v8239_v50  ;;  %3624 = vmatpush1.msra.mxu1 %v8528_v13  ;;  %v8544_v50 = vld [vmem:[#allocation8 + $0x1b0] sm:$0xff]  ;;  %10539 = vst [vmem:[#allocation148_spill] sm:$0xff] %v8697_v60 }
 0x72e   :  { %3554 = vmatprep.subr.mxu0 %v8243_v48  ;;  %3625 = vmatprep.subr.mxu1 %v8532_v55  ;;  %v8548_v48 = vld [vmem:[#allocation8 + $0x198] sm:$0xff] }
 0x72f   :  { %3555 = vmatpush1.msra.mxu0 %v8247_v30  ;;  %3626 = vmatpush1.msra.mxu1 %v8536_v56  ;;  %v8552_v30 = vld [vmem:[#allocation8 + $0x190] sm:$0xff] }
 0x730   :  { %3556 = vmatprep.subr.mxu0 %v8251_v34  ;;  %3627 = vmatprep.subr.mxu1 %v8540_v18  ;;  %v8556_v34 = vld [vmem:[#allocation8 + $0x178] sm:$0xff] }
 0x731   :  { %3557 = vmatpush1.msra.mxu0 %v8255_v16  ;;  %3628 = vmatpush1.msra.mxu1 %v8544_v50  ;;  %v8560_v16 = vld [vmem:[#allocation8 + $0x170] sm:$0xff] }
 0x732   :  { %3558 = vmatprep.subr.mxu0 %v8259_v9  ;;  %3629 = vmatprep.subr.mxu1 %v8548_v48  ;;  %v8564_v9 = vld [vmem:[#allocation8 + $0x158] sm:$0xff] }
 0x733   :  { %3559 = vmatpush1.msra.mxu0 %v8263_v28  ;;  %3630 = vmatpush1.msra.mxu1 %v8552_v30  ;;  %v8568_v28 = vld [vmem:[#allocation8 + $0x150] sm:$0xff] }
 0x734   :  { %3560 = vmatprep.subr.mxu0 %v8267_v7  ;;  %3631 = vmatprep.subr.mxu1 %v8556_v34  ;;  %v8572_v7 = vld [vmem:[#allocation8 + $0x138] sm:$0xff] }
 0x735   :  { %3561 = vmatpush1.msra.mxu0 %v8271_v21  ;;  %3632 = vmatpush1.msra.mxu1 %v8560_v16  ;;  %v8576_v21 = vld [vmem:[#allocation8 + $0x130] sm:$0xff] }
 0x736   :  { %3562 = vmatprep.subr.mxu0 %v8275_v31  ;;  %3633 = vmatprep.subr.mxu1 %v8564_v9  ;;  %v8580_v31 = vld [vmem:[#allocation8 + $0x118] sm:$0xff] }
 0x737   :  { %3563 = vmatpush1.msra.mxu0 %v8279_v14  ;;  %3634 = vmatpush1.msra.mxu1 %v8568_v28  ;;  %v8584_v14 = vld [vmem:[#allocation8 + $0x110] sm:$0xff] }
 0x738   :  { %3564 = vmatprep.subr.mxu0 %v8283_v10  ;;  %3635 = vmatprep.subr.mxu1 %v8572_v7  ;;  %v8588_v10 = vld [vmem:[#allocation8 + $0xf8] sm:$0xff] }
 0x739   :  { %3565 = vmatpush1.msra.mxu0 %v8287_v6  ;;  %3636 = vmatpush1.msra.mxu1 %v8576_v21  ;;  %v8592_v6 = vld [vmem:[#allocation8 + $0xf0] sm:$0xff] }
 0x73a   :  { %3566 = vmatprep.subr.mxu0 %v8291_v0  ;;  %3637 = vmatprep.subr.mxu1 %v8580_v31  ;;  %v8596_v0 = vld [vmem:[#allocation8 + $0xd8] sm:$0xff] }
 0x73b   :  { %3567 = vmatpush1.msra.mxu0 %v8295_v12  ;;  %3638 = vmatpush1.msra.mxu1 %v8584_v14  ;;  %v8600_v12 = vld [vmem:[#allocation8 + $0xd0] sm:$0xff] }
 0x73c   :  { %3568 = vmatprep.subr.mxu0 %v8299_v22  ;;  %3639 = vmatprep.subr.mxu1 %v8588_v10  ;;  %v8604_v22 = vld [vmem:[#allocation8 + $0xb8] sm:$0xff] }
 0x73d   :  { %3569 = vmatpush1.msra.mxu0 %v8303_v33  ;;  %3640 = vmatpush1.msra.mxu1 %v8592_v6  ;;  %v8608_v33 = vld [vmem:[#allocation8 + $0xb0] sm:$0xff] }
 0x73e   :  { %3570 = vmatprep.subr.mxu0 %v8307_v11  ;;  %3641 = vmatprep.subr.mxu1 %v8596_v0  ;;  %v8612_v11 = vld [vmem:[#allocation8 + $0x98] sm:$0xff] }
 0x73f   :  { %3571 = vmatpush1.msra.mxu0 %v8311_v19  ;;  %3642 = vmatpush1.msra.mxu1 %v8600_v12  ;;  %v10521_v19 = vld [vmem:[#allocation120_spill] sm:$0xff] }
 0x740   :  { %3572 = vmatprep.subr.mxu0 %v8315_v36  ;;  %3643 = vmatprep.subr.mxu1 %v8604_v22  ;;  %v10522_v36 = vld [vmem:[#allocation121_spill] sm:$0xff] }
 0x741   :  { %3573 = vmatpush1.msra.mxu0 %v8319_v23  ;;  %3644 = vmatpush1.msra.mxu1 %v8608_v33  ;;  %v10523_v23 = vld [vmem:[#allocation122_spill] sm:$0xff] }
 0x742   :  { %3574 = vmatprep.subr.mxu0 %v8323_v32  ;;  %3645 = vmatprep.subr.mxu1 %v8612_v11  ;;  %v10524_v32 = vld [vmem:[#allocation123_spill] sm:$0xff] }
 0x743   :  { %3575 = vmatpush1.msra.mxu0 %v10521_v19  ;;  %3646 = vmatpush1.msra.mxu1 %v8616_v2  ;;  %v8700_v19 = vld [vmem:[#allocation11 + $0x190] sm:$0xff] }
 0x744   :  { %3576 = vmatprep.subr.mxu0 %v10522_v36  ;;  %3647 = vmatprep.subr.mxu1 %v8620_v26  ;;  %10540 = vst [vmem:[#allocation160_spill] sm:$0xff] %v8700_v19  ;;  %v8703_v36 = vld [vmem:[#allocation11 + $0x168] sm:$0xff] }
 0x745   :  { %3577 = vmatpush1.msra.mxu0 %v10523_v23  ;;  %3648 = vmatpush1.msra.mxu1 %v8624_v1  ;;  %10541 = vst [vmem:[#allocation159_spill] sm:$0xff] %v8703_v36  ;;  %v8706_v23 = vld [vmem:[#allocation11 + $0x178] sm:$0xff] }
 0x746   :  { %3578 = vmatprep.subr.mxu0 %v10524_v32  ;;  %3649 = vmatprep.subr.mxu1 %v8628_v38  ;;  %10542 = vst [vmem:[#allocation139_spill] sm:$0xff] %v8706_v23  ;;  %v8709_v32 = vld [vmem:[#allocation11 + $0x160] sm:$0xff] }
 0x747   :  { %3579 = vmatpush1.msra.mxu0 %v10525_v3  ;;  %3650 = vmatpush1.msra.mxu1 %v8632_v25  ;;  %10543 = vst [vmem:[#allocation140_spill] sm:$0xff] %v8709_v32  ;;  %v8712_v3 = vld [vmem:[#allocation11 + $0x170] sm:$0xff] }
 0x748   :  { %3580 = vmatprep.subr.mxu0 %v10526_v42  ;;  %3651 = vmatprep.subr.mxu1 %v8636_v24  ;;  %10544 = vst [vmem:[#allocation143_spill] sm:$0xff] %v8712_v3  ;;  %v8715_v42 = vld [vmem:[#allocation11 + $0x148] sm:$0xff] }
 0x749   :  { %3581 = vmatpush1.msra.mxu0 %v10527_v59  ;;  %3652 = vmatpush1.msra.mxu1 %v8640_v39  ;;  %10545 = vst [vmem:[#allocation144_spill] sm:$0xff] %v8715_v42  ;;  %v8718_v59 = vld [vmem:[#allocation11 + $0x158] sm:$0xff] }
 0x74a   :  { %3582 = vmatprep.subr.mxu0 %v10528_v58  ;;  %3653 = vmatprep.subr.mxu1 %v8644_v5  ;;  %10546 = vst [vmem:[#allocation156_spill] sm:$0xff] %v8718_v59  ;;  %v8721_v58 = vld [vmem:[#allocation11 + $0x140] sm:$0xff] }
 0x74b   :  { %3583 = vmatpush1.msra.mxu0 %v10529_v27  ;;  %3616 = vmatprep.mubr.f32.mxu0 %v9822_v37  ;;  %10547 = vst [vmem:[#allocation155_spill] sm:$0xff] %v8721_v58  ;;  %v8724_v27 = vld [vmem:[#allocation11 + $0x150] sm:$0xff] }
 0x74c   :  { %3654 = vmatpush1.msra.mxu1 %v8649_v29  ;;  %3687 = vmatprep.mubr.f32.mxu1 %v9822_v37  ;;  %10548 = vst [vmem:[#allocation21_spill] sm:$0xff] %v8724_v27 }
 0x74d   :  { %3617 = vmatmul.mubr.f32.vlgmr.msra.gmra.mxu0 %v8515_v40  ;;  %3688 = vmatmul.mubr.f32.vlgmr.msra.gmra.mxu1 %v8515_v40  ;;  %v8691_v40 = vld [vmem:[#allocation11 + $0x188] sm:$0xff] }
 0x74e   :  { %3722 = vmatprep.subr.mxu0 %v8655_v45  ;;  %3793 = vmatprep.subr.mxu1 %v8658_v43  ;;  %10537 = vst [vmem:[#allocation137_spill] sm:$0xff] %v8691_v40 }
 0x74f   :  { %3723 = vmatpush1.msra.mxu0 %v8661_v44  ;;  %3794 = vmatpush1.msra.mxu1 %v8664_v41 }
 0x750   :  { %3724 = vmatprep.subr.mxu0 %v8667_v54  ;;  %3795 = vmatprep.subr.mxu1 %v8670_v51 }
 0x751   :  { %3725 = vmatpush1.msra.mxu0 %v8673_v63  ;;  %3796 = vmatpush1.msra.mxu1 %v8676_v62 }
 0x752   :  { %3726 = vmatprep.subr.mxu0 %v8679_v4  ;;  %3797 = vmatprep.subr.mxu1 %v8682_v17 }
 0x753   :  { %3727 = vmatpush1.msra.mxu0 %v8685_v46  ;;  %3798 = vmatpush1.msra.mxu1 %v8688_v53 }
 0x754   :  { %3728 = vmatprep.subr.mxu0 %v8691_v40  ;;  %3799 = vmatprep.subr.mxu1 %v8694_v47 }
 0x755   :  { %3729 = vmatpush1.msra.mxu0 %v8697_v60  ;;  %3800 = vmatpush1.msra.mxu1 %v8700_v19 }
 0x756   :  { %3730 = vmatprep.subr.mxu0 %v8703_v36  ;;  %3801 = vmatprep.subr.mxu1 %v8706_v23 }
 0x757   :  { %3731 = vmatpush1.msra.mxu0 %v8709_v32  ;;  %3802 = vmatpush1.msra.mxu1 %v8712_v3  ;;  %v8730_v3 = vld [vmem:[#allocation11 + $0x138] sm:$0xff] }
 0x758   :  { %3732 = vmatprep.subr.mxu0 %v8715_v42  ;;  %3803 = vmatprep.subr.mxu1 %v8718_v59  ;;  %10550 = vst [vmem:[#allocation23_spill] sm:$0xff] %v8730_v3  ;;  %v8733_v42 = vld [vmem:[#allocation11 + $0x120] sm:$0xff]  ;;  %v8736_v59 = vld [vmem:[#allocation11 + $0x130] sm:$0xff] }
 0x759   :  { %3733 = vmatpush1.msra.mxu0 %v8721_v58  ;;  %3804 = vmatpush1.msra.mxu1 %v8724_v27  ;;  %10551 = vst [vmem:[#allocation24_spill] sm:$0xff] %v8733_v42  ;;  %10552 = vst [vmem:[#allocation25_spill] sm:$0xff] %v8736_v59  ;;  %v8739_v58 = vld [vmem:[#allocation11 + $0x108] sm:$0xff]  ;;  %v8742_v27 = vld [vmem:[#allocation11 + $0x118] sm:$0xff] }
 0x75a   :  { %3734 = vmatprep.subr.mxu0 %v8727_v52  ;;  %3805 = vmatprep.subr.mxu1 %v8730_v3  ;;  %10553 = vst [vmem:[#allocation26_spill] sm:$0xff] %v8739_v58  ;;  %10554 = vst [vmem:[#allocation27_spill] sm:$0xff] %v8742_v27  ;;  %v8745_v52 = vld [vmem:[#allocation11 + $0x100] sm:$0xff]  ;;  %v8748_v3 = vld [vmem:[#allocation11 + $0x110] sm:$0xff] }
 0x75b   :  { %3735 = vmatpush1.msra.mxu0 %v8733_v42  ;;  %3806 = vmatpush1.msra.mxu1 %v8736_v59  ;;  %10555 = vst [vmem:[#allocation28_spill] sm:$0xff] %v8745_v52  ;;  %10556 = vst [vmem:[#allocation29_spill] sm:$0xff] %v8748_v3  ;;  %v8751_v42 = vld [vmem:[#allocation11 + $0xe8] sm:$0xff]  ;;  %v8754_v59 = vld [vmem:[#allocation11 + $0xf8] sm:$0xff] }
 0x75c   :  { %3736 = vmatprep.subr.mxu0 %v8739_v58  ;;  %3807 = vmatprep.subr.mxu1 %v8742_v27  ;;  %10557 = vst [vmem:[#allocation30_spill] sm:$0xff] %v8751_v42  ;;  %10558 = vst [vmem:[#allocation31_spill] sm:$0xff] %v8754_v59  ;;  %v8757_v58 = vld [vmem:[#allocation11 + $0xe0] sm:$0xff]  ;;  %v8760_v27 = vld [vmem:[#allocation11 + $0xf0] sm:$0xff] }
 0x75d   :  { %3737 = vmatpush1.msra.mxu0 %v8745_v52  ;;  %3808 = vmatpush1.msra.mxu1 %v8748_v3  ;;  %10559 = vst [vmem:[#allocation32_spill] sm:$0xff] %v8757_v58  ;;  %10560 = vst [vmem:[#allocation33_spill] sm:$0xff] %v8760_v27  ;;  %v8763_v52 = vld [vmem:[#allocation11 + $0xc8] sm:$0xff]  ;;  %v8766_v3 = vld [vmem:[#allocation11 + $0xd8] sm:$0xff] }
 0x75e   :  { %3738 = vmatprep.subr.mxu0 %v8751_v42  ;;  %3809 = vmatprep.subr.mxu1 %v8754_v59  ;;  %10561 = vst [vmem:[#allocation34_spill] sm:$0xff] %v8763_v52  ;;  %10562 = vst [vmem:[#allocation35_spill] sm:$0xff] %v8766_v3  ;;  %v8769_v42 = vld [vmem:[#allocation11 + $0xc0] sm:$0xff]  ;;  %v8772_v59 = vld [vmem:[#allocation11 + $0xd0] sm:$0xff] }
 0x75f   :  { %3739 = vmatpush1.msra.mxu0 %v8757_v58  ;;  %3810 = vmatpush1.msra.mxu1 %v8760_v27  ;;  %10563 = vst [vmem:[#allocation36_spill] sm:$0xff] %v8769_v42  ;;  %10564 = vst [vmem:[#allocation37_spill] sm:$0xff] %v8772_v59  ;;  %v8775_v58 = vld [vmem:[#allocation11 + $0xa8] sm:$0xff]  ;;  %v8778_v27 = vld [vmem:[#allocation11 + $0xb8] sm:$0xff] }
 0x760   :  { %3740 = vmatprep.subr.mxu0 %v8763_v52  ;;  %3811 = vmatprep.subr.mxu1 %v8766_v3  ;;  %10565 = vst [vmem:[#allocation38_spill] sm:$0xff] %v8775_v58  ;;  %10566 = vst [vmem:[#allocation39_spill] sm:$0xff] %v8778_v27  ;;  %v8781_v52 = vld [vmem:[#allocation11 + $0xa0] sm:$0xff]  ;;  %v8784_v3 = vld [vmem:[#allocation11 + $0xb0] sm:$0xff] }
 0x761   :  { %3741 = vmatpush1.msra.mxu0 %v8769_v42  ;;  %3812 = vmatpush1.msra.mxu1 %v8772_v59  ;;  %10567 = vst [vmem:[#allocation40_spill] sm:$0xff] %v8781_v52  ;;  %10568 = vst [vmem:[#allocation41_spill] sm:$0xff] %v8784_v3  ;;  %v8787_v42 = vld [vmem:[#allocation11 + $0x88] sm:$0xff]  ;;  %v8790_v59 = vld [vmem:[#allocation11 + $0x98] sm:$0xff] }
 0x762   :  { %3742 = vmatprep.subr.mxu0 %v8775_v58  ;;  %3813 = vmatprep.subr.mxu1 %v8778_v27  ;;  %10569 = vst [vmem:[#allocation42_spill] sm:$0xff] %v8787_v42  ;;  %10570 = vst [vmem:[#allocation43_spill] sm:$0xff] %v8790_v59  ;;  %v8793_v58 = vld [vmem:[#allocation11 + $0x80] sm:$0xff]  ;;  %v8796_v27 = vld [vmem:[#allocation11 + $0x90] sm:$0xff] }
 0x763   :  { %3743 = vmatpush1.msra.mxu0 %v8781_v52  ;;  %3814 = vmatpush1.msra.mxu1 %v8784_v3  ;;  %10571 = vst [vmem:[#allocation44_spill] sm:$0xff] %v8793_v58  ;;  %10572 = vst [vmem:[#allocation45_spill] sm:$0xff] %v8796_v27  ;;  %v8799_v52 = vld [vmem:[#allocation11 + $0x68] sm:$0xff]  ;;  %v8802_v3 = vld [vmem:[#allocation11 + $0x78] sm:$0xff] }
 0x764   :  { %3744 = vmatprep.subr.mxu0 %v8787_v42  ;;  %3815 = vmatprep.subr.mxu1 %v8790_v59  ;;  %10573 = vst [vmem:[#allocation46_spill] sm:$0xff] %v8799_v52  ;;  %10574 = vst [vmem:[#allocation47_spill] sm:$0xff] %v8802_v3  ;;  %v8805_v42 = vld [vmem:[#allocation11 + $0x60] sm:$0xff]  ;;  %v8808_v59 = vld [vmem:[#allocation11 + $0x70] sm:$0xff] }
 0x765   :  { %3745 = vmatpush1.msra.mxu0 %v8793_v58  ;;  %3816 = vmatpush1.msra.mxu1 %v8796_v27  ;;  %10575 = vst [vmem:[#allocation48_spill] sm:$0xff] %v8805_v42  ;;  %10576 = vst [vmem:[#allocation49_spill] sm:$0xff] %v8808_v59  ;;  %v8811_v58 = vld [vmem:[#allocation11 + $0x48] sm:$0xff]  ;;  %v8814_v27 = vld [vmem:[#allocation11 + $0x58] sm:$0xff] }
 0x766   :  { %3746 = vmatprep.subr.mxu0 %v8799_v52  ;;  %3817 = vmatprep.subr.mxu1 %v8802_v3  ;;  %10577 = vst [vmem:[#allocation50_spill] sm:$0xff] %v8811_v58  ;;  %10578 = vst [vmem:[#allocation51_spill] sm:$0xff] %v8814_v27  ;;  %v8817_v52 = vld [vmem:[#allocation11 + $0x40] sm:$0xff]  ;;  %v8820_v3 = vld [vmem:[#allocation11 + $0x50] sm:$0xff] }
 0x767   :  { %3747 = vmatpush1.msra.mxu0 %v8805_v42  ;;  %3818 = vmatpush1.msra.mxu1 %v8808_v59  ;;  %10579 = vst [vmem:[#allocation52_spill] sm:$0xff] %v8817_v52  ;;  %10580 = vst [vmem:[#allocation53_spill] sm:$0xff] %v8820_v3  ;;  %v8823_v42 = vld [vmem:[#allocation11 + $0x28] sm:$0xff]  ;;  %v8826_v59 = vld [vmem:[#allocation11 + $0x38] sm:$0xff] }
 0x768   :  { %3748 = vmatprep.subr.mxu0 %v8811_v58  ;;  %3819 = vmatprep.subr.mxu1 %v8814_v27  ;;  %10581 = vst [vmem:[#allocation54_spill] sm:$0xff] %v8823_v42  ;;  %10582 = vst [vmem:[#allocation55_spill] sm:$0xff] %v8826_v59  ;;  %v8829_v58 = vld [vmem:[#allocation11 + $0x20] sm:$0xff]  ;;  %v8832_v27 = vld [vmem:[#allocation11 + $0x30] sm:$0xff] }
 0x769   :  { %3749 = vmatpush1.msra.mxu0 %v8817_v52  ;;  %3820 = vmatpush1.msra.mxu1 %v8820_v3  ;;  %10583 = vst [vmem:[#allocation56_spill] sm:$0xff] %v8829_v58  ;;  %10584 = vst [vmem:[#allocation57_spill] sm:$0xff] %v8832_v27  ;;  %v8835_v52 = vld [vmem:[#allocation11 + $0x8] sm:$0xff]  ;;  %v8838_v3 = vld [vmem:[#allocation11 + $0x18] sm:$0xff] }
 0x76a   :  { %3750 = vmatprep.subr.mxu0 %v8823_v42  ;;  %3821 = vmatprep.subr.mxu1 %v8826_v59  ;;  %10585 = vst [vmem:[#allocation58_spill] sm:$0xff] %v8835_v52  ;;  %10586 = vst [vmem:[#allocation59_spill] sm:$0xff] %v8838_v3  ;;  %v8841_v42 = vld [vmem:[#allocation11] sm:$0xff]  ;;  %v8844_v59 = vld [vmem:[#allocation11 + $0x10] sm:$0xff] }
 0x76b   :  { %3751 = vmatpush1.msra.mxu0 %v8829_v58  ;;  %3822 = vmatpush1.msra.mxu1 %v8832_v27  ;;  %10587 = vst [vmem:[#allocation60_spill] sm:$0xff] %v8841_v42  ;;  %10588 = vst [vmem:[#allocation61_spill] sm:$0xff] %v8844_v59  ;;  %v8849_v27 = vld [vmem:[#allocation10 + $0x1e8] sm:$0xff] }
 0x76c   :  { %3752 = vmatprep.subr.mxu0 %v8835_v52  ;;  %3823 = vmatprep.subr.mxu1 %v8838_v3  ;;  %10589 = vst [vmem:[#allocation62_spill] sm:$0xff] %v8849_v27  ;;  %v8852_v52 = vld [vmem:[#allocation10 + $0x1f8] sm:$0xff] }
 0x76d   :  { %3753 = vmatpush1.msra.mxu0 %v8841_v42  ;;  %3824 = vmatpush1.msra.mxu1 %v8844_v59  ;;  %10590 = vst [vmem:[#allocation63_spill] sm:$0xff] %v8852_v52 }
 0x76e   :  { %3786 = vmatprep.mubr.f32.mxu0 %v9822_v37  ;;  %3857 = vmatprep.mubr.f32.mxu1 %v9822_v37 }
 0x76f   :  { %3864 = vmatprep.subr.mxu0 %v8849_v27  ;;  %3935 = vmatprep.subr.mxu1 %v8852_v52 }
 0x7ca   :  { %v3306_v3 = vpop.f32.mrf.mxu0  ;;  %v3377_v58 = vpop.f32.mrf.mxu1 }
 0x7cc   :  { %v3308_v32 = vpop.f32.mrf.mxu0  ;;  %v3379_v23 = vpop.f32.mrf.mxu1 }
 0x7eb   :  { %v3448_v42 = vpop.f32.mrf.mxu0  ;;  %v3519_v60 = vpop.f32.mrf.mxu1 }
 0x7ec   :  { %v3449_v36 = vadd.f32 %v3448_v42, %v3306_v3  ;;  %v3520_v4 = vadd.f32 %v3519_v60, %v3377_v58  ;;  %v10592_v60 = vld [vmem:[#allocation152_spill] sm:$0xff] }
 0x7ed   :  { %v3450_v19 = vpop.f32.mrf.mxu0  ;;  %v3521_v46 = vpop.f32.mrf.mxu1 }
 0x7ee   :  { %v3524_v59 = vadd.f32 %v3449_v36, %v6758_v15  ;;  %v3451_v47 = vadd.f32 %v3450_v19, %v3308_v32  ;;  %v3522_v17 = vadd.f32 %v3521_v46, %v3379_v23  ;;  %v3526_v3 = vadd.f32 %v3520_v4, %v6773_v8 }
 0x7f0   :  { %v4705_v40 = vmul.f32 -1.442695, %v3524_v59  ;;  %v3525_v53 = vadd.f32 %v3451_v47, %v6762_v35  ;;  %v3527_v52 = vadd.f32 %v3522_v17, %v6768_v20 }
 0x7f2   :  { %4978 = vpow2.f32 %v4705_v40  ;;  %v4706_v27 = vmul.f32 -1.442695, %v3525_v53  ;;  %v4707_v62 = vmul.f32 -1.442695, %v3527_v52  ;;  %v10591_v53 = vld [vmem:[#allocation151_spill] sm:$0xff] }
 0x7f4   :  { %4980 = vpow2.f32 %v4706_v27 }
 0x7f5   :  { %4982 = vpow2.f32 %v4707_v62 }
 0x7ff   :  { %v4979_v63 = vpop.eup %4978 }
 0x800   :  { %v3531_v42 = vadd.f32 1.0, %v4979_v63 }
 0x801   :  { %v4981_v51 = vpop.eup %4980 }
 0x802   :  { %4984 = vrcp.f32 %v3531_v42  ;;  %v3537_v19 = vadd.f32 1.0, %v4981_v51  ;;  %v4983_v40 = vpop.eup %4982  ;;  %v10593_v42 = vld [vmem:[#allocation164_spill] sm:$0xff] }
 0x803   :  { %4986 = vtanh.f32 %v3526_v3  ;;  %v3544_v58 = vadd.f32 1.0, %v4983_v40 }
 0x804   :  { %4988 = vrcp.f32 %v3537_v19 }
 0x80d   :  { %v3618_v47 = vpop.f32.mrf.mxu0  ;;  %v3689_v62 = vpop.f32.mrf.mxu1 }
 0x80e   :  { %v3694_v36 = vadd.f32 %v3618_v47, %v10591_v53  ;;  %v10594_v47 = vld [vmem:[#allocation163_spill] sm:$0xff] }
 0x80f   :  { %v4985_v32 = vpop.eup %4984  ;;  %v3620_v46 = vpop.f32.mrf.mxu0  ;;  %v3696_v53 = vadd.f32 %v3689_v62, %v10594_v47  ;;  %v8886_v62 = vld [vmem:[#allocation10 + $0x1d0] sm:$0xff]  ;;  %v8901_v47 = vld [vmem:[#allocation10 + $0x188] sm:$0xff] }
 0x810   :  { %v4987_v23 = vpop.eup %4986  ;;  %v4708_v17 = vmul.f32 -1.442695, %v3694_v36  ;;  %v3695_v52 = vadd.f32 %v3620_v46, %v10592_v60  ;;  %v3691_v3 = vpop.f32.mrf.mxu1  ;;  %10597 = vst [vmem:[#allocation66_spill] sm:$0xff] %v8901_v47 }
 0x811   :  { %v4989_v59 = vpop.eup %4988  ;;  %v3548_v4 = vmul.f32 %v4987_v23, %v4985_v32  ;;  %v3697_v19 = vadd.f32 %v3691_v3, %v10593_v42  ;;  %v8892_v3 = vld [vmem:[#allocation10 + $0x1b8] sm:$0xff]  ;;  %v8895_v42 = vld [vmem:[#allocation10 + $0x1a0] sm:$0xff] }
 0x812   :  { %v3547_v63 = vmul.f32 %v4989_v59, %v8442_v57  ;;  %4990 = vpow2.f32 %v4708_v17  ;;  %v4709_v51 = vmul.f32 -1.442695, %v3695_v52  ;;  %v8871_v52 = vld [vmem:[#allocation10 + $0x1e0] sm:$0xff]  ;;  %v8874_v59 = vld [vmem:[#allocation10 + $0x1f0] sm:$0xff] }
 0x813   :  { %v4710_v36 = vmul.f32 -1.442695, %v3697_v19  ;;  %v8898_v19 = vld [vmem:[#allocation10 + $0x1b0] sm:$0xff] }
 0x814   :  { %4992 = vpow2.f32 %v4709_v51  ;;  %v8862_v27 = vadd.f32 %v3548_v4, %v3547_v63  ;;  %v8880_v4 = vld [vmem:[#allocation10 + $0x1d8] sm:$0xff]  ;;  %v8883_v63 = vld [vmem:[#allocation10 + $0x1c0] sm:$0xff]  ;;  %v8889_v51 = vld [vmem:[#allocation10 + $0x1a8] sm:$0xff]  ;;  %10596 = vst [vmem:[#allocation65_spill] sm:$0xff] %v8898_v19 }
 0x815   :  { %4994 = vrcp.f32 %v3544_v58  ;;  %v8877_v58 = vld [vmem:[#allocation10 + $0x1c8] sm:$0xff] }
 0x816   :  { %4996 = vtanh.f32 %v8862_v27 }
 0x817   :  { %4998 = vtanh.f32 %v3696_v53  ;;  %v8904_v53 = vld [vmem:[#allocation10 + $0x198] sm:$0xff] }
 0x818   :  { %5000 = vpow2.f32 %v4710_v36  ;;  %10598 = vst [vmem:[#allocation67_spill] sm:$0xff] %v8904_v53 }
 0x81f   :  { %v4991_v46 = vpop.eup %4990 }
 0x820   :  { %v3701_v40 = vadd.f32 1.0, %v4991_v46  ;;  %v8907_v46 = vld [vmem:[#allocation10 + $0x180] sm:$0xff] }
 0x821   :  { %v4993_v32 = vpop.eup %4992  ;;  %10599 = vst [vmem:[#allocation68_spill] sm:$0xff] %v8907_v46 }
 0x822   :  { %v4995_v57 = vpop.eup %4994  ;;  %5002 = vrcp.f32 %v3701_v40  ;;  %v3707_v23 = vadd.f32 1.0, %v4993_v32  ;;  %v8910_v40 = vld [vmem:[#allocation10 + $0x190] sm:$0xff] }
 0x823   :  { %v4997_v17 = vpop.eup %4996  ;;  %10600 = vst [vmem:[#allocation69_spill] sm:$0xff] %v8910_v40 }
 0x824   :  { %5004 = vrcp.f32 %v3707_v23  ;;  %v8867_v60 = vmul.f32 %v4997_v17, %v4995_v57  ;;  %v4999_v36 = vpop.eup %4998  ;;  %v8913_v57 = vld [vmem:[#allocation10 + $0x168] sm:$0xff]  ;;  %v8916_v23 = vld [vmem:[#allocation10 + $0x178] sm:$0xff] }
 0x825   :  { %v5001_v32 = vpop.eup %5000  ;;  %10601 = vst [vmem:[#allocation70_spill] sm:$0xff] %v8913_v57  ;;  %10602 = vst [vmem:[#allocation71_spill] sm:$0xff] %v8916_v23 }
 0x826   :  { %10595 = vst [vmem:[#allocation64_spill] sm:$0xff] %v8867_v60  ;;  %3787 = vmatmul.mubr.f32.vlgmr.msra.gmra.mxu0 %v8867_v60  ;;  %3858 = vmatmul.mubr.f32.vlgmr.msra.gmra.mxu1 %v8867_v60  ;;  %v8919_v60 = vld [vmem:[#allocation10 + $0x160] sm:$0xff] }
 0x827   :  { %3865 = vmatpush1.msra.mxu0 %v8871_v52  ;;  %3936 = vmatpush1.msra.mxu1 %v8874_v59  ;;  %10603 = vst [vmem:[#allocation72_spill] sm:$0xff] %v8919_v60 }
 0x828   :  { %3866 = vmatprep.subr.mxu0 %v8877_v58  ;;  %3937 = vmatprep.subr.mxu1 %v8880_v4 }
 0x829   :  { %3867 = vmatpush1.msra.mxu0 %v8883_v63  ;;  %3938 = vmatpush1.msra.mxu1 %v8886_v62 }
 0x82a   :  { %3868 = vmatprep.subr.mxu0 %v8889_v51  ;;  %3939 = vmatprep.subr.mxu1 %v8892_v3 }
 0x82b   :  { %3869 = vmatpush1.msra.mxu0 %v8895_v42  ;;  %3940 = vmatpush1.msra.mxu1 %v8898_v19  ;;  %v8931_v19 = vld [vmem:[#allocation10 + $0x140] sm:$0xff] }
 0x82c   :  { %3870 = vmatprep.subr.mxu0 %v8901_v47  ;;  %3941 = vmatprep.subr.mxu1 %v8904_v53  ;;  %v8922_v53 = vld [vmem:[#allocation10 + $0x170] sm:$0xff]  ;;  %v8928_v47 = vld [vmem:[#allocation10 + $0x158] sm:$0xff]  ;;  %10606 = vst [vmem:[#allocation75_spill] sm:$0xff] %v8931_v19 }
 0x82d   :  { %3871 = vmatpush1.msra.mxu0 %v8907_v46  ;;  %3942 = vmatpush1.msra.mxu1 %v8910_v40  ;;  %v8925_v40 = vld [vmem:[#allocation10 + $0x148] sm:$0xff]  ;;  %10605 = vst [vmem:[#allocation74_spill] sm:$0xff] %v8928_v47 }
 0x82e   :  { %3872 = vmatprep.subr.mxu0 %v8913_v57  ;;  %3943 = vmatprep.subr.mxu1 %v8916_v23  ;;  %10604 = vst [vmem:[#allocation73_spill] sm:$0xff] %v8925_v40  ;;  %v3714_v23 = vadd.f32 1.0, %v5001_v32  ;;  %v8947_v32 = vld [vmem:[#allocation10 + $0x130] sm:$0xff] }
 0x82f   :  { %v5003_v17 = vpop.eup %5002  ;;  %3873 = vmatpush1.msra.mxu0 %v8919_v60  ;;  %3944 = vmatpush1.msra.mxu1 %v8922_v53  ;;  %v8934_v60 = vld [vmem:[#allocation10 + $0x150] sm:$0xff]  ;;  %10609 = vst [vmem:[#allocation162_spill] sm:$0xff] %v8947_v32 }
 0x830   :  { %v3718_v46 = vmul.f32 %v5003_v17, %v4999_v36  ;;  %3874 = vmatprep.subr.mxu0 %v8925_v40  ;;  %3945 = vmatprep.subr.mxu1 %v8928_v47  ;;  %10607 = vst [vmem:[#allocation149_spill] sm:$0xff] %v8934_v60  ;;  %v8938_v17 = vld [vmem:[#allocation10 + $0x128] sm:$0xff]  ;;  %v8941_v40 = vld [vmem:[#allocation10 + $0x138] sm:$0xff]  ;;  %v8944_v47 = vld [vmem:[#allocation10 + $0x120] sm:$0xff]  ;;  %5006 = vrcp.f32 %v3714_v23 }
 0x831   :  { %v5005_v57 = vpop.eup %5004  ;;  %3875 = vmatpush1.msra.mxu0 %v8931_v19  ;;  %3946 = vmatpush1.msra.mxu1 %v8934_v60  ;;  %10608 = vst [vmem:[#allocation150_spill] sm:$0xff] %v8944_v47  ;;  %v8952_v60 = vld [vmem:[#allocation10 + $0x108] sm:$0xff]  ;;  %v8974_v23 = vld [vmem:[#allocation10 + $0xf0] sm:$0xff] }
 0x832   :  { %v3717_v36 = vmul.f32 %v5005_v57, %v8478_v61  ;;  %3876 = vmatprep.subr.mxu0 %v8938_v17  ;;  %3947 = vmatprep.subr.mxu1 %v8941_v40  ;;  %10610 = vst [vmem:[#allocation161_spill] sm:$0xff] %v8952_v60  ;;  %v8955_v61 = vld [vmem:[#allocation10 + $0x118] sm:$0xff]  ;;  %v8958_v57 = vld [vmem:[#allocation10 + $0x100] sm:$0xff]  ;;  %10617 = vst [vmem:[#allocation146_spill] sm:$0xff] %v8974_v23 }
 0x833   :  { %3877 = vmatpush1.msra.mxu0 %v8944_v47  ;;  %3948 = vmatpush1.msra.mxu1 %v8947_v32  ;;  %10611 = vst [vmem:[#allocation77_spill] sm:$0xff] %v8955_v61  ;;  %10612 = vst [vmem:[#allocation141_spill] sm:$0xff] %v8958_v57  ;;  %v8961_v47 = vld [vmem:[#allocation10 + $0x110] sm:$0xff]  ;;  %v8964_v32 = vld [vmem:[#allocation10 + $0xe8] sm:$0xff] }
 0x834   :  { %v8950_v19 = vadd.f32 %v3718_v46, %v3717_v36  ;;  %3878 = vmatprep.subr.mxu0 %v8952_v60  ;;  %3949 = vmatprep.subr.mxu1 %v8955_v61  ;;  %10613 = vst [vmem:[#allocation142_spill] sm:$0xff] %v8961_v47  ;;  %10614 = vst [vmem:[#allocation78_spill] sm:$0xff] %v8964_v32  ;;  %v8967_v46 = vld [vmem:[#allocation10 + $0xf8] sm:$0xff]  ;;  %v8971_v36 = vld [vmem:[#allocation10 + $0xe0] sm:$0xff] }
 0x835   :  { %3879 = vmatpush1.msra.mxu0 %v8958_v57  ;;  %3950 = vmatpush1.msra.mxu1 %v8961_v47  ;;  %10615 = vst [vmem:[#allocation79_spill] sm:$0xff] %v8967_v46  ;;  %10616 = vst [vmem:[#allocation145_spill] sm:$0xff] %v8971_v36  ;;  %v8977_v57 = vld [vmem:[#allocation10 + $0xc8] sm:$0xff]  ;;  %v8980_v47 = vld [vmem:[#allocation10 + $0xd8] sm:$0xff] }
 0x836   :  { %3880 = vmatprep.subr.mxu0 %v8964_v32  ;;  %3951 = vmatprep.subr.mxu1 %v8967_v46  ;;  %5008 = vtanh.f32 %v8950_v19  ;;  %10618 = vst [vmem:[#allocation158_spill] sm:$0xff] %v8977_v57  ;;  %10619 = vst [vmem:[#allocation157_spill] sm:$0xff] %v8980_v47  ;;  %v8983_v32 = vld [vmem:[#allocation10 + $0xc0] sm:$0xff]  ;;  %v8986_v46 = vld [vmem:[#allocation10 + $0xd0] sm:$0xff] }
 0x837   :  { %3881 = vmatpush1.msra.mxu0 %v8971_v36  ;;  %3952 = vmatpush1.msra.mxu1 %v8974_v23  ;;  %10620 = vst [vmem:[#allocation81_spill] sm:$0xff] %v8983_v32  ;;  %10621 = vst [vmem:[#allocation82_spill] sm:$0xff] %v8986_v46  ;;  %v8989_v36 = vld [vmem:[#allocation10 + $0xa8] sm:$0xff]  ;;  %v8992_v23 = vld [vmem:[#allocation10 + $0xb8] sm:$0xff] }
 0x838   :  { %3882 = vmatprep.subr.mxu0 %v8977_v57  ;;  %3953 = vmatprep.subr.mxu1 %v8980_v47  ;;  %10622 = vst [vmem:[#allocation83_spill] sm:$0xff] %v8989_v36  ;;  %10623 = vst [vmem:[#allocation84_spill] sm:$0xff] %v8992_v23  ;;  %v8995_v57 = vld [vmem:[#allocation10 + $0xa0] sm:$0xff]  ;;  %v8998_v47 = vld [vmem:[#allocation10 + $0xb0] sm:$0xff] }
 0x839   :  { %3883 = vmatpush1.msra.mxu0 %v8983_v32  ;;  %3954 = vmatpush1.msra.mxu1 %v8986_v46  ;;  %10624 = vst [vmem:[#allocation85_spill] sm:$0xff] %v8995_v57  ;;  %10625 = vst [vmem:[#allocation86_spill] sm:$0xff] %v8998_v47  ;;  %v9001_v32 = vld [vmem:[#allocation10 + $0x88] sm:$0xff]  ;;  %v9004_v46 = vld [vmem:[#allocation10 + $0x98] sm:$0xff] }
 0x83a   :  { %3884 = vmatprep.subr.mxu0 %v8989_v36  ;;  %3955 = vmatprep.subr.mxu1 %v8992_v23  ;;  %10626 = vst [vmem:[#allocation87_spill] sm:$0xff] %v9001_v32  ;;  %10627 = vst [vmem:[#allocation88_spill] sm:$0xff] %v9004_v46  ;;  %v9007_v36 = vld [vmem:[#allocation10 + $0x80] sm:$0xff]  ;;  %v9010_v23 = vld [vmem:[#allocation10 + $0x90] sm:$0xff] }
 0x83b   :  { %3885 = vmatpush1.msra.mxu0 %v8995_v57  ;;  %3956 = vmatpush1.msra.mxu1 %v8998_v47  ;;  %10628 = vst [vmem:[#allocation89_spill] sm:$0xff] %v9007_v36  ;;  %10629 = vst [vmem:[#allocation90_spill] sm:$0xff] %v9010_v23  ;;  %v9013_v57 = vld [vmem:[#allocation10 + $0x68] sm:$0xff]  ;;  %v9016_v47 = vld [vmem:[#allocation10 + $0x78] sm:$0xff] }
 0x83c   :  { %3886 = vmatprep.subr.mxu0 %v9001_v32  ;;  %3957 = vmatprep.subr.mxu1 %v9004_v46  ;;  %10630 = vst [vmem:[#allocation91_spill] sm:$0xff] %v9013_v57  ;;  %10631 = vst [vmem:[#allocation92_spill] sm:$0xff] %v9016_v47  ;;  %v9019_v32 = vld [vmem:[#allocation10 + $0x60] sm:$0xff]  ;;  %v9022_v46 = vld [vmem:[#allocation10 + $0x70] sm:$0xff] }
 0x83d   :  { %3887 = vmatpush1.msra.mxu0 %v9007_v36  ;;  %3958 = vmatpush1.msra.mxu1 %v9010_v23  ;;  %10632 = vst [vmem:[#allocation93_spill] sm:$0xff] %v9019_v32  ;;  %10633 = vst [vmem:[#allocation94_spill] sm:$0xff] %v9022_v46  ;;  %v9025_v36 = vld [vmem:[#allocation10 + $0x48] sm:$0xff]  ;;  %v9028_v23 = vld [vmem:[#allocation10 + $0x58] sm:$0xff] }
 0x83e   :  { %3888 = vmatprep.subr.mxu0 %v9013_v57  ;;  %3959 = vmatprep.subr.mxu1 %v9016_v47  ;;  %10634 = vst [vmem:[#allocation95_spill] sm:$0xff] %v9025_v36  ;;  %10635 = vst [vmem:[#allocation96_spill] sm:$0xff] %v9028_v23  ;;  %v9031_v57 = vld [vmem:[#allocation10 + $0x40] sm:$0xff]  ;;  %v9034_v47 = vld [vmem:[#allocation10 + $0x50] sm:$0xff] }
 0x83f   :  { %3889 = vmatpush1.msra.mxu0 %v9019_v32  ;;  %3960 = vmatpush1.msra.mxu1 %v9022_v46  ;;  %10636 = vst [vmem:[#allocation97_spill] sm:$0xff] %v9031_v57  ;;  %10637 = vst [vmem:[#allocation98_spill] sm:$0xff] %v9034_v47  ;;  %v5007_v32 = vpop.eup %5006  ;;  %v9037_v61 = vld [vmem:[#allocation10 + $0x28] sm:$0xff]  ;;  %v9040_v46 = vld [vmem:[#allocation10 + $0x38] sm:$0xff] }
 0x840   :  { %3890 = vmatprep.subr.mxu0 %v9025_v36  ;;  %3961 = vmatprep.subr.mxu1 %v9028_v23  ;;  %10638 = vst [vmem:[#allocation99_spill] sm:$0xff] %v9037_v61  ;;  %10639 = vst [vmem:[#allocation100_spill] sm:$0xff] %v9040_v46  ;;  %v9043_v60 = vld [vmem:[#allocation10 + $0x20] sm:$0xff]  ;;  %v9046_v23 = vld [vmem:[#allocation10 + $0x30] sm:$0xff] }
 0x841   :  { %3891 = vmatpush1.msra.mxu0 %v9031_v57  ;;  %3962 = vmatpush1.msra.mxu1 %v9034_v47  ;;  %10640 = vst [vmem:[#allocation101_spill] sm:$0xff] %v9043_v60  ;;  %v9049_v57 = vld [vmem:[#allocation10 + $0x8] sm:$0xff]  ;;  %v9052_v47 = vld [vmem:[#allocation10 + $0x18] sm:$0xff] }
 0x842   :  { %3892 = vmatprep.subr.mxu0 %v9037_v61  ;;  %3963 = vmatprep.subr.mxu1 %v9040_v46  ;;  %10641 = vst [vmem:[#allocation102_spill] sm:$0xff] %v9049_v57  ;;  %10642 = vst [vmem:[#allocation103_spill] sm:$0xff] %v9052_v47  ;;  %v9057_v46 = vld [vmem:[#allocation10] sm:$0xff] }
 0x843   :  { %v5009_v36 = vpop.eup %5008  ;;  %3893 = vmatpush1.msra.mxu0 %v9043_v60  ;;  %3964 = vmatpush1.msra.mxu1 %v9046_v23  ;;  %10643 = vst [vmem:[#allocation104_spill] sm:$0xff] %v9057_v46  ;;  %v9061_v60 = vld [vmem:[#allocation10 + $0x10] sm:$0xff] }
 0x844   :  { %3894 = vmatprep.subr.mxu0 %v9049_v57  ;;  %3965 = vmatprep.subr.mxu1 %v9052_v47  ;;  %v9055_v61 = vmul.f32 %v5009_v36, %v5007_v32  ;;  %10644 = vst [vmem:[#allocation105_spill] sm:$0xff] %v9061_v60  ;;  %v5634_v57 = vld [vmem:[#allocation8 + $0x1e8] sm:$0xff]  ;;  %v5635_v32 = vld [vmem:[#allocation8 + $0x1e0] sm:$0xff] }
 0x845   :  { %3895 = vmatpush1.msra.mxu0 %v9057_v46  ;;  %3928 = vmatprep.mubr.f32.mxu0 %v9822_v37  ;;  %v5636_v36 = vld [vmem:[#allocation8 + $0x1c8] sm:$0xff]  ;;  %v5637_v46 = vld [vmem:[#allocation8 + $0x1c0] sm:$0xff] }
 0x846   :  { %3966 = vmatpush1.msra.mxu1 %v9061_v60  ;;  %3999 = vmatprep.mubr.f32.mxu1 %v9822_v37  ;;  %v5638_v60 = vld [vmem:[#allocation8 + $0x1a8] sm:$0xff]  ;;  %v5639_v47 = vld [vmem:[#allocation8 + $0x1a0] sm:$0xff] }
 0x847   :  { %3929 = vmatmul.mubr.f32.vlgmr.msra.gmra.mxu0 %v9055_v61  ;;  %4000 = vmatmul.mubr.f32.vlgmr.msra.gmra.mxu1 %v9055_v61 }
 0x848   :  { %4034 = vmatprep.subr.mxu0 %v5634_v57  ;;  %4105 = vmatprep.subr.mxu1 %v8524_v49  ;;  %v5640_v49 = vld [vmem:[#allocation8 + $0x188] sm:$0xff]  ;;  %v10659_v57 = vld [vmem:[#allocation143_spill] sm:$0xff] }
 0x849   :  { %4035 = vmatpush1.msra.mxu0 %v5635_v32  ;;  %4106 = vmatpush1.msra.mxu1 %v8528_v13  ;;  %v5641_v13 = vld [vmem:[#allocation8 + $0x180] sm:$0xff] }
 0x84a   :  { %4036 = vmatprep.subr.mxu0 %v5636_v36  ;;  %4107 = vmatprep.subr.mxu1 %v8532_v55  ;;  %v5642_v55 = vld [vmem:[#allocation8 + $0x168] sm:$0xff]  ;;  %v10661_v32 = vld [vmem:[#allocation156_spill] sm:$0xff]  ;;  %v10662_v36 = vld [vmem:[#allocation155_spill] sm:$0xff] }
 0x84b   :  { %4037 = vmatpush1.msra.mxu0 %v5637_v46  ;;  %4108 = vmatpush1.msra.mxu1 %v8536_v56  ;;  %v5643_v56 = vld [vmem:[#allocation8 + $0x160] sm:$0xff] }
 0x84c   :  { %4038 = vmatprep.subr.mxu0 %v5638_v60  ;;  %4109 = vmatprep.subr.mxu1 %v8540_v18  ;;  %v5644_v18 = vld [vmem:[#allocation8 + $0x148] sm:$0xff]  ;;  %v10656_v60 = vld [vmem:[#allocation159_spill] sm:$0xff]  ;;  %v10660_v46 = vld [vmem:[#allocation144_spill] sm:$0xff] }
 0x84d   :  { %4039 = vmatpush1.msra.mxu0 %v5639_v47  ;;  %4110 = vmatpush1.msra.mxu1 %v8544_v50  ;;  %v5645_v50 = vld [vmem:[#allocation8 + $0x140] sm:$0xff]  ;;  %v10657_v47 = vld [vmem:[#allocation139_spill] sm:$0xff] }
 0x84e   :  { %4040 = vmatprep.subr.mxu0 %v5640_v49  ;;  %4111 = vmatprep.subr.mxu1 %v8548_v48  ;;  %v5646_v48 = vld [vmem:[#allocation8 + $0x128] sm:$0xff] }
 0x84f   :  { %4041 = vmatpush1.msra.mxu0 %v5641_v13  ;;  %4112 = vmatpush1.msra.mxu1 %v8552_v30  ;;  %v5647_v30 = vld [vmem:[#allocation8 + $0x120] sm:$0xff]  ;;  %v10663_v49 = vld [vmem:[#allocation21_spill] sm:$0xff]  ;;  %v10664_v13 = vld [vmem:[#allocation22_spill] sm:$0xff] }
 0x850   :  { %4042 = vmatprep.subr.mxu0 %v5642_v55  ;;  %4113 = vmatprep.subr.mxu1 %v8556_v34  ;;  %v5648_v34 = vld [vmem:[#allocation8 + $0x108] sm:$0xff]  ;;  %v10665_v55 = vld [vmem:[#allocation23_spill] sm:$0xff] }
 0x851   :  { %4043 = vmatpush1.msra.mxu0 %v5643_v56  ;;  %4114 = vmatpush1.msra.mxu1 %v8560_v16  ;;  %v5649_v16 = vld [vmem:[#allocation8 + $0x100] sm:$0xff] }
 0x852   :  { %4044 = vmatprep.subr.mxu0 %v5644_v18  ;;  %4115 = vmatprep.subr.mxu1 %v8564_v9  ;;  %v5650_v9 = vld [vmem:[#allocation8 + $0xe8] sm:$0xff]  ;;  %v10666_v56 = vld [vmem:[#allocation24_spill] sm:$0xff] }
 0x853   :  { %4045 = vmatpush1.msra.mxu0 %v5645_v50  ;;  %4116 = vmatpush1.msra.mxu1 %v8568_v28  ;;  %v5651_v28 = vld [vmem:[#allocation8 + $0xe0] sm:$0xff]  ;;  %v10667_v18 = vld [vmem:[#allocation25_spill] sm:$0xff]  ;;  %v10668_v50 = vld [vmem:[#allocation26_spill] sm:$0xff] }
 0x854   :  { %4046 = vmatprep.subr.mxu0 %v5646_v48  ;;  %4117 = vmatprep.subr.mxu1 %v8572_v7  ;;  %v5652_v7 = vld [vmem:[#allocation8 + $0xc8] sm:$0xff]  ;;  %v10669_v48 = vld [vmem:[#allocation27_spill] sm:$0xff] }
 0x855   :  { %4047 = vmatpush1.msra.mxu0 %v5647_v30  ;;  %4118 = vmatpush1.msra.mxu1 %v8576_v21  ;;  %v5653_v21 = vld [vmem:[#allocation8 + $0xc0] sm:$0xff] }
 0x856   :  { %4048 = vmatprep.subr.mxu0 %v5648_v34  ;;  %4119 = vmatprep.subr.mxu1 %v8580_v31  ;;  %v5654_v31 = vld [vmem:[#allocation8 + $0xa8] sm:$0xff]  ;;  %v10670_v30 = vld [vmem:[#allocation28_spill] sm:$0xff] }
 0x857   :  { %4049 = vmatpush1.msra.mxu0 %v5649_v16  ;;  %4120 = vmatpush1.msra.mxu1 %v8584_v14  ;;  %v5655_v14 = vld [vmem:[#allocation8 + $0xa0] sm:$0xff]  ;;  %v10671_v34 = vld [vmem:[#allocation29_spill] sm:$0xff]  ;;  %v10672_v16 = vld [vmem:[#allocation30_spill] sm:$0xff] }
 0x858   :  { %4050 = vmatprep.subr.mxu0 %v5650_v9  ;;  %4121 = vmatprep.subr.mxu1 %v8588_v10  ;;  %v5656_v10 = vld [vmem:[#allocation8 + $0x88] sm:$0xff]  ;;  %v10673_v9 = vld [vmem:[#allocation31_spill] sm:$0xff] }
 0x859   :  { %4051 = vmatpush1.msra.mxu0 %v5651_v28  ;;  %4122 = vmatpush1.msra.mxu1 %v8592_v6  ;;  %v5657_v6 = vld [vmem:[#allocation8 + $0x80] sm:$0xff] }
 0x85a   :  { %4052 = vmatprep.subr.mxu0 %v5652_v7  ;;  %4123 = vmatprep.subr.mxu1 %v8596_v0  ;;  %v5658_v0 = vld [vmem:[#allocation8 + $0x68] sm:$0xff]  ;;  %v10674_v28 = vld [vmem:[#allocation32_spill] sm:$0xff] }
 0x85b   :  { %4053 = vmatpush1.msra.mxu0 %v5653_v21  ;;  %4124 = vmatpush1.msra.mxu1 %v8600_v12  ;;  %v5659_v12 = vld [vmem:[#allocation8 + $0x60] sm:$0xff]  ;;  %v10675_v7 = vld [vmem:[#allocation33_spill] sm:$0xff]  ;;  %v10676_v21 = vld [vmem:[#allocation34_spill] sm:$0xff] }
 0x85c   :  { %4054 = vmatprep.subr.mxu0 %v5654_v31  ;;  %4125 = vmatprep.subr.mxu1 %v8604_v22  ;;  %v5660_v22 = vld [vmem:[#allocation8 + $0x48] sm:$0xff]  ;;  %v10677_v31 = vld [vmem:[#allocation35_spill] sm:$0xff] }
 0x85d   :  { %4055 = vmatpush1.msra.mxu0 %v5655_v14  ;;  %4126 = vmatpush1.msra.mxu1 %v8608_v33  ;;  %v5661_v33 = vld [vmem:[#allocation8 + $0x40] sm:$0xff] }
 0x85e   :  { %4056 = vmatprep.subr.mxu0 %v5656_v10  ;;  %4127 = vmatprep.subr.mxu1 %v8612_v11  ;;  %v5662_v11 = vld [vmem:[#allocation8 + $0x28] sm:$0xff]  ;;  %v10678_v14 = vld [vmem:[#allocation36_spill] sm:$0xff] }
 0x85f   :  { %4057 = vmatpush1.msra.mxu0 %v5657_v6  ;;  %4128 = vmatpush1.msra.mxu1 %v8616_v2  ;;  %v5663_v2 = vld [vmem:[#allocation8 + $0x20] sm:$0xff]  ;;  %v10679_v10 = vld [vmem:[#allocation37_spill] sm:$0xff]  ;;  %v10680_v6 = vld [vmem:[#allocation38_spill] sm:$0xff] }
 0x860   :  { %4058 = vmatprep.subr.mxu0 %v5658_v0  ;;  %4129 = vmatprep.subr.mxu1 %v8620_v26  ;;  %v5664_v26 = vld [vmem:[#allocation8 + $0x8] sm:$0xff]  ;;  %v10681_v0 = vld [vmem:[#allocation39_spill] sm:$0xff] }
 0x861   :  { %4059 = vmatpush1.msra.mxu0 %v5659_v12  ;;  %4130 = vmatpush1.msra.mxu1 %v8624_v1  ;;  %v5665_v1 = vld [vmem:[#allocation8] sm:$0xff] }
 0x862   :  { %4060 = vmatprep.subr.mxu0 %v5660_v22  ;;  %4131 = vmatprep.subr.mxu1 %v8628_v38  ;;  %v10645_v38 = vld [vmem:[#allocation130_spill] sm:$0xff]  ;;  %v10682_v12 = vld [vmem:[#allocation40_spill] sm:$0xff]  ;;  %v10683_v22 = vld [vmem:[#allocation41_spill] sm:$0xff] }
 0x863   :  { %4061 = vmatpush1.msra.mxu0 %v5661_v33  ;;  %4132 = vmatpush1.msra.mxu1 %v8632_v25  ;;  %v10646_v25 = vld [vmem:[#allocation131_spill] sm:$0xff]  ;;  %v10684_v33 = vld [vmem:[#allocation42_spill] sm:$0xff] }
 0x864   :  { %4062 = vmatprep.subr.mxu0 %v5662_v11  ;;  %4133 = vmatprep.subr.mxu1 %v8636_v24  ;;  %v10647_v24 = vld [vmem:[#allocation132_spill] sm:$0xff]  ;;  %v10685_v11 = vld [vmem:[#allocation43_spill] sm:$0xff] }
 0x865   :  { %4063 = vmatpush1.msra.mxu0 %v5663_v2  ;;  %4134 = vmatpush1.msra.mxu1 %v8640_v39  ;;  %v10648_v39 = vld [vmem:[#allocation133_spill] sm:$0xff]  ;;  %v10686_v2 = vld [vmem:[#allocation44_spill] sm:$0xff] }
 0x866   :  { %4064 = vmatprep.subr.mxu0 %v5664_v26  ;;  %4135 = vmatprep.subr.mxu1 %v8644_v5  ;;  %v10649_v5 = vld [vmem:[#allocation134_spill] sm:$0xff]  ;;  %v10687_v26 = vld [vmem:[#allocation45_spill] sm:$0xff] }
 0x867   :  { %4065 = vmatpush1.msra.mxu0 %v5665_v1  ;;  %4098 = vmatprep.mubr.f32.mxu0 %v9822_v37  ;;  %v10688_v1 = vld [vmem:[#allocation46_spill] sm:$0xff] }
 0x868   :  { %4136 = vmatpush1.msra.mxu1 %v8649_v29  ;;  %4169 = vmatprep.mubr.f32.mxu1 %v9822_v37  ;;  %v10650_v29 = vld [vmem:[#allocation135_spill] sm:$0xff] }
 0x869   :  { %4099 = vmatmul.mubr.f32.vlgmr.msra.gmra.mxu0 %v9055_v61  ;;  %4170 = vmatmul.mubr.f32.vlgmr.msra.gmra.mxu1 %v9055_v61  ;;  %v10658_v61 = vld [vmem:[#allocation140_spill] sm:$0xff] }
 0x86a   :  { %4204 = vmatprep.subr.mxu0 %v8655_v45  ;;  %4275 = vmatprep.subr.mxu1 %v8658_v43  ;;  %v10651_v45 = vld [vmem:[#allocation136_spill] sm:$0xff]  ;;  %v10652_v43 = vld [vmem:[#allocation137_spill] sm:$0xff] }
 0x86b   :  { %4205 = vmatpush1.msra.mxu0 %v8661_v44  ;;  %4276 = vmatpush1.msra.mxu1 %v8664_v41  ;;  %v10653_v44 = vld [vmem:[#allocation147_spill] sm:$0xff]  ;;  %v10654_v41 = vld [vmem:[#allocation148_spill] sm:$0xff] }
 0x86c   :  { %4206 = vmatprep.subr.mxu0 %v8667_v54  ;;  %4277 = vmatprep.subr.mxu1 %v10645_v38  ;;  %v10655_v54 = vld [vmem:[#allocation160_spill] sm:$0xff]  ;;  %v10689_v38 = vld [vmem:[#allocation47_spill] sm:$0xff] }
 0x86d   :  { %4207 = vmatpush1.msra.mxu0 %v10646_v25  ;;  %4278 = vmatpush1.msra.mxu1 %v10647_v24  ;;  %v10690_v25 = vld [vmem:[#allocation48_spill] sm:$0xff]  ;;  %v10691_v24 = vld [vmem:[#allocation49_spill] sm:$0xff] }
 0x86e   :  { %4208 = vmatprep.subr.mxu0 %v10648_v39  ;;  %4279 = vmatprep.subr.mxu1 %v10649_v5  ;;  %v10692_v39 = vld [vmem:[#allocation50_spill] sm:$0xff]  ;;  %v10693_v5 = vld [vmem:[#allocation51_spill] sm:$0xff] }
 0x86f   :  { %4209 = vmatpush1.msra.mxu0 %v10650_v29  ;;  %4280 = vmatpush1.msra.mxu1 %v10651_v45  ;;  %v10694_v29 = vld [vmem:[#allocation52_spill] sm:$0xff]  ;;  %v10695_v45 = vld [vmem:[#allocation53_spill] sm:$0xff] }
 0x870   :  { %4210 = vmatprep.subr.mxu0 %v10652_v43  ;;  %4281 = vmatprep.subr.mxu1 %v10653_v44  ;;  %v10696_v43 = vld [vmem:[#allocation54_spill] sm:$0xff]  ;;  %v10697_v44 = vld [vmem:[#allocation55_spill] sm:$0xff] }
 0x871   :  { %4211 = vmatpush1.msra.mxu0 %v10654_v41  ;;  %4282 = vmatpush1.msra.mxu1 %v10655_v54  ;;  %v10698_v41 = vld [vmem:[#allocation56_spill] sm:$0xff]  ;;  %v10699_v54 = vld [vmem:[#allocation57_spill] sm:$0xff] }
 0x872   :  { %4212 = vmatprep.subr.mxu0 %v10656_v60  ;;  %4283 = vmatprep.subr.mxu1 %v10657_v47  ;;  %v10700_v60 = vld [vmem:[#allocation58_spill] sm:$0xff]  ;;  %v10701_v47 = vld [vmem:[#allocation59_spill] sm:$0xff] }
 0x873   :  { %4213 = vmatpush1.msra.mxu0 %v10658_v61  ;;  %4284 = vmatpush1.msra.mxu1 %v10659_v57  ;;  %v10702_v61 = vld [vmem:[#allocation60_spill] sm:$0xff]  ;;  %v10703_v57 = vld [vmem:[#allocation61_spill] sm:$0xff] }
 0x874   :  { %4214 = vmatprep.subr.mxu0 %v10660_v46  ;;  %4285 = vmatprep.subr.mxu1 %v10661_v32  ;;  %v10704_v46 = vld [vmem:[#allocation62_spill] sm:$0xff]  ;;  %v10705_v32 = vld [vmem:[#allocation63_spill] sm:$0xff] }
 0x875   :  { %4215 = vmatpush1.msra.mxu0 %v10662_v36  ;;  %4286 = vmatpush1.msra.mxu1 %v10663_v49 }
 0x876   :  { %4216 = vmatprep.subr.mxu0 %v10664_v13  ;;  %4287 = vmatprep.subr.mxu1 %v10665_v55 }
 0x877   :  { %4217 = vmatpush1.msra.mxu0 %v10666_v56  ;;  %4288 = vmatpush1.msra.mxu1 %v10667_v18 }
 0x878   :  { %4218 = vmatprep.subr.mxu0 %v10668_v50  ;;  %4289 = vmatprep.subr.mxu1 %v10669_v48 }
 0x879   :  { %4219 = vmatpush1.msra.mxu0 %v10670_v30  ;;  %4290 = vmatpush1.msra.mxu1 %v10671_v34 }
 0x87a   :  { %4220 = vmatprep.subr.mxu0 %v10672_v16  ;;  %4291 = vmatprep.subr.mxu1 %v10673_v9 }
 0x87b   :  { %4221 = vmatpush1.msra.mxu0 %v10674_v28  ;;  %4292 = vmatpush1.msra.mxu1 %v10675_v7 }
 0x87c   :  { %4222 = vmatprep.subr.mxu0 %v10676_v21  ;;  %4293 = vmatprep.subr.mxu1 %v10677_v31 }
 0x87d   :  { %4223 = vmatpush1.msra.mxu0 %v10678_v14  ;;  %4294 = vmatpush1.msra.mxu1 %v10679_v10 }
 0x87e   :  { %4224 = vmatprep.subr.mxu0 %v10680_v6  ;;  %4295 = vmatprep.subr.mxu1 %v10681_v0 }
 0x87f   :  { %4225 = vmatpush1.msra.mxu0 %v10682_v12  ;;  %4296 = vmatpush1.msra.mxu1 %v10683_v22 }
 0x880   :  { %4226 = vmatprep.subr.mxu0 %v10684_v33  ;;  %4297 = vmatprep.subr.mxu1 %v10685_v11 }
 0x881   :  { %4227 = vmatpush1.msra.mxu0 %v10686_v2  ;;  %4298 = vmatpush1.msra.mxu1 %v10687_v26  ;;  %v10706_v26 = vld [vmem:[#allocation153_spill] sm:$0xff] }
 0x882   :  { %4228 = vmatprep.subr.mxu0 %v10688_v1  ;;  %4299 = vmatprep.subr.mxu1 %v10689_v38 }
 0x883   :  { %4229 = vmatpush1.msra.mxu0 %v10690_v25  ;;  %4300 = vmatpush1.msra.mxu1 %v10691_v24 }
 0x884   :  { %4230 = vmatprep.subr.mxu0 %v10692_v39  ;;  %4301 = vmatprep.subr.mxu1 %v10693_v5  ;;  %v10707_v5 = vld [vmem:[#allocation154_spill] sm:$0xff] }
 0x885   :  { %4231 = vmatpush1.msra.mxu0 %v10694_v29  ;;  %4302 = vmatpush1.msra.mxu1 %v10695_v45 }
 0x886   :  { %4232 = vmatprep.subr.mxu0 %v10696_v43  ;;  %4303 = vmatprep.subr.mxu1 %v10697_v44 }
 0x887   :  { %4233 = vmatpush1.msra.mxu0 %v10698_v41  ;;  %4304 = vmatpush1.msra.mxu1 %v10699_v54 }
 0x888   :  { %4234 = vmatprep.subr.mxu0 %v10700_v60  ;;  %4305 = vmatprep.subr.mxu1 %v10701_v47 }
 0x889   :  { %4235 = vmatpush1.msra.mxu0 %v10702_v61  ;;  %4306 = vmatpush1.msra.mxu1 %v10703_v57  ;;  %v10708_v57 = vld [vmem:[#allocation166_spill] sm:$0xff] }
 0x88a   :  { %4268 = vmatprep.mubr.f32.mxu0 %v9822_v37  ;;  %4339 = vmatprep.mubr.f32.mxu1 %v9822_v37 }
 0x88b   :  { %4346 = vmatprep.subr.mxu0 %v10704_v46  ;;  %4417 = vmatprep.subr.mxu1 %v10705_v32  ;;  %v10709_v32 = vld [vmem:[#allocation165_spill] sm:$0xff] }
 0x8e6   :  { %v3788_v36 = vpop.f32.mrf.mxu0  ;;  %v3859_v49 = vpop.f32.mrf.mxu1 }
 0x8e8   :  { %v3790_v13 = vpop.f32.mrf.mxu0  ;;  %v3861_v56 = vpop.f32.mrf.mxu1 }
 0x907   :  { %v3930_v55 = vpop.f32.mrf.mxu0  ;;  %v4001_v30 = vpop.f32.mrf.mxu1 }
 0x908   :  { %v3931_v18 = vadd.f32 %v3930_v55, %v3788_v36  ;;  %v4002_v14 = vadd.f32 %v4001_v30, %v3859_v49  ;;  %v10710_v30 = vld [vmem:[#allocation65_spill] sm:$0xff] }
 0x909   :  { %v3932_v50 = vpop.f32.mrf.mxu0  ;;  %v4003_v7 = vpop.f32.mrf.mxu1 }
 0x90a   :  { %v4006_v48 = vadd.f32 %v3931_v18, %v6758_v15  ;;  %v3933_v34 = vadd.f32 %v3932_v50, %v3790_v13  ;;  %v4004_v21 = vadd.f32 %v4003_v7, %v3861_v56  ;;  %v4008_v0 = vadd.f32 %v4002_v14, %v6773_v8  ;;  %v10721_v14 = vld [vmem:[#allocation149_spill] sm:$0xff] }
 0x90c   :  { %v4711_v16 = vmul.f32 -1.442695, %v4006_v48  ;;  %v4007_v9 = vadd.f32 %v3933_v34, %v6762_v35  ;;  %v4009_v31 = vadd.f32 %v4004_v21, %v6768_v20  ;;  %v10711_v34 = vld [vmem:[#allocation66_spill] sm:$0xff] }
 0x90e   :  { %5010 = vpow2.f32 %v4711_v16  ;;  %v4712_v28 = vmul.f32 -1.442695, %v4007_v9  ;;  %v4713_v10 = vmul.f32 -1.442695, %v4009_v31  ;;  %v10715_v16 = vld [vmem:[#allocation70_spill] sm:$0xff]  ;;  %v10718_v9 = vld [vmem:[#allocation73_spill] sm:$0xff] }
 0x90f   :  { %v10720_v31 = vld [vmem:[#allocation75_spill] sm:$0xff] }
 0x910   :  { %5012 = vpow2.f32 %v4712_v28  ;;  %v10719_v28 = vld [vmem:[#allocation74_spill] sm:$0xff] }
 0x911   :  { %5014 = vpow2.f32 %v4713_v10 }
 0x91b   :  { %v5011_v6 = vpop.eup %5010 }
 0x91c   :  { %v4013_v12 = vadd.f32 1.0, %v5011_v6  ;;  %v10722_v6 = vld [vmem:[#allocation150_spill] sm:$0xff] }
 0x91d   :  { %v5013_v22 = vpop.eup %5012 }
 0x91e   :  { %5016 = vrcp.f32 %v4013_v12  ;;  %v4019_v33 = vadd.f32 1.0, %v5013_v22  ;;  %v5015_v2 = vpop.eup %5014  ;;  %v10724_v12 = vld [vmem:[#allocation161_spill] sm:$0xff] }
 0x91f   :  { %5018 = vtanh.f32 %v4008_v0  ;;  %v4026_v43 = vadd.f32 1.0, %v5015_v2  ;;  %v10725_v22 = vld [vmem:[#allocation77_spill] sm:$0xff]  ;;  %v10728_v2 = vld [vmem:[#allocation78_spill] sm:$0xff] }
 0x920   :  { %5020 = vrcp.f32 %v4019_v33  ;;  %v10726_v33 = vld [vmem:[#allocation141_spill] sm:$0xff] }
 0x929   :  { %v4100_v11 = vpop.f32.mrf.mxu0  ;;  %v4171_v54 = vpop.f32.mrf.mxu1 }
 0x92a   :  { %v4176_v1 = vadd.f32 %v4100_v11, %v10706_v26  ;;  %v4178_v36 = vadd.f32 %v4171_v54, %v10709_v32  ;;  %v10727_v11 = vld [vmem:[#allocation142_spill] sm:$0xff]  ;;  %v10744_v54 = vld [vmem:[#allocation91_spill] sm:$0xff]  ;;  %v10749_v32 = vld [vmem:[#allocation96_spill] sm:$0xff] }
 0x92b   :  { %v5017_v38 = vpop.eup %5016  ;;  %v4102_v25 = vpop.f32.mrf.mxu0  ;;  %v10732_v26 = vld [vmem:[#allocation158_spill] sm:$0xff] }
 0x92c   :  { %v5019_v24 = vpop.eup %5018  ;;  %v4714_v39 = vmul.f32 -1.442695, %v4176_v1  ;;  %v4177_v29 = vadd.f32 %v4102_v25, %v10707_v5  ;;  %v4173_v61 = vpop.f32.mrf.mxu1  ;;  %v10733_v1 = vld [vmem:[#allocation157_spill] sm:$0xff]  ;;  %v10735_v25 = vld [vmem:[#allocation82_spill] sm:$0xff] }
 0x92d   :  { %v5021_v45 = vpop.eup %5020  ;;  %v4030_v44 = vmul.f32 %v5019_v24, %v5017_v38  ;;  %v4179_v46 = vadd.f32 %v4173_v61, %v10708_v57  ;;  %v10734_v38 = vld [vmem:[#allocation81_spill] sm:$0xff]  ;;  %v10736_v24 = vld [vmem:[#allocation83_spill] sm:$0xff]  ;;  %v10747_v57 = vld [vmem:[#allocation94_spill] sm:$0xff] }
 0x92e   :  { %v4029_v41 = vmul.f32 %v5021_v45, %v8862_v27  ;;  %5022 = vpow2.f32 %v4714_v39  ;;  %v4715_v60 = vmul.f32 -1.442695, %v4177_v29  ;;  %v10737_v39 = vld [vmem:[#allocation84_spill] sm:$0xff]  ;;  %v10738_v5 = vld [vmem:[#allocation85_spill] sm:$0xff]  ;;  %v10739_v29 = vld [vmem:[#allocation86_spill] sm:$0xff] }
 0x92f   :  { %v4716_v49 = vmul.f32 -1.442695, %v4179_v46  ;;  %v10740_v45 = vld [vmem:[#allocation87_spill] sm:$0xff]  ;;  %v10746_v61 = vld [vmem:[#allocation93_spill] sm:$0xff] }
 0x930   :  { %5024 = vpow2.f32 %v4715_v60  ;;  %v9178_v47 = vadd.f32 %v4030_v44, %v4029_v41  ;;  %v10742_v44 = vld [vmem:[#allocation89_spill] sm:$0xff]  ;;  %v10743_v41 = vld [vmem:[#allocation90_spill] sm:$0xff]  ;;  %v10745_v60 = vld [vmem:[#allocation92_spill] sm:$0xff] }
 0x931   :  { %5026 = vrcp.f32 %v4026_v43  ;;  %v10741_v43 = vld [vmem:[#allocation88_spill] sm:$0xff]  ;;  %v10748_v46 = vld [vmem:[#allocation95_spill] sm:$0xff] }
 0x932   :  { %5028 = vtanh.f32 %v9178_v47 }
 0x933   :  { %5030 = vtanh.f32 %v4178_v36  ;;  %v10750_v36 = vld [vmem:[#allocation97_spill] sm:$0xff] }
 0x934   :  { %5032 = vpow2.f32 %v4716_v49  ;;  %v10751_v49 = vld [vmem:[#allocation98_spill] sm:$0xff] }
 0x93b   :  { %v5023_v13 = vpop.eup %5022 }
 0x93c   :  { %v4183_v55 = vadd.f32 1.0, %v5023_v13 }
 0x93d   :  { %v5025_v56 = vpop.eup %5024 }
 0x93e   :  { %v5027_v27 = vpop.eup %5026  ;;  %5034 = vrcp.f32 %v4183_v55  ;;  %v4189_v18 = vadd.f32 1.0, %v5025_v56  ;;  %v10752_v55 = vld [vmem:[#allocation99_spill] sm:$0xff]  ;;  %v10753_v56 = vld [vmem:[#allocation100_spill] sm:$0xff] }
 0x93f   :  { %v5029_v50 = vpop.eup %5028 }
 0x940   :  { %5036 = vrcp.f32 %v4189_v18  ;;  %v9183_v48 = vmul.f32 %v5029_v50, %v5027_v27  ;;  %v10754_v18 = vld [vmem:[#allocation101_spill] sm:$0xff]  ;;  %v10755_v50 = vld [vmem:[#allocation102_spill] sm:$0xff] }
 0x942   :  { %4269 = vmatmul.mubr.f32.vlgmr.msra.gmra.mxu0 %v9183_v48  ;;  %4340 = vmatmul.mubr.f32.vlgmr.msra.gmra.mxu1 %v9183_v48 }
 0x943   :  { %4347 = vmatpush1.msra.mxu0 %v8871_v52  ;;  %4418 = vmatpush1.msra.mxu1 %v8874_v59  ;;  %v10712_v52 = vld [vmem:[#allocation67_spill] sm:$0xff]  ;;  %v5031_v59 = vpop.eup %5030 }
 0x944   :  { %4348 = vmatprep.subr.mxu0 %v8877_v58  ;;  %4419 = vmatprep.subr.mxu1 %v8880_v4  ;;  %v10713_v58 = vld [vmem:[#allocation68_spill] sm:$0xff]  ;;  %v10714_v4 = vld [vmem:[#allocation69_spill] sm:$0xff] }
 0x945   :  { %4349 = vmatpush1.msra.mxu0 %v8883_v63  ;;  %4420 = vmatpush1.msra.mxu1 %v8886_v62  ;;  %v5033_v63 = vpop.eup %5032  ;;  %v10716_v62 = vld [vmem:[#allocation71_spill] sm:$0xff] }
 0x946   :  { %4350 = vmatprep.subr.mxu0 %v8889_v51  ;;  %4421 = vmatprep.subr.mxu1 %v8892_v3  ;;  %v10717_v3 = vld [vmem:[#allocation72_spill] sm:$0xff]  ;;  %v4196_v21 = vadd.f32 1.0, %v5033_v63 }
 0x947   :  { %4351 = vmatpush1.msra.mxu0 %v8895_v42  ;;  %4422 = vmatpush1.msra.mxu1 %v10710_v30  ;;  %v10756_v30 = vld [vmem:[#allocation103_spill] sm:$0xff]  ;;  %v10759_v63 = vld [vmem:[#allocation20_spill] sm:$0xff] }
 0x948   :  { %4352 = vmatprep.subr.mxu0 %v10711_v34  ;;  %4423 = vmatprep.subr.mxu1 %v10712_v52  ;;  %5038 = vrcp.f32 %v4196_v21  ;;  %v10757_v52 = vld [vmem:[#allocation104_spill] sm:$0xff]  ;;  %v4519_v21 = vld [vmem:[#allocation13 + $0x18] sm:$0xff] }
 0x949   :  { %4353 = vmatpush1.msra.mxu0 %v10713_v58  ;;  %4424 = vmatpush1.msra.mxu1 %v10714_v4  ;;  %v10758_v58 = vld [vmem:[#allocation105_spill] sm:$0xff]  ;;  %v4530_v4 = vld [vmem:[#allocation13 + $0x70] sm:$0xff] }
 0x94a   :  { %4354 = vmatprep.subr.mxu0 %v10715_v16  ;;  %4425 = vmatprep.subr.mxu1 %v10716_v62  ;;  %v4528_v16 = vld [vmem:[#allocation13 + $0x60] sm:$0xff]  ;;  %v4527_v62 = vld [vmem:[#allocation13 + $0x58] sm:$0xff] }
 0x94b   :  { %v5035_v51 = vpop.eup %5034  ;;  %4355 = vmatpush1.msra.mxu0 %v10717_v3  ;;  %4426 = vmatpush1.msra.mxu1 %v8922_v53  ;;  %v10723_v53 = vld [vmem:[#allocation162_spill] sm:$0xff]  ;;  %v4524_v3 = vld [vmem:[#allocation13 + $0x40] sm:$0xff] }
 0x94c   :  { %v4200_v42 = vmul.f32 %v5035_v51, %v5031_v59  ;;  %4356 = vmatprep.subr.mxu0 %v10718_v9  ;;  %4427 = vmatprep.subr.mxu1 %v10719_v28  ;;  %v4531_v59 = vld [vmem:[#allocation13 + $0x78] sm:$0xff]  ;;  %v4526_v51 = vld [vmem:[#allocation13 + $0x50] sm:$0xff]  ;;  %v4521_v28 = vld [vmem:[#allocation13 + $0x28] sm:$0xff] }
 0x94d   :  { %v5037_v7 = vpop.eup %5036  ;;  %4357 = vmatpush1.msra.mxu0 %v10720_v31  ;;  %4428 = vmatpush1.msra.mxu1 %v10721_v14  ;;  %v4522_v9 = vld [vmem:[#allocation13 + $0x30] sm:$0xff]  ;;  %v4517_v14 = vld [vmem:[#allocation13 + $0x8] sm:$0xff] }
 0x94e   :  { %v4199_v10 = vmul.f32 %v5037_v7, %v8950_v19  ;;  %4358 = vmatprep.subr.mxu0 %v8938_v17  ;;  %4429 = vmatprep.subr.mxu1 %v8941_v40  ;;  %v10729_v19 = vld [vmem:[#allocation79_spill] sm:$0xff]  ;;  %v10730_v40 = vld [vmem:[#allocation145_spill] sm:$0xff]  ;;  %v10731_v17 = vld [vmem:[#allocation146_spill] sm:$0xff] }
 0x94f   :  { %4359 = vmatpush1.msra.mxu0 %v10722_v6  ;;  %4430 = vmatpush1.msra.mxu1 %v10723_v53  ;;  %v4520_v7 = vld [vmem:[#allocation13 + $0x20] sm:$0xff]  ;;  %v4518_v31 = vld [vmem:[#allocation13 + $0x10] sm:$0xff] }
 0x950   :  { %v4201_v0 = vadd.f32 %v4200_v42, %v4199_v10  ;;  %4360 = vmatprep.subr.mxu0 %v10724_v12  ;;  %4431 = vmatprep.subr.mxu1 %v10725_v22  ;;  %v4523_v42 = vld [vmem:[#allocation13 + $0x38] sm:$0xff]  ;;  %v4516_v10 = vld [vmem:[#allocation13] sm:$0xff]  ;;  %v10761_v53 = vld [vmem:[#allocation138_spill] sm:$0xff] }
 0x951   :  { %4361 = vmatpush1.msra.mxu0 %v10726_v33  ;;  %4432 = vmatpush1.msra.mxu1 %v10727_v11  ;;  %v10760_v6 = vld [vmem:[#allocation80_spill] sm:$0xff]  ;;  %v10763_v12 = vld [vmem:[#allocation129_spill] sm:$0xff] }
 0x952   :  { %4362 = vmatprep.subr.mxu0 %v10728_v2  ;;  %4433 = vmatprep.subr.mxu1 %v10729_v19  ;;  %5040 = vtanh.f32 %v4201_v0  ;;  %v10762_v0 = vld [vmem:[#allocation76_spill] sm:$0xff] }
 0x953   :  { %4363 = vmatpush1.msra.mxu0 %v10730_v40  ;;  %4434 = vmatpush1.msra.mxu1 %v10731_v17  ;;  %v10764_v22 = vld [vmem:[#allocation64_spill] sm:$0xff] }
 0x954   :  { %4364 = vmatprep.subr.mxu0 %v10732_v26  ;;  %4435 = vmatprep.subr.mxu1 %v10733_v1 }
 0x955   :  { %4365 = vmatpush1.msra.mxu0 %v10734_v38  ;;  %4436 = vmatpush1.msra.mxu1 %v10735_v25  ;;  %v5039_v13 = vpop.eup %5038 }
 0x956   :  { %4366 = vmatprep.subr.mxu0 %v10736_v24  ;;  %4437 = vmatprep.subr.mxu1 %v10737_v39 }
 0x957   :  { %4367 = vmatpush1.msra.mxu0 %v10738_v5  ;;  %4438 = vmatpush1.msra.mxu1 %v10739_v29 }
 0x958   :  { %4368 = vmatprep.subr.mxu0 %v10740_v45  ;;  %4439 = vmatprep.subr.mxu1 %v10741_v43 }
 0x959   :  { %4369 = vmatpush1.msra.mxu0 %v10742_v44  ;;  %4440 = vmatpush1.msra.mxu1 %v10743_v41 }
 0x95a   :  { %4370 = vmatprep.subr.mxu0 %v10744_v54  ;;  %4441 = vmatprep.subr.mxu1 %v10745_v60 }
 0x95b   :  { %4371 = vmatpush1.msra.mxu0 %v10746_v61  ;;  %4442 = vmatpush1.msra.mxu1 %v10747_v57 }
 0x95c   :  { %4372 = vmatprep.subr.mxu0 %v10748_v46  ;;  %4443 = vmatprep.subr.mxu1 %v10749_v32 }
 0x95d   :  { %4373 = vmatpush1.msra.mxu0 %v10750_v36  ;;  %4444 = vmatpush1.msra.mxu1 %v10751_v49 }
 0x95e   :  { %4374 = vmatprep.subr.mxu0 %v10752_v55  ;;  %4445 = vmatprep.subr.mxu1 %v10753_v56 }
 0x95f   :  { %v5041_v27 = vpop.eup %5040  ;;  %4375 = vmatpush1.msra.mxu0 %v10754_v18  ;;  %4446 = vmatpush1.msra.mxu1 %v9046_v23  ;;  %v4529_v23 = vld [vmem:[#allocation13 + $0x68] sm:$0xff] }
 0x960   :  { %4376 = vmatprep.subr.mxu0 %v10755_v50  ;;  %4447 = vmatprep.subr.mxu1 %v10756_v30  ;;  %v4203_v34 = vmul.f32 %v5041_v27, %v5039_v13 }
 0x961   :  { %4377 = vmatpush1.msra.mxu0 %v10757_v52  ;;  %4410 = vmatprep.mubr.f32.mxu0 %v9822_v37 }
 0x962   :  { %4448 = vmatpush1.msra.mxu1 %v10758_v58  ;;  %4481 = vmatprep.mubr.f32.mxu1 %v9822_v37  ;;  %v4525_v37 = vld [vmem:[#allocation13 + $0x48] sm:$0xff] }
 0x963   :  { %4411 = vmatmul.mubr.f32.vlgmr.msra.gmra.mxu0 %v4203_v34  ;;  %4482 = vmatmul.mubr.f32.vlgmr.msra.gmra.mxu1 %v4203_v34 }
 0x964   :  { %4745 = vmatprep.subr.mxu0 %v4531_v59  ;;  %4777 = vmatprep.mubr.f32.mxu0 %v10759_v63 }
 0x965   :  { %4746 = vmatpush3.msra.mxu0 %v4531_v59 }
 0x966   :  { %4747 = vmatprep.subr.mxu0 %v4530_v4 }
 0x967   :  { %4748 = vmatpush3.msra.mxu0 %v4530_v4 }
 0x968   :  { %4749 = vmatprep.subr.mxu0 %v4529_v23 }
 0x969   :  { %4750 = vmatpush3.msra.mxu0 %v4529_v23 }
 0x96a   :  { %4751 = vmatprep.subr.mxu0 %v4528_v16 }
 0x96b   :  { %4752 = vmatpush3.msra.mxu0 %v4528_v16 }
 0x96c   :  { %4753 = vmatprep.subr.mxu0 %v4527_v62 }
 0x96d   :  { %4754 = vmatpush3.msra.mxu0 %v4527_v62 }
 0x96e   :  { %4755 = vmatprep.subr.mxu0 %v4526_v51 }
 0x96f   :  { %4756 = vmatpush3.msra.mxu0 %v4526_v51 }
 0x970   :  { %4757 = vmatprep.subr.mxu0 %v4525_v37 }
 0x971   :  { %4758 = vmatpush3.msra.mxu0 %v4525_v37 }
 0x972   :  { %4759 = vmatprep.subr.mxu0 %v4524_v3 }
 0x973   :  { %4760 = vmatpush3.msra.mxu0 %v4524_v3 }
 0x974   :  { %4761 = vmatprep.subr.mxu0 %v4523_v42 }
 0x975   :  { %4762 = vmatpush3.msra.mxu0 %v4523_v42 }
 0x976   :  { %4763 = vmatprep.subr.mxu0 %v4522_v9 }
 0x977   :  { %4764 = vmatpush3.msra.mxu0 %v4522_v9 }
 0x978   :  { %4765 = vmatprep.subr.mxu0 %v4521_v28 }
 0x979   :  { %4766 = vmatpush3.msra.mxu0 %v4521_v28 }
 0x97a   :  { %4767 = vmatprep.subr.mxu0 %v4520_v7 }
 0x97b   :  { %4768 = vmatpush3.msra.mxu0 %v4520_v7 }
 0x97c   :  { %4769 = vmatprep.subr.mxu0 %v4519_v21 }
 0x97d   :  { %4770 = vmatpush3.msra.mxu0 %v4519_v21 }
 0x97e   :  { %4771 = vmatprep.subr.mxu0 %v4518_v31 }
 0x97f   :  { %4772 = vmatpush3.msra.mxu0 %v4518_v31 }
 0x980   :  { %4773 = vmatprep.subr.mxu0 %v4517_v14 }
 0x981   :  { %4774 = vmatpush3.msra.mxu0 %v4517_v14 }
 0x982   :  { %4775 = vmatprep.subr.mxu0 %v4516_v10 }
 0x983   :  { %4776 = vmatpush3.msra.mxu0 %v4516_v10 }
 0x984   :  { %4778 = vmatmul.mubr.f32.vlgmr.msra.gmra.mxu0 %v10760_v6 }
 0x985   :  { %4780 = vmatprep.mubr.f32.mxu0 %v10761_v53 }
 0x988   :  { %4781 = vmatmul.mubr.f32.gmra.mxu0 %v10762_v0 }
 0x989   :  { %4783 = vmatprep.mubr.f32.mxu0 %v10763_v12 }
 0x98c   :  { %4784 = vmatmul.mubr.f32.gmra.mxu0 %v10764_v22 }
 0x98d   :  { %4786 = vmatprep.mubr.f32.mxu0 %v9183_v48 }
 0xa02   :  { %v4270_v33 = vpop.f32.mrf.mxu0  ;;  %v4341_v11 = vpop.f32.mrf.mxu1 }
 0xa04   :  { %v4272_v2 = vpop.f32.mrf.mxu0  ;;  %v4343_v40 = vpop.f32.mrf.mxu1 }
 0xa23   :  { %v4412_v19 = vpop.f32.mrf.mxu0  ;;  %v4483_v38 = vpop.f32.mrf.mxu1 }
 0xa24   :  { %v4413_v17 = vadd.f32 %v4412_v19, %v4270_v33  ;;  %v4484_v43 = vadd.f32 %v4483_v38, %v4341_v11 }
 0xa25   :  { %v4414_v26 = vpop.f32.mrf.mxu0  ;;  %v4485_v29 = vpop.f32.mrf.mxu1 }
 0xa26   :  { %v4488_v1 = vadd.f32 %v4413_v17, %v6758_v15  ;;  %v4415_v25 = vadd.f32 %v4414_v26, %v4272_v2  ;;  %v4486_v45 = vadd.f32 %v4485_v29, %v4343_v40  ;;  %v4490_v54 = vadd.f32 %v4484_v43, %v6773_v8 }
 0xa28   :  { %v4717_v24 = vmul.f32 -1.442695, %v4488_v1  ;;  %v4489_v39 = vadd.f32 %v4415_v25, %v6762_v35  ;;  %v4491_v48 = vadd.f32 %v4486_v45, %v6768_v20  ;;  %v4720_v35 = vld [vmem:[%s9281_s8] ss:$0 sm:$0xff]  ;;  %s5848_s8 = smov [#allocation14]  }
 0xa29   :  { %s4657_s13 = sshll.u32 %s5848_s8, 4  ;;  %s4658_s13 = int_to_ptr.vmem [resolvable:$true] %s4657_s13 }
 0xa2a   :  { %5042 = vpow2.f32 %v4717_v24  ;;  %v4718_v5 = vmul.f32 -1.442695, %v4489_v39  ;;  %v4719_v44 = vmul.f32 -1.442695, %v4491_v48  ;;  %s5806_s23 = scalar_lea.vmem %s4658_s13, 1024  ;;  %p5811_p8 = scmp.lt.s32.totalorder %s4658_s13, %s4658_s13 }
 0xa2b   :  { %p5807_p7 = scmp.ne.s32.totalorder %s4658_s13, %s5806_s23  ;;  %p5812_p9 = scmp.lt.s32.totalorder %s5806_s23, %s5806_s23 }
 0xa2c   :  { %5044 = vpow2.f32 %v4718_v5 }
 0xa2d   :  { %5046 = vpow2.f32 %v4719_v44  ;;  %p5813_p10 = por %p5812_p9, %p5811_p8 }
 0xa2f   :  { %p5814_p11 = pnand %p5813_p10, %p5807_p7 }
 0xa37   :  { %v5043_v41 = vpop.eup %5042 }
 0xa38   :  { %v4495_v60 = vadd.f32 1.0, %v5043_v41 }
 0xa39   :  { %v5045_v61 = vpop.eup %5044 }
 0xa3a   :  { %5048 = vrcp.f32 %v4495_v60  ;;  %v4501_v15 = vadd.f32 1.0, %v5045_v61  ;;  %v5047_v32 = vpop.eup %5046 }
 0xa3b   :  { %5050 = vtanh.f32 %v4490_v54  ;;  %v4508_v56 = vadd.f32 1.0, %v5047_v32 }
 0xa3c   :  { %5052 = vrcp.f32 %v4501_v15 }
 0xa3d   :  { %5054 = vrcp.f32 %v4508_v56 }
 0xa44   :  { %v4779_v57 = vpop.f32.mrf.mxu0 }
 0xa45   :  { %v4611_v46 = vadd.f32 %v4779_v57, %v4720_v35 }
 0xa46   :  { %v4605_v20 = vpop.f32.mrf.mxu0 }
 0xa47   :  { %v5049_v36 = vpop.eup %5048  ;;  %4645 = vst [vmem:[#allocation14 + $0x8] sm:$0xff] %v4611_v46  ;;  %v4606_v49 = vadd.f32 %v4720_v35, %v4605_v20 }
 0xa48   :  { %v5051_v13 = vpop.eup %5050  ;;  %v4782_v8 = vpop.f32.mrf.mxu0 }
 0xa49   :  { %v5053_v55 = vpop.eup %5052  ;;  %4644 = vst [vmem:[#allocation14] sm:$0xff] %v4606_v49  ;;  %v4621_v27 = vadd.f32 %v4782_v8, %v4720_v35  ;;  %v4512_v18 = vmul.f32 %v5051_v13, %v5049_v36 }
 0xa4a   :  { %v4615_v50 = vpop.f32.mrf.mxu0  ;;  %v4511_v30 = vmul.f32 %v5053_v55, %v9178_v47  ;;  %v5055_v23 = vpop.eup %5054 }
 0xa4b   :  { %4647 = vst [vmem:[#allocation14 + $0x18] sm:$0xff] %v4621_v27  ;;  %v4616_v34 = vadd.f32 %v4720_v35, %v4615_v50 }
 0xa4c   :  { %v4785_v52 = vpop.f32.mrf.mxu0  ;;  %v4513_v59 = vadd.f32 %v4512_v18, %v4511_v30 }
 0xa4d   :  { %4646 = vst [vmem:[#allocation14 + $0x10] sm:$0xff] %v4616_v34  ;;  %v4631_v58 = vadd.f32 %v4785_v52, %v4720_v35 }
 0xa4e   :  { %v4625_v4 = vpop.f32.mrf.mxu0  ;;  %5056 = vtanh.f32 %v4513_v59 }
 0xa4f   :  { %4649 = vst [vmem:[#allocation14 + $0x28] sm:$0xff] %v4631_v58  ;;  %v4626_v63 = vadd.f32 %v4720_v35, %v4625_v4 }
 0xa51   :  { %4648 = vst [vmem:[#allocation14 + $0x20] sm:$0xff] %v4626_v63 }
 0xa5b   :  { %v5057_v16 = vpop.eup %5056 }
 0xa5c   :  { %v4515_v62 = vmul.f32 %v5057_v16, %v5055_v23 }
 0xa5e   :  { %4787 = vmatmul.mubr.f32.gmra.mxu0 %v4515_v62 }
 0xb1e   :  { %v4788_v51 = vpop.f32.mrf.mxu0 }
 0xb1f   :  { %v4641_v47 = vadd.f32 %v4788_v51, %v4720_v35 }
 0xb20   :  { %v4635_v37 = vpop.f32.mrf.mxu0 }
 0xb21   :  { %4651 = vst [vmem:[#allocation14 + $0x38] sm:$0xff] %v4641_v47  ;;  %v4636_v3 = vadd.f32 %v4720_v35, %v4635_v37 }
 0xb23   :  { %4650 = vst [vmem:[#allocation14 + $0x30] sm:$0xff] %v4636_v3 }
 0xb24   :  { %5817 = shalt.err (!%p5814_p11)
}
 0xb25   :  { %4663 = dma.vmem_to_hbm [thread:$0]  %s4658_s13, 1024, %s9282_s9, [#allocation4], %s5842_s3, %s5842_s3, %s5843_s28  }
 0xb26   :  { %5834 = dma.done.wait [#allocation4], 1024  }
 0xb27   :  { %5835 = vsyncadd [#allocation4], 4294966272 }
 0xb28   :  { %4667 = vsyncpa [#allocation3], 1 }
 0xb29   :  { %4668 = vsyncpa [#allocation6], 1 }
 0xb2a   :  { %4669 = vsyncpa [#allocation9], 1 }
 0xb2b   :  { %4670 = vsyncpa [#allocation12], 1 }
 0xb2c   :  { %4671 = vsyncpa [#allocation4], 1 }

</bundles_post_ra>
